<compile_context>
chip_gen: v7x
topology: tpu7x:2x2x1
jax: 0.10.0
libtpu: 0.0.40
codegen_flags: <defaults>
</compile_context>

<pallas_src>
import jax
import jax.numpy as jnp
from jax.experimental import pallas as pl
from jax.experimental.pallas import tpu as pltpu

_BN_EPS = 1e-5

_VMEM_LIMIT_CACHE = None


def _vmem_limit_bytes():
    """Generation-dependent scoped-VMEM limit (v7x ~48MiB, v5e/v6e ~96MiB)."""
    global _VMEM_LIMIT_CACHE
    if _VMEM_LIMIT_CACHE is None:
        try:
            cap = int(pltpu.get_tpu_info().vmem_capacity_bytes)
        except Exception:
            cap = 64 * 1024 * 1024
        _VMEM_LIMIT_CACHE = min((cap * 3) // 4, 100 * 1024 * 1024)
    return _VMEM_LIMIT_CACHE


def _compiler_params():
    return pltpu.CompilerParams(
        dimension_semantics=("parallel",),      # megacore sharding over batch
        vmem_limit_bytes=_vmem_limit_bytes(),
    )


# ---------------------------------------------------------------------------
# In-kernel helpers
# ---------------------------------------------------------------------------

def _zero_halo(pad_ref):
    """Zero only the 1-pixel border of the (h+2, w+2, c) halo scratch."""
    hp, wp, c = pad_ref.shape
    row = jnp.zeros((1, wp, c), pad_ref.dtype)
    col = jnp.zeros((hp, 1, c), pad_ref.dtype)
    pad_ref[0:1, :, :] = row
    pad_ref[hp - 1:hp, :, :] = row
    pad_ref[:, 0:1, :] = col
    pad_ref[:, wp - 1:wp, :] = col


def _conv3x3_acc(pad_ref, w_ref):
    """3x3 conv as 9 per-tap accumulating MXU dots; returns (h*w, cout) fp32."""
    hp, wp, cin = pad_ref.shape
    h, w = hp - 2, wp - 2
    acc = None
    t = 0
    for ky in range(3):
        for kx in range(3):
            slab = pad_ref[ky:ky + h, kx:kx + w, :].reshape(h * w, cin)
            contrib = jnp.dot(slab, w_ref[t],
                              preferred_element_type=jnp.float32)
            acc = contrib if acc is None else acc + contrib
            t += 1
    return acc


def _partial_stats(acc):
    """Per-channel (sum, centered sum-of-squares) of (rows, C) fp32 -> (1,2,C)."""
    rows = acc.shape[0]
    s = jnp.sum(acc, axis=0, keepdims=True)
    mu = s * (1.0 / rows)
    ss = jnp.sum((acc - mu) ** 2, axis=0, keepdims=True)
    return jnp.concatenate([s, ss], axis=0)[None]


# ---------------------------------------------------------------------------
# Kernels
# ---------------------------------------------------------------------------

def conv1_stats_kernel(x_ref, w_ref, out_ref, stats_ref, pad_ref):
    """conv1: in-kernel NCHW->NHWC + bf16 cast, 3x3 conv, BN1 partial stats."""
    hp, wp, cin = pad_ref.shape
    h, w = hp - 2, wp - 2
    _zero_halo(pad_ref)
    # (cin, h*w) fp32 -> (h*w, cin) -> (h, w, cin) bf16 into the halo interior.
    pad_ref[1:h + 1, 1:w + 1, :] = (
        jnp.transpose(x_ref[0]).reshape(h, w, cin).astype(pad_ref.dtype))
    acc = _conv3x3_acc(pad_ref, w_ref)              # (h*w, cout) fp32
    stats_ref[...] = _partial_stats(acc)
    # Store channel-first (cout, h*w): lane-dense along h*w, bf16 in HBM.
    out_ref[...] = jnp.transpose(acc).astype(out_ref.dtype)[None]


def bn_relu_conv2_stats_kernel(y_ref, scale_ref, shift_ref, w_ref,
                               out_ref, stats_ref, pad_ref):
    """bn1 (folded scale/shift) -> relu -> conv2 + BN2 partial stats (fused)."""
    hp, wp, c1 = pad_ref.shape
    h, w = hp - 2, wp - 2
    # BN1 + ReLU in fp32 on the (c1, h*w) bf16 intermediate.
    hact = jnp.maximum(
        y_ref[0].astype(jnp.float32) * scale_ref[...] + shift_ref[...], 0.0)
    _zero_halo(pad_ref)
    pad_ref[1:h + 1, 1:w + 1, :] = (
        jnp.transpose(hact).reshape(h, w, c1).astype(pad_ref.dtype))
    acc = _conv3x3_acc(pad_ref, w_ref)              # (h*w, c2) fp32
    stats_ref[...] = _partial_stats(acc)
    out_ref[...] = jnp.transpose(acc).astype(out_ref.dtype)[None]


def bn_add_relu_kernel(y_ref, scale_ref, shift_ref, id_ref, out_ref):
    """bn2 (folded scale/shift) + identity residual + relu, channel-first."""
    z = (y_ref[0].astype(jnp.float32) * scale_ref[...] + shift_ref[...]
         + id_ref[0])
    out_ref[...] = jnp.maximum(z, 0.0)[None]


# ---------------------------------------------------------------------------
# pallas_call wrappers (grid over batch, one image per step)
# ---------------------------------------------------------------------------

def _conv1_call(x_flat, w_taps, h, w):
    n, cin, hw = x_flat.shape
    cout = w_taps.shape[-1]
    return pl.pallas_call(
        conv1_stats_kernel,
        grid=(n,),
        in_specs=[
            pl.BlockSpec((1, cin, hw), lambda i: (i, 0, 0)),
            pl.BlockSpec((9, cin, cout), lambda i: (0, 0, 0)),
        ],
        out_specs=(
            pl.BlockSpec((1, cout, hw), lambda i: (i, 0, 0)),
            pl.BlockSpec((1, 2, cout), lambda i: (i, 0, 0)),
        ),
        out_shape=(
            jax.ShapeDtypeStruct((n, cout, hw), jnp.bfloat16),
            jax.ShapeDtypeStruct((n, 2, cout), jnp.float32),
        ),
        scratch_shapes=[pltpu.VMEM((h + 2, w + 2, cin), jnp.bfloat16)],
        compiler_params=_compiler_params(),
    )(x_flat, w_taps)


def _conv2_call(y1, scale1, shift1, w_taps, h, w):
    n, c1, hw = y1.shape
    c2 = w_taps.shape[-1]
    return pl.pallas_call(
        bn_relu_conv2_stats_kernel,
        grid=(n,),
        in_specs=[
            pl.BlockSpec((1, c1, hw), lambda i: (i, 0, 0)),
            pl.BlockSpec((c1, 1), lambda i: (0, 0)),
            pl.BlockSpec((c1, 1), lambda i: (0, 0)),
            pl.BlockSpec((9, c1, c2), lambda i: (0, 0, 0)),
        ],
        out_specs=(
            pl.BlockSpec((1, c2, hw), lambda i: (i, 0, 0)),
            pl.BlockSpec((1, 2, c2), lambda i: (i, 0, 0)),
        ),
        out_shape=(
            jax.ShapeDtypeStruct((n, c2, hw), jnp.bfloat16),
            jax.ShapeDtypeStruct((n, 2, c2), jnp.float32),
        ),
        scratch_shapes=[pltpu.VMEM((h + 2, w + 2, c1), jnp.bfloat16)],
        compiler_params=_compiler_params(),
    )(y1, scale1, shift1, w_taps)


def _bn_add_relu_call(y2, scale2, shift2, identity):
    n, c2, hw = y2.shape
    return pl.pallas_call(
        bn_add_relu_kernel,
        grid=(n,),
        in_specs=[
            pl.BlockSpec((1, c2, hw), lambda i: (i, 0, 0)),
            pl.BlockSpec((c2, 1), lambda i: (0, 0)),
            pl.BlockSpec((c2, 1), lambda i: (0, 0)),
            pl.BlockSpec((1, c2, hw), lambda i: (i, 0, 0)),
        ],
        out_specs=pl.BlockSpec((1, c2, hw), lambda i: (i, 0, 0)),
        out_shape=jax.ShapeDtypeStruct((n, c2, hw), jnp.float32),
        compiler_params=_compiler_params(),
    )(y2, scale2, shift2, identity)


# ---------------------------------------------------------------------------
# Wrapper-side (tiny) math + forward (NCHW in / NCHW out)
# ---------------------------------------------------------------------------

def _oihw_to_taps(w_oihw):
    """(Cout, Cin, 3, 3) -> (9, Cin, Cout) ky-major taps, bf16 for the MXU."""
    cout, cin = w_oihw.shape[0], w_oihw.shape[1]
    w = jnp.transpose(w_oihw, (2, 3, 1, 0))        # (ky, kx, cin, cout)
    return w.reshape(9, cin, cout).astype(jnp.bfloat16)


def _bn_fold(stats, gamma, beta, rows_per_tile, total_count):
    """Per-tile (sum, centered sumsq) -> folded (scale, shift) via Chan combine."""
    stats = stats.astype(jnp.float32)
    tile_sum = stats[:, 0, :]                      # (n, C)
    tile_m2 = stats[:, 1, :]                       # (n, C) centered
    tile_mean = tile_sum / rows_per_tile
    mean = jnp.sum(tile_sum, axis=0) / total_count
    m2 = jnp.sum(tile_m2, axis=0) + rows_per_tile * jnp.sum(
        (tile_mean - mean[None, :]) ** 2, axis=0)
    var = m2 / total_count                         # biased batch variance
    inv = jax.lax.rsqrt(var + _BN_EPS)
    scale = gamma.astype(jnp.float32) * inv
    shift = beta.astype(jnp.float32) - mean * scale
    return scale.reshape(-1, 1), shift.reshape(-1, 1)


@jax.jit
def basic_block_forward(x_nchw, w1_oihw, g1, b1, w2_oihw, g2, b2):
    """BasicBlock forward (stride=1, downsample=None).  (N,C,H,W)->(N,C,H,W)."""
    n, cin, h, w = x_nchw.shape
    c2 = w2_oihw.shape[0]
    assert cin == c2, "identity residual needs in_channels == out_channels*expansion"

    # Free metadata-only reshape: NCHW -> (N, C, H*W); no transpose, no cast pass.
    x_flat = x_nchw.reshape(n, cin, h * w).astype(jnp.float32)
    rows = float(h * w)
    count = float(n * h * w)

    # conv1 (+ BN1 partial statistics)
    y1, stats1 = _conv1_call(x_flat, _oihw_to_taps(w1_oihw), h, w)
    scale1, shift1 = _bn_fold(stats1, g1, b1, rows, count)

    # bn1 -> relu -> conv2 (+ BN2 partial statistics), one fused kernel
    y2, stats2 = _conv2_call(y1, scale1, shift1, _oihw_to_taps(w2_oihw), h, w)
    scale2, shift2 = _bn_fold(stats2, g2, b2, rows, count)

    # bn2 -> + identity -> relu
    out = _bn_add_relu_call(y2, scale2, shift2, x_flat)
    return out.reshape(n, c2, h, w)                # free split reshape


# ---------------------------------------------------------------------------
# Pure-JAX reference and self-test
# ---------------------------------------------------------------------------

def _reference_forward(x, w1, g1, b1, w2, g2, b2, match_kernel=False):
    """NCHW lax-conv reference.  match_kernel=True mimics the kernel's bf16
    rounding of matmul operands and of the stored intermediates."""
    f32 = jnp.float32

    def rb(v):
        return v.astype(jnp.bfloat16).astype(f32) if match_kernel else v

    def conv(xx, ww):
        return jax.lax.conv_general_dilated(
            rb(xx), rb(ww), window_strides=(1, 1), padding=((1, 1), (1, 1)),
            dimension_numbers=("NCHW", "OIHW", "NCHW"),
            precision=jax.lax.Precision.HIGHEST)

    def bn_scale_shift(y, g, b):
        mean = y.mean(axis=(0, 2, 3))
        var = y.var(axis=(0, 2, 3))
        scale = g * jax.lax.rsqrt(var + _BN_EPS)
        shift = b - mean * scale
        return scale.reshape(1, -1, 1, 1), shift.reshape(1, -1, 1, 1)

    y1 = conv(x, w1)
    s1, t1 = bn_scale_shift(y1, g1, b1)
    hid = jnp.maximum(rb(y1) * s1 + t1, 0.0)
    y2 = conv(hid, w2)
    s2, t2 = bn_scale_shift(y2, g2, b2)
    return jnp.maximum(rb(y2) * s2 + t2 + x, 0.0)


if __name__ == "__main__":
    # Small shapes consistent with the module (in_channels == out_channels *
    # expansion so the identity residual is valid with downsample=None).
    N, C, H, W = 2, 4, 16, 16
    expansion = 1

    key = jax.random.PRNGKey(0)
    kx, kw1, kw2 = jax.random.split(key, 3)

    x = jax.random.normal(kx, (N, C, H, W), jnp.float32)
    w1 = 0.1 * jax.random.normal(kw1, (C, C, 3, 3), jnp.float32)
    w2 = 0.1 * jax.random.normal(kw2, (C * expansion, C, 3, 3), jnp.float32)
    # BatchNorm2d default init: weight=1, bias=0 (training-mode batch stats).
    g1 = jnp.ones((C,), jnp.float32)
    b1 = jnp.zeros((C,), jnp.float32)
    g2 = jnp.ones((C * expansion,), jnp.float32)
    b2 = jnp.zeros((C * expansion,), jnp.float32)

    out = jax.block_until_ready(basic_block_forward(x, w1, g1, b1, w2, g2, b2))
    assert out.shape == (N, C * expansion, H, W), out.shape

    # Tight check against a precision-matched (bf16 operands + bf16-stored
    # intermediates) reference.
    ref_tight = _reference_forward(x, w1, g1, b1, w2, g2, b2, match_kernel=True)
    err_tight = float(jnp.max(jnp.abs(out - ref_tight)))
    assert jnp.allclose(out, ref_tight, atol=1e-2, rtol=1e-2), err_tight

    # Loose check against the full-fp32 reference.
    ref_f32 = _reference_forward(x, w1, g1, b1, w2, g2, b2, match_kernel=False)
    err_loose = float(jnp.max(jnp.abs(out - ref_f32)))
    assert jnp.allclose(out, ref_f32, atol=2e-1, rtol=2e-1), err_loose

    print("KERNEL_OK")
</pallas_src>

<mosaic_0001>
module attributes {stable_mosaic.version = 11 : i64} {
  func.func @conv1_stats_kernel(%arg0: i32, %arg1: memref<1x4x256xf32, #tpu.memory_space<vmem>>, %arg2: memref<9x4x4xbf16, #tpu.memory_space<vmem>>, %arg3: memref<1x4x256xbf16, #tpu.memory_space<vmem>>, %arg4: memref<1x2x4xf32, #tpu.memory_space<vmem>>, %arg5: memref<18x18x4xbf16, #tpu.memory_space<vmem>>) attributes {dimension_semantics = [#tpu.dimension_semantics<parallel>], iteration_bounds = array<i64: 2>, scalar_prefetch = 0 : i64, scratch_operands = 1 : i64, tpu.core_type = #tpu.core_type<tc>, window_params = [{transform_indices = @transform_0, window_bounds = array<i64: 1, 4, 256>}, {pipeline_mode = #tpu.pipeline_mode<synchronous>, transform_indices = @transform_1, window_bounds = array<i64: 9, 4, 4>}, {transform_indices = @transform_2, window_bounds = array<i64: 1, 4, 256>}, {transform_indices = @transform_3, window_bounds = array<i64: 1, 2, 4>}]} {
    %cst = arith.constant 0.000000e+00 : bf16
    %0 = vector.broadcast %cst : bf16 to vector<1x18x4xbf16>
    %cst_0 = arith.constant 0.000000e+00 : bf16
    %1 = vector.broadcast %cst_0 : bf16 to vector<18x1x4xbf16>
    %c0 = arith.constant 0 : index
    %c0_1 = arith.constant 0 : index
    %c0_2 = arith.constant 0 : index
    %2 = vector.load %arg5[%c0, %c0_1, %c0_2] : memref<18x18x4xbf16, #tpu.memory_space<vmem>>, vector<1x18x4xbf16>
    tpu.vector_store %arg5[%c0, %c0_1, %c0_2], %0 {strides = array<i32>} : memref<18x18x4xbf16, #tpu.memory_space<vmem>>, vector<1x18x4xbf16>,
    %c17 = arith.constant 17 : index
    %c0_3 = arith.constant 0 : index
    %c0_4 = arith.constant 0 : index
    %3 = vector.load %arg5[%c17, %c0_3, %c0_4] : memref<18x18x4xbf16, #tpu.memory_space<vmem>>, vector<1x18x4xbf16>
    tpu.vector_store %arg5[%c17, %c0_3, %c0_4], %0 {strides = array<i32>} : memref<18x18x4xbf16, #tpu.memory_space<vmem>>, vector<1x18x4xbf16>,
    %c0_5 = arith.constant 0 : index
    %c0_6 = arith.constant 0 : index
    %c0_7 = arith.constant 0 : index
    %4 = vector.load %arg5[%c0_5, %c0_6, %c0_7] : memref<18x18x4xbf16, #tpu.memory_space<vmem>>, vector<18x1x4xbf16>
    tpu.vector_store %arg5[%c0_5, %c0_6, %c0_7], %1 {strides = array<i32>} : memref<18x18x4xbf16, #tpu.memory_space<vmem>>, vector<18x1x4xbf16>,
    %c0_8 = arith.constant 0 : index
    %c17_9 = arith.constant 17 : index
    %c0_10 = arith.constant 0 : index
    %5 = vector.load %arg5[%c0_8, %c17_9, %c0_10] : memref<18x18x4xbf16, #tpu.memory_space<vmem>>, vector<18x1x4xbf16>
    tpu.vector_store %arg5[%c0_8, %c17_9, %c0_10], %1 {strides = array<i32>} : memref<18x18x4xbf16, #tpu.memory_space<vmem>>, vector<18x1x4xbf16>,
    %c0_11 = arith.constant 0 : index
    %c0_12 = arith.constant 0 : index
    %c0_13 = arith.constant 0 : index
    %6 = vector.load %arg1[%c0_11, %c0_12, %c0_13] : memref<1x4x256xf32, #tpu.memory_space<vmem>>, vector<1x4x256xf32>
    %7 = vector.shape_cast %6 : vector<1x4x256xf32> to vector<4x256xf32>
    %8 = tpu.transpose %7, [1, 0] : vector<4x256xf32> -> vector<256x4xf32>
    %9 = vector.shape_cast %8 : vector<256x4xf32> to vector<16x16x4xf32>
    %10 = arith.truncf %9 : vector<16x16x4xf32> to vector<16x16x4xbf16>
    %c1 = arith.constant 1 : index
    %c1_14 = arith.constant 1 : index
    %c0_15 = arith.constant 0 : index
    %11 = vector.load %arg5[%c1, %c1_14, %c0_15] : memref<18x18x4xbf16, #tpu.memory_space<vmem>>, vector<16x16x4xbf16>
    tpu.vector_store %arg5[%c1, %c1_14, %c0_15], %10 {strides = array<i32>} : memref<18x18x4xbf16, #tpu.memory_space<vmem>>, vector<16x16x4xbf16>,
    %c0_16 = arith.constant 0 : index
    %c0_17 = arith.constant 0 : index
    %c0_18 = arith.constant 0 : index
    %12 = vector.load %arg5[%c0_16, %c0_17, %c0_18] : memref<18x18x4xbf16, #tpu.memory_space<vmem>>, vector<16x16x4xbf16>
    %13 = vector.shape_cast %12 : vector<16x16x4xbf16> to vector<256x4xbf16>
    %c0_19 = arith.constant 0 : index
    %c0_20 = arith.constant 0 : index
    %c0_21 = arith.constant 0 : index
    %14 = vector.load %arg2[%c0_19, %c0_20, %c0_21] : memref<9x4x4xbf16, #tpu.memory_space<vmem>>, vector<1x4x4xbf16>
    %15 = vector.shape_cast %14 : vector<1x4x4xbf16> to vector<4x4xbf16>
    %cst_22 = arith.constant dense<0.000000e+00> : vector<256x4xf32>
    %16 = tpu.matmul %13, %15, %cst_22 {dimension_numbers = #tpu.dot_dimension_numbers<[1], [0], [0], [1], [0, 0, 1, 1], [], []>} : vector<256x4xbf16>, vector<4x4xbf16>, vector<256x4xf32> -> vector<256x4xf32>
    %c0_23 = arith.constant 0 : index
    %c1_24 = arith.constant 1 : index
    %c0_25 = arith.constant 0 : index
    %17 = vector.load %arg5[%c0_23, %c1_24, %c0_25] : memref<18x18x4xbf16, #tpu.memory_space<vmem>>, vector<16x16x4xbf16>
    %18 = vector.shape_cast %17 : vector<16x16x4xbf16> to vector<256x4xbf16>
    %c1_26 = arith.constant 1 : index
    %c0_27 = arith.constant 0 : index
    %c0_28 = arith.constant 0 : index
    %19 = vector.load %arg2[%c1_26, %c0_27, %c0_28] : memref<9x4x4xbf16, #tpu.memory_space<vmem>>, vector<1x4x4xbf16>
    %20 = vector.shape_cast %19 : vector<1x4x4xbf16> to vector<4x4xbf16>
    %cst_29 = arith.constant dense<0.000000e+00> : vector<256x4xf32>
    %21 = tpu.matmul %18, %20, %cst_29 {dimension_numbers = #tpu.dot_dimension_numbers<[1], [0], [0], [1], [0, 0, 1, 1], [], []>} : vector<256x4xbf16>, vector<4x4xbf16>, vector<256x4xf32> -> vector<256x4xf32>
    %22 = arith.addf %16, %21 : vector<256x4xf32>
    %c0_30 = arith.constant 0 : index
    %c2 = arith.constant 2 : index
    %c0_31 = arith.constant 0 : index
    %23 = vector.load %arg5[%c0_30, %c2, %c0_31] : memref<18x18x4xbf16, #tpu.memory_space<vmem>>, vector<16x16x4xbf16>
    %24 = vector.shape_cast %23 : vector<16x16x4xbf16> to vector<256x4xbf16>
    %c2_32 = arith.constant 2 : index
    %c0_33 = arith.constant 0 : index
    %c0_34 = arith.constant 0 : index
    %25 = vector.load %arg2[%c2_32, %c0_33, %c0_34] : memref<9x4x4xbf16, #tpu.memory_space<vmem>>, vector<1x4x4xbf16>
    %26 = vector.shape_cast %25 : vector<1x4x4xbf16> to vector<4x4xbf16>
    %cst_35 = arith.constant dense<0.000000e+00> : vector<256x4xf32>
    %27 = tpu.matmul %24, %26, %cst_35 {dimension_numbers = #tpu.dot_dimension_numbers<[1], [0], [0], [1], [0, 0, 1, 1], [], []>} : vector<256x4xbf16>, vector<4x4xbf16>, vector<256x4xf32> -> vector<256x4xf32>
    %28 = arith.addf %22, %27 : vector<256x4xf32>
    %c1_36 = arith.constant 1 : index
    %c0_37 = arith.constant 0 : index
    %c0_38 = arith.constant 0 : index
    %29 = vector.load %arg5[%c1_36, %c0_37, %c0_38] : memref<18x18x4xbf16, #tpu.memory_space<vmem>>, vector<16x16x4xbf16>
    %30 = vector.shape_cast %29 : vector<16x16x4xbf16> to vector<256x4xbf16>
    %c3 = arith.constant 3 : index
    %c0_39 = arith.constant 0 : index
    %c0_40 = arith.constant 0 : index
    %31 = vector.load %arg2[%c3, %c0_39, %c0_40] : memref<9x4x4xbf16, #tpu.memory_space<vmem>>, vector<1x4x4xbf16>
    %32 = vector.shape_cast %31 : vector<1x4x4xbf16> to vector<4x4xbf16>
    %cst_41 = arith.constant dense<0.000000e+00> : vector<256x4xf32>
    %33 = tpu.matmul %30, %32, %cst_41 {dimension_numbers = #tpu.dot_dimension_numbers<[1], [0], [0], [1], [0, 0, 1, 1], [], []>} : vector<256x4xbf16>, vector<4x4xbf16>, vector<256x4xf32> -> vector<256x4xf32>
    %34 = arith.addf %28, %33 : vector<256x4xf32>
    %c1_42 = arith.constant 1 : index
    %c1_43 = arith.constant 1 : index
    %c0_44 = arith.constant 0 : index
    %35 = vector.load %arg5[%c1_42, %c1_43, %c0_44] : memref<18x18x4xbf16, #tpu.memory_space<vmem>>, vector<16x16x4xbf16>
    %36 = vector.shape_cast %35 : vector<16x16x4xbf16> to vector<256x4xbf16>
    %c4 = arith.constant 4 : index
    %c0_45 = arith.constant 0 : index
    %c0_46 = arith.constant 0 : index
    %37 = vector.load %arg2[%c4, %c0_45, %c0_46] : memref<9x4x4xbf16, #tpu.memory_space<vmem>>, vector<1x4x4xbf16>
    %38 = vector.shape_cast %37 : vector<1x4x4xbf16> to vector<4x4xbf16>
    %cst_47 = arith.constant dense<0.000000e+00> : vector<256x4xf32>
    %39 = tpu.matmul %36, %38, %cst_47 {dimension_numbers = #tpu.dot_dimension_numbers<[1], [0], [0], [1], [0, 0, 1, 1], [], []>} : vector<256x4xbf16>, vector<4x4xbf16>, vector<256x4xf32> -> vector<256x4xf32>
    %40 = arith.addf %34, %39 : vector<256x4xf32>
    %c1_48 = arith.constant 1 : index
    %c2_49 = arith.constant 2 : index
    %c0_50 = arith.constant 0 : index
    %41 = vector.load %arg5[%c1_48, %c2_49, %c0_50] : memref<18x18x4xbf16, #tpu.memory_space<vmem>>, vector<16x16x4xbf16>
    %42 = vector.shape_cast %41 : vector<16x16x4xbf16> to vector<256x4xbf16>
    %c5 = arith.constant 5 : index
    %c0_51 = arith.constant 0 : index
    %c0_52 = arith.constant 0 : index
    %43 = vector.load %arg2[%c5, %c0_51, %c0_52] : memref<9x4x4xbf16, #tpu.memory_space<vmem>>, vector<1x4x4xbf16>
    %44 = vector.shape_cast %43 : vector<1x4x4xbf16> to vector<4x4xbf16>
    %cst_53 = arith.constant dense<0.000000e+00> : vector<256x4xf32>
    %45 = tpu.matmul %42, %44, %cst_53 {dimension_numbers = #tpu.dot_dimension_numbers<[1], [0], [0], [1], [0, 0, 1, 1], [], []>} : vector<256x4xbf16>, vector<4x4xbf16>, vector<256x4xf32> -> vector<256x4xf32>
    %46 = arith.addf %40, %45 : vector<256x4xf32>
    %c2_54 = arith.constant 2 : index
    %c0_55 = arith.constant 0 : index
    %c0_56 = arith.constant 0 : index
    %47 = vector.load %arg5[%c2_54, %c0_55, %c0_56] : memref<18x18x4xbf16, #tpu.memory_space<vmem>>, vector<16x16x4xbf16>
    %48 = vector.shape_cast %47 : vector<16x16x4xbf16> to vector<256x4xbf16>
    %c6 = arith.constant 6 : index
    %c0_57 = arith.constant 0 : index
    %c0_58 = arith.constant 0 : index
    %49 = vector.load %arg2[%c6, %c0_57, %c0_58] : memref<9x4x4xbf16, #tpu.memory_space<vmem>>, vector<1x4x4xbf16>
    %50 = vector.shape_cast %49 : vector<1x4x4xbf16> to vector<4x4xbf16>
    %cst_59 = arith.constant dense<0.000000e+00> : vector<256x4xf32>
    %51 = tpu.matmul %48, %50, %cst_59 {dimension_numbers = #tpu.dot_dimension_numbers<[1], [0], [0], [1], [0, 0, 1, 1], [], []>} : vector<256x4xbf16>, vector<4x4xbf16>, vector<256x4xf32> -> vector<256x4xf32>
    %52 = arith.addf %46, %51 : vector<256x4xf32>
    %c2_60 = arith.constant 2 : index
    %c1_61 = arith.constant 1 : index
    %c0_62 = arith.constant 0 : index
    %53 = vector.load %arg5[%c2_60, %c1_61, %c0_62] : memref<18x18x4xbf16, #tpu.memory_space<vmem>>, vector<16x16x4xbf16>
    %54 = vector.shape_cast %53 : vector<16x16x4xbf16> to vector<256x4xbf16>
    %c7 = arith.constant 7 : index
    %c0_63 = arith.constant 0 : index
    %c0_64 = arith.constant 0 : index
    %55 = vector.load %arg2[%c7, %c0_63, %c0_64] : memref<9x4x4xbf16, #tpu.memory_space<vmem>>, vector<1x4x4xbf16>
    %56 = vector.shape_cast %55 : vector<1x4x4xbf16> to vector<4x4xbf16>
    %cst_65 = arith.constant dense<0.000000e+00> : vector<256x4xf32>
    %57 = tpu.matmul %54, %56, %cst_65 {dimension_numbers = #tpu.dot_dimension_numbers<[1], [0], [0], [1], [0, 0, 1, 1], [], []>} : vector<256x4xbf16>, vector<4x4xbf16>, vector<256x4xf32> -> vector<256x4xf32>
    %58 = arith.addf %52, %57 : vector<256x4xf32>
    %c2_66 = arith.constant 2 : index
    %c2_67 = arith.constant 2 : index
    %c0_68 = arith.constant 0 : index
    %59 = vector.load %arg5[%c2_66, %c2_67, %c0_68] : memref<18x18x4xbf16, #tpu.memory_space<vmem>>, vector<16x16x4xbf16>
    %60 = vector.shape_cast %59 : vector<16x16x4xbf16> to vector<256x4xbf16>
    %c8 = arith.constant 8 : index
    %c0_69 = arith.constant 0 : index
    %c0_70 = arith.constant 0 : index
    %61 = vector.load %arg2[%c8, %c0_69, %c0_70] : memref<9x4x4xbf16, #tpu.memory_space<vmem>>, vector<1x4x4xbf16>
    %62 = vector.shape_cast %61 : vector<1x4x4xbf16> to vector<4x4xbf16>
    %cst_71 = arith.constant dense<0.000000e+00> : vector<256x4xf32>
    %63 = tpu.matmul %60, %62, %cst_71 {dimension_numbers = #tpu.dot_dimension_numbers<[1], [0], [0], [1], [0, 0, 1, 1], [], []>} : vector<256x4xbf16>, vector<4x4xbf16>, vector<256x4xf32> -> vector<256x4xf32>
    %64 = arith.addf %58, %63 : vector<256x4xf32>
    %cst_72 = arith.constant dense<0.000000e+00> : vector<4xf32>
    %65 = vector.multi_reduction <add>, %64, %cst_72 [0] : vector<256x4xf32> to vector<4xf32>
    %66 = vector.shape_cast %65 : vector<4xf32> to vector<1x4xf32>
    %cst_73 = arith.constant 3.906250e-03 : f32
    %67 = vector.broadcast %cst_73 : f32 to vector<1x4xf32>
    %68 = arith.mulf %66, %67 : vector<1x4xf32>
    %69 = vector.broadcast %68 : vector<1x4xf32> to vector<256x4xf32>
    %70 = arith.subf %64, %69 : vector<256x4xf32>
    %71 = arith.mulf %70, %70 : vector<256x4xf32>
    %cst_74 = arith.constant dense<0.000000e+00> : vector<4xf32>
    %72 = vector.multi_reduction <add>, %71, %cst_74 [0] : vector<256x4xf32> to vector<4xf32>
    %73 = vector.shape_cast %72 : vector<4xf32> to vector<1x4xf32>
    %74 = tpu.concatenate %66, %73 in 0 : vector<1x4xf32>, vector<1x4xf32> -> vector<2x4xf32>
    %75 = vector.shape_cast %74 : vector<2x4xf32> to vector<1x2x4xf32>
    %c0_75 = arith.constant 0 : index
    %c0_76 = arith.constant 0 : index
    %c0_77 = arith.constant 0 : index
    %76 = vector.load %arg4[%c0_75, %c0_76, %c0_77] : memref<1x2x4xf32, #tpu.memory_space<vmem>>, vector<1x2x4xf32>
    tpu.vector_store %arg4[%c0_75, %c0_76, %c0_77], %75 {strides = array<i32>} : memref<1x2x4xf32, #tpu.memory_space<vmem>>, vector<1x2x4xf32>,
    %77 = tpu.transpose %64, [1, 0] : vector<256x4xf32> -> vector<4x256xf32>
    %78 = arith.truncf %77 : vector<4x256xf32> to vector<4x256xbf16>
    %79 = vector.shape_cast %78 : vector<4x256xbf16> to vector<1x4x256xbf16>
    %c0_78 = arith.constant 0 : index
    %c0_79 = arith.constant 0 : index
    %c0_80 = arith.constant 0 : index
    %80 = vector.load %arg3[%c0_78, %c0_79, %c0_80] : memref<1x4x256xbf16, #tpu.memory_space<vmem>>, vector<1x4x256xbf16>
    tpu.vector_store %arg3[%c0_78, %c0_79, %c0_80], %79 {strides = array<i32>} : memref<1x4x256xbf16, #tpu.memory_space<vmem>>, vector<1x4x256xbf16>,
    return
  }
  func.func @transform_0(%arg0: i32) -> (i32, i32, i32) {
    %c0_i32 = arith.constant 0 : i32
    %c0_i32_0 = arith.constant 0 : i32
    %c0_i32_1 = arith.constant 0 : i32
    return %arg0, %c0_i32, %c0_i32_0 : i32, i32, i32
  }
  func.func @transform_1(%arg0: i32) -> (i32, i32, i32) {
    %c0_i32 = arith.constant 0 : i32
    %c0_i32_0 = arith.constant 0 : i32
    %c0_i32_1 = arith.constant 0 : i32
    %c0_i32_2 = arith.constant 0 : i32
    return %c0_i32, %c0_i32_0, %c0_i32_1 : i32, i32, i32
  }
  func.func @transform_2(%arg0: i32) -> (i32, i32, i32) {
    %c0_i32 = arith.constant 0 : i32
    %c0_i32_0 = arith.constant 0 : i32
    %c0_i32_1 = arith.constant 0 : i32
    return %arg0, %c0_i32, %c0_i32_0 : i32, i32, i32
  }
  func.func @transform_3(%arg0: i32) -> (i32, i32, i32) {
    %c0_i32 = arith.constant 0 : i32
    %c0_i32_0 = arith.constant 0 : i32
    %c0_i32_1 = arith.constant 0 : i32
    return %arg0, %c0_i32, %c0_i32_0 : i32, i32, i32
  }
}

module attributes {stable_mosaic.version = 11 : i64} {
  func.func @bn_add_relu_kernel(%arg0: i32, %arg1: memref<1x4x256xbf16, #tpu.memory_space<vmem>>, %arg2: memref<4x1xf32, #tpu.memory_space<vmem>>, %arg3: memref<4x1xf32, #tpu.memory_space<vmem>>, %arg4: memref<1x4x256xf32, #tpu.memory_space<vmem>>, %arg5: memref<1x4x256xf32, #tpu.memory_space<vmem>>) attributes {dimension_semantics = [#tpu.dimension_semantics<parallel>], iteration_bounds = array<i64: 2>, scalar_prefetch = 0 : i64, scratch_operands = 0 : i64, tpu.core_type = #tpu.core_type<tc>, window_params = [{transform_indices = @transform_0, window_bounds = array<i64: 1, 4, 256>}, {pipeline_mode = #tpu.pipeline_mode<synchronous>, transform_indices = @transform_1, window_bounds = array<i64: 4, 1>}, {pipeline_mode = #tpu.pipeline_mode<synchronous>, transform_indices = @transform_2, window_bounds = array<i64: 4, 1>}, {transform_indices = @transform_3, window_bounds = array<i64: 1, 4, 256>}, {transform_indices = @transform_4, window_bounds = array<i64: 1, 4, 256>}]} {
    %c0 = arith.constant 0 : index
    %c0_0 = arith.constant 0 : index
    %c0_1 = arith.constant 0 : index
    %0 = vector.load %arg1[%c0, %c0_0, %c0_1] : memref<1x4x256xbf16, #tpu.memory_space<vmem>>, vector<1x4x256xbf16>
    %1 = vector.shape_cast %0 : vector<1x4x256xbf16> to vector<4x256xbf16>
    %2 = arith.extf %1 : vector<4x256xbf16> to vector<4x256xf32>
    %c0_2 = arith.constant 0 : index
    %c0_3 = arith.constant 0 : index
    %3 = vector.load %arg2[%c0_2, %c0_3] : memref<4x1xf32, #tpu.memory_space<vmem>>, vector<4x1xf32>
    %4 = vector.broadcast %3 : vector<4x1xf32> to vector<4x256xf32>
    %5 = arith.mulf %2, %4 : vector<4x256xf32>
    %c0_4 = arith.constant 0 : index
    %c0_5 = arith.constant 0 : index
    %6 = vector.load %arg3[%c0_4, %c0_5] : memref<4x1xf32, #tpu.memory_space<vmem>>, vector<4x1xf32>
    %7 = vector.broadcast %6 : vector<4x1xf32> to vector<4x256xf32>
    %8 = arith.addf %5, %7 : vector<4x256xf32>
    %c0_6 = arith.constant 0 : index
    %c0_7 = arith.constant 0 : index
    %c0_8 = arith.constant 0 : index
    %9 = vector.load %arg4[%c0_6, %c0_7, %c0_8] : memref<1x4x256xf32, #tpu.memory_space<vmem>>, vector<1x4x256xf32>
    %10 = vector.shape_cast %9 : vector<1x4x256xf32> to vector<4x256xf32>
    %11 = arith.addf %8, %10 : vector<4x256xf32>
    %cst = arith.constant 0.000000e+00 : f32
    %12 = vector.broadcast %cst : f32 to vector<4x256xf32>
    %13 = arith.maximumf %11, %12 : vector<4x256xf32>
    %14 = vector.shape_cast %13 : vector<4x256xf32> to vector<1x4x256xf32>
    %c0_9 = arith.constant 0 : index
    %c0_10 = arith.constant 0 : index
    %c0_11 = arith.constant 0 : index
    %15 = vector.load %arg5[%c0_9, %c0_10, %c0_11] : memref<1x4x256xf32, #tpu.memory_space<vmem>>, vector<1x4x256xf32>
    tpu.vector_store %arg5[%c0_9, %c0_10, %c0_11], %14 {strides = array<i32>} : memref<1x4x256xf32, #tpu.memory_space<vmem>>, vector<1x4x256xf32>,
    return
  }
  func.func @transform_0(%arg0: i32) -> (i32, i32, i32) {
    %c0_i32 = arith.constant 0 : i32
    %c0_i32_0 = arith.constant 0 : i32
    %c0_i32_1 = arith.constant 0 : i32
    return %arg0, %c0_i32, %c0_i32_0 : i32, i32, i32
  }
  func.func @transform_1(%arg0: i32) -> (i32, i32) {
    %c0_i32 = arith.constant 0 : i32
    %c0_i32_0 = arith.constant 0 : i32
    %c0_i32_1 = arith.constant 0 : i32
    return %c0_i32, %c0_i32_0 : i32, i32
  }
  func.func @transform_2(%arg0: i32) -> (i32, i32) {
    %c0_i32 = arith.constant 0 : i32
    %c0_i32_0 = arith.constant 0 : i32
    %c0_i32_1 = arith.constant 0 : i32
    return %c0_i32, %c0_i32_0 : i32, i32
  }
  func.func @transform_3(%arg0: i32) -> (i32, i32, i32) {
    %c0_i32 = arith.constant 0 : i32
    %c0_i32_0 = arith.constant 0 : i32
    %c0_i32_1 = arith.constant 0 : i32
    return %arg0, %c0_i32, %c0_i32_0 : i32, i32, i32
  }
  func.func @transform_4(%arg0: i32) -> (i32, i32, i32) {
    %c0_i32 = arith.constant 0 : i32
    %c0_i32_0 = arith.constant 0 : i32
    %c0_i32_1 = arith.constant 0 : i32
    return %arg0, %c0_i32, %c0_i32_0 : i32, i32, i32
  }
}

module attributes {stable_mosaic.version = 11 : i64} {
  func.func @bn_relu_conv2_stats_kernel(%arg0: i32, %arg1: memref<1x4x256xbf16, #tpu.memory_space<vmem>>, %arg2: memref<4x1xf32, #tpu.memory_space<vmem>>, %arg3: memref<4x1xf32, #tpu.memory_space<vmem>>, %arg4: memref<9x4x4xbf16, #tpu.memory_space<vmem>>, %arg5: memref<1x4x256xbf16, #tpu.memory_space<vmem>>, %arg6: memref<1x2x4xf32, #tpu.memory_space<vmem>>, %arg7: memref<18x18x4xbf16, #tpu.memory_space<vmem>>) attributes {dimension_semantics = [#tpu.dimension_semantics<parallel>], iteration_bounds = array<i64: 2>, scalar_prefetch = 0 : i64, scratch_operands = 1 : i64, tpu.core_type = #tpu.core_type<tc>, window_params = [{transform_indices = @transform_0, window_bounds = array<i64: 1, 4, 256>}, {pipeline_mode = #tpu.pipeline_mode<synchronous>, transform_indices = @transform_1, window_bounds = array<i64: 4, 1>}, {pipeline_mode = #tpu.pipeline_mode<synchronous>, transform_indices = @transform_2, window_bounds = array<i64: 4, 1>}, {pipeline_mode = #tpu.pipeline_mode<synchronous>, transform_indices = @transform_3, window_bounds = array<i64: 9, 4, 4>}, {transform_indices = @transform_4, window_bounds = array<i64: 1, 4, 256>}, {transform_indices = @transform_5, window_bounds = array<i64: 1, 2, 4>}]} {
    %c0 = arith.constant 0 : index
    %c0_0 = arith.constant 0 : index
    %c0_1 = arith.constant 0 : index
    %0 = vector.load %arg1[%c0, %c0_0, %c0_1] : memref<1x4x256xbf16, #tpu.memory_space<vmem>>, vector<1x4x256xbf16>
    %1 = vector.shape_cast %0 : vector<1x4x256xbf16> to vector<4x256xbf16>
    %2 = arith.extf %1 : vector<4x256xbf16> to vector<4x256xf32>
    %c0_2 = arith.constant 0 : index
    %c0_3 = arith.constant 0 : index
    %3 = vector.load %arg2[%c0_2, %c0_3] : memref<4x1xf32, #tpu.memory_space<vmem>>, vector<4x1xf32>
    %4 = vector.broadcast %3 : vector<4x1xf32> to vector<4x256xf32>
    %5 = arith.mulf %2, %4 : vector<4x256xf32>
    %c0_4 = arith.constant 0 : index
    %c0_5 = arith.constant 0 : index
    %6 = vector.load %arg3[%c0_4, %c0_5] : memref<4x1xf32, #tpu.memory_space<vmem>>, vector<4x1xf32>
    %7 = vector.broadcast %6 : vector<4x1xf32> to vector<4x256xf32>
    %8 = arith.addf %5, %7 : vector<4x256xf32>
    %cst = arith.constant 0.000000e+00 : f32
    %9 = vector.broadcast %cst : f32 to vector<4x256xf32>
    %10 = arith.maximumf %8, %9 : vector<4x256xf32>
    %cst_6 = arith.constant 0.000000e+00 : bf16
    %11 = vector.broadcast %cst_6 : bf16 to vector<1x18x4xbf16>
    %cst_7 = arith.constant 0.000000e+00 : bf16
    %12 = vector.broadcast %cst_7 : bf16 to vector<18x1x4xbf16>
    %c0_8 = arith.constant 0 : index
    %c0_9 = arith.constant 0 : index
    %c0_10 = arith.constant 0 : index
    %13 = vector.load %arg7[%c0_8, %c0_9, %c0_10] : memref<18x18x4xbf16, #tpu.memory_space<vmem>>, vector<1x18x4xbf16>
    tpu.vector_store %arg7[%c0_8, %c0_9, %c0_10], %11 {strides = array<i32>} : memref<18x18x4xbf16, #tpu.memory_space<vmem>>, vector<1x18x4xbf16>,
    %c17 = arith.constant 17 : index
    %c0_11 = arith.constant 0 : index
    %c0_12 = arith.constant 0 : index
    %14 = vector.load %arg7[%c17, %c0_11, %c0_12] : memref<18x18x4xbf16, #tpu.memory_space<vmem>>, vector<1x18x4xbf16>
    tpu.vector_store %arg7[%c17, %c0_11, %c0_12], %11 {strides = array<i32>} : memref<18x18x4xbf16, #tpu.memory_space<vmem>>, vector<1x18x4xbf16>,
    %c0_13 = arith.constant 0 : index
    %c0_14 = arith.constant 0 : index
    %c0_15 = arith.constant 0 : index
    %15 = vector.load %arg7[%c0_13, %c0_14, %c0_15] : memref<18x18x4xbf16, #tpu.memory_space<vmem>>, vector<18x1x4xbf16>
    tpu.vector_store %arg7[%c0_13, %c0_14, %c0_15], %12 {strides = array<i32>} : memref<18x18x4xbf16, #tpu.memory_space<vmem>>, vector<18x1x4xbf16>,
    %c0_16 = arith.constant 0 : index
    %c17_17 = arith.constant 17 : index
    %c0_18 = arith.constant 0 : index
    %16 = vector.load %arg7[%c0_16, %c17_17, %c0_18] : memref<18x18x4xbf16, #tpu.memory_space<vmem>>, vector<18x1x4xbf16>
    tpu.vector_store %arg7[%c0_16, %c17_17, %c0_18], %12 {strides = array<i32>} : memref<18x18x4xbf16, #tpu.memory_space<vmem>>, vector<18x1x4xbf16>,
    %17 = tpu.transpose %10, [1, 0] : vector<4x256xf32> -> vector<256x4xf32>
    %18 = vector.shape_cast %17 : vector<256x4xf32> to vector<16x16x4xf32>
    %19 = arith.truncf %18 : vector<16x16x4xf32> to vector<16x16x4xbf16>
    %c1 = arith.constant 1 : index
    %c1_19 = arith.constant 1 : index
    %c0_20 = arith.constant 0 : index
    %20 = vector.load %arg7[%c1, %c1_19, %c0_20] : memref<18x18x4xbf16, #tpu.memory_space<vmem>>, vector<16x16x4xbf16>
    tpu.vector_store %arg7[%c1, %c1_19, %c0_20], %19 {strides = array<i32>} : memref<18x18x4xbf16, #tpu.memory_space<vmem>>, vector<16x16x4xbf16>,
    %c0_21 = arith.constant 0 : index
    %c0_22 = arith.constant 0 : index
    %c0_23 = arith.constant 0 : index
    %21 = vector.load %arg7[%c0_21, %c0_22, %c0_23] : memref<18x18x4xbf16, #tpu.memory_space<vmem>>, vector<16x16x4xbf16>
    %22 = vector.shape_cast %21 : vector<16x16x4xbf16> to vector<256x4xbf16>
    %c0_24 = arith.constant 0 : index
    %c0_25 = arith.constant 0 : index
    %c0_26 = arith.constant 0 : index
    %23 = vector.load %arg4[%c0_24, %c0_25, %c0_26] : memref<9x4x4xbf16, #tpu.memory_space<vmem>>, vector<1x4x4xbf16>
    %24 = vector.shape_cast %23 : vector<1x4x4xbf16> to vector<4x4xbf16>
    %cst_27 = arith.constant dense<0.000000e+00> : vector<256x4xf32>
    %25 = tpu.matmul %22, %24, %cst_27 {dimension_numbers = #tpu.dot_dimension_numbers<[1], [0], [0], [1], [0, 0, 1, 1], [], []>} : vector<256x4xbf16>, vector<4x4xbf16>, vector<256x4xf32> -> vector<256x4xf32>
    %c0_28 = arith.constant 0 : index
    %c1_29 = arith.constant 1 : index
    %c0_30 = arith.constant 0 : index
    %26 = vector.load %arg7[%c0_28, %c1_29, %c0_30] : memref<18x18x4xbf16, #tpu.memory_space<vmem>>, vector<16x16x4xbf16>
    %27 = vector.shape_cast %26 : vector<16x16x4xbf16> to vector<256x4xbf16>
    %c1_31 = arith.constant 1 : index
    %c0_32 = arith.constant 0 : index
    %c0_33 = arith.constant 0 : index
    %28 = vector.load %arg4[%c1_31, %c0_32, %c0_33] : memref<9x4x4xbf16, #tpu.memory_space<vmem>>, vector<1x4x4xbf16>
    %29 = vector.shape_cast %28 : vector<1x4x4xbf16> to vector<4x4xbf16>
    %cst_34 = arith.constant dense<0.000000e+00> : vector<256x4xf32>
    %30 = tpu.matmul %27, %29, %cst_34 {dimension_numbers = #tpu.dot_dimension_numbers<[1], [0], [0], [1], [0, 0, 1, 1], [], []>} : vector<256x4xbf16>, vector<4x4xbf16>, vector<256x4xf32> -> vector<256x4xf32>
    %31 = arith.addf %25, %30 : vector<256x4xf32>
    %c0_35 = arith.constant 0 : index
    %c2 = arith.constant 2 : index
    %c0_36 = arith.constant 0 : index
    %32 = vector.load %arg7[%c0_35, %c2, %c0_36] : memref<18x18x4xbf16, #tpu.memory_space<vmem>>, vector<16x16x4xbf16>
    %33 = vector.shape_cast %32 : vector<16x16x4xbf16> to vector<256x4xbf16>
    %c2_37 = arith.constant 2 : index
    %c0_38 = arith.constant 0 : index
    %c0_39 = arith.constant 0 : index
    %34 = vector.load %arg4[%c2_37, %c0_38, %c0_39] : memref<9x4x4xbf16, #tpu.memory_space<vmem>>, vector<1x4x4xbf16>
    %35 = vector.shape_cast %34 : vector<1x4x4xbf16> to vector<4x4xbf16>
    %cst_40 = arith.constant dense<0.000000e+00> : vector<256x4xf32>
    %36 = tpu.matmul %33, %35, %cst_40 {dimension_numbers = #tpu.dot_dimension_numbers<[1], [0], [0], [1], [0, 0, 1, 1], [], []>} : vector<256x4xbf16>, vector<4x4xbf16>, vector<256x4xf32> -> vector<256x4xf32>
    %37 = arith.addf %31, %36 : vector<256x4xf32>
    %c1_41 = arith.constant 1 : index
    %c0_42 = arith.constant 0 : index
    %c0_43 = arith.constant 0 : index
    %38 = vector.load %arg7[%c1_41, %c0_42, %c0_43] : memref<18x18x4xbf16, #tpu.memory_space<vmem>>, vector<16x16x4xbf16>
    %39 = vector.shape_cast %38 : vector<16x16x4xbf16> to vector<256x4xbf16>
    %c3 = arith.constant 3 : index
    %c0_44 = arith.constant 0 : index
    %c0_45 = arith.constant 0 : index
    %40 = vector.load %arg4[%c3, %c0_44, %c0_45] : memref<9x4x4xbf16, #tpu.memory_space<vmem>>, vector<1x4x4xbf16>
    %41 = vector.shape_cast %40 : vector<1x4x4xbf16> to vector<4x4xbf16>
    %cst_46 = arith.constant dense<0.000000e+00> : vector<256x4xf32>
    %42 = tpu.matmul %39, %41, %cst_46 {dimension_numbers = #tpu.dot_dimension_numbers<[1], [0], [0], [1], [0, 0, 1, 1], [], []>} : vector<256x4xbf16>, vector<4x4xbf16>, vector<256x4xf32> -> vector<256x4xf32>
    %43 = arith.addf %37, %42 : vector<256x4xf32>
    %c1_47 = arith.constant 1 : index
    %c1_48 = arith.constant 1 : index
    %c0_49 = arith.constant 0 : index
    %44 = vector.load %arg7[%c1_47, %c1_48, %c0_49] : memref<18x18x4xbf16, #tpu.memory_space<vmem>>, vector<16x16x4xbf16>
    %45 = vector.shape_cast %44 : vector<16x16x4xbf16> to vector<256x4xbf16>
    %c4 = arith.constant 4 : index
    %c0_50 = arith.constant 0 : index
    %c0_51 = arith.constant 0 : index
    %46 = vector.load %arg4[%c4, %c0_50, %c0_51] : memref<9x4x4xbf16, #tpu.memory_space<vmem>>, vector<1x4x4xbf16>
    %47 = vector.shape_cast %46 : vector<1x4x4xbf16> to vector<4x4xbf16>
    %cst_52 = arith.constant dense<0.000000e+00> : vector<256x4xf32>
    %48 = tpu.matmul %45, %47, %cst_52 {dimension_numbers = #tpu.dot_dimension_numbers<[1], [0], [0], [1], [0, 0, 1, 1], [], []>} : vector<256x4xbf16>, vector<4x4xbf16>, vector<256x4xf32> -> vector<256x4xf32>
    %49 = arith.addf %43, %48 : vector<256x4xf32>
    %c1_53 = arith.constant 1 : index
    %c2_54 = arith.constant 2 : index
    %c0_55 = arith.constant 0 : index
    %50 = vector.load %arg7[%c1_53, %c2_54, %c0_55] : memref<18x18x4xbf16, #tpu.memory_space<vmem>>, vector<16x16x4xbf16>
    %51 = vector.shape_cast %50 : vector<16x16x4xbf16> to vector<256x4xbf16>
    %c5 = arith.constant 5 : index
    %c0_56 = arith.constant 0 : index
    %c0_57 = arith.constant 0 : index
    %52 = vector.load %arg4[%c5, %c0_56, %c0_57] : memref<9x4x4xbf16, #tpu.memory_space<vmem>>, vector<1x4x4xbf16>
    %53 = vector.shape_cast %52 : vector<1x4x4xbf16> to vector<4x4xbf16>
    %cst_58 = arith.constant dense<0.000000e+00> : vector<256x4xf32>
    %54 = tpu.matmul %51, %53, %cst_58 {dimension_numbers = #tpu.dot_dimension_numbers<[1], [0], [0], [1], [0, 0, 1, 1], [], []>} : vector<256x4xbf16>, vector<4x4xbf16>, vector<256x4xf32> -> vector<256x4xf32>
    %55 = arith.addf %49, %54 : vector<256x4xf32>
    %c2_59 = arith.constant 2 : index
    %c0_60 = arith.constant 0 : index
    %c0_61 = arith.constant 0 : index
    %56 = vector.load %arg7[%c2_59, %c0_60, %c0_61] : memref<18x18x4xbf16, #tpu.memory_space<vmem>>, vector<16x16x4xbf16>
    %57 = vector.shape_cast %56 : vector<16x16x4xbf16> to vector<256x4xbf16>
    %c6 = arith.constant 6 : index
    %c0_62 = arith.constant 0 : index
    %c0_63 = arith.constant 0 : index
    %58 = vector.load %arg4[%c6, %c0_62, %c0_63] : memref<9x4x4xbf16, #tpu.memory_space<vmem>>, vector<1x4x4xbf16>
    %59 = vector.shape_cast %58 : vector<1x4x4xbf16> to vector<4x4xbf16>
    %cst_64 = arith.constant dense<0.000000e+00> : vector<256x4xf32>
    %60 = tpu.matmul %57, %59, %cst_64 {dimension_numbers = #tpu.dot_dimension_numbers<[1], [0], [0], [1], [0, 0, 1, 1], [], []>} : vector<256x4xbf16>, vector<4x4xbf16>, vector<256x4xf32> -> vector<256x4xf32>
    %61 = arith.addf %55, %60 : vector<256x4xf32>
    %c2_65 = arith.constant 2 : index
    %c1_66 = arith.constant 1 : index
    %c0_67 = arith.constant 0 : index
    %62 = vector.load %arg7[%c2_65, %c1_66, %c0_67] : memref<18x18x4xbf16, #tpu.memory_space<vmem>>, vector<16x16x4xbf16>
    %63 = vector.shape_cast %62 : vector<16x16x4xbf16> to vector<256x4xbf16>
    %c7 = arith.constant 7 : index
    %c0_68 = arith.constant 0 : index
    %c0_69 = arith.constant 0 : index
    %64 = vector.load %arg4[%c7, %c0_68, %c0_69] : memref<9x4x4xbf16, #tpu.memory_space<vmem>>, vector<1x4x4xbf16>
    %65 = vector.shape_cast %64 : vector<1x4x4xbf16> to vector<4x4xbf16>
    %cst_70 = arith.constant dense<0.000000e+00> : vector<256x4xf32>
    %66 = tpu.matmul %63, %65, %cst_70 {dimension_numbers = #tpu.dot_dimension_numbers<[1], [0], [0], [1], [0, 0, 1, 1], [], []>} : vector<256x4xbf16>, vector<4x4xbf16>, vector<256x4xf32> -> vector<256x4xf32>
    %67 = arith.addf %61, %66 : vector<256x4xf32>
    %c2_71 = arith.constant 2 : index
    %c2_72 = arith.constant 2 : index
    %c0_73 = arith.constant 0 : index
    %68 = vector.load %arg7[%c2_71, %c2_72, %c0_73] : memref<18x18x4xbf16, #tpu.memory_space<vmem>>, vector<16x16x4xbf16>
    %69 = vector.shape_cast %68 : vector<16x16x4xbf16> to vector<256x4xbf16>
    %c8 = arith.constant 8 : index
    %c0_74 = arith.constant 0 : index
    %c0_75 = arith.constant 0 : index
    %70 = vector.load %arg4[%c8, %c0_74, %c0_75] : memref<9x4x4xbf16, #tpu.memory_space<vmem>>, vector<1x4x4xbf16>
    %71 = vector.shape_cast %70 : vector<1x4x4xbf16> to vector<4x4xbf16>
    %cst_76 = arith.constant dense<0.000000e+00> : vector<256x4xf32>
    %72 = tpu.matmul %69, %71, %cst_76 {dimension_numbers = #tpu.dot_dimension_numbers<[1], [0], [0], [1], [0, 0, 1, 1], [], []>} : vector<256x4xbf16>, vector<4x4xbf16>, vector<256x4xf32> -> vector<256x4xf32>
    %73 = arith.addf %67, %72 : vector<256x4xf32>
    %cst_77 = arith.constant dense<0.000000e+00> : vector<4xf32>
    %74 = vector.multi_reduction <add>, %73, %cst_77 [0] : vector<256x4xf32> to vector<4xf32>
    %75 = vector.shape_cast %74 : vector<4xf32> to vector<1x4xf32>
    %cst_78 = arith.constant 3.906250e-03 : f32
    %76 = vector.broadcast %cst_78 : f32 to vector<1x4xf32>
    %77 = arith.mulf %75, %76 : vector<1x4xf32>
    %78 = vector.broadcast %77 : vector<1x4xf32> to vector<256x4xf32>
    %79 = arith.subf %73, %78 : vector<256x4xf32>
    %80 = arith.mulf %79, %79 : vector<256x4xf32>
    %cst_79 = arith.constant dense<0.000000e+00> : vector<4xf32>
    %81 = vector.multi_reduction <add>, %80, %cst_79 [0] : vector<256x4xf32> to vector<4xf32>
    %82 = vector.shape_cast %81 : vector<4xf32> to vector<1x4xf32>
    %83 = tpu.concatenate %75, %82 in 0 : vector<1x4xf32>, vector<1x4xf32> -> vector<2x4xf32>
    %84 = vector.shape_cast %83 : vector<2x4xf32> to vector<1x2x4xf32>
    %c0_80 = arith.constant 0 : index
    %c0_81 = arith.constant 0 : index
    %c0_82 = arith.constant 0 : index
    %85 = vector.load %arg6[%c0_80, %c0_81, %c0_82] : memref<1x2x4xf32, #tpu.memory_space<vmem>>, vector<1x2x4xf32>
    tpu.vector_store %arg6[%c0_80, %c0_81, %c0_82], %84 {strides = array<i32>} : memref<1x2x4xf32, #tpu.memory_space<vmem>>, vector<1x2x4xf32>,
    %86 = tpu.transpose %73, [1, 0] : vector<256x4xf32> -> vector<4x256xf32>
    %87 = arith.truncf %86 : vector<4x256xf32> to vector<4x256xbf16>
    %88 = vector.shape_cast %87 : vector<4x256xbf16> to vector<1x4x256xbf16>
    %c0_83 = arith.constant 0 : index
    %c0_84 = arith.constant 0 : index
    %c0_85 = arith.constant 0 : index
    %89 = vector.load %arg5[%c0_83, %c0_84, %c0_85] : memref<1x4x256xbf16, #tpu.memory_space<vmem>>, vector<1x4x256xbf16>
    tpu.vector_store %arg5[%c0_83, %c0_84, %c0_85], %88 {strides = array<i32>} : memref<1x4x256xbf16, #tpu.memory_space<vmem>>, vector<1x4x256xbf16>,
    return
  }
  func.func @transform_0(%arg0: i32) -> (i32, i32, i32) {
    %c0_i32 = arith.constant 0 : i32
    %c0_i32_0 = arith.constant 0 : i32
    %c0_i32_1 = arith.constant 0 : i32
    return %arg0, %c0_i32, %c0_i32_0 : i32, i32, i32
  }
  func.func @transform_1(%arg0: i32) -> (i32, i32) {
    %c0_i32 = arith.constant 0 : i32
    %c0_i32_0 = arith.constant 0 : i32
    %c0_i32_1 = arith.constant 0 : i32
    return %c0_i32, %c0_i32_0 : i32, i32
  }
  func.func @transform_2(%arg0: i32) -> (i32, i32) {
    %c0_i32 = arith.constant 0 : i32
    %c0_i32_0 = arith.constant 0 : i32
    %c0_i32_1 = arith.constant 0 : i32
    return %c0_i32, %c0_i32_0 : i32, i32
  }
  func.func @transform_3(%arg0: i32) -> (i32, i32, i32) {
    %c0_i32 = arith.constant 0 : i32
    %c0_i32_0 = arith.constant 0 : i32
    %c0_i32_1 = arith.constant 0 : i32
    %c0_i32_2 = arith.constant 0 : i32
    return %c0_i32, %c0_i32_0, %c0_i32_1 : i32, i32, i32
  }
  func.func @transform_4(%arg0: i32) -> (i32, i32, i32) {
    %c0_i32 = arith.constant 0 : i32
    %c0_i32_0 = arith.constant 0 : i32
    %c0_i32_1 = arith.constant 0 : i32
    return %arg0, %c0_i32, %c0_i32_0 : i32, i32, i32
  }
  func.func @transform_5(%arg0: i32) -> (i32, i32, i32) {
    %c0_i32 = arith.constant 0 : i32
    %c0_i32_0 = arith.constant 0 : i32
    %c0_i32_1 = arith.constant 0 : i32
    return %arg0, %c0_i32, %c0_i32_0 : i32, i32, i32
  }
}

</mosaic_0001>

<bundles_post_ra>
// kernel: basic_block_forward.5
= control target key start
LH: loop header
LB: loop body
LE: loop exit
PB: predicated region body
PF: predicated region fallthrough
CT: control target
= control target key end

     0   :  { %s381_s15 = smov 0   ;;  %s407_s0 = inlined_call_operand.vmem [shape: bf16[2,4,256], index: 0, kind: input, shape index: {}]   ;;  %s408_s1 = inlined_call_operand.vmem [shape: f32[4,1], index: 1, kind: input, shape index: {}]   ;;  %s409_s2 = inlined_call_operand.vmem [shape: f32[4,1], index: 2, kind: input, shape index: {}]   ;;  %s410_s3 = inlined_call_operand.vmem [shape: f32[2,4,256], index: 3, kind: input, shape index: {}]   ;;  %s411_s4 = inlined_call_operand.vmem [shape: f32[2,4,256], index: 4, kind: output, shape index: {}]  }
   0x1 LB: > { %s319_s16 = sadd.s32 4294967295, %s352_s15   ;;  %p323_p0 = scmp.ge.s32.totalorder %s352_s15, 1  ;;  %s352_s15 = sphi %s381_s15, %s14_s15  }
   0x2   : > { %p172_p1 = scmp.lt.s32.totalorder %s352_s15, 3 }
   0x4   : > { %p173_p2 = pnand %p323_p0, %p172_p1 }
   0x5   : > { %v220_v0 = vld [vmem:[%s408_s1] sm:$0xf] (!%p173_p2)  ;;  %v354_v1 = vmov (!%p173_p2), 0   ;;  %p203_p3 = scmp.lt.s32.totalorder (!%p173_p2), %s319_s16, 1  ;;  %v355_v3 = vmov (!%p173_p2), 839922192   ;;  %v228_v5 = vlaneseq (!%p173_p2) }
   0x6   : > { %176 = sbr.rel (%p173_p2) target bundleno = 148 (0x94), region = 36  ;;  %345 = vset.pattern.permute.xlu0 (!%p173_p2), %v354_v1  ;;  %v234_v2 = vld [vmem:[%s409_s2] sm:$0xf] (!%p173_p2)  ;;  %v226_v4 = vunpack.c.l.s4 (!%p173_p2), %v355_v3 }
   0x7   : > { %223 = vperm.xlu0 (!%p173_p2), %345, %v220_v0   ;;  %v229_v7 = vshrl.u32 (!%p173_p2), %v228_v5, 7 }
   0x8   : > { %v227_v6 = vunpack.c.0.s8 (!%p173_p2), %v226_v4 }
   0xa   : > { %v230_v8 = vsub.s32 (!%p173_p2), %v227_v6, %v229_v7 }
   0xb   : > { %237 = vperm.xlu0 (!%p173_p2), %345, %v234_v2  }
   0xd   : > { %s413_s16 = smov (!%p203_p3, %s319_s16), 1 }
   0xe   : > { %s332_s21 = sshll.u32 %s413_s16, 2  ;;  %s333_s25 = sshll.u32 %s413_s16, 3 }
   0xf   : > { %s207_s24 = scalar_lea.vmem %s407_s0, %s332_s21  ;;  %s212_s28 = scalar_lea.vmem %s410_s3, %s333_s25 }
  0x10   : > { %v218_v9 = vld [vmem:[%s207_s24] sm:$0xf]  ;;  %s217_s5 = scalar_lea.vmem %s411_s4, %s333_s25 }
  0x11   : > { %v219_v11 = vunpack.c.l.bf16 %v218_v9  ;;  %v248_v16 = vld [vmem:[%s212_s28] sm:$0xff] }
  0x86   : > { %v224_v10 = vpop.permute.xlu0 %223 }
  0x87   : > { %v231_v12 = vrot.slane %v224_v10, %v230_v8 }
  0x89   : > { %v233_v14 = vmul.f32 %v231_v12, %v219_v11 }
  0x8a   : > { %v238_v13 = vpop.permute.xlu0 %237 }
  0x8b   : > { %v245_v15 = vrot.slane %v238_v13, %v230_v8 }
  0x8d   : > { %v247_v17 = vadd.f32 %v245_v15, %v233_v14 }
  0x8f   : > { %v249_v18 = vadd.f32 %v248_v16, %v247_v17 }
  0x91   : > { %v250_v19 = vmax.f32 %v249_v18, 0.0 }
  0x93   : > { %251 = vst [vmem:[%s217_s5] sm:$0xff] %v250_v19 }
  0x94 PF: > { %s14_s15 = sadd.s32 1, %s352_s15  }
  0x95   : > { %p11_p4 = scmp.ge.s32.totalorder %s14_s15, 4  }
  0x97   :  { %13 = sbr.rel (!%p11_p4) target bundleno = 1 (0x1), region = 69 }

// kernel: basic_block_forward.3
= control target key start
LH: loop header
LB: loop body
LE: loop exit
PB: predicated region body
PF: predicated region fallthrough
CT: control target
= control target key end

     0   :  { %s7165_s12 = smov 0   ;;  %s9110_s0 = inlined_call_operand.vmem [shape: f32[2,4,256], index: 0, kind: input, shape index: {}]   ;;  %s9111_s1 = inlined_call_operand.vmem [shape: bf16[9,4,4], index: 1, kind: input, shape index: {}]   ;;  %s9112_s2 = inlined_call_operand.vmem [shape: bf16[2,4,256], index: 2, kind: output, shape index: {0}]   ;;  %s9113_s3 = inlined_call_operand.vmem [shape: f32[2,2,4], index: 3, kind: output, shape index: {1}]  }
   0x1 LB: > { %s5835_s13 = sadd.s32 4294967295, %s7142_s12   ;;  %p5839_p0 = scmp.ge.s32.totalorder %s7142_s12, 1  ;;  %s7142_s12 = sphi %s7165_s12, %s14_s12  }
   0x2   : > { %p140_p1 = scmp.lt.s32.totalorder %s7142_s12, 3 }
   0x4   : > { %p141_p2 = pnand %p5839_p0, %p140_p1 }
   0x6   : > { %144 = sbr.rel (%p141_p2) target bundleno = 899 (0x383), region = 28 }
   0xd   : > { %p168_p3 = scmp.lt.s32.totalorder %s5835_s13, 1  ;;  %vm186_vm0 = vcmask 24576   ;;  %vm193_vm1 = vsmask.f32 256  ;;  %v198_v1 = vld [vmem:[#allocation2 + $0xc] sm:$0x1] }
   0xe   : > { %vm7175_vm2 = vmand %vm186_vm0, %vm193_vm1  ;;  %vm249_vm3 = vsmask.f32 7938  ;;  %vm183_vm4 = vcmask 27648   ;;  %v9125_v4 = vmov 0  ;;  %v254_v5 = vld [vmem:[#allocation2 + $0x14] sm:$0x1] }
   0xf   : > { %s9180_s13 = smov (!%p168_p3, %s5835_s13), 1  ;;  %v199_v2 = vsel %vm7175_vm2, 0, %v198_v1  ;;  %vm7192_vm5 = vmand %vm186_vm0, %vm249_vm3  ;;  %v7144_v7 = vmov 0   ;;  %v201_v8 = vld [vmem:[#allocation2 + $0x18] sm:$0x1]  ;;  %vm1441_vm8 = vcmask 1041408  }
  0x10   : > { %200 = vst [vmem:[#allocation2 + $0xc] sm:$0x1] %v199_v2  ;;  %s6225_s14 = sshll.u32 %s9180_s13, 3  ;;  %v9126_v4 = vsel %vm7192_vm5, 4294967295, %v9125_v4  ;;  %v255_v6 = vsel %vm7192_vm5, 0, %v254_v5  ;;  %v202_v9 = vsel %vm7175_vm2, 0, %v201_v8  ;;  %vm7294_vm11 = vmand %vm183_vm4, %vm249_vm3 }
  0x11   : > { %s172_s17 = scalar_lea.vmem %s9110_s0, %s6225_s14  ;;  %9127 = vst [vmem:[#allocation3_spill] sm:$0xff] %v9126_v4  ;;  %184 = vst.msk [vmem:[#allocation2] sm:$0xf] %vm183_vm4, %v7144_v7  ;;  %v257_v10 = vld [vmem:[#allocation2 + $0x20] sm:$0x1]  ;;  %vm1392_vm10 = vcmask 31744  }
  0x12   : > { %v7187_v3 = vld [vmem:[%s172_s17] sm:$0xff]  ;;  %185 = vst.msk [vmem:[#allocation2 + $0x4] sm:$0xf] %vm183_vm4, %v7144_v7  ;;  %189 = vst.msk [vmem:[#allocation2 + $0xcc] sm:$0xf] %vm183_vm4, %v7144_v7  ;;  %v258_v12 = vsel %vm7192_vm5, 0, %v257_v10 }
  0x13   : > { %309 = vxpose.xlu0.b32.start.end [1/1] (short) %v7187_v3, 128  ;;  %187 = vst.msk [vmem:[#allocation2 + $0x8] sm:$0x1] %vm186_vm0, %v7144_v7  ;;  %191 = vst.msk [vmem:[#allocation2 + $0xd4] sm:$0x1] %vm186_vm0, %v7144_v7  ;;  %v204_v14 = vld [vmem:[#allocation2 + $0x24] sm:$0x1]  ;;  %v307_v57 = vcombine.high %v7187_v3, %v7187_v3 }
  0x14   : > { %190 = vst.msk [vmem:[#allocation2 + $0xd0] sm:$0xf] %vm183_vm4, %v7144_v7  ;;  %256 = vst [vmem:[#allocation2 + $0x14] sm:$0x1] %v255_v6  ;;  %v205_v16 = vsel %vm7175_vm2, 0, %v204_v14  ;;  %vm1946_vm14 = vcmask 1042432  }
  0x15   : > { %203 = vst [vmem:[#allocation2 + $0x18] sm:$0x1] %v202_v9  ;;  %259 = vst [vmem:[#allocation2 + $0x20] sm:$0x1] %v258_v12  ;;  %v260_v18 = vld [vmem:[#allocation2 + $0x2c] sm:$0x1] }
  0x16   : > { %206 = vst [vmem:[#allocation2 + $0x24] sm:$0x1] %v205_v16  ;;  %v261_v19 = vsel %vm7192_vm5, 0, %v260_v18  ;;  %v207_v26 = vld [vmem:[#allocation2 + $0x30] sm:$0x1]  ;;  %vm1947_vm15 = vcmask 1046532  }
  0x17   : > { %262 = vst [vmem:[#allocation2 + $0x2c] sm:$0x1] %v261_v19  ;;  %v208_v29 = vsel %vm7175_vm2, 0, %v207_v26  ;;  %vm955_vm6 = vsmask.f32 3328  ;;  %vm7578_vm0 = vmor %vm1946_vm14, %vm1947_vm15  ;;  %s6226_s17 = sshll.u32 %s9180_s13, 2 }
  0x18   : > { %v195_v11 = vld [vmem:[#allocation2] sm:$0x1]  ;;  %209 = vst [vmem:[#allocation2 + $0x30] sm:$0x1] %v208_v29  ;;  %vm956_vm7 = vsmask.f32 7440  ;;  %s177_s20 = scalar_lea.vmem %s9112_s2, %s6226_s17 }
  0x19   : > { %v196_v13 = vsel %vm7175_vm2, 0, %v195_v11  ;;  %v907_v21 = vld [vmem:[#allocation2 + $0x4] sm:$0xf]  ;;  %v263_v35 = vld [vmem:[#allocation2 + $0x38] sm:$0x1]  ;;  %vm7223_vm9 = vmor %vm955_vm6, %vm956_vm7  ;;  %s5844_s21 = sshll.u32 %s9180_s13, 1 }
  0x1a   : > { %197 = vst [vmem:[#allocation2] sm:$0x1] %v196_v13  ;;  %v251_v15 = vld [vmem:[#allocation2 + $0x8] sm:$0x1]  ;;  %v968_v24 = vshll.u32 %v907_v21, 16  ;;  %v972_v25 = vshrl.u32 %v907_v21, 16  ;;  %s181_s24 = scalar_lea.vmem %s9113_s3, %s5844_s21 }
  0x1b   : > { %v252_v17 = vsel %vm7192_vm5, 0, %v251_v15  ;;  %v264_v38 = vsel %vm7192_vm5, 0, %v263_v35  ;;  %v5877_v39 = vld [vmem:[%s9111_s1 + $0x2] sm:$0x3]  ;;  %v210_v46 = vld [vmem:[#allocation2 + $0x3c] sm:$0x1] }
  0x1c   : > { %253 = vst [vmem:[#allocation2 + $0x8] sm:$0x1] %v252_v17  ;;  %v970_v31 = vrot.slane %v968_v24, 5  ;;  %v974_v33 = vrot.slane %v972_v25, 4  ;;  %265 = vst [vmem:[#allocation2 + $0x38] sm:$0x1] %v264_v38  ;;  %6976 = vmatprep.subr.msk.bf16.mxu1 %vm1441_vm8, %v5877_v39 }
  0x1d   : > { %v1443_v41 = vsel %vm1441_vm8, %v5877_v39, 0  ;;  %v211_v48 = vsel %vm7175_vm2, 0, %v210_v46  ;;  %v266_v49 = vld [vmem:[#allocation2 + $0x44] sm:$0x1]  ;;  %v6024_v51 = vld [vmem:[%s9111_s1 + $0x8] sm:$0x3] }
  0x1e   : > { %v975_v37 = vor.u32 %v974_v33, %v970_v31  ;;  %6413 = vmatpush3.bf16.msra.mxu1 %v1443_v41  ;;  %212 = vst [vmem:[#allocation2 + $0x3c] sm:$0x1] %v211_v48  ;;  %v267_v50 = vsel %vm7192_vm5, 0, %v266_v49  ;;  %v213_v52 = vld [vmem:[#allocation2 + $0x48] sm:$0x1]  ;;  %6980 = vmatprep.subr.msk.bf16.mxu0 %vm1441_vm8, %v6024_v51  ;;  %v7243_v53 = vsel %vm1441_vm8, %v6024_v51, 0 }
  0x1f   : > { %268 = vst [vmem:[#allocation2 + $0x44] sm:$0x1] %v267_v50  ;;  %9130 = vst [vmem:[#allocation4_spill] sm:$0xff] %v7243_v53  ;;  %v214_v54 = vsel %vm7175_vm2, 0, %v213_v52  ;;  %6549 = vmatpush3.bf16.msra.mxu0 %v7243_v53  ;;  %v269_v55 = vld [vmem:[#allocation2 + $0x50] sm:$0x1] }
  0x20   : > { %v976_v43 = vrot.slane %v975_v37, 4  ;;  %215 = vst [vmem:[#allocation2 + $0x48] sm:$0x1] %v214_v54  ;;  %v270_v56 = vsel %vm7192_vm5, 0, %v269_v55  ;;  %v216_v58 = vld [vmem:[#allocation2 + $0x54] sm:$0x1] }
  0x21   : > { %v906_v20 = vld [vmem:[#allocation2] sm:$0xf]  ;;  %271 = vst [vmem:[#allocation2 + $0x50] sm:$0x1] %v270_v56  ;;  %v217_v59 = vsel %vm7175_vm2, 0, %v216_v58 }
  0x22   : > { %v959_v22 = vshrl.u32 %v906_v20, 16  ;;  %v962_v23 = vshll.u32 %v906_v20, 16  ;;  %218 = vst [vmem:[#allocation2 + $0x54] sm:$0x1] %v217_v59  ;;  %v272_v60 = vld [vmem:[#allocation2 + $0x5c] sm:$0x1] }
  0x23   : > { %v939_v30 = vld [vmem:[#allocation2 + $0x8] sm:$0x1]  ;;  %v219_v61 = vld [vmem:[#allocation2 + $0x60] sm:$0x1]  ;;  %v273_v62 = vsel %vm7192_vm5, 0, %v272_v60 }
  0x24   : > { %v961_v27 = vrot.slane %v959_v22, 4  ;;  %v964_v28 = vrot.slane %v962_v23, 5  ;;  %v978_v34 = vshll.u32 %v939_v30, 16  ;;  %v220_v63 = vsel %vm7175_vm2, 0, %v219_v61  ;;  %274 = vst [vmem:[#allocation2 + $0x5c] sm:$0x1] %v273_v62 }
  0x25   : > { %221 = vst [vmem:[#allocation2 + $0x60] sm:$0x1] %v220_v63  ;;  %v275_v1 = vld [vmem:[#allocation2 + $0x68] sm:$0x1]  ;;  %v222_v2 = vld [vmem:[#allocation2 + $0x6c] sm:$0x1] }
  0x26   : > { %v965_v32 = vor.u32 %v964_v28, %v961_v27  ;;  %v980_v44 = vrot.slane %v978_v34, 5  ;;  %v276_v3 = vsel %vm7192_vm5, 0, %v275_v1  ;;  %v223_v5 = vsel %vm7175_vm2, 0, %v222_v2  ;;  %v278_v6 = vld [vmem:[#allocation2 + $0x74] sm:$0x1] }
  0x27   : > { %277 = vst [vmem:[#allocation2 + $0x68] sm:$0x1] %v276_v3  ;;  %224 = vst [vmem:[#allocation2 + $0x6c] sm:$0x1] %v223_v5  ;;  %v225_v7 = vld [vmem:[#allocation2 + $0x78] sm:$0x1] }
  0x28   : > { %v966_v36 = vrot.slane %v965_v32, 4  ;;  %v981_v45 = vsel %vm7223_vm9, %v976_v43, %v980_v44  ;;  %v279_v8 = vsel %vm7192_vm5, 0, %v278_v6  ;;  %v226_v9 = vsel %vm7175_vm2, 0, %v225_v7  ;;  %v281_v10 = vld [vmem:[#allocation2 + $0x80] sm:$0x1] }
  0x29   : > { %280 = vst [vmem:[#allocation2 + $0x74] sm:$0x1] %v279_v8  ;;  %227 = vst [vmem:[#allocation2 + $0x78] sm:$0x1] %v226_v9  ;;  %v282_v11 = vsel %vm7192_vm5, 0, %v281_v10 }
  0x2a   : > { %v971_v42 = vsel %vm7223_vm9, %v966_v36, %v970_v31  ;;  %v228_v12 = vld [vmem:[#allocation2 + $0x84] sm:$0x1]  ;;  %283 = vst [vmem:[#allocation2 + $0x80] sm:$0x1] %v282_v11  ;;  %v284_v14 = vld [vmem:[#allocation2 + $0x8c] sm:$0x1] }
  0x2b   : > { %v5878_v47 = vcombine.low %v971_v42, %v981_v45  ;;  %v229_v13 = vsel %vm7175_vm2, 0, %v228_v12  ;;  %v7273_v15 = vld [vmem:[%s9111_s1] sm:$0x3]  ;;  %v7278_v16 = vld [vmem:[%s9111_s1 + $0xa] sm:$0x3]  ;;  %v285_v17 = vsel %vm7192_vm5, 0, %v284_v14 }
  0x2c   : > { %230 = vst [vmem:[#allocation2 + $0x84] sm:$0x1] %v229_v13  ;;  %6977 = vmatprep.subr.msk.bf16.mxu1 %vm1441_vm8, %v7273_v15  ;;  %6982 = vmatprep.subr.msk.bf16.mxu0 %vm1441_vm8, %v7278_v16  ;;  %v231_v18 = vld [vmem:[#allocation2 + $0x90] sm:$0x1]  ;;  %286 = vst [vmem:[#allocation2 + $0x8c] sm:$0x1] %v285_v17 }
  0x2d   : > { %6414 = vmatprep.mubr.msk.bf16.mxu1 %vm1392_vm10, %v5878_v47  ;;  %v232_v19 = vsel %vm7175_vm2, 0, %v231_v18  ;;  %v287_v22 = vld [vmem:[#allocation2 + $0x98] sm:$0x1]  ;;  %v234_v26 = vld [vmem:[#allocation2 + $0x9c] sm:$0x1] }
  0x2e   : > { %233 = vst [vmem:[#allocation2 + $0x90] sm:$0x1] %v232_v19  ;;  %v288_v24 = vsel %vm7192_vm5, 0, %v287_v22  ;;  %v235_v30 = vsel %vm7175_vm2, 0, %v234_v26  ;;  %v794_v32 = vld [vmem:[#allocation2 + $0xc] sm:$0xf] }
  0x2f   : > { %289 = vst [vmem:[#allocation2 + $0x98] sm:$0x1] %v288_v24  ;;  %236 = vst [vmem:[#allocation2 + $0x9c] sm:$0x1] %v235_v30  ;;  %vm469_vm12 = vsmask.f32 4368 }
  0x30   : > { %vm7301_vm13 = vmor %vm193_vm1, %vm469_vm12  ;;  %v798_v42 = vld [vmem:[#allocation2 + $0x14] sm:$0x1]  ;;  %v290_v49 = vld [vmem:[#allocation2 + $0xa4] sm:$0x1]  ;;  %vm5667_vm1 = vcmask 1040384  }
  0x31   : > { %v801_v55 = vld [vmem:[#allocation2 + $0x18] sm:$0xf]  ;;  %v291_v56 = vsel %vm7192_vm5, 0, %v290_v49  ;;  %v805_v7 = vld [vmem:[#allocation2 + $0x20] sm:$0x1] }
  0x32   : > { %292 = vst [vmem:[#allocation2 + $0xa4] sm:$0x1] %v291_v56 }
  0x50   : > { %341 = vxpose.xlu0.b32.start.end [1/1] (short) %v307_v57, 128  ;;  %v237_v57 = vld [vmem:[#allocation2 + $0xa8] sm:$0x1] }
  0x51   : > { %v238_v62 = vsel %vm7175_vm2, 0, %v237_v57 }
  0x52   : > { %239 = vst [vmem:[#allocation2 + $0xa8] sm:$0x1] %v238_v62 }
  0x93   : > { %v325_v20 = vpop.trf.xlu0 }
  0x94   : > { %v6227_v21 = vpack.c.bf16 %v325_v20, %v325_v20 }
  0x96   : > { %v472_v23 = vshrl.u32 %v6227_v21, 16  ;;  %v475_v28 = vshll.u32 %v6227_v21, 16 }
  0x97   : > { %v326_v25 = vpop.trf.xlu0 }
  0x98   : > { %v474_v27 = vrot.slane %v472_v23, 7  ;;  %v6228_v29 = vpack.c.bf16 %v326_v25, %v326_v25 }
  0x9a   : > { %v477_v33 = vor.u32 %v475_v28, %v474_v27  ;;  %v480_v34 = vshrl.u32 %v6228_v29, 16  ;;  %v483_v38 = vshll.u32 %v6228_v29, 16  ;;  %v478_v43 = vrot.slane %v474_v27, 4  ;;  %v808_v29 = vld [vmem:[#allocation2 + $0x24] sm:$0xf] }
  0x9b   : > { %v327_v35 = vpop.trf.xlu0 }
  0x9c   : > { %v795_v36 = vsel %vm7294_vm11, %v477_v33, %v794_v32  ;;  %v482_v37 = vrot.slane %v480_v34, 7  ;;  %v6229_v39 = vpack.c.bf16 %v327_v35, %v327_v35 }
  0x9d   : > { %796 = vst [vmem:[#allocation2 + $0xc] sm:$0xf] %v795_v36 }
  0x9e   : > { %v485_v44 = vor.u32 %v483_v38, %v482_v37  ;;  %v487_v45 = vrot.slane %v482_v37, 4  ;;  %v489_v46 = vshrl.u32 %v6229_v39, 16  ;;  %v492_v47 = vshll.u32 %v6229_v39, 16 }
  0x9f   : > { %v328_v48 = vpop.trf.xlu0  ;;  %v7323_v37 = vsel %vm1441_vm8, %v7273_v15, 0  ;;  %v7327_v38 = vsel %vm1441_vm8, %v7278_v16, 0  ;;  %v812_v15 = vld [vmem:[#allocation2 + $0x2c] sm:$0x1] }
  0xa0   : > { %v486_v50 = vsel %vm7301_vm13, %v478_v43, %v485_v44  ;;  %v799_v51 = vsel %vm7175_vm2, %v487_v45, %v798_v42  ;;  %v491_v52 = vrot.slane %v489_v46, 7  ;;  %v6230_v54 = vpack.c.bf16 %v328_v48, %v328_v48 }
  0xa1   : > { %797 = vst.msk [vmem:[#allocation2 + $0x10] sm:$0xf] %vm183_vm4, %v486_v50  ;;  %800 = vst [vmem:[#allocation2 + $0x14] sm:$0x1] %v799_v51 }
  0xa2   : > { %v494_v58 = vor.u32 %v492_v47, %v491_v52  ;;  %v497_v59 = vshrl.u32 %v6230_v54, 16  ;;  %v495_v60 = vrot.slane %v491_v52, 4  ;;  %v500_v2 = vshll.u32 %v6230_v54, 16 }
  0xa3   : > { %v329_v61 = vpop.trf.xlu0 }
  0xa4   : > { %v802_v63 = vsel %vm7294_vm11, %v494_v58, %v801_v55  ;;  %v499_v1 = vrot.slane %v497_v59, 7  ;;  %v6231_v3 = vpack.c.bf16 %v329_v61, %v329_v61  ;;  %v908_v5 = vld [vmem:[#allocation2 + $0xc] sm:$0xf] }
  0xa5   : > { %v2713_v6 = vld [vmem:[#allocation2 + $0xc] sm:$0xf]  ;;  %803 = vst [vmem:[#allocation2 + $0x18] sm:$0xf] %v802_v63  ;;  %v983_v8 = vshrl.u32 %v908_v5, 16  ;;  %v986_v9 = vshll.u32 %v908_v5, 16 }
  0xa6   : > { %v2762_v10 = vshrl.u32 %v2713_v6, 16  ;;  %v2765_v11 = vshll.u32 %v2713_v6, 16  ;;  %v502_v12 = vor.u32 %v500_v2, %v499_v1  ;;  %v504_v13 = vrot.slane %v499_v1, 4 }
  0xa7   : > { %v506_v14 = vshrl.u32 %v6231_v3, 16  ;;  %v509_v17 = vshll.u32 %v6231_v3, 16  ;;  %v330_v18 = vpop.trf.xlu0  ;;  %v985_v19 = vrot.slane %v983_v8, 4  ;;  %v988_v20 = vrot.slane %v986_v9, 5 }
  0xa8   : > { %v2764_v21 = vrot.slane %v2762_v10, 4  ;;  %v2767_v22 = vrot.slane %v2765_v11, 5  ;;  %v503_v23 = vsel %vm7301_vm13, %v495_v60, %v502_v12  ;;  %v806_v24 = vsel %vm7175_vm2, %v504_v13, %v805_v7  ;;  %v909_v27 = vld [vmem:[#allocation2 + $0x10] sm:$0xf]  ;;  %v940_v28 = vld [vmem:[#allocation2 + $0x14] sm:$0x1] }
  0xa9   : > { %v508_v25 = vrot.slane %v506_v14, 7  ;;  %v6232_v26 = vpack.c.bf16 %v330_v18, %v330_v18  ;;  %804 = vst.msk [vmem:[#allocation2 + $0x1c] sm:$0xf] %vm183_vm4, %v503_v23  ;;  %807 = vst [vmem:[#allocation2 + $0x20] sm:$0x1] %v806_v24  ;;  %v989_v30 = vor.u32 %v988_v20, %v985_v19  ;;  %v992_v32 = vshll.u32 %v909_v27, 16 }
  0xaa   : > { %v996_v33 = vshrl.u32 %v909_v27, 16  ;;  %v1002_v34 = vshll.u32 %v940_v28, 16  ;;  %v7331_v50 = vld [vmem:[#allocation2 + $0x10] sm:$0xf]  ;;  %v2768_v54 = vor.u32 %v2767_v22, %v2764_v21  ;;  %v7335_v59 = vld [vmem:[#allocation2 + $0x14] sm:$0x1] }
  0xab   : > { %v511_v35 = vor.u32 %v509_v17, %v508_v25  ;;  %v514_v36 = vshrl.u32 %v6232_v26, 16  ;;  %v512_v39 = vrot.slane %v508_v25, 4  ;;  %v331_v42 = vpop.trf.xlu0  ;;  %v990_v43 = vrot.slane %v989_v30, 4  ;;  %v815_v7 = vld [vmem:[#allocation2 + $0x30] sm:$0xf] }
  0xac   : > { %v994_v44 = vrot.slane %v992_v32, 5  ;;  %v998_v45 = vrot.slane %v996_v33, 4  ;;  %v517_v48 = vshll.u32 %v6232_v26, 16  ;;  %v6233_v49 = vpack.c.bf16 %v331_v42, %v331_v42  ;;  %v910_v18 = vld [vmem:[#allocation2 + $0x18] sm:$0xf] }
  0xad   : > { %v809_v46 = vsel %vm7294_vm11, %v511_v35, %v808_v29  ;;  %v516_v47 = vrot.slane %v514_v36, 7  ;;  %v1004_v52 = vrot.slane %v1002_v34, 5  ;;  %v2769_v62 = vrot.slane %v2768_v54, 4  ;;  %v819_v25 = vld [vmem:[#allocation2 + $0x38] sm:$0x1] }
  0xae   : > { %810 = vst [vmem:[#allocation2 + $0x24] sm:$0xf] %v809_v46  ;;  %v995_v51 = vsel %vm7223_vm9, %v990_v43, %v994_v44  ;;  %v999_v16 = vor.u32 %v998_v45, %v994_v44  ;;  %v523_v57 = vshrl.u32 %v6233_v49, 16  ;;  %v526_v58 = vshll.u32 %v6233_v49, 16  ;;  %v2716_v35 = vld [vmem:[#allocation2 + $0x18] sm:$0xf] }
  0xaf   : > { %v519_v55 = vor.u32 %v517_v48, %v516_v47  ;;  %v521_v56 = vrot.slane %v516_v47, 4  ;;  %v332_v60 = vpop.trf.xlu0  ;;  %v2771_v63 = vshll.u32 %v7331_v50, 16  ;;  %v2775_v1 = vshrl.u32 %v7331_v50, 16  ;;  %v822_v54 = vld [vmem:[#allocation2 + $0x3c] sm:$0xf] }
  0xb0   : > { %v1000_v61 = vrot.slane %v999_v16, 4  ;;  %v525_v5 = vrot.slane %v523_v57, 7  ;;  %v6234_v6 = vpack.c.bf16 %v332_v60, %v332_v60  ;;  %v2781_v11 = vshll.u32 %v7335_v59, 16  ;;  %v911_v29 = vld [vmem:[#allocation2 + $0x1c] sm:$0xf] }
  0xb1   : > { %v520_v2 = vsel %vm7301_vm13, %v512_v39, %v519_v55  ;;  %v813_v3 = vsel %vm7175_vm2, %v521_v56, %v812_v15  ;;  %v2773_v9 = vrot.slane %v2771_v63, 5  ;;  %v2777_v10 = vrot.slane %v2775_v1, 4  ;;  %v941_v44 = vld [vmem:[#allocation2 + $0x20] sm:$0x1]  ;;  %v7075_v0 = vld [vmem:[#allocation2 + $0x18] sm:$0xf] }
  0xb2   : > { %811 = vst.msk [vmem:[#allocation2 + $0x28] sm:$0xf] %vm183_vm4, %v520_v2  ;;  %814 = vst [vmem:[#allocation2 + $0x2c] sm:$0x1] %v813_v3  ;;  %v1005_v8 = vsel %vm7223_vm9, %v1000_v61, %v1004_v52  ;;  %v528_v12 = vor.u32 %v526_v58, %v525_v5  ;;  %v529_v13 = vrot.slane %v525_v5, 4  ;;  %v531_v14 = vshrl.u32 %v6234_v6, 16 }
  0xb3   : > { %v534_v17 = vshll.u32 %v6234_v6, 16  ;;  %v333_v19 = vpop.trf.xlu0  ;;  %v5879_v20 = vcombine.low %v995_v51, %v1005_v8  ;;  %v2774_v21 = vsel %vm7223_vm9, %v2769_v62, %v2773_v9  ;;  %v2778_v22 = vor.u32 %v2777_v10, %v2773_v9  ;;  %v7363_v62 = vld [vmem:[#allocation2 + $0x1c] sm:$0xf]  ;;  %v826_v8 = vld [vmem:[#allocation2 + $0x44] sm:$0x1] }
  0xb4   : > { %v2783_v23 = vrot.slane %v2781_v11, 5  ;;  %v816_v24 = vsel %vm7294_vm11, %v528_v12, %v815_v7  ;;  %v533_v26 = vrot.slane %v531_v14, 7  ;;  %v6235_v27 = vpack.c.bf16 %v333_v19, %v333_v19 }
  0xb5   : > { %v3505_v28 = vrot.slane %v7331_v50, 5  ;;  %817 = vst [vmem:[#allocation2 + $0x30] sm:$0xf] %v816_v24  ;;  %6415 = vmatmul.mubr.msk.bf16.vlgmr.msra.gmra.mrb[0].mxu1 %vm1392_vm10, %v5879_v20  ;;  %v2779_v30 = vrot.slane %v2778_v22, 4  ;;  %v3508_v32 = vrot.slane %v7335_v59, 5  ;;  %v1007_v33 = vshrl.u32 %v910_v18, 16 }
  0xb6   : > { %v1010_v34 = vshll.u32 %v910_v18, 16  ;;  %v536_v36 = vor.u32 %v534_v17, %v533_v26  ;;  %v538_v39 = vrot.slane %v533_v26, 4  ;;  %v540_v42 = vshrl.u32 %v6235_v27, 16  ;;  %6447 = vmatpush3.bf16.msra.mxu1 %v7323_v37  ;;  %v7369_v17 = vld [vmem:[#allocation2 + $0x20] sm:$0x1] }
  0xb7   : > { %v543_v43 = vshll.u32 %v6235_v27, 16  ;;  %v2784_v45 = vsel %vm7223_vm9, %v2779_v30, %v2783_v23  ;;  %v334_v46 = vpop.trf.xlu0  ;;  %v1009_v47 = vrot.slane %v1007_v33, 4  ;;  %v1016_v49 = vshll.u32 %v911_v29, 16 }
  0xb8   : > { %v1012_v48 = vrot.slane %v1010_v34, 5  ;;  %v537_v15 = vsel %vm7301_vm13, %v529_v13, %v536_v36  ;;  %v820_v51 = vsel %vm7175_vm2, %v538_v39, %v819_v25  ;;  %v542_v16 = vrot.slane %v540_v42, 7  ;;  %v829_v39 = vld [vmem:[#allocation2 + $0x48] sm:$0xf] }
  0xb9   : > { %v6025_v52 = vcombine.low %v2774_v21, %v2784_v45  ;;  %818 = vst.msk [vmem:[#allocation2 + $0x34] sm:$0xf] %vm183_vm4, %v537_v15  ;;  %821 = vst [vmem:[#allocation2 + $0x38] sm:$0x1] %v820_v51  ;;  %v6236_v37 = vpack.c.bf16 %v334_v46, %v334_v46  ;;  %v1018_v56 = vrot.slane %v1016_v49, 5  ;;  %v1020_v57 = vshrl.u32 %v911_v29, 16 }
  0xba   : > { %v1013_v55 = vor.u32 %v1012_v48, %v1009_v47  ;;  %v545_v58 = vor.u32 %v543_v43, %v542_v16  ;;  %v546_v60 = vrot.slane %v542_v16, 4  ;;  %v1026_v61 = vshll.u32 %v941_v44, 16  ;;  %v912_v44 = vld [vmem:[#allocation2 + $0x24] sm:$0xf] }
  0xbb   : > { %6550 = vmatprep.mubr.msk.bf16.mxu0 %vm1392_vm10, %v6025_v52  ;;  %v2786_v63 = vshrl.u32 %v2716_v35, 16  ;;  %v548_v1 = vshrl.u32 %v6236_v37, 16  ;;  %v551_v2 = vshll.u32 %v6236_v37, 16  ;;  %v335_v3 = vpop.trf.xlu0  ;;  %v1022_v6 = vrot.slane %v1020_v57, 4  ;;  %v913_v57 = vld [vmem:[#allocation2 + $0x28] sm:$0xf] }
  0xbc   : > { %v1014_v5 = vrot.slane %v1013_v55, 4  ;;  %v823_v7 = vsel %vm7294_vm11, %v545_v58, %v822_v54  ;;  %v6237_v9 = vpack.c.bf16 %v335_v3, %v335_v3  ;;  %v1028_v10 = vrot.slane %v1026_v61, 5  ;;  %v2719_v58 = vld [vmem:[#allocation2 + $0x24] sm:$0xf] }
  0xbd   : > { %v2788_v11 = vrot.slane %v2786_v63, 4  ;;  %824 = vst [vmem:[#allocation2 + $0x3c] sm:$0xf] %v823_v7  ;;  %v550_v12 = vrot.slane %v548_v1, 7  ;;  %v1023_v14 = vor.u32 %v1022_v6, %v1018_v56  ;;  %v2789_v18 = vshll.u32 %v2716_v35, 16 }
  0xbe   : > { %v1019_v13 = vsel %vm7223_vm9, %v1014_v5, %v1018_v56  ;;  %v557_v19 = vshrl.u32 %v6237_v9, 16  ;;  %v560_v20 = vshll.u32 %v6237_v9, 16  ;;  %v2795_v21 = vshll.u32 %v7363_v62, 16  ;;  %v942_v63 = vld [vmem:[#allocation2 + $0x2c] sm:$0x1] }
  0xbf   : > { %v2799_v22 = vshrl.u32 %v7363_v62, 16  ;;  %v553_v23 = vor.u32 %v551_v2, %v550_v12  ;;  %v555_v24 = vrot.slane %v550_v12, 4  ;;  %v1024_v25 = vrot.slane %v1023_v14, 4  ;;  %v336_v27 = vpop.trf.xlu0 }
  0xc0   : > { %v2791_v26 = vrot.slane %v2789_v18, 5  ;;  %v7373_v29 = vrot.slane %v557_v19, 7  ;;  %v2797_v30 = vrot.slane %v2795_v21, 5  ;;  %v2805_v34 = vshll.u32 %v7369_v17, 16 }
  0xc1   : > { %v2801_v33 = vrot.slane %v2799_v22, 4  ;;  %v554_v35 = vsel %vm7301_vm13, %v546_v60, %v553_v23  ;;  %v827_v36 = vsel %vm7175_vm2, %v555_v24, %v826_v8  ;;  %v1029_v42 = vsel %vm7223_vm9, %v1024_v25, %v1028_v10  ;;  %v6106_v8 = vld [vmem:[%s9111_s1 + $0xc] sm:$0x3]  ;;  %v833_v10 = vld [vmem:[#allocation2 + $0x50] sm:$0x1] }
  0xc2   : > { %v2792_v43 = vor.u32 %v2791_v26, %v2788_v11  ;;  %825 = vst.msk [vmem:[#allocation2 + $0x40] sm:$0xf] %vm183_vm4, %v554_v35  ;;  %828 = vst [vmem:[#allocation2 + $0x44] sm:$0x1] %v827_v36  ;;  %v562_v45 = vor.u32 %v560_v20, %v7373_v29  ;;  %v563_v46 = vrot.slane %v7373_v29, 4  ;;  %v5880_v47 = vcombine.low %v1019_v13, %v1029_v42 }
  0xc3   : > { %v2802_v48 = vor.u32 %v2801_v33, %v2797_v30  ;;  %v2807_v15 = vrot.slane %v2805_v34, 5  ;;  %v3512_v51 = vrot.slane %v7363_v62, 5  ;;  %v3515_v16 = vrot.slane %v7369_v17, 5  ;;  %v337_v52 = vpop.trf.xlu0  ;;  %v836_v22 = vld [vmem:[#allocation2 + $0x54] sm:$0xf] }
  0xc4   : > { %v2793_v49 = vrot.slane %v2792_v43, 4  ;;  %v830_v54 = vsel %vm7294_vm11, %v562_v45, %v829_v39  ;;  %6418 = vmatprep.mubr.msk.bf16.mxu1 %vm1392_vm10, %v5880_v47  ;;  %v6238_v55 = vpack.c.bf16 %v336_v27, %v336_v27  ;;  %v6239_v56 = vpack.c.bf16 %v337_v52, %v337_v52  ;;  %v7406_v34 = vld [vmem:[#allocation2 + $0x28] sm:$0xf]  ;;  %v7409_v43 = vld [vmem:[#allocation2 + $0x2c] sm:$0x1] }
  0xc5   : > { %v2803_v37 = vrot.slane %v2802_v48, 4  ;;  %831 = vst [vmem:[#allocation2 + $0x48] sm:$0xf] %v830_v54  ;;  %v7394_v61 = vrot.slane %v3512_v51, 4  ;;  %v1031_v1 = vshrl.u32 %v912_v44, 16  ;;  %v1034_v2 = vshll.u32 %v912_v44, 16 }
  0xc6   : > { %v2798_v60 = vsel %vm7223_vm9, %v2793_v49, %v2797_v30  ;;  %v565_v5 = vshrl.u32 %v6238_v55, 16  ;;  %v568_v6 = vshll.u32 %v6238_v55, 16  ;;  %v574_v7 = vshrl.u32 %v6239_v56, 16 }
  0xc7   : > { %v2808_v3 = vsel %vm7223_vm9, %v2803_v37, %v2807_v15  ;;  %v577_v11 = vshll.u32 %v6239_v56, 16  ;;  %v1033_v12 = vrot.slane %v1031_v1, 4  ;;  %v1036_v13 = vrot.slane %v1034_v2, 5  ;;  %v338_v14 = vpop.trf.xlu0 }
  0xc8   : > { %v6026_v9 = vcombine.low %v2798_v60, %v2808_v3  ;;  %v567_v18 = vrot.slane %v565_v5, 7  ;;  %v7401_v19 = vrot.slane %v574_v7, 7  ;;  %v1040_v20 = vshll.u32 %v913_v57, 16 }
  0xc9   : > { %v1044_v21 = vshrl.u32 %v913_v57, 16  ;;  %v1037_v23 = vor.u32 %v1036_v13, %v1033_v12  ;;  %v1050_v24 = vshll.u32 %v942_v63, 16  ;;  %v2810_v25 = vshrl.u32 %v2719_v58, 16 }
  0xca   : > { %6551 = vmatmul.mubr.msk.bf16.vlgmr.msra.gmra.mrb[0].mxu0 %vm1392_vm10, %v6026_v9  ;;  %v2813_v26 = vshll.u32 %v2719_v58, 16  ;;  %v570_v27 = vor.u32 %v568_v6, %v567_v18  ;;  %v572_v29 = vrot.slane %v567_v18, 4  ;;  %v579_v30 = vor.u32 %v577_v11, %v7401_v19  ;;  %v915_v58 = vld [vmem:[#allocation2 + $0x34] sm:$0xf] }
  0xcb   : > { %v580_v33 = vrot.slane %v7401_v19, 4  ;;  %6583 = vmatpush3.bf16.msra.mxu0 %v7327_v38  ;;  %v1038_v35 = vrot.slane %v1037_v23, 4  ;;  %v1042_v36 = vrot.slane %v1040_v20, 5  ;;  %v1046_v39 = vrot.slane %v1044_v21, 4  ;;  %v339_v44 = vpop.trf.xlu0  ;;  %v914_v38 = vld [vmem:[#allocation2 + $0x30] sm:$0xf] }
  0xcc   : > { %v1052_v42 = vrot.slane %v1050_v24, 5  ;;  %6983 = vmatprep.subr.msk.bf16.mxu0 %vm1441_vm8, %v6106_v8  ;;  %v571_v45 = vsel %vm7301_vm13, %v563_v46, %v570_v27  ;;  %v834_v47 = vsel %vm7175_vm2, %v572_v29, %v833_v10  ;;  %v837_v48 = vsel %vm7294_vm11, %v579_v30, %v836_v22  ;;  %v840_v10 = vld [vmem:[#allocation2 + $0x5c] sm:$0x1]  ;;  %v843_v20 = vld [vmem:[#allocation2 + $0x60] sm:$0xf] }
  0xcd   : > { %v2812_v49 = vrot.slane %v2810_v25, 4  ;;  %832 = vst.msk [vmem:[#allocation2 + $0x4c] sm:$0xf] %vm183_vm4, %v571_v45  ;;  %835 = vst [vmem:[#allocation2 + $0x50] sm:$0x1] %v834_v47  ;;  %v1043_v15 = vsel %vm7223_vm9, %v1038_v35, %v1042_v36  ;;  %v1047_v52 = vor.u32 %v1046_v39, %v1042_v36  ;;  %v2815_v54 = vrot.slane %v2813_v26, 5 }
  0xce   : > { %838 = vst [vmem:[#allocation2 + $0x54] sm:$0xf] %v837_v48  ;;  %v2819_v37 = vshll.u32 %v7406_v34, 16  ;;  %v2823_v46 = vshrl.u32 %v7406_v34, 16  ;;  %v2829_v55 = vshll.u32 %v7409_v43, 16  ;;  %v6240_v56 = vpack.c.bf16 %v338_v14, %v338_v14 }
  0xcf   : > { %v6241_v57 = vpack.c.bf16 %v339_v44, %v339_v44  ;;  %v1048_v60 = vrot.slane %v1047_v52, 4  ;;  %v2816_v63 = vor.u32 %v2815_v54, %v2812_v49  ;;  %v1055_v2 = vshrl.u32 %v914_v38, 16  ;;  %v2722_v26 = vld [vmem:[#allocation2 + $0x30] sm:$0xf]  ;;  %v340_v27 = vpop.trf.xlu0  ;;  %v943_v36 = vld [vmem:[#allocation2 + $0x38] sm:$0x1] }
  0xd0   : > { %v2821_v1 = vrot.slane %v2819_v37, 5  ;;  %v2825_v3 = vrot.slane %v2823_v46, 4  ;;  %v2831_v5 = vrot.slane %v2829_v55, 5  ;;  %v582_v6 = vshrl.u32 %v6240_v56, 16  ;;  %v7433_v48 = vld [vmem:[#allocation2 + $0x34] sm:$0xf] }
  0xd1   : > { %v585_v7 = vshll.u32 %v6240_v56, 16  ;;  %v1053_v8 = vsel %vm7223_vm9, %v1048_v60, %v1052_v42  ;;  %v2817_v9 = vrot.slane %v2816_v63, 4  ;;  %v591_v11 = vshrl.u32 %v6241_v57, 16  ;;  %v7443_v54 = vld [vmem:[#allocation2 + $0x38] sm:$0x1] }
  0xd2   : > { %v594_v12 = vshll.u32 %v6241_v57, 16  ;;  %v5881_v13 = vcombine.low %v1043_v15, %v1053_v8  ;;  %v2826_v18 = vor.u32 %v2825_v3, %v2821_v1  ;;  %v584_v14 = vrot.slane %v582_v6, 7  ;;  %v916_v60 = vld [vmem:[#allocation2 + $0x3c] sm:$0xf] }
  0xd3   : > { %v1057_v21 = vrot.slane %v1055_v2, 4  ;;  %v2822_v22 = vsel %vm7223_vm9, %v2817_v9, %v2821_v1  ;;  %v7428_v23 = vrot.slane %v591_v11, 7  ;;  %v1058_v24 = vshll.u32 %v914_v38, 16 }
  0xd4   : > { %v1064_v25 = vshll.u32 %v915_v58, 16  ;;  %6419 = vmatmul.mubr.msk.bf16.gmra.mrb[4].mxu1 %vm1392_vm10, %v5881_v13  ;;  %v2827_v29 = vrot.slane %v2826_v18, 4  ;;  %v587_v30 = vor.u32 %v585_v7, %v584_v14  ;;  %v589_v35 = vrot.slane %v584_v14, 4 }
  0xd5   : > { %v1068_v39 = vshrl.u32 %v915_v58, 16  ;;  %v596_v42 = vor.u32 %v594_v12, %v7428_v23  ;;  %v597_v44 = vrot.slane %v7428_v23, 4  ;;  %v1060_v45 = vrot.slane %v1058_v24, 5 }
  0xd6   : > { %v1066_v47 = vrot.slane %v1064_v25, 5  ;;  %v2832_v49 = vsel %vm7223_vm9, %v2827_v29, %v2831_v5  ;;  %v588_v38 = vsel %vm7301_vm13, %v580_v33, %v587_v30  ;;  %v841_v15 = vsel %vm7175_vm2, %v589_v35, %v840_v10  ;;  %v357_v5 = vpop.trf.xlu0  ;;  %v944_v30 = vld [vmem:[#allocation2 + $0x44] sm:$0x1] }
  0xd7   : > { %v1070_v52 = vrot.slane %v1068_v39, 4  ;;  %v6027_v37 = vcombine.low %v2822_v22, %v2832_v49  ;;  %839 = vst.msk [vmem:[#allocation2 + $0x58] sm:$0xf] %vm183_vm4, %v588_v38  ;;  %842 = vst [vmem:[#allocation2 + $0x5c] sm:$0x1] %v841_v15  ;;  %v844_v46 = vsel %vm7294_vm11, %v596_v42, %v843_v20  ;;  %v1061_v55 = vor.u32 %v1060_v45, %v1057_v21 }
  0xd8   : > { %v1074_v56 = vshll.u32 %v943_v36, 16  ;;  %845 = vst [vmem:[#allocation2 + $0x60] sm:$0xf] %v844_v46  ;;  %v2834_v57 = vshrl.u32 %v2722_v26, 16  ;;  %v2837_v58 = vshll.u32 %v2722_v26, 16  ;;  %v2843_v33 = vshll.u32 %v7433_v48, 16 }
  0xd9   : > { %v1071_v19 = vor.u32 %v1070_v52, %v1066_v47  ;;  %6554 = vmatprep.mubr.msk.bf16.mxu0 %vm1392_vm10, %v6027_v37  ;;  %v1062_v63 = vrot.slane %v1061_v55, 4  ;;  %v2847_v2 = vshrl.u32 %v7433_v48, 16  ;;  %v2853_v3 = vshll.u32 %v7443_v54, 16  ;;  %v917_v21 = vld [vmem:[#allocation2 + $0x40] sm:$0xf] }
  0xda   : > { %v1076_v1 = vrot.slane %v1074_v56, 5  ;;  %v2836_v7 = vrot.slane %v2834_v57, 4  ;;  %v2839_v8 = vrot.slane %v2837_v58, 5  ;;  %v2845_v9 = vrot.slane %v2843_v33, 5  ;;  %v358_v38 = vpop.trf.xlu0  ;;  %v847_v52 = vld [vmem:[#allocation2 + $0x68] sm:$0x1] }
  0xdb   : > { %v1072_v6 = vrot.slane %v1071_v19, 4  ;;  %v1067_v10 = vsel %vm7223_vm9, %v1062_v63, %v1066_v47  ;;  %v2849_v11 = vrot.slane %v2847_v2, 4  ;;  %v2855_v12 = vrot.slane %v2853_v3, 5  ;;  %v850_v58 = vld [vmem:[#allocation2 + $0x6c] sm:$0xf] }
  0xdc   : > { %v6242_v13 = vpack.c.bf16 %v340_v27, %v340_v27  ;;  %v2840_v14 = vor.u32 %v2839_v8, %v2836_v7  ;;  %v6243_v20 = vpack.c.bf16 %v357_v5, %v357_v5  ;;  %v1079_v22 = vshrl.u32 %v916_v60, 16  ;;  %v2725_v63 = vld [vmem:[#allocation2 + $0x3c] sm:$0xf]  ;;  %v7465_v5 = vld [vmem:[#allocation2 + $0x40] sm:$0xf] }
  0xdd   : > { %v1077_v18 = vsel %vm7223_vm9, %v1072_v6, %v1076_v1  ;;  %v2850_v25 = vor.u32 %v2849_v11, %v2845_v9  ;;  %v1082_v47 = vshll.u32 %v916_v60, 16  ;;  %v1088_v49 = vshll.u32 %v917_v21, 16  ;;  %v7467_v6 = vld [vmem:[#allocation2 + $0x44] sm:$0x1]  ;;  %v5958_v11 = vld [vmem:[%s9111_s1 + $0x4] sm:$0x3] }
  0xde   : > { %v5882_v24 = vcombine.low %v1067_v10, %v1077_v18  ;;  %v599_v26 = vshrl.u32 %v6242_v13, 16  ;;  %v602_v29 = vshll.u32 %v6242_v13, 16  ;;  %v2841_v35 = vrot.slane %v2840_v14, 4  ;;  %v918_v18 = vld [vmem:[#allocation2 + $0x48] sm:$0xf]  ;;  %6978 = vmatprep.subr.msk.bf16.mxu1 %vm1441_vm8, %v5958_v11 }
  0xdf   : > { %v608_v36 = vshrl.u32 %v6243_v20, 16  ;;  %v611_v39 = vshll.u32 %v6243_v20, 16  ;;  %v1081_v42 = vrot.slane %v1079_v22, 4  ;;  %v2851_v45 = vrot.slane %v2850_v25, 4 }
  0xe0   : > { %6422 = vmatprep.mubr.msk.bf16.mxu1 %vm1392_vm10, %v5882_v24  ;;  %v601_v27 = vrot.slane %v599_v26, 7  ;;  %v2846_v15 = vsel %vm7223_vm9, %v2841_v35, %v2845_v9  ;;  %v1092_v46 = vshrl.u32 %v917_v21, 16  ;;  %v1098_v55 = vshll.u32 %v944_v30, 16  ;;  %v359_v24 = vpop.trf.xlu0 }
  0xe1   : > { %v7459_v37 = vrot.slane %v608_v36, 7  ;;  %v2856_v56 = vsel %vm7223_vm9, %v2851_v45, %v2855_v12  ;;  %v1084_v33 = vrot.slane %v1082_v47, 5  ;;  %v1090_v3 = vrot.slane %v1088_v49, 5 }
  0xe2   : > { %v604_v19 = vor.u32 %v602_v29, %v601_v27  ;;  %v606_v57 = vrot.slane %v601_v27, 4  ;;  %v6028_v1 = vcombine.low %v2846_v15, %v2856_v56  ;;  %v1094_v10 = vrot.slane %v1092_v46, 4 }
  0xe3   : > { %v613_v60 = vor.u32 %v611_v39, %v7459_v37  ;;  %v614_v2 = vrot.slane %v7459_v37, 4  ;;  %v1085_v9 = vor.u32 %v1084_v33, %v1081_v42  ;;  %v1100_v12 = vrot.slane %v1098_v55, 5 }
  0xe4   : > { %v605_v7 = vsel %vm7301_vm13, %v597_v44, %v604_v19  ;;  %v848_v8 = vsel %vm7175_vm2, %v606_v57, %v847_v52  ;;  %6555 = vmatmul.mubr.msk.bf16.gmra.mrb[4].mxu0 %vm1392_vm10, %v6028_v1  ;;  %v2858_v13 = vshrl.u32 %v2725_v63, 16  ;;  %v2861_v44 = vshll.u32 %v2725_v63, 16  ;;  %v854_v63 = vld [vmem:[#allocation2 + $0x74] sm:$0x1] }
  0xe5   : > { %846 = vst.msk [vmem:[#allocation2 + $0x64] sm:$0xf] %vm183_vm4, %v605_v7  ;;  %849 = vst [vmem:[#allocation2 + $0x68] sm:$0x1] %v848_v8  ;;  %v851_v23 = vsel %vm7294_vm11, %v613_v60, %v850_v58  ;;  %v1086_v14 = vrot.slane %v1085_v9, 4  ;;  %v1095_v20 = vor.u32 %v1094_v10, %v1090_v3  ;;  %v2867_v21 = vshll.u32 %v7465_v5, 16  ;;  %v360_v7 = vpop.trf.xlu0 }
  0xe6   : > { %852 = vst [vmem:[#allocation2 + $0x6c] sm:$0xf] %v851_v23  ;;  %v2871_v22 = vshrl.u32 %v7465_v5, 16  ;;  %v2860_v25 = vrot.slane %v2858_v13, 4  ;;  %v2863_v26 = vrot.slane %v2861_v44, 5  ;;  %v2877_v29 = vshll.u32 %v7467_v6, 16 }
  0xe7   : > { %v6244_v30 = vpack.c.bf16 %v358_v38, %v358_v38  ;;  %v1091_v35 = vsel %vm7223_vm9, %v1086_v14, %v1090_v3  ;;  %v1096_v36 = vrot.slane %v1095_v20, 4  ;;  %v2869_v39 = vrot.slane %v2867_v21, 5  ;;  %v919_v38 = vld [vmem:[#allocation2 + $0x4c] sm:$0xf]  ;;  %v2728_v23 = vld [vmem:[#allocation2 + $0x48] sm:$0xf] }
  0xe8   : > { %v2873_v42 = vrot.slane %v2871_v22, 4  ;;  %v2864_v45 = vor.u32 %v2863_v26, %v2860_v25  ;;  %v2879_v27 = vrot.slane %v2877_v29, 5  ;;  %v6245_v46 = vpack.c.bf16 %v359_v24, %v359_v24  ;;  %v945_v44 = vld [vmem:[#allocation2 + $0x50] sm:$0x1]  ;;  %v857_v24 = vld [vmem:[#allocation2 + $0x78] sm:$0xf] }
  0xe9   : > { %v616_v47 = vshrl.u32 %v6244_v30, 16  ;;  %v619_v49 = vshll.u32 %v6244_v30, 16  ;;  %v1101_v15 = vsel %vm7223_vm9, %v1096_v36, %v1100_v12  ;;  %v1103_v55 = vshrl.u32 %v918_v18, 16  ;;  %v7503_v26 = vld [vmem:[#allocation2 + $0x4c] sm:$0xf] }
  0xea   : > { %v2874_v52 = vor.u32 %v2873_v42, %v2869_v39  ;;  %v5883_v56 = vcombine.low %v1091_v35, %v1101_v15  ;;  %v2865_v19 = vrot.slane %v2864_v45, 4  ;;  %v1106_v58 = vshll.u32 %v918_v18, 16 }
  0xeb   : > { %v618_v57 = vrot.slane %v616_v47, 7  ;;  %v625_v1 = vshrl.u32 %v6245_v46, 16  ;;  %v628_v60 = vshll.u32 %v6245_v46, 16  ;;  %v1105_v3 = vrot.slane %v1103_v55, 4  ;;  %v920_v46 = vld [vmem:[#allocation2 + $0x54] sm:$0xf] }
  0xec   : > { %v2875_v33 = vrot.slane %v2874_v52, 4  ;;  %6423 = vmatmul.mubr.msk.bf16.gmra.mrb[8].mxu1 %vm1392_vm10, %v5883_v56  ;;  %v2870_v8 = vsel %vm7223_vm9, %v2865_v19, %v2869_v39  ;;  %v1108_v11 = vrot.slane %v1106_v58, 5  ;;  %v1112_v18 = vshll.u32 %v919_v38, 16  ;;  %v7509_v39 = vld [vmem:[#allocation2 + $0x50] sm:$0x1]  ;;  %v361_v52 = vpop.trf.xlu0 }
  0xed   : > { %v621_v9 = vor.u32 %v619_v49, %v618_v57  ;;  %v623_v10 = vrot.slane %v618_v57, 4  ;;  %v7495_v13 = vrot.slane %v625_v1, 7  ;;  %v1116_v14 = vshrl.u32 %v919_v38, 16 }
  0xee   : > { %v2880_v12 = vsel %vm7223_vm9, %v2875_v33, %v2879_v27  ;;  %v1109_v25 = vor.u32 %v1108_v11, %v1105_v3  ;;  %v1114_v35 = vrot.slane %v1112_v18, 5  ;;  %v2882_v42 = vshrl.u32 %v2728_v23, 16 }
  0xef   : > { %v6029_v20 = vcombine.low %v2870_v8, %v2880_v12  ;;  %v622_v21 = vsel %vm7301_vm13, %v614_v2, %v621_v9  ;;  %v855_v22 = vsel %vm7175_vm2, %v623_v10, %v854_v63  ;;  %v630_v29 = vor.u32 %v628_v60, %v7495_v13 }
  0xf0   : > { %853 = vst.msk [vmem:[#allocation2 + $0x70] sm:$0xf] %vm183_vm4, %v622_v21  ;;  %856 = vst [vmem:[#allocation2 + $0x74] sm:$0x1] %v855_v22  ;;  %v631_v30 = vrot.slane %v7495_v13, 4  ;;  %v1118_v36 = vrot.slane %v1116_v14, 4  ;;  %v6246_v60 = vpack.c.bf16 %v360_v7, %v360_v7  ;;  %v6247_v3 = vpack.c.bf16 %v361_v52, %v361_v52  ;;  %v362_v7 = vpop.trf.xlu0 }
  0xf1   : > { %6558 = vmatprep.mubr.msk.bf16.mxu0 %vm1392_vm10, %v6029_v20  ;;  %v1110_v37 = vrot.slane %v1109_v25, 4  ;;  %v1122_v2 = vshll.u32 %v945_v44, 16  ;;  %v2885_v45 = vshll.u32 %v2728_v23, 16  ;;  %v858_v27 = vsel %vm7294_vm11, %v630_v29, %v857_v24  ;;  %v921_v23 = vld [vmem:[#allocation2 + $0x58] sm:$0xf] }
  0xf2   : > { %v1119_v47 = vor.u32 %v1118_v36, %v1114_v35  ;;  %v2891_v49 = vshll.u32 %v7503_v26, 16  ;;  %v2895_v15 = vshrl.u32 %v7503_v26, 16  ;;  %859 = vst [vmem:[#allocation2 + $0x78] sm:$0xf] %v858_v27  ;;  %v2884_v19 = vrot.slane %v2882_v42, 4 }
  0xf3   : > { %v1115_v55 = vsel %vm7223_vm9, %v1110_v37, %v1114_v35  ;;  %v1124_v56 = vrot.slane %v1122_v2, 5  ;;  %v2887_v57 = vrot.slane %v2885_v45, 5  ;;  %v2901_v63 = vshll.u32 %v7509_v39, 16  ;;  %v946_v21 = vld [vmem:[#allocation2 + $0x5c] sm:$0x1] }
  0xf4   : > { %v1120_v38 = vrot.slane %v1119_v47, 4  ;;  %v2893_v58 = vrot.slane %v2891_v49, 5  ;;  %v2897_v33 = vrot.slane %v2895_v15, 4  ;;  %v1127_v8 = vshrl.u32 %v920_v46, 16  ;;  %v861_v24 = vld [vmem:[#allocation2 + $0x80] sm:$0x1] }
  0xf5   : > { %v2888_v1 = vor.u32 %v2887_v57, %v2884_v19  ;;  %v2903_v11 = vrot.slane %v2901_v63, 5  ;;  %v1130_v12 = vshll.u32 %v920_v46, 16  ;;  %v633_v14 = vshrl.u32 %v6246_v60, 16  ;;  %v864_v2 = vld [vmem:[#allocation2 + $0x84] sm:$0xf] }
  0xf6   : > { %v1125_v9 = vsel %vm7223_vm9, %v1120_v38, %v1124_v56  ;;  %v2898_v10 = vor.u32 %v2897_v33, %v2893_v58  ;;  %v636_v20 = vshll.u32 %v6246_v60, 16  ;;  %v642_v25 = vshrl.u32 %v6247_v3, 16  ;;  %v2731_v52 = vld [vmem:[#allocation2 + $0x54] sm:$0xf]  ;;  %v7527_v57 = vld [vmem:[#allocation2 + $0x58] sm:$0xf] }
  0xf7   : > { %v5884_v44 = vcombine.low %v1115_v55, %v1125_v9  ;;  %v2889_v18 = vrot.slane %v2888_v1, 4  ;;  %v645_v29 = vshll.u32 %v6247_v3, 16  ;;  %v1129_v35 = vrot.slane %v1127_v8, 4  ;;  %v7529_v38 = vld [vmem:[#allocation2 + $0x5c] sm:$0x1] }
  0xf8   : > { %v2899_v22 = vrot.slane %v2898_v10, 4  ;;  %v635_v37 = vrot.slane %v633_v14, 7  ;;  %v1132_v42 = vrot.slane %v1130_v12, 5  ;;  %v1136_v45 = vshll.u32 %v921_v23, 16 }
  0xf9   : > { %6426 = vmatprep.mubr.msk.bf16.mxu1 %vm1392_vm10, %v5884_v44  ;;  %v2894_v36 = vsel %vm7223_vm9, %v2889_v18, %v2893_v58  ;;  %v7525_v47 = vrot.slane %v642_v25, 7  ;;  %v1140_v49 = vshrl.u32 %v921_v23, 16  ;;  %v1146_v15 = vshll.u32 %v946_v21, 16  ;;  %v363_v44 = vpop.trf.xlu0 }
  0xfa   : > { %v2904_v27 = vsel %vm7223_vm9, %v2899_v22, %v2903_v11  ;;  %v638_v55 = vor.u32 %v636_v20, %v635_v37  ;;  %v640_v56 = vrot.slane %v635_v37, 4  ;;  %v1133_v19 = vor.u32 %v1132_v42, %v1129_v35  ;;  %v922_v37 = vld [vmem:[#allocation2 + $0x60] sm:$0xf] }
  0xfb   : > { %v6030_v46 = vcombine.low %v2894_v36, %v2904_v27  ;;  %v647_v58 = vor.u32 %v645_v29, %v7525_v47  ;;  %v648_v33 = vrot.slane %v7525_v47, 4  ;;  %v1138_v63 = vrot.slane %v1136_v45, 5 }
  0xfc   : > { %v1142_v1 = vrot.slane %v1140_v49, 4  ;;  %v639_v60 = vsel %vm7301_vm13, %v631_v30, %v638_v55  ;;  %v862_v3 = vsel %vm7175_vm2, %v640_v56, %v861_v24  ;;  %v1134_v8 = vrot.slane %v1133_v19, 4  ;;  %v923_v49 = vld [vmem:[#allocation2 + $0x64] sm:$0xf] }
  0xfd   : > { %6559 = vmatmul.mubr.msk.bf16.gmra.mrb[8].mxu0 %vm1392_vm10, %v6030_v46  ;;  %v1148_v9 = vrot.slane %v1146_v15, 5  ;;  %860 = vst.msk [vmem:[#allocation2 + $0x7c] sm:$0xf] %vm183_vm4, %v639_v60  ;;  %863 = vst [vmem:[#allocation2 + $0x80] sm:$0x1] %v862_v3  ;;  %v865_v10 = vsel %vm7294_vm11, %v647_v58, %v864_v2  ;;  %v2906_v23 = vshrl.u32 %v2731_v52, 16  ;;  %v6248_v24 = vpack.c.bf16 %v362_v7, %v362_v7 }
  0xfe   : > { %v1143_v11 = vor.u32 %v1142_v1, %v1138_v63  ;;  %v2909_v12 = vshll.u32 %v2731_v52, 16  ;;  %866 = vst [vmem:[#allocation2 + $0x84] sm:$0xf] %v865_v10  ;;  %v1139_v13 = vsel %vm7223_vm9, %v1134_v8, %v1138_v63  ;;  %v2915_v30 = vshll.u32 %v7527_v57, 16  ;;  %v868_v1 = vld [vmem:[#allocation2 + $0x8c] sm:$0x1] }
  0xff   : > { %v2919_v18 = vshrl.u32 %v7527_v57, 16  ;;  %v2925_v14 = vshll.u32 %v7529_v38, 16  ;;  %v2908_v21 = vrot.slane %v2906_v23, 4  ;;  %v6249_v36 = vpack.c.bf16 %v363_v44, %v363_v44  ;;  %v947_v44 = vld [vmem:[#allocation2 + $0x68] sm:$0x1] }
 0x100   : > { %v1144_v20 = vrot.slane %v1143_v11, 4  ;;  %v2911_v22 = vrot.slane %v2909_v12, 5  ;;  %v2917_v25 = vrot.slane %v2915_v30, 5  ;;  %v650_v45 = vshrl.u32 %v6248_v24, 16  ;;  %v871_v12 = vld [vmem:[#allocation2 + $0x90] sm:$0xf] }
 0x101   : > { %v2921_v29 = vrot.slane %v2919_v18, 4  ;;  %v2927_v35 = vrot.slane %v2925_v14, 5  ;;  %v653_v27 = vshll.u32 %v6248_v24, 16  ;;  %v659_v46 = vshrl.u32 %v6249_v36, 16 }
 0x102   : > { %v1149_v2 = vsel %vm7223_vm9, %v1144_v20, %v1148_v9  ;;  %v2912_v42 = vor.u32 %v2911_v22, %v2908_v21  ;;  %v662_v55 = vshll.u32 %v6249_v36, 16  ;;  %v652_v7 = vrot.slane %v650_v45, 7  ;;  %v364_v9 = vpop.trf.xlu0  ;;  %v2734_v21 = vld [vmem:[#allocation2 + $0x60] sm:$0xf]  ;;  %v7559_v22 = vld [vmem:[#allocation2 + $0x64] sm:$0xf] }
 0x103   : > { %v5885_v15 = vcombine.low %v1139_v13, %v1149_v2  ;;  %v2922_v52 = vor.u32 %v2921_v29, %v2917_v25  ;;  %v1151_v19 = vshrl.u32 %v922_v37, 16  ;;  %v1154_v58 = vshll.u32 %v922_v37, 16  ;;  %v7567_v37 = vld [vmem:[#allocation2 + $0x68] sm:$0x1] }
 0x104   : > { %v2913_v56 = vrot.slane %v2912_v42, 4  ;;  %v7551_v60 = vrot.slane %v659_v46, 7  ;;  %v1160_v3 = vshll.u32 %v923_v49, 16  ;;  %v1164_v8 = vshrl.u32 %v923_v49, 16 }
 0x105   : > { %6427 = vmatmul.mubr.msk.bf16.gmra.mrb[12].mxu1 %vm1392_vm10, %v5885_v15  ;;  %v2923_v63 = vrot.slane %v2922_v52, 4  ;;  %v655_v11 = vor.u32 %v653_v27, %v652_v7  ;;  %v657_v23 = vrot.slane %v652_v7, 4  ;;  %v1153_v13 = vrot.slane %v1151_v19, 4  ;;  %v3439_v15 = vld [vmem:[#allocation2 + $0xc] sm:$0xe] }
 0x106   : > { %v2918_v10 = vsel %vm7223_vm9, %v2913_v56, %v2917_v25  ;;  %v664_v18 = vor.u32 %v662_v55, %v7551_v60  ;;  %v665_v14 = vrot.slane %v7551_v60, 4  ;;  %v1156_v20 = vrot.slane %v1154_v58, 5  ;;  %v365_v7 = vpop.trf.xlu0 }
 0x107   : > { %v2928_v30 = vsel %vm7223_vm9, %v2923_v63, %v2927_v35  ;;  %v656_v25 = vsel %vm7301_vm13, %v648_v33, %v655_v11  ;;  %v869_v29 = vsel %vm7175_vm2, %v657_v23, %v868_v1  ;;  %v1162_v36 = vrot.slane %v1160_v3, 5  ;;  %v2737_v3 = vld [vmem:[#allocation2 + $0x6c] sm:$0xf] }
 0x108   : > { %v6031_v24 = vcombine.low %v2918_v10, %v2928_v30  ;;  %867 = vst.msk [vmem:[#allocation2 + $0x88] sm:$0xf] %vm183_vm4, %v656_v25  ;;  %870 = vst [vmem:[#allocation2 + $0x8c] sm:$0x1] %v869_v29  ;;  %v872_v35 = vsel %vm7294_vm11, %v664_v18, %v871_v12  ;;  %v1157_v2 = vor.u32 %v1156_v20, %v1153_v13  ;;  %v1166_v42 = vrot.slane %v1164_v8, 4 }
 0x109   : > { %v1170_v45 = vshll.u32 %v947_v44, 16  ;;  %873 = vst [vmem:[#allocation2 + $0x90] sm:$0xf] %v872_v35  ;;  %v2930_v47 = vshrl.u32 %v2734_v21, 16  ;;  %v2933_v33 = vshll.u32 %v2734_v21, 16  ;;  %v2939_v27 = vshll.u32 %v7559_v22, 16 }
 0x10a   : > { %6562 = vmatprep.mubr.msk.bf16.mxu0 %vm1392_vm10, %v6031_v24  ;;  %v2943_v49 = vshrl.u32 %v7559_v22, 16  ;;  %v1158_v52 = vrot.slane %v1157_v2, 4  ;;  %v1167_v46 = vor.u32 %v1166_v42, %v1162_v36  ;;  %v2949_v56 = vshll.u32 %v7567_v37, 16  ;;  %v7582_v8 = vld [vmem:[#allocation2 + $0x6c] sm:$0xf] }
 0x10b   : > { %v1172_v55 = vrot.slane %v1170_v45, 5  ;;  %v2932_v19 = vrot.slane %v2930_v47, 4  ;;  %v2935_v58 = vrot.slane %v2933_v33, 5  ;;  %v2941_v63 = vrot.slane %v2939_v27, 5  ;;  %v3440_v42 = vld [vmem:[#allocation2 + $0x18] sm:$0xe] }
 0x10c   : > { %v2945_v1 = vrot.slane %v2943_v49, 4  ;;  %v1163_v10 = vsel %vm7223_vm9, %v1158_v52, %v1162_v36  ;;  %v1168_v11 = vrot.slane %v1167_v46, 4  ;;  %v2951_v23 = vrot.slane %v2949_v56, 5  ;;  %v948_v27 = vld [vmem:[#allocation2 + $0x74] sm:$0x1] }
 0x10d   : > { %v6057_v12 = vrot.slane %v3439_v15, 9  ;;  %v2936_v44 = vor.u32 %v2935_v58, %v2932_v19  ;;  %v3507_v30 = vrot.slane %v3505_v28, 4  ;;  %v6250_v18 = vpack.c.bf16 %v364_v9, %v364_v9  ;;  %v7599_v9 = vld [vmem:[#allocation2 + $0x70] sm:$0xf]  ;;  %v875_v15 = vld [vmem:[#allocation2 + $0x98] sm:$0x1] }
 0x10e   : > { %v2946_v13 = vor.u32 %v2945_v1, %v2941_v63  ;;  %v1173_v20 = vsel %vm7223_vm9, %v1168_v11, %v1172_v55  ;;  %v6251_v24 = vpack.c.bf16 %v365_v7, %v365_v7  ;;  %v1175_v25 = vshrl.u32 %v7582_v8, 16  ;;  %v878_v56 = vld [vmem:[#allocation2 + $0x9c] sm:$0xf] }
 0x10f   : > { %v3506_v21 = vsel %vm7578_vm0, %v6057_v12, %v3505_v28  ;;  %v5886_v29 = vcombine.low %v1163_v10, %v1173_v20  ;;  %v2937_v36 = vrot.slane %v2936_v44, 4  ;;  %v3509_v2 = vsel %vm7578_vm0, %v3507_v30, %v3508_v32  ;;  %v366_v28 = vpop.trf.xlu0 }
 0x110   : > { %v2947_v35 = vrot.slane %v2946_v13, 4  ;;  %v6074_v45 = vcombine.low %v3506_v21, %v3509_v2  ;;  %v667_v47 = vshrl.u32 %v6250_v18, 16  ;;  %v670_v50 = vshll.u32 %v6250_v18, 16  ;;  %v3441_v13 = vld [vmem:[#allocation2 + $0x24] sm:$0xe] }
 0x111   : > { %v676_v33 = vshrl.u32 %v6251_v24, 16  ;;  %6430 = vmatprep.mubr.msk.bf16.mxu1 %vm1392_vm10, %v5886_v29  ;;  %v2942_v49 = vsel %vm7223_vm9, %v2937_v36, %v2941_v63  ;;  %v679_v52 = vshll.u32 %v6251_v24, 16  ;;  %v1177_v32 = vrot.slane %v1175_v25, 4  ;;  %v7627_v2 = vld [vmem:[#allocation2 + $0x78] sm:$0xf] }
 0x112   : > { %v2952_v59 = vsel %vm7223_vm9, %v2947_v35, %v2951_v23  ;;  %v669_v55 = vrot.slane %v667_v47, 7  ;;  %v1178_v19 = vshll.u32 %v7582_v8, 16  ;;  %v1184_v58 = vshll.u32 %v7599_v9, 16 }
 0x113   : > { %v6032_v46 = vcombine.low %v2942_v49, %v2952_v59  ;;  %v7606_v7 = vrot.slane %v676_v33, 7  ;;  %v1188_v1 = vshrl.u32 %v7599_v9, 16  ;;  %v1194_v10 = vshll.u32 %v948_v27, 16  ;;  %v367_v35 = vpop.trf.xlu0 }
 0x114   : > { %v6058_v11 = vrot.slane %v3440_v42, 9  ;;  %v672_v63 = vor.u32 %v670_v50, %v669_v55  ;;  %v674_v23 = vrot.slane %v669_v55, 4  ;;  %v1180_v30 = vrot.slane %v1178_v19, 5  ;;  %v882_v19 = vld [vmem:[#allocation2 + $0xa4] sm:$0x1] }
 0x115   : > { %6563 = vmatmul.mubr.msk.bf16.gmra.mrb[12].mxu0 %vm1392_vm10, %v6032_v46  ;;  %v681_v12 = vor.u32 %v679_v52, %v7606_v7  ;;  %v682_v44 = vrot.slane %v7606_v7, 4  ;;  %v1186_v18 = vrot.slane %v1184_v58, 5  ;;  %v1190_v20 = vrot.slane %v1188_v1, 4  ;;  %v7640_v46 = vld [vmem:[#allocation2 + $0x7c] sm:$0xf] }
 0x116   : > { %6584 = vmatprep.mubr.msk.bf16.mxu0 %vm1392_vm10, %v6074_v45  ;;  %v1196_v21 = vrot.slane %v1194_v10, 5  ;;  %v673_v24 = vsel %vm7301_vm13, %v665_v14, %v672_v63  ;;  %v876_v25 = vsel %vm7175_vm2, %v674_v23, %v875_v15  ;;  %v3513_v36 = vsel %vm7578_vm0, %v6058_v11, %v3512_v51  ;;  %v885_v11 = vld [vmem:[#allocation2 + $0xa8] sm:$0xf]  ;;  %v240_v7 = vld [vmem:[#allocation2 + $0xb4] sm:$0x1] }
 0x117   : > { %v879_v29 = vsel %vm7294_vm11, %v681_v12, %v878_v56  ;;  %874 = vst.msk [vmem:[#allocation2 + $0x94] sm:$0xf] %vm183_vm4, %v673_v24  ;;  %877 = vst [vmem:[#allocation2 + $0x98] sm:$0x1] %v876_v25  ;;  %v1181_v60 = vor.u32 %v1180_v30, %v1177_v32  ;;  %v1191_v14 = vor.u32 %v1190_v20, %v1186_v18  ;;  %v6059_v45 = vrot.slane %v3441_v13, 9  ;;  %v368_v13 = vpop.trf.xlu0 }
 0x118   : > { %880 = vst [vmem:[#allocation2 + $0x9c] sm:$0xf] %v879_v29  ;;  %v3516_v42 = vsel %vm7578_vm0, %v7394_v61, %v3515_v16  ;;  %v3519_v47 = vrot.slane %v7406_v34, 5  ;;  %v3522_v51 = vrot.slane %v7409_v43, 5  ;;  %v6252_v50 = vpack.c.bf16 %v366_v28, %v366_v28  ;;  %v949_v28 = vld [vmem:[#allocation2 + $0x80] sm:$0x1] }
 0x119   : > { %v6075_v62 = vcombine.low %v3513_v36, %v3516_v42  ;;  %v1182_v33 = vrot.slane %v1181_v60, 4  ;;  %v1192_v27 = vrot.slane %v1191_v14, 4  ;;  %v6253_v49 = vpack.c.bf16 %v367_v35, %v367_v35  ;;  %v3442_v24 = vld [vmem:[#allocation2 + $0x30] sm:$0xe]  ;;  %v3443_v60 = vld [vmem:[#allocation2 + $0x3c] sm:$0xe] }
 0x11a   : > { %v1199_v59 = vshrl.u32 %v7627_v2, 16  ;;  %v3520_v15 = vsel %vm7578_vm0, %v6059_v45, %v3519_v47  ;;  %v3521_v17 = vrot.slane %v3519_v47, 4  ;;  %v684_v52 = vshrl.u32 %v6252_v50, 16 }
 0x11b   : > { %v687_v32 = vshll.u32 %v6252_v50, 16  ;;  %v1187_v16 = vsel %vm7223_vm9, %v1182_v33, %v1186_v18  ;;  %v1197_v61 = vsel %vm7223_vm9, %v1192_v27, %v1196_v21  ;;  %v693_v34 = vshrl.u32 %v6253_v49, 16  ;;  %v293_v27 = vld [vmem:[#allocation2 + $0xb0] sm:$0x1] }
 0x11c   : > { %v696_v43 = vshll.u32 %v6253_v49, 16  ;;  %v5887_v55 = vcombine.low %v1187_v16, %v1197_v61  ;;  %v3523_v56 = vsel %vm7578_vm0, %v3521_v17, %v3522_v51  ;;  %v686_v58 = vrot.slane %v684_v52, 7  ;;  %v369_v61 = vpop.trf.xlu0 }
 0x11d   : > { %6585 = vmatmul.mubr.msk.bf16.vlgmr.msra.gmra.mrb[0].mxu0 %vm1392_vm10, %v6075_v62  ;;  %v1201_v1 = vrot.slane %v1199_v59, 4  ;;  %v6076_v10 = vcombine.low %v3520_v15, %v3523_v56  ;;  %v7649_v63 = vrot.slane %v693_v34, 7  ;;  %v1202_v23 = vshll.u32 %v7627_v2, 16  ;;  %v7683_v56 = vld [vmem:[#allocation2 + $0x84] sm:$0xf] }
 0x11e   : > { %v1208_v12 = vshll.u32 %v7640_v46, 16  ;;  %6431 = vmatmul.mubr.msk.bf16.gmra.mrb[16].mxu1 %vm1392_vm10, %v5887_v55  ;;  %v689_v30 = vor.u32 %v687_v32, %v686_v58  ;;  %v691_v18 = vrot.slane %v686_v58, 4  ;;  %v1212_v20 = vshrl.u32 %v7640_v46, 16 }
 0x11f   : > { %v1218_v21 = vshll.u32 %v949_v28, 16  ;;  %6588 = vmatprep.mubr.msk.bf16.mxu0 %vm1392_vm10, %v6076_v10  ;;  %v698_v25 = vor.u32 %v696_v43, %v7649_v63  ;;  %v699_v29 = vrot.slane %v7649_v63, 4  ;;  %v1204_v36 = vrot.slane %v1202_v23, 5  ;;  %v950_v23 = vld [vmem:[#allocation2 + $0x8c] sm:$0x1] }
 0x120   : > { %v1210_v35 = vrot.slane %v1208_v12, 5  ;;  %v690_v14 = vsel %vm7301_vm13, %v682_v44, %v689_v30  ;;  %v883_v42 = vsel %vm7175_vm2, %v691_v18, %v882_v19  ;;  %v1214_v45 = vrot.slane %v1212_v20, 4  ;;  %v3444_v20 = vld [vmem:[#allocation2 + $0x48] sm:$0xe] }
 0x121   : > { %v1220_v62 = vrot.slane %v1218_v21, 5  ;;  %881 = vst.msk [vmem:[#allocation2 + $0xa0] sm:$0xf] %vm183_vm4, %v690_v14  ;;  %884 = vst [vmem:[#allocation2 + $0xa4] sm:$0x1] %v883_v42  ;;  %v886_v47 = vsel %vm7294_vm11, %v698_v25, %v885_v11  ;;  %v1205_v51 = vor.u32 %v1204_v36, %v1201_v1  ;;  %v6060_v50 = vrot.slane %v3442_v24, 9 }
 0x122   : > { %v3526_v33 = vrot.slane %v7433_v48, 5  ;;  %887 = vst [vmem:[#allocation2 + $0xa8] sm:$0xf] %v886_v47  ;;  %v1215_v49 = vor.u32 %v1214_v45, %v1210_v35  ;;  %v3529_v44 = vrot.slane %v7443_v54, 5  ;;  %v6061_v59 = vrot.slane %v3443_v60, 9 }
 0x123   : > { %v3533_v15 = vrot.slane %v7465_v5, 5  ;;  %v1206_v17 = vrot.slane %v1205_v51, 4  ;;  %v3536_v16 = vrot.slane %v7467_v6, 5  ;;  %v294_v28 = vsel %vm7192_vm5, 0, %v293_v27  ;;  %v7689_v11 = vld [vmem:[#allocation2 + $0x88] sm:$0xf] }
 0x124   : > { %v3527_v52 = vsel %vm7578_vm0, %v6060_v50, %v3526_v33  ;;  %v3528_v32 = vrot.slane %v3526_v33, 4  ;;  %v1216_v34 = vrot.slane %v1215_v49, 4  ;;  %295 = vst [vmem:[#allocation2 + $0xb0] sm:$0x1] %v294_v28  ;;  %v6254_v55 = vpack.c.bf16 %v368_v13, %v368_v13  ;;  %v3445_v49 = vld [vmem:[#allocation2 + $0x54] sm:$0xe]  ;;  %v370_v28 = vpop.trf.xlu0 }
 0x125   : > { %v3534_v48 = vsel %vm7578_vm0, %v6061_v59, %v3533_v15  ;;  %v3535_v43 = vrot.slane %v3533_v15, 4  ;;  %v1211_v54 = vsel %vm7223_vm9, %v1206_v17, %v1210_v35  ;;  %v241_v6 = vsel %vm7175_vm2, 0, %v240_v7 }
 0x126   : > { %v3530_v5 = vsel %vm7578_vm0, %v3528_v32, %v3529_v44  ;;  %v1221_v19 = vsel %vm7223_vm9, %v1216_v34, %v1220_v62  ;;  %242 = vst [vmem:[#allocation2 + $0xb4] sm:$0x1] %v241_v6  ;;  %v6255_v10 = vpack.c.bf16 %v369_v61, %v369_v61  ;;  %v701_v13 = vshrl.u32 %v6254_v55, 16 }
 0x127   : > { %v6077_v58 = vcombine.low %v3527_v52, %v3530_v5  ;;  %v3537_v1 = vsel %vm7578_vm0, %v3535_v43, %v3536_v16  ;;  %v5888_v12 = vcombine.low %v1211_v54, %v1221_v19  ;;  %v704_v18 = vshll.u32 %v6254_v55, 16  ;;  %v296_v43 = vld [vmem:[#allocation2 + $0xbc] sm:$0x1] }
 0x128   : > { %v6078_v30 = vcombine.low %v3534_v48, %v3537_v1  ;;  %v710_v21 = vshrl.u32 %v6255_v10, 16  ;;  %v713_v24 = vshll.u32 %v6255_v10, 16  ;;  %v1223_v25 = vshrl.u32 %v7683_v56, 16 }
 0x129   : > { %6589 = vmatmul.mubr.msk.bf16.gmra.mrb[4].mxu0 %vm1392_vm10, %v6077_v58  ;;  %v1226_v36 = vshll.u32 %v7683_v56, 16  ;;  %6434 = vmatprep.mubr.msk.bf16.mxu1 %vm1392_vm10, %v5888_v12  ;;  %v703_v35 = vrot.slane %v701_v13, 7  ;;  %v1232_v60 = vshll.u32 %v7689_v11, 16  ;;  %v1236_v14 = vshrl.u32 %v7689_v11, 16  ;;  %v7721_v12 = vld [vmem:[#allocation2 + $0x90] sm:$0xf] }
 0x12a   : > { %6592 = vmatprep.mubr.msk.bf16.mxu0 %vm1392_vm10, %v6078_v30  ;;  %v1242_v42 = vshll.u32 %v950_v23, 16  ;;  %v7698_v45 = vrot.slane %v710_v21, 7  ;;  %v1225_v62 = vrot.slane %v1223_v25, 4  ;;  %v6062_v51 = vrot.slane %v3444_v20, 9  ;;  %v7798_v31 = vld [vmem:[#allocation2 + $0xa8] sm:$0xf] }
 0x12b   : > { %v1228_v47 = vrot.slane %v1226_v36, 5  ;;  %v706_v50 = vor.u32 %v704_v18, %v703_v35  ;;  %v708_v33 = vrot.slane %v703_v35, 4  ;;  %v1234_v27 = vrot.slane %v1232_v60, 5  ;;  %v889_v44 = vld [vmem:[#allocation2 + $0xb0] sm:$0x1] }
 0x12c   : > { %v1238_v7 = vrot.slane %v1236_v14, 4  ;;  %v715_v59 = vor.u32 %v713_v24, %v7698_v45  ;;  %v716_v15 = vrot.slane %v7698_v45, 4  ;;  %v1244_v52 = vrot.slane %v1242_v42, 5  ;;  %v3446_v36 = vld [vmem:[#allocation2 + $0x60] sm:$0xe] }
 0x12d   : > { %v1229_v17 = vor.u32 %v1228_v47, %v1225_v62  ;;  %v707_v32 = vsel %vm7301_vm13, %v699_v29, %v706_v50  ;;  %v890_v16 = vsel %vm7175_vm2, %v708_v33, %v889_v44  ;;  %v892_v61 = vld [vmem:[#allocation2 + $0xb4] sm:$0xf]  ;;  %v3540_v48 = vrot.slane %v7503_v26, 5  ;;  %v3447_v33 = vld [vmem:[#allocation2 + $0x6c] sm:$0xe] }
 0x12e   : > { %v1239_v34 = vor.u32 %v1238_v7, %v1234_v27  ;;  %888 = vst.msk [vmem:[#allocation2 + $0xac] sm:$0xf] %vm183_vm4, %v707_v32  ;;  %891 = vst [vmem:[#allocation2 + $0xb0] sm:$0x1] %v890_v16  ;;  %v893_v54 = vsel %vm7294_vm11, %v715_v59, %v892_v61  ;;  %v3543_v63 = vrot.slane %v7509_v39, 5  ;;  %v6063_v55 = vrot.slane %v3445_v49, 9 }
 0x12f   : > { %v1230_v5 = vrot.slane %v1229_v17, 4  ;;  %894 = vst [vmem:[#allocation2 + $0xb4] sm:$0xf] %v893_v54  ;;  %v3541_v6 = vsel %vm7578_vm0, %v6062_v51, %v3540_v48  ;;  %v3542_v19 = vrot.slane %v3540_v48, 4  ;;  %v3547_v26 = vrot.slane %v7527_v57, 5  ;;  %v371_v17 = vpop.trf.xlu0 }
 0x130   : > { %v1240_v29 = vrot.slane %v1239_v34, 4  ;;  %v3550_v1 = vrot.slane %v7529_v38, 5  ;;  %v297_v10 = vsel %vm7192_vm5, 0, %v296_v43  ;;  %v6256_v23 = vpack.c.bf16 %v370_v28, %v370_v28  ;;  %v7723_v39 = vld [vmem:[#allocation2 + $0x94] sm:$0xf] }
 0x131   : > { %v1235_v58 = vsel %vm7223_vm9, %v1230_v5, %v1234_v27  ;;  %v3544_v13 = vsel %vm7578_vm0, %v3542_v19, %v3543_v63  ;;  %v3548_v57 = vsel %vm7578_vm0, %v6063_v55, %v3547_v26  ;;  %v3549_v18 = vrot.slane %v3547_v26, 4  ;;  %298 = vst [vmem:[#allocation2 + $0xbc] sm:$0x1] %v297_v10  ;;  %v951_v38 = vld [vmem:[#allocation2 + $0x98] sm:$0x1] }
 0x132   : > { %v1245_v30 = vsel %vm7223_vm9, %v1240_v29, %v1244_v52  ;;  %v6079_v21 = vcombine.low %v3541_v6, %v3544_v13  ;;  %v718_v24 = vshrl.u32 %v6256_v23, 16  ;;  %v721_v25 = vshll.u32 %v6256_v23, 16  ;;  %v2738_v59 = vld [vmem:[#allocation2 + $0x70] sm:$0xf]  ;;  %v7743_v34 = vld [vmem:[%s9111_s1 + $0xe] sm:$0x3] }
 0x133   : > { %v5889_v20 = vcombine.low %v1235_v58, %v1245_v30  ;;  %v3551_v35 = vsel %vm7578_vm0, %v3549_v18, %v3550_v1  ;;  %v1247_v60 = vshrl.u32 %v7721_v12, 16  ;;  %v1250_v14 = vshll.u32 %v7721_v12, 16  ;;  %v7069_v54 = vld [vmem:[%s9111_s1 + $0xc] sm:$0x3]  ;;  %v2739_v63 = vld [vmem:[#allocation2 + $0x74] sm:$0x1] }
 0x134   : > { %v1256_v42 = vshll.u32 %v7723_v39, 16  ;;  %6593 = vmatmul.mubr.msk.bf16.gmra.mrb[8].mxu0 %vm1392_vm10, %v6079_v21  ;;  %v6080_v62 = vcombine.low %v3548_v57, %v3551_v35  ;;  %v720_v47 = vrot.slane %v718_v24, 7  ;;  %v1260_v51 = vshrl.u32 %v7723_v39, 16  ;;  %v299_v23 = vld [vmem:[#allocation2 + $0xc8] sm:$0x1]  ;;  %v372_v24 = vpop.trf.xlu0 }
 0x135   : > { %6435 = vmatmul.mubr.msk.bf16.gmra.mrb[20].mxu1 %vm1392_vm10, %v5889_v20  ;;  %v1266_v50 = vshll.u32 %v951_v38, 16  ;;  %v1249_v27 = vrot.slane %v1247_v60, 4  ;;  %v1252_v7 = vrot.slane %v1250_v14, 5  ;;  %v6064_v44 = vrot.slane %v3446_v36, 9  ;;  %v7760_v45 = vld [vmem:[#allocation2 + $0x9c] sm:$0xf] }
 0x136   : > { %v1258_v49 = vrot.slane %v1256_v42, 5  ;;  %6596 = vmatprep.mubr.msk.bf16.mxu0 %vm1392_vm10, %v6080_v62  ;;  %v723_v52 = vor.u32 %v721_v25, %v720_v47  ;;  %v725_v32 = vrot.slane %v720_v47, 4  ;;  %v1262_v16 = vrot.slane %v1260_v51, 4  ;;  %v7772_v25 = vld [vmem:[#allocation2 + $0xa0] sm:$0xf] }
 0x137   : > { %v1268_v61 = vrot.slane %v1266_v50, 5  ;;  %v1253_v48 = vor.u32 %v1252_v7, %v1249_v27  ;;  %v3554_v43 = vrot.slane %v7559_v22, 5  ;;  %v3557_v28 = vrot.slane %v7567_v37, 5  ;;  %v243_v22 = vld [vmem:[#allocation2 + $0xc0] sm:$0x1] }
 0x138   : > { %v4073_v5 = vsel %vm1441_vm8, %v7069_v54, 0  ;;  %v896_v55 = vld [vmem:[#allocation2 + $0xbc] sm:$0x1]  ;;  %v724_v29 = vsel %vm7301_vm13, %v716_v15, %v723_v52  ;;  %v1263_v6 = vor.u32 %v1262_v16, %v1258_v49  ;;  %v6065_v19 = vrot.slane %v3447_v33, 9  ;;  %v952_v50 = vld [vmem:[#allocation2 + $0xa4] sm:$0x1] }
 0x139   : > { %6617 = vmatpush3.bf16.msra.mxu0 %v4073_v5  ;;  %v3561_v26 = vrot.slane %v2738_v59, 5  ;;  %895 = vst.msk [vmem:[#allocation2 + $0xb8] sm:$0xf] %vm183_vm4, %v724_v29  ;;  %v897_v37 = vsel %vm7175_vm2, %v725_v32, %v896_v55  ;;  %v1254_v58 = vrot.slane %v1253_v48, 4  ;;  %v3555_v1 = vsel %vm7578_vm0, %v6064_v44, %v3554_v43  ;;  %v7787_v55 = vld [vmem:[#allocation2 + $0x7c] sm:$0xf] }
 0x13a   : > { %v3556_v10 = vrot.slane %v3554_v43, 4  ;;  %6984 = vmatprep.subr.msk.bf16.mxu0 %vm1441_vm8, %v7743_v34  ;;  %898 = vst [vmem:[#allocation2 + $0xbc] sm:$0x1] %v897_v37  ;;  %v1264_v15 = vrot.slane %v1263_v6, 4  ;;  %v3564_v57 = vrot.slane %v2739_v63, 5  ;;  %v244_v20 = vsel %vm7175_vm2, 0, %v243_v22 }
 0x13b   : > { %v3562_v30 = vsel %vm7578_vm0, %v6065_v19, %v3561_v26  ;;  %v3563_v13 = vrot.slane %v3561_v26, 4  ;;  %v1259_v18 = vsel %vm7223_vm9, %v1254_v58, %v1258_v49  ;;  %v6257_v21 = vpack.c.bf16 %v371_v17, %v371_v17  ;;  %245 = vst [vmem:[#allocation2 + $0xc0] sm:$0x1] %v244_v20  ;;  %v3448_v29 = vld [vmem:[#allocation2 + $0x78] sm:$0xe] }
 0x13c   : > { %v3558_v38 = vsel %vm7578_vm0, %v3556_v10, %v3557_v28  ;;  %v1269_v36 = vsel %vm7223_vm9, %v1264_v15, %v1268_v61  ;;  %v300_v14 = vsel %vm7192_vm5, 0, %v299_v23  ;;  %v6258_v33 = vpack.c.bf16 %v372_v24, %v372_v24  ;;  %v7789_v26 = vld [vmem:[#allocation2 + $0x80] sm:$0x1]  ;;  %v3449_v22 = vld [vmem:[#allocation2 + $0x84] sm:$0xe] }
 0x13d   : > { %v6081_v35 = vcombine.low %v3555_v1, %v3558_v38  ;;  %v3565_v60 = vsel %vm7578_vm0, %v3563_v13, %v3564_v57  ;;  %v5890_v42 = vcombine.low %v1259_v18, %v1269_v36  ;;  %v727_v47 = vshrl.u32 %v6257_v21, 16  ;;  %301 = vst [vmem:[#allocation2 + $0xc8] sm:$0x1] %v300_v14  ;;  %v2744_v15 = vld [vmem:[#allocation2 + $0x88] sm:$0xf] }
 0x13e   : > { %v6082_v62 = vcombine.low %v3562_v30, %v3565_v60  ;;  %v730_v51 = vshll.u32 %v6257_v21, 16  ;;  %v1271_v27 = vshrl.u32 %v7760_v45, 16  ;;  %v1274_v7 = vshll.u32 %v7760_v45, 16  ;;  %v2745_v21 = vld [vmem:[#allocation2 + $0x8c] sm:$0x1] }
 0x13f   : > { %6597 = vmatmul.mubr.msk.bf16.gmra.mrb[12].mxu0 %vm1392_vm10, %v6081_v35  ;;  %v1280_v49 = vshll.u32 %v7772_v25, 16  ;;  %6438 = vmatprep.mubr.msk.bf16.mxu1 %vm1392_vm10, %v5890_v42  ;;  %v729_v44 = vrot.slane %v727_v47, 7  ;;  %v1284_v59 = vshrl.u32 %v7772_v25, 16  ;;  %v735_v17 = vshrl.u32 %v6258_v33, 16  ;;  %v7806_v60 = vld [vmem:[#allocation2 + $0xac] sm:$0xf] }
 0x140   : > { %6600 = vmatprep.mubr.msk.bf16.mxu0 %vm1392_vm10, %v6082_v62  ;;  %v738_v52 = vshll.u32 %v6258_v33, 16  ;;  %v1273_v32 = vrot.slane %v1271_v27, 4  ;;  %v1276_v16 = vrot.slane %v1274_v7, 5  ;;  %v1290_v28 = vshll.u32 %v952_v50, 16  ;;  %v3450_v14 = vld [vmem:[#allocation2 + $0x90] sm:$0xe] }
 0x141   : > { %v732_v61 = vor.u32 %v730_v51, %v729_v44  ;;  %v1282_v48 = vrot.slane %v1280_v49, 5  ;;  %v1286_v43 = vrot.slane %v1284_v59, 4  ;;  %v733_v54 = vrot.slane %v729_v44, 4  ;;  %v953_v50 = vld [vmem:[#allocation2 + $0xb0] sm:$0x1] }
 0x142   : > { %v737_v5 = vrot.slane %v735_v17, 7  ;;  %v1277_v63 = vor.u32 %v1276_v16, %v1273_v32  ;;  %v899_v6 = vld [vmem:[#allocation2 + $0xc0] sm:$0xf]  ;;  %v1292_v13 = vrot.slane %v1290_v28, 5  ;;  %v3568_v57 = vrot.slane %v7787_v55, 5 }
 0x143   : > { %v1287_v19 = vor.u32 %v1286_v43, %v1282_v48  ;;  %v900_v37 = vsel %vm7294_vm11, %v732_v61, %v899_v6  ;;  %v6066_v20 = vrot.slane %v3448_v29, 9  ;;  %v3571_v41 = vrot.slane %v7789_v26, 5  ;;  %v2747_v33 = vld [vmem:[#allocation2 + $0x94] sm:$0xf]  ;;  %v2748_v59 = vld [vmem:[#allocation2 + $0x98] sm:$0x1] }
 0x144   : > { %v903_v58 = vld [vmem:[#allocation2 + $0xc8] sm:$0x1]  ;;  %v740_v1 = vor.u32 %v738_v52, %v737_v5  ;;  %v742_v10 = vrot.slane %v737_v5, 4  ;;  %v1278_v23 = vrot.slane %v1277_v63, 4  ;;  %901 = vst [vmem:[#allocation2 + $0xc0] sm:$0xf] %v900_v37 }
 0x145   : > { %v1288_v30 = vrot.slane %v1287_v19, 4  ;;  %v3570_v35 = vrot.slane %v3568_v57, 4  ;;  %v3569_v62 = vsel %vm7578_vm0, %v6066_v20, %v3568_v57  ;;  %v6067_v47 = vrot.slane %v3449_v22, 9  ;;  %v2750_v61 = vld [vmem:[#allocation2 + $0xa0] sm:$0xf] }
 0x146   : > { %v741_v18 = vsel %vm7301_vm13, %v733_v54, %v740_v1  ;;  %v904_v38 = vsel %vm7175_vm2, %v742_v10, %v903_v58  ;;  %v1283_v24 = vsel %vm7223_vm9, %v1278_v23, %v1282_v48  ;;  %v3575_v51 = vrot.slane %v2744_v15, 5  ;;  %v3451_v48 = vld [vmem:[#allocation2 + $0x9c] sm:$0xe]  ;;  %v7822_v22 = vld [vmem:[#allocation2 + $0xb4] sm:$0xf] }
 0x147   : > { %902 = vst.msk [vmem:[#allocation2 + $0xc4] sm:$0xf] %vm183_vm4, %v741_v18  ;;  %905 = vst [vmem:[#allocation2 + $0xc8] sm:$0x1] %v904_v38  ;;  %v1293_v36 = vsel %vm7223_vm9, %v1288_v30, %v1292_v13  ;;  %v3572_v27 = vsel %vm7578_vm0, %v3570_v35, %v3571_v41  ;;  %v3578_v7 = vrot.slane %v2745_v21, 5  ;;  %v1295_v49 = vshrl.u32 %v7798_v31, 16 }
 0x148   : > { %v5891_v42 = vcombine.low %v1283_v24, %v1293_v36  ;;  %v1298_v44 = vshll.u32 %v7798_v31, 16  ;;  %v6083_v17 = vcombine.low %v3569_v62, %v3572_v27  ;;  %v3576_v52 = vsel %vm7578_vm0, %v6067_v47, %v3575_v51  ;;  %v7824_v10 = vld [vmem:[#allocation2 + $0xb8] sm:$0xf]  ;;  %v2751_v57 = vld [vmem:[#allocation2 + $0xa4] sm:$0x1] }
 0x149   : > { %v3577_v32 = vrot.slane %v3575_v51, 4  ;;  %v1304_v16 = vshll.u32 %v7806_v60, 16  ;;  %v1297_v43 = vrot.slane %v1295_v49, 4  ;;  %v1308_v54 = vshrl.u32 %v7806_v60, 16  ;;  %v954_v24 = vld [vmem:[#allocation2 + $0xbc] sm:$0x1] }
 0x14a   : > { %6439 = vmatmul.mubr.msk.bf16.gmra.mrb[24].mxu1 %vm1392_vm10, %v5891_v42  ;;  %v1300_v28 = vrot.slane %v1298_v44, 5  ;;  %v1314_v5 = vshll.u32 %v953_v50, 16  ;;  %6601 = vmatmul.mubr.msk.bf16.gmra.mrb[16].mxu0 %vm1392_vm10, %v6083_v17  ;;  %v6068_v6 = vrot.slane %v3450_v14, 9  ;;  %v3582_v19 = vrot.slane %v2747_v33, 5  ;;  %v2753_v50 = vld [vmem:[#allocation2 + $0xac] sm:$0xf] }
 0x14b   : > { %v3579_v63 = vsel %vm7578_vm0, %v3577_v32, %v3578_v7  ;;  %v1306_v29 = vrot.slane %v1304_v16, 5  ;;  %v1310_v1 = vrot.slane %v1308_v54, 4  ;;  %v3585_v13 = vrot.slane %v2748_v59, 5  ;;  %v3452_v33 = vld [vmem:[#allocation2 + $0xa8] sm:$0xe] }
 0x14c   : > { %v6084_v37 = vcombine.low %v3576_v52, %v3579_v63  ;;  %v1301_v58 = vor.u32 %v1300_v28, %v1297_v43  ;;  %v1316_v23 = vrot.slane %v1314_v5, 5  ;;  %v3583_v15 = vsel %vm7578_vm0, %v6068_v6, %v3582_v19  ;;  %v2754_v59 = vld [vmem:[#allocation2 + $0xb0] sm:$0x1]  ;;  %v2756_v5 = vld [vmem:[#allocation2 + $0xb8] sm:$0xf] }
 0x14d   : > { %v3584_v30 = vrot.slane %v3582_v19, 4  ;;  %v1311_v38 = vor.u32 %v1310_v1, %v1306_v29  ;;  %v6069_v20 = vrot.slane %v3451_v48, 9  ;;  %v3589_v21 = vrot.slane %v2750_v61, 5  ;;  %v3453_v61 = vld [vmem:[#allocation2 + $0xb4] sm:$0xe] }
 0x14e   : > { %6604 = vmatprep.mubr.msk.bf16.mxu0 %vm1392_vm10, %v6084_v37  ;;  %v1302_v18 = vrot.slane %v1301_v58, 4  ;;  %v1319_v35 = vshrl.u32 %v7822_v22, 16  ;;  %v1322_v41 = vshll.u32 %v7822_v22, 16  ;;  %v1328_v14 = vshll.u32 %v7824_v10, 16  ;;  %v2757_v63 = vld [vmem:[#allocation2 + $0xbc] sm:$0x1] }
 0x14f   : > { %v3586_v36 = vsel %vm7578_vm0, %v3584_v30, %v3585_v13  ;;  %v1312_v62 = vrot.slane %v1311_v38, 4  ;;  %v3592_v51 = vrot.slane %v2751_v57, 5  ;;  %v3590_v27 = vsel %vm7578_vm0, %v6069_v20, %v3589_v21  ;;  %v2759_v19 = vld [vmem:[#allocation2 + $0xc4] sm:$0xf]  ;;  %v2760_v37 = vld [vmem:[#allocation2 + $0xc8] sm:$0x1] }
 0x150   : > { %v1307_v42 = vsel %vm7223_vm9, %v1302_v18, %v1306_v29  ;;  %v6085_v47 = vcombine.low %v3583_v15, %v3586_v36  ;;  %v3591_v7 = vrot.slane %v3589_v21, 4  ;;  %v1321_v49 = vrot.slane %v1319_v35, 4  ;;  %v3454_v58 = vld [vmem:[#allocation2 + $0xc0] sm:$0xe] }
 0x151   : > { %v1324_v44 = vrot.slane %v1322_v41, 5  ;;  %v1317_v17 = vsel %vm7223_vm9, %v1312_v62, %v1316_v23  ;;  %v1330_v52 = vrot.slane %v1328_v14, 5  ;;  %v1332_v32 = vshrl.u32 %v7824_v10, 16  ;;  %v7070_v41 = vld [vmem:[#allocation2] sm:$0xf] }
 0x152   : > { %v1338_v16 = vshll.u32 %v954_v24, 16  ;;  %v5892_v48 = vcombine.low %v1307_v42, %v1317_v17  ;;  %6605 = vmatmul.mubr.msk.bf16.gmra.mrb[20].mxu0 %vm1392_vm10, %v6085_v47  ;;  %v3593_v43 = vsel %vm7578_vm0, %v3591_v7, %v3592_v51  ;;  %v3596_v54 = vrot.slane %v2753_v50, 5  ;;  %v7850_v14 = vld [vmem:[#allocation2 + $0x4] sm:$0xf] }
 0x153   : > { %v1325_v28 = vor.u32 %v1324_v44, %v1321_v49  ;;  %v6086_v29 = vcombine.low %v3590_v27, %v3593_v43  ;;  %v1334_v6 = vrot.slane %v1332_v32, 4  ;;  %v6070_v1 = vrot.slane %v3452_v33, 9 }
 0x154   : > { %6442 = vmatprep.mubr.msk.bf16.mxu1 %vm1392_vm10, %v5892_v48  ;;  %v3598_v23 = vrot.slane %v3596_v54, 4  ;;  %v3599_v15 = vrot.slane %v2754_v59, 5  ;;  %v3603_v57 = vrot.slane %v2756_v5, 5  ;;  %v1340_v18 = vrot.slane %v1338_v16, 5  ;;  %v246_v16 = vld [vmem:[#allocation2 + $0xcc] sm:$0x1] }
 0x155   : > { %6608 = vmatprep.mubr.msk.bf16.mxu0 %vm1392_vm10, %v6086_v29  ;;  %v1326_v30 = vrot.slane %v1325_v28, 4  ;;  %v1335_v13 = vor.u32 %v1334_v6, %v1330_v52  ;;  %v3597_v38 = vsel %vm7578_vm0, %v6070_v1, %v3596_v54  ;;  %v6071_v21 = vrot.slane %v3453_v61, 9  ;;  %v7034_v54 = vld [vmem:[#allocation2 + $0x18] sm:$0xff]   ;;  %v7072_v29 = vld [vmem:[#allocation2 + $0xc] sm:$0xf] }
 0x156   : > { %v3600_v20 = vsel %vm7578_vm0, %v3598_v23, %v3599_v15  ;;  %v3605_v36 = vrot.slane %v3603_v57, 4  ;;  %v3606_v35 = vrot.slane %v2757_v63, 5  ;;  %v5910_v42 = vcombine.low %v7070_v41, %v7850_v14  ;;  %v7875_v6 = vld [vmem:[#allocation2 + $0x10] sm:$0xf]  ;;  %v7890_v23 = vld [vmem:[%s9111_s1 + $0x6] sm:$0x3] }
 0x157   : > { %v1336_v24 = vrot.slane %v1335_v13, 4  ;;  %v6087_v62 = vcombine.low %v3597_v38, %v3600_v20  ;;  %v6072_v47 = vrot.slane %v3454_v58, 9  ;;  %v3610_v51 = vrot.slane %v2759_v19, 5  ;;  %v7883_v58 = vld [vmem:[#allocation2 + $0x1c] sm:$0xf] }
 0x158   : > { %v3613_v50 = vrot.slane %v2760_v37, 5  ;;  %v1331_v33 = vsel %vm7223_vm9, %v1326_v30, %v1330_v52  ;;  %v3604_v7 = vsel %vm7578_vm0, %v6071_v21, %v3603_v57  ;;  %v3607_v49 = vsel %vm7578_vm0, %v3605_v36, %v3606_v35  ;;  %v7074_v37 = vld [vmem:[%s9111_s1 + $0x4] sm:$0x3]  ;;  %v7898_v13 = vld [vmem:[#allocation2 + $0x8] sm:$0x1] }
 0x159   : > { %v1341_v27 = vsel %vm7223_vm9, %v1336_v24, %v1340_v18  ;;  %v6088_v59 = vcombine.low %v3604_v7, %v3607_v49  ;;  %v3612_v17 = vrot.slane %v3610_v51, 4  ;;  %v3611_v32 = vsel %vm7578_vm0, %v6072_v47, %v3610_v51  ;;  %v7078_v38 = vld [vmem:[#allocation2 + $0x14] sm:$0x1]  ;;  %v7035_v21 = vld [vmem:[#allocation2 + $0x24] sm:$0xff]   ;;  %v4268_v24 = vld [vmem:[#allocation2 + $0x18] sm:$0xf] }
 0x15a   : > { %v5893_v44 = vcombine.low %v1331_v33, %v1341_v27  ;;  %6609 = vmatmul.mubr.msk.bf16.gmra.mrb[24].mxu0 %vm1392_vm10, %v6087_v62  ;;  %v2987_v61 = vshll.u32 %v7787_v55, 16  ;;  %v2991_v48 = vshrl.u32 %v7787_v55, 16  ;;  %v247_v28 = vsel %vm7175_vm2, 0, %v246_v16  ;;  %v7036_v35 = vld [vmem:[#allocation2 + $0x30] sm:$0xff]   ;;  %v1898_v41 = vld [vmem:[#allocation2] sm:$0xe] }
 0x15b   : > { %6612 = vmatprep.mubr.msk.bf16.mxu0 %vm1392_vm10, %v6088_v59  ;;  %v3614_v52 = vsel %vm7578_vm0, %v3612_v17, %v3613_v50  ;;  %248 = vst [vmem:[#allocation2 + $0xcc] sm:$0x1] %v247_v28  ;;  %v5911_v19 = vcombine.low %v7072_v29, %v7875_v6  ;;  %v2160_v55 = vsel %vm1441_vm8, %v7074_v37, 0  ;;  %v5912_v1 = vcombine.low %v7075_v0, %v7883_v58  ;;  %v7079_v47 = vld [vmem:[#allocation2 + $0x24] sm:$0xf] }
 0x15c   : > { %6443 = vmatmul.mubr.msk.bf16.gmra.mrb[28].mxu1 %vm1392_vm10, %v5893_v44  ;;  %v6089_v43 = vcombine.low %v3611_v32, %v3614_v52  ;;  %v7873_v5 = vrot.slane %v2987_v61, 5  ;;  %v2993_v63 = vrot.slane %v2991_v48, 4  ;;  %v2997_v15 = vshll.u32 %v7789_v26, 16  ;;  %v7913_v51 = vld [vmem:[#allocation2 + $0x28] sm:$0xf] }
 0x15d   : > { %6448 = vmatprep.mubr.msk.bf16.mxu1 %vm1392_vm10, %v5910_v42  ;;  %v1954_v57 = vrot.slane %v7898_v13, 5  ;;  %v9114_v18 = vrot.slane %v7875_v6, 5  ;;  %v1961_v20 = vrot.slane %v7078_v38, 5  ;;  %v4799_v26 = vsel %vm1441_vm8, %v7743_v34, 0  ;;  %v7909_v42 = vld [vmem:[%s9111_s1 + $0x10] sm:$0x3] }
 0x15e   : > { %9137 = vst [vmem:[#allocation5_spill] sm:$0xff] %v7873_v5  ;;  %v2994_v30 = vor.u32 %v2993_v63, %v7873_v5  ;;  %v7904_v36 = vrot.slane %v2997_v15, 5  ;;  %v5913_v50 = vcombine.low %v7079_v47, %v7913_v51  ;;  %v7081_v34 = vld [vmem:[#allocation2 + $0x30] sm:$0xf]  ;;  %v7917_v33 = vld [vmem:[#allocation2 + $0x34] sm:$0xf] }
 0x15f   : > { %v5914_v27 = vcombine.low %v7081_v34, %v7917_v33  ;;  %v7920_v7 = vld [vmem:[#allocation2 + $0x3c] sm:$0xf]  ;;  %v7922_v49 = vld [vmem:[#allocation2 + $0x40] sm:$0xf]  ;;  %v7927_v17 = vld [vmem:[#allocation2 + $0x48] sm:$0xf] }
 0x160   : > { %9138 = vst [vmem:[#allocation6_spill] sm:$0xff] %v7904_v36  ;;  %v7911_v62 = vrot.slane %v2994_v30, 4  ;;  %v5915_v44 = vcombine.low %v7920_v7, %v7922_v49  ;;  %v4269_v59 = vld [vmem:[#allocation2 + $0x1c] sm:$0xf]  ;;  %v7929_v32 = vld [vmem:[#allocation2 + $0x4c] sm:$0xf] }
 0x161   : > { %v5916_v52 = vcombine.low %v7927_v17, %v7929_v32  ;;  %v7933_v16 = vld [vmem:[#allocation2 + $0x54] sm:$0xf]  ;;  %v7935_v61 = vld [vmem:[#allocation2 + $0x58] sm:$0xf]  ;;  %v7941_v28 = vld [vmem:[#allocation2 + $0x64] sm:$0xf] }
 0x162   : > { %6613 = vmatmul.mubr.msk.bf16.gmra.mrb[28].mxu0 %vm1392_vm10, %v6089_v43  ;;  %9139 = vst [vmem:[#allocation7_spill] sm:$0xff] %v7911_v62  ;;  %v7939_v43 = vld [vmem:[#allocation2 + $0x60] sm:$0xf]  ;;  %v1951_v63 = vrot.slane %v7850_v14, 5  ;;  %v1899_v37 = vld [vmem:[#allocation2 + $0xc] sm:$0xe] }
 0x163   : > { %6618 = vmatprep.mubr.msk.bf16.mxu0 %vm1392_vm10, %v7034_v54  ;;  %v4317_v0 = vshrl.u32 %v4268_v24, 16  ;;  %v4320_v14 = vshll.u32 %v4268_v24, 16  ;;  %v4326_v15 = vshll.u32 %v4269_v59, 16  ;;  %v4330_v30 = vshrl.u32 %v4269_v59, 16  ;;  %v4271_v47 = vld [vmem:[#allocation2 + $0x24] sm:$0xf] }
 0x164   : > { %6449 = vmatmul.mubr.msk.bf16.vlgmr.msra.gmra.mrb[0].mxu1 %vm1392_vm10, %v5911_v19  ;;  %v5942_v19 = vrot.slane %v1898_v41, 9  ;;  %v1900_v41 = vld [vmem:[#allocation2 + $0x18] sm:$0xe]  ;;  %v1953_v24 = vrot.slane %v1951_v63, 4  ;;  %v5943_v34 = vrot.slane %v1899_v37, 9  ;;  %v7037_v17 = vld [vmem:[#allocation2 + $0x3c] sm:$0xff]  }
 0x165   : > { %6481 = vmatpush3.bf16.msra.mxu1 %v2160_v55  ;;  %6452 = vmatprep.mubr.msk.bf16.mxu1 %vm1392_vm10, %v5912_v1  ;;  %v1960_v55 = vrot.slane %v9114_v18, 4  ;;  %v4270_v7 = vld [vmem:[#allocation2 + $0x20] sm:$0x1]  ;;  %v4272_v59 = vld [vmem:[#allocation2 + $0x28] sm:$0xf]  ;;  %v4322_v1 = vrot.slane %v4320_v14, 5 }
 0x166   : > { %6979 = vmatprep.subr.msk.bf16.mxu1 %vm1441_vm8, %v7890_v23  ;;  %v1901_v38 = vld [vmem:[#allocation2 + $0x24] sm:$0xe]  ;;  %v7038_v37 = vld [vmem:[#allocation2 + $0x48] sm:$0xff]   ;;  %v7979_v29 = vrot.slane %v4326_v15, 5  ;;  %v1972_v54 = vrot.slane %v7913_v51, 5  ;;  %v4341_v48 = vshrl.u32 %v4271_v47, 16 }
 0x167   : > { %v4354_v18 = vshrl.u32 %v4272_v59, 16  ;;  %v5944_v51 = vrot.slane %v1900_v41, 9  ;;  %v4274_v15 = vld [vmem:[#allocation2 + $0x30] sm:$0xf]  ;;  %v7040_v36 = vld [vmem:[#allocation2 + $0x60] sm:$0xff]   ;;  %vm5669_vm2 = vcmask 25600  }
 0x168   : > { %v4365_v5 = vshrl.u32 %v4274_v15, 16 }
 0x16a   : > { %6619 = vmatmul.mubr.msk.bf16.vlgmr.msra.gmra.mrb[0].mxu0 %vm1392_vm10, %v7035_v21  ;;  %v1965_v21 = vrot.slane %v7883_v58, 5  ;;  %v7988_v58 = vsel %vm7578_vm0, %v1953_v24, %v1954_v57  ;;  %v4275_v57 = vld [vmem:[#allocation2 + $0x34] sm:$0xf] }
 0x16b   : > { %6622 = vmatprep.mubr.msk.bf16.mxu0 %vm1392_vm10, %v7036_v35  ;;  %6651 = vmatpush3.bf16.msra.mxu0 %v4799_v26  ;;  %v7972_v26 = vsel %vm7578_vm0, %v5942_v19, %v1951_v63  ;;  %v7976_v35 = vsel %vm7578_vm0, %v1960_v55, %v1961_v20  ;;  %v4344_v63 = vshll.u32 %v4271_v47, 16  ;;  %v4350_v19 = vshll.u32 %v4272_v59, 16 }
 0x16c   : > { %6453 = vmatmul.mubr.msk.bf16.gmra.mrb[4].mxu1 %vm1392_vm10, %v5913_v50  ;;  %6985 = vmatprep.subr.msk.bf16.mxu0 %vm1441_vm8, %v7909_v42  ;;  %v4319_v50 = vrot.slane %v4317_v0, 4  ;;  %v9140_v20 = vrot.slane %v7875_v6, 5  ;;  %v7091_v0 = vld [vmem:[#allocation2 + $0x20] sm:$0x1]  ;;  %v1967_v13 = vrot.slane %v1965_v21, 4  ;;  %v4336_v47 = vshll.u32 %v4270_v7, 16 }
 0x16d   : > { %6456 = vmatprep.mubr.msk.bf16.mxu1 %vm1392_vm10, %v5914_v27  ;;  %v7968_v27 = vsel %vm1441_vm8, %v7890_v23, 0  ;;  %v4332_v23 = vrot.slane %v4330_v30, 4  ;;  %v1968_v14 = vrot.slane %v7091_v0, 5  ;;  %v5945_v59 = vrot.slane %v1901_v38, 9  ;;  %v7039_v38 = vld [vmem:[#allocation2 + $0x54] sm:$0xff]  }
 0x16e   : > { %v7994_v55 = vsel %vm7578_vm0, %v5943_v34, %v9140_v20  ;;  %v4323_v6 = vor.u32 %v4322_v1, %v4319_v50  ;;  %v1974_v34 = vrot.slane %v1972_v54, 4  ;;  %v4343_v20 = vrot.slane %v4341_v48, 4 }
 0x16f   : > { %v4333_v24 = vor.u32 %v4332_v23, %v7979_v29  ;;  %v4346_v0 = vrot.slane %v4344_v63, 5  ;;  %v8001_v53 = vrot.slane %v4350_v19, 5  ;;  %v4368_v30 = vshll.u32 %v4274_v15, 16  ;;  %v4277_v15 = vld [vmem:[#allocation2 + $0x3c] sm:$0xf] }
 0x170   : > { %v4374_v62 = vshll.u32 %v4275_v57, 16  ;;  %v4378_v7 = vshrl.u32 %v4275_v57, 16  ;;  %v8007_v1 = vsel %vm7578_vm0, %v5944_v51, %v1965_v21  ;;  %v8011_v48 = vsel %vm7578_vm0, %v1967_v13, %v1968_v14  ;;  %v4278_v57 = vld [vmem:[#allocation2 + $0x40] sm:$0xf] }
 0x171   : > { %v4338_v50 = vrot.slane %v4336_v47, 5  ;;  %v4324_v23 = vrot.slane %v4323_v6, 4  ;;  %v4334_v21 = vrot.slane %v4333_v24, 4  ;;  %v4347_v51 = vor.u32 %v4346_v0, %v4343_v20  ;;  %v1902_v47 = vld [vmem:[#allocation2 + $0x30] sm:$0xe] }
 0x172   : > { %6623 = vmatmul.mubr.msk.bf16.gmra.mrb[4].mxu0 %vm1392_vm10, %v7037_v17  ;;  %v7092_v17 = vld [vmem:[#allocation2 + $0x2c] sm:$0x1]  ;;  %v1979_v13 = vrot.slane %v7917_v33, 5  ;;  %v8025_v6 = vrot.slane %v4374_v62, 5  ;;  %v4392_v24 = vshll.u32 %v4277_v15, 16  ;;  %v4402_v20 = vshrl.u32 %v4278_v57, 16 }
 0x173   : > { %6626 = vmatprep.mubr.msk.bf16.mxu0 %vm1392_vm10, %v7038_v37  ;;  %v1975_v41 = vrot.slane %v7092_v17, 5  ;;  %v4273_v37 = vld [vmem:[#allocation2 + $0x2c] sm:$0x1]  ;;  %v9141_v17 = vcombine.low %v7933_v16, %v7935_v61  ;;  %v9142_v33 = vcombine.low %v7939_v43, %v7941_v28  ;;  %v1986_v16 = vrot.slane %v7922_v49, 5  ;;  %v7042_v49 = vld [vmem:[#allocation2 + $0x78] sm:$0xff]  }
 0x174   : > { %6457 = vmatmul.mubr.msk.bf16.gmra.mrb[8].mxu1 %vm1392_vm10, %v5915_v44  ;;  %v4356_v44 = vrot.slane %v4354_v18, 4  ;;  %v8015_v18 = vsel %vm7578_vm0, %v5945_v59, %v1972_v54  ;;  %v4360_v19 = vshll.u32 %v4273_v37, 16  ;;  %v4367_v54 = vrot.slane %v4365_v5, 4  ;;  %v7041_v5 = vld [vmem:[#allocation2 + $0x6c] sm:$0xff]  }
 0x175   : > { %6460 = vmatprep.mubr.msk.bf16.mxu1 %vm1392_vm10, %v5916_v52  ;;  %v8019_v63 = vsel %vm7578_vm0, %v1974_v34, %v1975_v41  ;;  %v4370_v59 = vrot.slane %v4368_v30, 5  ;;  %v4380_v34 = vrot.slane %v4378_v7, 4  ;;  %v4389_v41 = vshrl.u32 %v4277_v15, 16  ;;  %v4276_v15 = vld [vmem:[#allocation2 + $0x38] sm:$0x1] }
 0x176   : > { %v4357_v14 = vor.u32 %v4356_v44, %v8001_v53  ;;  %v4398_v37 = vshll.u32 %v4278_v57, 16  ;;  %v4339_v30 = vsel %vm7223_vm9, %v4334_v21, %v4338_v50  ;;  %v4348_v0 = vrot.slane %v4347_v51, 4  ;;  %v1903_v51 = vld [vmem:[#allocation2 + $0x3c] sm:$0xe] }
 0x177   : > { %v4362_v44 = vrot.slane %v4360_v19, 5  ;;  %v5946_v43 = vrot.slane %v1902_v47, 9  ;;  %v4371_v57 = vor.u32 %v4370_v59, %v4367_v54  ;;  %v4404_v62 = vrot.slane %v4402_v20, 4  ;;  %v7093_v19 = vld [vmem:[#allocation2 + $0x38] sm:$0x1] }
 0x178   : > { %v4358_v7 = vrot.slane %v4357_v14, 4  ;;  %v8046_v52 = vrot.slane %v4398_v37, 5  ;;  %v1982_v21 = vrot.slane %v7093_v19, 5  ;;  %v1988_v14 = vrot.slane %v1986_v16, 4  ;;  %v4280_v59 = vld [vmem:[#allocation2 + $0x48] sm:$0xf] }
 0x179   : > { %v8052_v50 = vsel %vm7578_vm0, %v5946_v43, %v1979_v13  ;;  %v4353_v47 = vsel %vm7223_vm9, %v4348_v0, %v8001_v53  ;;  %v4384_v54 = vshll.u32 %v4276_v15, 16  ;;  %v4372_v37 = vrot.slane %v4371_v57, 4  ;;  %v7094_v20 = vld [vmem:[#allocation2 + $0x44] sm:$0x1] }
 0x17a   : > { %6627 = vmatmul.mubr.msk.bf16.gmra.mrb[8].mxu0 %vm1392_vm10, %v7039_v38  ;;  %v1981_v38 = vrot.slane %v1979_v13, 4  ;;  %v4363_v13 = vsel %vm7223_vm9, %v4358_v7, %v4362_v44  ;;  %v9143_v53 = vcombine.low %v7582_v8, %v7599_v9  ;;  %v5947_v0 = vrot.slane %v1903_v51, 9 }
 0x17b   : > { %6630 = vmatprep.mubr.msk.bf16.mxu0 %vm1392_vm10, %v7040_v36  ;;  %v4329_v36 = vsel %vm7223_vm9, %v4324_v23, %v7979_v29  ;;  %v4391_v29 = vrot.slane %v4389_v41, 4  ;;  %v4394_v23 = vrot.slane %v4392_v24, 5  ;;  %v4405_v15 = vor.u32 %v4404_v62, %v8046_v52  ;;  %v7043_v62 = vld [vmem:[#allocation2 + $0x84] sm:$0xff]  }
 0x17c   : > { %6461 = vmatmul.mubr.msk.bf16.gmra.mrb[12].mxu1 %vm1392_vm10, %v9141_v17  ;;  %v4381_v17 = vor.u32 %v4380_v34, %v8025_v6  ;;  %v8048_v4 = vcombine.low %v4329_v36, %v4339_v30  ;;  %v8063_v24 = vsel %vm7578_vm0, %v1981_v38, %v1982_v21  ;;  %v4279_v36 = vld [vmem:[#allocation2 + $0x44] sm:$0x1]  ;;  %v9144_v44 = vcombine.low %v7627_v2, %v7640_v46  ;;  %v7098_v2 = vld [vmem:[#allocation2 + $0x68] sm:$0x1] }
 0x17d   : > { %6464 = vmatprep.mubr.msk.bf16.mxu1 %vm1392_vm10, %v9142_v33  ;;  %v4281_v33 = vld [vmem:[#allocation2 + $0x4c] sm:$0xf]  ;;  %v4395_v43 = vor.u32 %v4394_v23, %v4391_v29  ;;  %v1993_v38 = vrot.slane %v7929_v32, 5  ;;  %v4413_v57 = vshrl.u32 %v4280_v59, 16  ;;  %v4416_v8 = vshll.u32 %v4280_v59, 16 }
 0x17e   : > { %v4422_v34 = vshll.u32 %v4281_v33, 16  ;;  %v4426_v41 = vshrl.u32 %v4281_v33, 16  ;;  %v4382_v30 = vrot.slane %v4381_v17, 4  ;;  %v4386_v9 = vrot.slane %v4384_v54, 5  ;;  %v1904_v17 = vld [vmem:[#allocation2 + $0x48] sm:$0xe] }
 0x17f   : > { %v4408_v33 = vshll.u32 %v4279_v36, 16  ;;  %v8081_v23 = vcombine.low %v4353_v47, %v4363_v13  ;;  %v4377_v46 = vsel %vm7223_vm9, %v4372_v37, %v8025_v6  ;;  %v8090_v32 = vsel %vm7578_vm0, %v5947_v0, %v1986_v16  ;;  %v8096_v47 = vld [vmem:[#allocation2 + $0x50] sm:$0x1]  ;;  %v4283_v54 = vld [vmem:[#allocation2 + $0x54] sm:$0xf] }
 0x180   : > { %v4428_v29 = vrot.slane %v4426_v41, 4  ;;  %v4387_v19 = vsel %vm7223_vm9, %v4382_v30, %v4386_v9  ;;  %v4396_v51 = vrot.slane %v4395_v43, 4  ;;  %9145 = vst [vmem:[#allocation8_spill] sm:$0xff] %v8096_v47  ;;  %v8098_v59 = vld [vmem:[#allocation2 + $0x58] sm:$0xf]  ;;  %v5948_v41 = vrot.slane %v1904_v17, 9 }
 0x181   : > { %9146 = vst [vmem:[#allocation9_spill] sm:$0xff] %v8098_v59  ;;  %v1995_v6 = vrot.slane %v1993_v38, 4  ;;  %v4415_v13 = vrot.slane %v4413_v57, 4  ;;  %v4418_v37 = vrot.slane %v4416_v8, 5  ;;  %v4410_v16 = vrot.slane %v4408_v33, 5 }
 0x182   : > { %6631 = vmatmul.mubr.msk.bf16.gmra.mrb[12].mxu0 %vm1392_vm10, %v7041_v5  ;;  %v1989_v5 = vrot.slane %v7094_v20, 5  ;;  %v7095_v20 = vld [vmem:[#allocation2 + $0x50] sm:$0x1]  ;;  %v2000_v30 = vrot.slane %v7935_v61, 5  ;;  %v4437_v0 = vshrl.u32 %v4283_v54, 16  ;;  %v4440_v43 = vshll.u32 %v4283_v54, 16 }
 0x183   : > { %6634 = vmatprep.mubr.msk.bf16.mxu0 %vm1392_vm10, %v7042_v49  ;;  %v8079_v49 = vrot.slane %v4422_v34, 5  ;;  %v7044_v34 = vld [vmem:[#allocation2 + $0x90] sm:$0xff]   ;;  %v8106_v57 = vld [vmem:[#allocation2 + $0x64] sm:$0xf]  ;;  %v9148_v8 = vcombine.low %v7683_v56, %v7689_v11  ;;  %v8112_v9 = vcombine.low %v4377_v46, %v4387_v19  ;;  %v4401_v61 = vsel %vm7223_vm9, %v4396_v51, %v8046_v52  ;;  %v4286_v46 = vld [vmem:[#allocation2 + $0x60] sm:$0xf] }
 0x184   : > { %6465 = vmatmul.mubr.msk.bf16.gmra.mrb[16].mxu1 %vm1392_vm10, %v9143_v53  ;;  %v8076_v7 = vsel %vm7578_vm0, %v1988_v14, %v1989_v5  ;;  %v4406_v14 = vrot.slane %v4405_v15, 4  ;;  %v1996_v5 = vrot.slane %v7095_v20, 5  ;;  %v1905_v53 = vld [vmem:[#allocation2 + $0x54] sm:$0xe]  ;;  %v4446_v15 = vshll.u32 %v8098_v59, 16  ;;  %9147 = vst [vmem:[#allocation10_spill] sm:$0xff] %v8106_v57 }
 0x185   : > { %6468 = vmatprep.mubr.msk.bf16.mxu1 %vm1392_vm10, %v9144_v44  ;;  %v4429_v36 = vor.u32 %v4428_v29, %v8079_v49  ;;  %v4450_v44 = vshrl.u32 %v8098_v59, 16  ;;  %v8121_v17 = vsel %vm7578_vm0, %v5948_v41, %v1993_v38  ;;  %v9149_v29 = vcombine.low %v7721_v12, %v7723_v39  ;;  %v8134_v54 = vld [vmem:[#allocation2 + $0x5c] sm:$0x1] }
 0x186   : > { %v4411_v33 = vsel %vm7223_vm9, %v4406_v14, %v4410_v16  ;;  %v8129_v56 = vsel %vm7578_vm0, %v1995_v6, %v1996_v5  ;;  %v4419_v11 = vor.u32 %v4418_v37, %v4415_v13  ;;  %v5949_v52 = vrot.slane %v1905_v53, 9  ;;  %9150 = vst [vmem:[#allocation11_spill] sm:$0xff] %v8134_v54  ;;  %v7046_v6 = vld [vmem:[#allocation2 + $0x9c] sm:$0xff]  }
 0x187   : > { %v4430_v19 = vrot.slane %v4429_v36, 4  ;;  %v2002_v51 = vrot.slane %v2000_v30, 4  ;;  %v4470_v14 = vshll.u32 %v8106_v57, 16  ;;  %v4474_v38 = vshrl.u32 %v8106_v57, 16  ;;  %v7096_v13 = vld [vmem:[#allocation2 + $0x5c] sm:$0x1] }
 0x188   : > { %v4439_v12 = vrot.slane %v4437_v0, 4  ;;  %v4442_v39 = vrot.slane %v4440_v43, 5  ;;  %v4452_v41 = vrot.slane %v4450_v44, 4  ;;  %v8138_v16 = vcombine.low %v4401_v61, %v4411_v33  ;;  %v7048_v36 = vld [vmem:[#allocation2 + $0xa8] sm:$0xff]   ;;  %v8420_v59 = vld [vmem:[#allocation2 + $0xbc] sm:$0x1] }
 0x189   : > { %v2003_v37 = vrot.slane %v7096_v13, 5  ;;  %v4461_v20 = vshrl.u32 %v4286_v46, 16  ;;  %v4464_v5 = vshll.u32 %v4286_v46, 16  ;;  %v8144_v0 = vsel %vm7578_vm0, %v5949_v52, %v2000_v30  ;;  %v4289_v43 = vld [vmem:[#allocation2 + $0x6c] sm:$0xf] }
 0x18a   : > { %6635 = vmatmul.mubr.msk.bf16.gmra.mrb[16].mxu0 %vm1392_vm10, %v7043_v62  ;;  %v4432_v62 = vshll.u32 %v8096_v47, 16  ;;  %v4456_v44 = vshll.u32 %v8134_v54, 16  ;;  %v8152_v61 = vrot.slane %v4470_v14, 5  ;;  %v4476_v33 = vrot.slane %v4474_v38, 4  ;;  %v8154_v46 = vld [vmem:[#allocation2 + $0x70] sm:$0xf] }
 0x18b   : > { %6638 = vmatprep.mubr.msk.bf16.mxu0 %vm1392_vm10, %v7044_v34  ;;  %v8136_v34 = vrot.slane %v4446_v15, 5  ;;  %v8149_v15 = vsel %vm7578_vm0, %v2002_v51, %v2003_v37  ;;  %v1906_v52 = vld [vmem:[#allocation2 + $0x60] sm:$0xe]  ;;  %v9151_v51 = vcombine.low %v7760_v45, %v7772_v25  ;;  %v8165_v14 = vld [vmem:[#allocation2 + $0x68] sm:$0x1]  ;;  %v4463_v38 = vrot.slane %v4461_v20, 4 }
 0x18c   : > { %6469 = vmatmul.mubr.msk.bf16.gmra.mrb[20].mxu1 %vm1392_vm10, %v9148_v8  ;;  %v4420_v8 = vrot.slane %v4419_v11, 4  ;;  %v4443_v11 = vor.u32 %v4442_v39, %v4439_v12  ;;  %9152 = vst [vmem:[#allocation12_spill] sm:$0xff] %v8165_v14  ;;  %v4466_v13 = vrot.slane %v4464_v5, 5  ;;  %v4485_v37 = vshrl.u32 %v4289_v43, 16  ;;  %v7097_v12 = vld [vmem:[#allocation2 + $0x70] sm:$0xf] }
 0x18d   : > { %6472 = vmatprep.mubr.msk.bf16.mxu1 %vm1392_vm10, %v9149_v29  ;;  %v4434_v29 = vrot.slane %v4432_v62, 5  ;;  %v4453_v62 = vor.u32 %v4452_v41, %v8136_v34  ;;  %v2014_v39 = vrot.slane %v7097_v12, 5  ;;  %v4494_v45 = vshll.u32 %v8154_v46, 16 }
 0x18e   : > { %v4498_v25 = vshrl.u32 %v8154_v46, 16  ;;  %v5950_v5 = vrot.slane %v1906_v52, 9  ;;  %v4467_v12 = vor.u32 %v4466_v13, %v4463_v38  ;;  %v4487_v53 = vrot.slane %v4485_v37, 4 }
 0x18f   : > { %v4435_v30 = vsel %vm7223_vm9, %v4430_v19, %v4434_v29  ;;  %v9153_v19 = vcombine.low %v7798_v31, %v7806_v60  ;;  %v4477_v31 = vor.u32 %v4476_v33, %v8152_v61  ;;  %v4454_v60 = vrot.slane %v4453_v62, 4 }
 0x190   : > { %v4458_v29 = vrot.slane %v4456_v44, 5  ;;  %v2010_v54 = vrot.slane %v7098_v2, 5  ;;  %v2016_v20 = vrot.slane %v2014_v39, 4  ;;  %v8184_v52 = vrot.slane %v4494_v45, 5 }
 0x191   : > { %v4500_v33 = vrot.slane %v4498_v25, 4  ;;  %v4478_v62 = vrot.slane %v4477_v31, 4  ;;  %v4468_v25 = vrot.slane %v4467_v12, 4 }
 0x192   : > { %6639 = vmatmul.mubr.msk.bf16.gmra.mrb[20].mxu0 %vm1392_vm10, %v7046_v6  ;;  %v2007_v6 = vrot.slane %v7941_v28, 5  ;;  %v4425_v28 = vsel %vm7223_vm9, %v4420_v8, %v8079_v49  ;;  %v8182_v49 = vld [vmem:[#allocation2 + $0x7c] sm:$0xf]  ;;  %v7050_v8 = vld [vmem:[#allocation2 + $0xb4] sm:$0xff]   ;;  %v4459_v2 = vsel %vm7223_vm9, %v4454_v60, %v4458_v29  ;;  %v9155_v60 = vcombine.low %v7972_v26, %v7988_v58 }
 0x193   : > { %6642 = vmatprep.mubr.msk.bf16.mxu0 %vm1392_vm10, %v7048_v36  ;;  %v4488_v36 = vshll.u32 %v4289_v43, 16  ;;  %v8176_v41 = vcombine.low %v4425_v28, %v4435_v30  ;;  %v4292_v30 = vld [vmem:[#allocation2 + $0x78] sm:$0xf]  ;;  %v7051_v28 = vld [vmem:[#allocation2 + $0xc0] sm:$0xff]   ;;  %v4522_v38 = vshrl.u32 %v8182_v49, 16 }
 0x194   : > { %6473 = vmatmul.mubr.msk.bf16.gmra.mrb[24].mxu1 %vm1392_vm10, %v9151_v51  ;;  %v2009_v43 = vrot.slane %v2007_v6, 4  ;;  %v4480_v51 = vshll.u32 %v8165_v14, 16  ;;  %v8189_v44 = vsel %vm7578_vm0, %v5950_v5, %v2007_v6  ;;  %v1907_v14 = vld [vmem:[#allocation2 + $0x6c] sm:$0xe]  ;;  %v9154_v6 = vcombine.low %v7822_v22, %v7824_v10  ;;  %v8204_v5 = vld [vmem:[#allocation2 + $0x74] sm:$0x1] }
 0x195   : > { %6476 = vmatprep.mubr.msk.bf16.mxu1 %vm1392_vm10, %v9153_v19  ;;  %v4444_v19 = vrot.slane %v4443_v11, 4  ;;  %v4490_v21 = vrot.slane %v4488_v36, 5  ;;  %v4518_v11 = vshll.u32 %v8182_v49, 16  ;;  %v7099_v36 = vld [vmem:[#allocation2 + $0x74] sm:$0x1]  ;;  %v5951_v29 = vrot.slane %v1907_v14, 9 }
 0x196   : > { %v8198_v13 = vsel %vm7578_vm0, %v2009_v43, %v2010_v54  ;;  %v4482_v37 = vrot.slane %v4480_v51, 5  ;;  %v2017_v45 = vrot.slane %v7099_v36, 5  ;;  %v4501_v10 = vor.u32 %v4500_v33, %v8184_v52  ;;  %v7052_v43 = vld [vmem:[#allocation2 + $0xcc] sm:$0xff]  }
 0x197   : > { %v4491_v31 = vor.u32 %v4490_v21, %v4487_v53  ;;  %v4449_v54 = vsel %vm7223_vm9, %v4444_v19, %v8136_v34  ;;  %v7100_v53 = vld [vmem:[#allocation2 + $0x7c] sm:$0xf]  ;;  %v8220_v26 = vrot.slane %v4518_v11, 5  ;;  %v4524_v58 = vrot.slane %v4522_v38, 4  ;;  %v1908_v19 = vld [vmem:[#allocation2 + $0x78] sm:$0xe] }
 0x198   : > { %v8215_v22 = vsel %vm7578_vm0, %v2016_v20, %v2017_v45  ;;  %v4483_v21 = vsel %vm7223_vm9, %v4478_v62, %v4482_v37  ;;  %v2021_v51 = vrot.slane %v7100_v53, 5  ;;  %v8222_v12 = vcombine.low %v4449_v54, %v4459_v2  ;;  %v4295_v2 = vld [vmem:[#allocation2 + $0x84] sm:$0xf]  ;;  %v4298_v36 = vld [vmem:[#allocation2 + $0x90] sm:$0xf] }
 0x199   : > { %v8228_v14 = vsel %vm7578_vm0, %v5951_v29, %v2014_v39  ;;  %v4504_v20 = vshll.u32 %v8204_v5, 16  ;;  %v4473_v33 = vsel %vm7223_vm9, %v4468_v25, %v8152_v61  ;;  %v4492_v62 = vrot.slane %v4491_v31, 4 }
 0x19a   : > { %6643 = vmatmul.mubr.msk.bf16.gmra.mrb[24].mxu0 %vm1392_vm10, %v7050_v8  ;;  %v4509_v8 = vshrl.u32 %v4292_v30, 16  ;;  %v8236_v37 = vcombine.low %v4473_v33, %v4483_v21  ;;  %v4502_v39 = vrot.slane %v4501_v10, 4  ;;  %v5269_v45 = vsel %vm1441_vm8, %v7909_v42, 0  ;;  %v7101_v21 = vld [vmem:[#allocation2 + $0x80] sm:$0x1] }
 0x19b   : > { %6646 = vmatprep.mubr.msk.bf16.mxu0 %vm1392_vm10, %v7051_v28  ;;  %v4512_v28 = vshll.u32 %v4292_v30, 16  ;;  %v8231_v30 = vld [vmem:[#allocation2 + $0x88] sm:$0xf]  ;;  %v4525_v61 = vor.u32 %v4524_v58, %v8220_v26  ;;  %v5952_v54 = vrot.slane %v1908_v19, 9  ;;  %v4533_v29 = vshrl.u32 %v4295_v2, 16 }
 0x19c   : > { %6477 = vmatmul.mubr.msk.bf16.gmra.mrb[28].mxu1 %vm1392_vm10, %v9154_v6  ;;  %v4511_v11 = vrot.slane %v4509_v8, 4  ;;  %v8242_v6 = vld [vmem:[#allocation2 + $0x80] sm:$0x1]  ;;  %v4542_v25 = vshll.u32 %v8231_v30, 16  ;;  %v4546_v31 = vshrl.u32 %v8231_v30, 16  ;;  %v4536_v42 = vshll.u32 %v4295_v2, 16 }
 0x19d   : > { %6482 = vmatprep.mubr.msk.bf16.mxu1 %vm1392_vm10, %v9155_v60  ;;  %v4514_v38 = vrot.slane %v4512_v28, 5  ;;  %v2023_v60 = vrot.slane %v2021_v51, 4  ;;  %v8248_v8 = vld [vmem:[#allocation2 + $0x94] sm:$0xf]  ;;  %v4506_v28 = vrot.slane %v4504_v20, 5  ;;  %v9156_v10 = vcombine.low %v7994_v55, %v7976_v35 }
 0x19e   : > { %v2024_v53 = vrot.slane %v7101_v21, 5  ;;  %v4528_v33 = vshll.u32 %v8242_v6, 16  ;;  %v7102_v55 = vld [vmem:[#allocation2 + $0x88] sm:$0xf]  ;;  %v4570_v19 = vshrl.u32 %v8248_v8, 16  ;;  %v4535_v2 = vrot.slane %v4533_v29, 4 }
 0x19f   : > { %v4515_v58 = vor.u32 %v4514_v38, %v4511_v11  ;;  %v4507_v35 = vsel %vm7223_vm9, %v4502_v39, %v4506_v28  ;;  %v2028_v20 = vrot.slane %v7102_v55, 5  ;;  %v4526_v11 = vrot.slane %v4525_v61, 4 }
 0x1a0   : > { %v4548_v38 = vrot.slane %v4546_v31, 4  ;;  %v4538_v39 = vrot.slane %v4536_v42, 5  ;;  %v4557_v28 = vshrl.u32 %v4298_v36, 16  ;;  %v1910_v42 = vld [vmem:[#allocation2 + $0x90] sm:$0xe] }
 0x1a1   : > { %v4516_v61 = vrot.slane %v4515_v58, 4  ;;  %v2030_v31 = vrot.slane %v2028_v20, 4 }
 0x1a2   : > { %6647 = vmatmul.mubr.msk.bf16.gmra.mrb[28].mxu0 %vm1392_vm10, %v7052_v43  ;;  %v4497_v43 = vsel %vm7223_vm9, %v4492_v62, %v8184_v52  ;;  %v4566_v52 = vshll.u32 %v8248_v8, 16  ;;  %v8271_v62 = vsel %vm7578_vm0, %v2023_v60, %v2024_v53  ;;  %v8283_v60 = vsel %vm7578_vm0, %v5952_v54, %v2021_v51  ;;  %v8285_v53 = vld [vmem:[#allocation2 + $0x8c] sm:$0x1] }
 0x1a3   : > { %6652 = vmatprep.mubr.msk.bf16.mxu0 %vm1392_vm10, %v8048_v4  ;;  %v9157_v4 = vcombine.low %v8007_v1, %v8011_v48  ;;  %v7103_v1 = vld [vmem:[%s9111_s1 + $0x8] sm:$0x3]  ;;  %v1909_v48 = vld [vmem:[#allocation2 + $0x84] sm:$0xe]  ;;  %v8279_v21 = vcombine.low %v4497_v43, %v4507_v35  ;;  %v7105_v43 = vld [vmem:[#allocation2 + $0x8c] sm:$0x1] }
 0x1a4   : > { %6483 = vmatmul.mubr.msk.bf16.vlgmr.msra.gmra.mrb[0].mxu1 %vm1392_vm10, %v9156_v10  ;;  %v4560_v10 = vshll.u32 %v4298_v36, 16  ;;  %v8287_v34 = vrot.slane %v4566_v52, 5  ;;  %v5953_v54 = vrot.slane %v1909_v48, 9  ;;  %v2031_v58 = vrot.slane %v7105_v43, 5  ;;  %v7106_v48 = vld [vmem:[#allocation2 + $0xa0] sm:$0xf] }
 0x1a5   : > { %6515 = vmatpush3.bf16.msra.mxu1 %v7968_v27  ;;  %6486 = vmatprep.mubr.msk.bf16.mxu1 %vm1392_vm10, %v9157_v4  ;;  %v8273_v27 = vrot.slane %v4542_v25, 5  ;;  %v4530_v25 = vrot.slane %v4528_v33, 5  ;;  %v7104_v4 = vld [vmem:[#allocation2 + $0x94] sm:$0xf]  ;;  %v4539_v33 = vor.u32 %v4538_v39, %v4535_v2  ;;  %v4559_v35 = vrot.slane %v4557_v28, 4 }
 0x1a6   : > { %6981 = vmatprep.subr.msk.bf16.mxu1 %vm1441_vm8, %v7103_v1  ;;  %v2035_v55 = vrot.slane %v7104_v4, 5  ;;  %v4572_v1 = vrot.slane %v4570_v19, 4  ;;  %v4562_v52 = vrot.slane %v4560_v10, 5  ;;  %v9158_v19 = vcombine.low %v8015_v18, %v8019_v63  ;;  %v8323_v28 = vld [vmem:[#allocation2 + $0xa0] sm:$0xf] }
 0x1a7   : > { %v4531_v51 = vsel %vm7223_vm9, %v4526_v11, %v4530_v25  ;;  %v4549_v29 = vor.u32 %v4548_v38, %v8273_v27  ;;  %v4521_v11 = vsel %vm7223_vm9, %v4516_v61, %v8220_v26  ;;  %v8307_v38 = vsel %vm7578_vm0, %v5953_v54, %v2028_v20  ;;  %v7107_v43 = vld [vmem:[#allocation2 + $0x98] sm:$0x1]  ;;  %v7110_v36 = vld [vmem:[#allocation2 + $0xb0] sm:$0x1] }
 0x1a8   : > { %v2042_v2 = vrot.slane %v7106_v48, 5  ;;  %v9159_v39 = vcombine.low %v8052_v50, %v8063_v24  ;;  %v8316_v18 = vcombine.low %v4521_v11, %v4531_v51  ;;  %v8320_v63 = vsel %vm7578_vm0, %v2030_v31, %v2031_v58  ;;  %v1911_v11 = vld [vmem:[#allocation2 + $0x9c] sm:$0xe] }
 0x1a9   : > { %v2037_v26 = vrot.slane %v2035_v55, 4  ;;  %v4573_v20 = vor.u32 %v4572_v1, %v8287_v34  ;;  %v4550_v10 = vrot.slane %v4549_v29, 4  ;;  %v5954_v61 = vrot.slane %v1910_v42, 9  ;;  %v8344_v1 = vld [vmem:[#allocation2 + $0xac] sm:$0xf] }
 0x1aa   : > { %6653 = vmatmul.mubr.msk.bf16.vlgmr.msra.gmra.mrb[0].mxu0 %vm1392_vm10, %v8081_v23  ;;  %v4301_v23 = vld [vmem:[#allocation2 + $0x9c] sm:$0xf]  ;;  %v4540_v54 = vrot.slane %v4539_v33, 4  ;;  %v2038_v50 = vrot.slane %v7107_v43, 5  ;;  %v4563_v24 = vor.u32 %v4562_v52, %v4559_v35  ;;  %v2044_v48 = vrot.slane %v2042_v2, 4 }
 0x1ab   : > { %6656 = vmatprep.mubr.msk.bf16.mxu0 %vm1392_vm10, %v8112_v9  ;;  %6685 = vmatpush3.bf16.msra.mxu0 %v5269_v45  ;;  %v4552_v9 = vshll.u32 %v8285_v53, 16  ;;  %v8310_v45 = vld [vmem:[#allocation2 + $0x98] sm:$0x1]  ;;  %v4581_v25 = vshrl.u32 %v4301_v23, 16  ;;  %v4584_v4 = vshll.u32 %v4301_v23, 16  ;;  %v4590_v31 = vshll.u32 %v8323_v28, 16 }
 0x1ac   : > { %6487 = vmatmul.mubr.msk.bf16.gmra.mrb[4].mxu1 %vm1392_vm10, %v9158_v19  ;;  %v4576_v51 = vshll.u32 %v8310_v45, 16  ;;  %v4594_v58 = vshrl.u32 %v8323_v28, 16  ;;  %v8332_v29 = vsel %vm7578_vm0, %v5954_v61, %v2035_v55  ;;  %v8336_v42 = vsel %vm7578_vm0, %v2037_v26, %v2038_v50  ;;  %v8338_v35 = vld [vmem:[#allocation2 + $0xa4] sm:$0x1] }
 0x1ad   : > { %6490 = vmatprep.mubr.msk.bf16.mxu1 %vm1392_vm10, %v9159_v39  ;;  %v4554_v19 = vrot.slane %v4552_v9, 5  ;;  %v4574_v33 = vrot.slane %v4573_v20, 4  ;;  %v7108_v23 = vld [vmem:[#allocation2 + $0xa4] sm:$0x1]  ;;  %v4583_v39 = vrot.slane %v4581_v25, 4  ;;  %v4586_v43 = vrot.slane %v4584_v4, 5 }
 0x1ae   : > { %v2045_v9 = vrot.slane %v7108_v23, 5  ;;  %v4545_v55 = vsel %vm7223_vm9, %v4540_v54, %v8273_v27  ;;  %v4564_v26 = vrot.slane %v4563_v24, 4  ;;  %v4578_v20 = vrot.slane %v4576_v51, 5  ;;  %v8363_v27 = vld [vmem:[#allocation2 + $0xb8] sm:$0xf] }
 0x1af   : > { %v4555_v52 = vsel %vm7223_vm9, %v4550_v10, %v4554_v19  ;;  %v5955_v61 = vrot.slane %v1911_v11, 9  ;;  %v9160_v10 = vcombine.low %v8090_v32, %v8076_v7  ;;  %v4596_v50 = vrot.slane %v4594_v58, 4  ;;  %v1912_v19 = vld [vmem:[#allocation2 + $0xa8] sm:$0xe] }
 0x1b0   : > { %v8359_v4 = vsel %vm7578_vm0, %v2044_v48, %v2045_v9  ;;  %v9161_v54 = vcombine.low %v8121_v17, %v8129_v56  ;;  %v8369_v7 = vcombine.low %v4545_v55, %v4555_v52  ;;  %v4579_v32 = vsel %vm7223_vm9, %v4574_v33, %v4578_v20  ;;  %v4304_v11 = vld [vmem:[#allocation2 + $0xa8] sm:$0xf]  ;;  %v4307_v56 = vld [vmem:[#allocation2 + $0xb4] sm:$0xf]  ;;  %v7109_v20 = vld [vmem:[#allocation2 + $0xac] sm:$0xf] }
 0x1b1   : > { %v8375_v24 = vsel %vm7578_vm0, %v5955_v61, %v2042_v2  ;;  %v4600_v51 = vshll.u32 %v8338_v35, 16  ;;  %v4587_v48 = vor.u32 %v4586_v43, %v4583_v39  ;;  %v4618_v17 = vshrl.u32 %v8344_v1, 16 }
 0x1b2   : > { %6657 = vmatmul.mubr.msk.bf16.gmra.mrb[4].mxu0 %vm1392_vm10, %v8138_v16  ;;  %v302_v16 = vld [vmem:[#allocation2 + $0xd4] sm:$0x1]  ;;  %v4569_v33 = vsel %vm7223_vm9, %v4564_v26, %v8287_v34  ;;  %v4638_v23 = vshll.u32 %v8363_v27, 16  ;;  %v4642_v9 = vshrl.u32 %v8363_v27, 16  ;;  %v5956_v55 = vrot.slane %v1912_v19, 9 }
 0x1b3   : > { %6660 = vmatprep.mubr.msk.bf16.mxu0 %vm1392_vm10, %v8176_v41  ;;  %v8361_v41 = vrot.slane %v4590_v31, 5  ;;  %v4614_v31 = vshll.u32 %v8344_v1, 16  ;;  %v303_v52 = vsel %vm7192_vm5, 0, %v302_v16  ;;  %v8389_v39 = vcombine.low %v4569_v33, %v4579_v32  ;;  %v4310_v16 = vld [vmem:[#allocation2 + $0xc0] sm:$0xf] }
 0x1b4   : > { %6491 = vmatmul.mubr.msk.bf16.gmra.mrb[8].mxu1 %vm1392_vm10, %v9160_v10  ;;  %304 = vst [vmem:[#allocation2 + $0xd4] sm:$0x1] %v303_v52  ;;  %v2049_v61 = vrot.slane %v7109_v20, 5  ;;  %v4605_v10 = vshrl.u32 %v4304_v11, 16  ;;  %v4629_v58 = vshrl.u32 %v4307_v56, 16  ;;  %v4632_v34 = vshll.u32 %v4307_v56, 16 }
 0x1b5   : > { %6494 = vmatprep.mubr.msk.bf16.mxu1 %vm1392_vm10, %v9161_v54  ;;  %v4597_v43 = vor.u32 %v4596_v50, %v8361_v41  ;;  %v4608_v54 = vshll.u32 %v4304_v11, 16  ;;  %v8392_v26 = vld [vmem:[#allocation2 + $0xc4] sm:$0xf]  ;;  %v8396_v2 = vrot.slane %v4587_v48, 4  ;;  %v8398_v52 = vrot.slane %v4600_v51, 5 }
 0x1b6   : > { %v8400_v32 = vrot.slane %v4614_v31, 5  ;;  %v4620_v50 = vrot.slane %v4618_v17, 4  ;;  %v8404_v19 = vld [vmem:[#allocation2 + $0xb0] sm:$0x1]  ;;  %v8406_v11 = vrot.slane %v4638_v23, 5  ;;  %v4644_v56 = vrot.slane %v4642_v9, 4 }
 0x1b7   : > { %v4653_v33 = vshrl.u32 %v4310_v16, 16  ;;  %v4656_v20 = vshll.u32 %v4310_v16, 16  ;;  %v4598_v51 = vrot.slane %v4597_v43, 4  ;;  %v2051_v48 = vrot.slane %v2049_v61, 4  ;;  %v7111_v43 = vld [vmem:[#allocation2 + $0xb8] sm:$0xf] }
 0x1b8   : > { %v4662_v31 = vshll.u32 %v8392_v26, 16  ;;  %v4666_v17 = vshrl.u32 %v8392_v26, 16  ;;  %v4607_v23 = vrot.slane %v4605_v10, 4  ;;  %v4610_v9 = vrot.slane %v4608_v54, 5 }
 0x1b9   : > { %v4631_v25 = vrot.slane %v4629_v58, 4  ;;  %v4634_v16 = vrot.slane %v4632_v34, 5  ;;  %v2052_v57 = vrot.slane %v7110_v36, 5  ;;  %v8424_v47 = vsel %vm7578_vm0, %v5956_v55, %v2049_v61 }
 0x1ba   : > { %6661 = vmatmul.mubr.msk.bf16.gmra.mrb[8].mxu0 %vm1392_vm10, %v8222_v12  ;;  %v9163_v12 = vcombine.low %v8144_v0, %v8149_v15  ;;  %v4621_v0 = vor.u32 %v4620_v50, %v8400_v32  ;;  %v4624_v15 = vshll.u32 %v8404_v19, 16  ;;  %v4658_v10 = vrot.slane %v4656_v20, 5  ;;  %v4313_v50 = vld [vmem:[#allocation2 + $0xcc] sm:$0xf]  ;;  %v8441_v20 = vld [vmem:[#allocation2 + $0xd0] sm:$0xf] }
 0x1bb   : > { %6664 = vmatprep.mubr.msk.bf16.mxu0 %vm1392_vm10, %v8236_v37  ;;  %v9164_v37 = vcombine.low %v8189_v44, %v8198_v13  ;;  %v4645_v44 = vor.u32 %v4644_v56, %v8406_v11  ;;  %v4655_v13 = vrot.slane %v4653_v33, 4  ;;  %v4593_v36 = vsel %vm7223_vm9, %v8396_v2, %v8361_v41 }
 0x1bc   : > { %6495 = vmatmul.mubr.msk.bf16.gmra.mrb[12].mxu1 %vm1392_vm10, %v9163_v12  ;;  %v2056_v12 = vrot.slane %v7111_v43, 5  ;;  %v8433_v54 = vsel %vm7578_vm0, %v2051_v48, %v2052_v57  ;;  %v8435_v58 = vrot.slane %v4662_v31, 5  ;;  %v4668_v34 = vrot.slane %v4666_v17, 4  ;;  %v7112_v48 = vld [vmem:[#allocation2 + $0xbc] sm:$0x1] }
 0x1bd   : > { %6498 = vmatprep.mubr.msk.bf16.mxu1 %vm1392_vm10, %v9164_v37  ;;  %v4603_v55 = vsel %vm7223_vm9, %v4598_v51, %v8398_v52  ;;  %v4611_v61 = vor.u32 %v4610_v9, %v4607_v23  ;;  %v4635_v56 = vor.u32 %v4634_v16, %v4631_v25  ;;  %v4648_v33 = vshll.u32 %v8420_v59, 16  ;;  %v8445_v17 = vld [vmem:[#allocation2 + $0xc8] sm:$0x1]  ;;  %v1913_v52 = vld [vmem:[#allocation2 + $0xb4] sm:$0xe] }
 0x1be   : > { %v4622_v41 = vrot.slane %v4621_v0, 4  ;;  %v4626_v57 = vrot.slane %v4624_v15, 5  ;;  %v2058_v2 = vrot.slane %v2056_v12, 4  ;;  %v2059_v31 = vrot.slane %v7112_v48, 5 }
 0x1bf   : > { %v4646_v51 = vrot.slane %v4645_v44, 4  ;;  %v4659_v25 = vor.u32 %v4658_v10, %v4655_v13  ;;  %v4672_v37 = vshll.u32 %v8445_v17, 16  ;;  %v4677_v23 = vshrl.u32 %v4313_v50, 16 }
 0x1c0   : > { %v9165_v9 = vcombine.low %v8228_v14, %v8215_v22  ;;  %v4680_v16 = vshll.u32 %v4313_v50, 16  ;;  %v4686_v0 = vshll.u32 %v8441_v20, 16  ;;  %v4690_v15 = vshrl.u32 %v8441_v20, 16 }
 0x1c1   : > { %v5973_v43 = vcombine.low %v8424_v47, %v8433_v54  ;;  %v4612_v44 = vrot.slane %v4611_v61, 4  ;;  %v4636_v13 = vrot.slane %v4635_v56, 4  ;;  %v4650_v22 = vrot.slane %v4648_v33, 5  ;;  %v5001_v33 = vld [vmem:[#allocation2 + $0x6c] sm:$0xe] }
 0x1c2   : > { %6665 = vmatmul.mubr.msk.bf16.gmra.mrb[12].mxu0 %vm1392_vm10, %v8279_v21  ;;  %v4669_v21 = vor.u32 %v4668_v34, %v8435_v58  ;;  %v6151_v14 = vcombine.low %v4593_v36, %v4603_v55  ;;  %v4627_v10 = vsel %vm7223_vm9, %v4622_v41, %v4626_v57  ;;  %v5957_v34 = vrot.slane %v1913_v52, 9 }
 0x1c3   : > { %6668 = vmatprep.mubr.msk.bf16.mxu0 %vm1392_vm10, %v8316_v18  ;;  %v9166_v18 = vcombine.low %v8283_v60, %v8271_v62  ;;  %v8467_v50 = vsel %vm7578_vm0, %v2058_v2, %v2059_v31  ;;  %v4651_v62 = vsel %vm7223_vm9, %v4646_v51, %v4650_v22  ;;  %v8471_v60 = vrot.slane %v4659_v25, 4  ;;  %v5004_v22 = vld [vmem:[#allocation2 + $0x90] sm:$0xe] }
 0x1c4   : > { %6499 = vmatmul.mubr.msk.bf16.gmra.mrb[16].mxu1 %vm1392_vm10, %v9165_v9  ;;  %v8473_v48 = vrot.slane %v4672_v37, 5  ;;  %v8475_v9 = vrot.slane %v4677_v23, 4  ;;  %v8477_v61 = vrot.slane %v4669_v21, 4  ;;  %v8479_v36 = vrot.slane %v4680_v16, 5  ;;  %v5002_v37 = vld [vmem:[#allocation2 + $0x78] sm:$0xe] }
 0x1c5   : > { %6502 = vmatprep.mubr.msk.bf16.mxu1 %vm1392_vm10, %v9166_v18  ;;  %v8481_v55 = vrot.slane %v4686_v0, 5  ;;  %v8483_v56 = vrot.slane %v4690_v15, 4  ;;  %v4617_v41 = vsel %vm7223_vm9, %v4612_v44, %v8400_v32  ;;  %v8490_v57 = vsel %vm7578_vm0, %v5957_v34, %v2056_v12  ;;  %v8502_v32 = vld [vmem:[#allocation2 + $0x1c] sm:$0xf]  ;;  %v5003_v21 = vld [vmem:[#allocation2 + $0x84] sm:$0xe] }
 0x1c6   : > { %v4641_v2 = vsel %vm7223_vm9, %v4636_v13, %v8406_v11  ;;  %v5109_v31 = vrot.slane %v8154_v46, 5  ;;  %v6152_v52 = vcombine.low %v4617_v41, %v4627_v10  ;;  %v5974_v51 = vcombine.low %v8490_v57, %v8467_v50  ;;  %v7116_v57 = vld [vmem:[#allocation2 + $0x34] sm:$0xf] }
 0x1c7   : > { %v8500_v25 = vcombine.low %v4641_v2, %v4651_v62  ;;  %v5060_v12 = vrot.slane %v8502_v32, 5  ;;  %v4665_v46 = vsel %vm7223_vm9, %v8471_v60, %v8435_v58  ;;  %v5112_v23 = vrot.slane %v8204_v5, 5  ;;  %v7053_v58 = vld [vmem:[#allocation2 + $0xc] sm:$0xff]   ;;  %v7055_v32 = vld [vmem:[#allocation2 + $0x24] sm:$0xff]  }
 0x1c8   : > { %v5111_v11 = vrot.slane %v5109_v31, 4  ;;  %v9167_v16 = vcombine.low %v8307_v38, %v8320_v63  ;;  %v4683_v0 = vor.u32 %v8479_v36, %v8475_v9  ;;  %v4693_v15 = vor.u32 %v8483_v56, %v8481_v55  ;;  %v5005_v56 = vld [vmem:[#allocation2 + $0x9c] sm:$0xe] }
 0x1c9   : > { %v5116_v18 = vrot.slane %v8182_v49, 5  ;;  %v9168_v5 = vcombine.low %v8332_v29, %v8336_v42  ;;  %v6180_v44 = vrot.slane %v5002_v37, 9  ;;  %v5123_v13 = vrot.slane %v8231_v30, 5 }
 0x1ca   : > { %6669 = vmatmul.mubr.msk.bf16.gmra.mrb[16].mxu0 %vm1392_vm10, %v8369_v7  ;;  %v6179_v7 = vrot.slane %v5001_v33, 9  ;;  %v8535_v63 = vsel %vm7578_vm0, %v5111_v11, %v5112_v23  ;;  %v5119_v29 = vrot.slane %v8242_v6, 5  ;;  %v6181_v42 = vrot.slane %v5003_v21, 9  ;;  %v8547_v33 = vld [vmem:[#allocation2 + $0xd4] sm:$0x1] }
 0x1cb   : > { %6672 = vmatprep.mubr.msk.bf16.mxu0 %vm1392_vm10, %v8389_v39  ;;  %v4675_v39 = vsel %vm7223_vm9, %v8477_v61, %v8473_v48  ;;  %v5118_v10 = vrot.slane %v5116_v18, 4  ;;  %v8543_v34 = vsel %vm7578_vm0, %v6180_v44, %v5116_v18  ;;  %v5125_v62 = vrot.slane %v5123_v13, 4 }
 0x1cc   : > { %6503 = vmatmul.mubr.msk.bf16.gmra.mrb[20].mxu1 %vm1392_vm10, %v9167_v16  ;;  %v8531_v38 = vsel %vm7578_vm0, %v6179_v7, %v5109_v31  ;;  %v5126_v9 = vrot.slane %v8285_v53, 5  ;;  %v5130_v36 = vrot.slane %v8248_v8, 5  ;;  %v8555_v6 = vsel %vm7578_vm0, %v6181_v42, %v5123_v13 }
 0x1cd   : > { %6506 = vmatprep.mubr.msk.bf16.mxu1 %vm1392_vm10, %v9168_v5  ;;  %v6196_v49 = vcombine.low %v8531_v38, %v8535_v63  ;;  %v8551_v30 = vsel %vm7578_vm0, %v5118_v10, %v5119_v29  ;;  %v6182_v41 = vrot.slane %v5004_v22, 9  ;;  %v5137_v2 = vrot.slane %v8323_v28, 5  ;;  %v5006_v28 = vld [vmem:[#allocation2 + $0xa8] sm:$0xe]  ;;  %v5007_v5 = vld [vmem:[#allocation2 + $0xb4] sm:$0xe] }
 0x1ce   : > { %v6197_v31 = vcombine.low %v8543_v34, %v8551_v30  ;;  %v8562_v8 = vsel %vm7578_vm0, %v5125_v62, %v5126_v9  ;;  %v5132_v53 = vrot.slane %v5130_v36, 4  ;;  %v5133_v37 = vrot.slane %v8310_v45, 5  ;;  %v2743_v34 = vld [vmem:[#allocation2 + $0x84] sm:$0xf] }
 0x1cf   : > { %v6198_v7 = vcombine.low %v8555_v6, %v8562_v8  ;;  %v6183_v11 = vrot.slane %v5005_v56, 9  ;;  %v5139_v23 = vrot.slane %v5137_v2, 4  ;;  %v5140_v21 = vrot.slane %v8338_v35, 5  ;;  %v5008_v56 = vld [vmem:[#allocation2 + $0xc0] sm:$0xe] }
 0x1d0   : > { %v4696_v16 = vshll.u32 %v8547_v33, 16  ;;  %v8573_v18 = vsel %vm7578_vm0, %v6182_v41, %v5130_v36  ;;  %v8577_v45 = vsel %vm7578_vm0, %v5132_v53, %v5133_v37  ;;  %v9169_v44 = vcombine.low %v8375_v24, %v8359_v4  ;;  %v7123_v8 = vld [vmem:[#allocation2 + $0x88] sm:$0xf] }
 0x1d1   : > { %v6199_v35 = vcombine.low %v8573_v18, %v8577_v45  ;;  %v8592_v13 = vsel %vm7578_vm0, %v5139_v23, %v5140_v21  ;;  %v5151_v22 = vrot.slane %v8363_v27, 5  ;;  %v6184_v24 = vrot.slane %v5006_v28, 9  ;;  %v5009_v23 = vld [vmem:[#allocation2 + $0xcc] sm:$0xe]  ;;  %v7114_v21 = vld [vmem:[#allocation2 + $0x20] sm:$0x1] }
 0x1d2   : > { %6673 = vmatmul.mubr.msk.bf16.gmra.mrb[20].mxu0 %vm1392_vm10, %v6151_v14  ;;  %v5144_v14 = vrot.slane %v8344_v1, 5  ;;  %v4994_v1 = vld [vmem:[#allocation2 + $0x18] sm:$0xe]  ;;  %v5147_v29 = vrot.slane %v8404_v19, 5  ;;  %v4684_v42 = vrot.slane %v4683_v0, 4  ;;  %v6185_v62 = vrot.slane %v5007_v5, 9 }
 0x1d3   : > { %6676 = vmatprep.mubr.msk.bf16.mxu0 %vm1392_vm10, %v6152_v52  ;;  %v8588_v52 = vsel %vm7578_vm0, %v6183_v11, %v5137_v2  ;;  %v5153_v9 = vrot.slane %v5151_v22, 4  ;;  %v5154_v36 = vrot.slane %v8420_v59, 5  ;;  %v4694_v27 = vrot.slane %v4693_v15, 4  ;;  %v7067_v45 = vld [vmem:[#allocation2 + $0xb4] sm:$0xff]  }
 0x1d4   : > { %6507 = vmatmul.mubr.msk.bf16.gmra.mrb[24].mxu1 %vm1392_vm10, %v9169_v44  ;;  %v6200_v4 = vcombine.low %v8588_v52, %v8592_v13  ;;  %v5146_v10 = vrot.slane %v5144_v14, 4  ;;  %v4698_v41 = vrot.slane %v4696_v16, 5  ;;  %v8605_v47 = vsel %vm7578_vm0, %v6184_v24, %v5144_v14  ;;  %v9170_v14 = vld [vmem:[#allocation6_spill] sm:$0xff] }
 0x1d5   : > { %6510 = vmatprep.mubr.msk.bf16.mxu1 %vm1392_vm10, %v5973_v43  ;;  %v2740_v43 = vld [vmem:[#allocation2 + $0x78] sm:$0xf]  ;;  %v6172_v2 = vrot.slane %v4994_v1, 9  ;;  %v8615_v0 = vsel %vm7578_vm0, %v6185_v62, %v5151_v22  ;;  %v8619_v59 = vsel %vm7578_vm0, %v5153_v9, %v5154_v36  ;;  %v6154_v15 = vcombine.low %v4665_v46, %v4675_v39  ;;  %v7115_v1 = vld [vmem:[#allocation2 + $0x28] sm:$0xf] }
 0x1d6   : > { %v8609_v54 = vsel %vm7578_vm0, %v5146_v10, %v5147_v29  ;;  %v5062_v53 = vrot.slane %v5060_v12, 4  ;;  %v6202_v37 = vcombine.low %v8615_v0, %v8619_v59  ;;  %v6186_v11 = vrot.slane %v5008_v56, 9  ;;  %v7125_v13 = vld [vmem:[#allocation2 + $0x94] sm:$0xf] }
 0x1d7   : > { %v6201_v19 = vcombine.low %v8605_v47, %v8609_v54  ;;  %v5063_v28 = vrot.slane %v7114_v21, 5  ;;  %v5158_v48 = vrot.slane %v8392_v26, 5  ;;  %v5161_v61 = vrot.slane %v8445_v17, 5  ;;  %v4996_v21 = vld [vmem:[#allocation2 + $0x30] sm:$0xe] }
 0x1d8   : > { %v2978_v16 = vshrl.u32 %v2740_v43, 16  ;;  %v4689_v60 = vsel %vm7223_vm9, %v4684_v42, %v8481_v55  ;;  %v4699_v46 = vsel %vm7223_vm9, %v4694_v27, %v4698_v41  ;;  %v2981_v39 = vshll.u32 %v2740_v43, 16  ;;  %v7126_v54 = vld [vmem:[#allocation2 + $0xa0] sm:$0xf] }
 0x1d9   : > { %v8655_v26 = vsel %vm7578_vm0, %v6186_v11, %v5158_v48  ;;  %v5160_v17 = vrot.slane %v5158_v48, 4  ;;  %v6187_v44 = vrot.slane %v5009_v23, 9  ;;  %v5064_v22 = vsel %vm7578_vm0, %v5062_v53, %v5063_v28  ;;  %v7054_v53 = vld [vmem:[#allocation2 + $0x18] sm:$0xff]   ;;  %v9172_v28 = vld [vmem:[#allocation5_spill] sm:$0xff] }
 0x1da   : > { %6677 = vmatmul.mubr.msk.bf16.gmra.mrb[24].mxu0 %vm1392_vm10, %v8500_v25  ;;  %v9171_v25 = vld [vmem:[#allocation7_spill] sm:$0xff]  ;;  %v2980_v55 = vrot.slane %v2978_v16, 4  ;;  %v5067_v24 = vrot.slane %v7115_v1, 5  ;;  %v2983_v10 = vrot.slane %v2981_v39, 5  ;;  %v5165_v29 = vrot.slane %v8441_v20, 5 }
 0x1db   : > { %6680 = vmatprep.mubr.msk.bf16.mxu0 %vm1392_vm10, %v6154_v15  ;;  %v3000_v5 = vsel %vm7223_vm9, %v9171_v25, %v9170_v14  ;;  %v6155_v50 = vcombine.low %v4689_v60, %v4699_v46  ;;  %v8663_v42 = vsel %vm7578_vm0, %v5160_v17, %v5161_v61  ;;  %v5168_v62 = vrot.slane %v8547_v33, 5  ;;  %v4995_v33 = vld [vmem:[#allocation2 + $0x24] sm:$0xe]  ;;  %v7118_v16 = vld [vmem:[#allocation2 + $0x38] sm:$0x1] }
 0x1dc   : > { %6511 = vmatmul.mubr.msk.bf16.gmra.mrb[28].mxu1 %vm1392_vm10, %v5974_v51  ;;  %v5074_v51 = vrot.slane %v7116_v57, 5  ;;  %v6203_v9 = vcombine.low %v8655_v26, %v8663_v42  ;;  %v2984_v36 = vor.u32 %v2983_v10, %v2980_v55  ;;  %v5061_v56 = vsel %vm7578_vm0, %v6172_v2, %v5060_v12  ;;  %v7117_v12 = vld [vmem:[#allocation2 + $0x2c] sm:$0x1]  ;;  %v9173_v46 = vld [vmem:[#allocation4_spill] sm:$0xff]  ;;  %v2752_v26 = vld [vmem:[#allocation2 + $0xa8] sm:$0xf] }
 0x1dd   : > { %6516 = vmatprep.mubr.msk.bf16.mxu1 %vm1392_vm10, %v7053_v58  ;;  %v8674_v20 = vsel %vm7578_vm0, %v6187_v44, %v5165_v29  ;;  %v5167_v27 = vrot.slane %v5165_v29, 4  ;;  %v6189_v41 = vcombine.low %v5061_v56, %v5064_v22  ;;  %v5069_v43 = vrot.slane %v5067_v24, 4  ;;  %v7119_v25 = vld [vmem:[#allocation2 + $0x40] sm:$0xf]  ;;  %v7120_v22 = vld [vmem:[#allocation2 + $0x4c] sm:$0xf] }
 0x1de   : > { %v2985_v15 = vrot.slane %v2984_v36, 4  ;;  %v5076_v11 = vrot.slane %v5074_v51, 4  ;;  %v5070_v2 = vrot.slane %v7117_v12, 5  ;;  %v5077_v58 = vrot.slane %v7118_v16, 5  ;;  %v4997_v36 = vld [vmem:[#allocation2 + $0x3c] sm:$0xe] }
 0x1df   : > { %v8679_v23 = vsel %vm7578_vm0, %v5167_v27, %v5168_v62  ;;  %v6173_v39 = vrot.slane %v4995_v33, 9  ;;  %v5081_v17 = vrot.slane %v7119_v25, 5  ;;  %v6174_v55 = vrot.slane %v4996_v21, 9  ;;  %v7056_v62 = vld [vmem:[#allocation2 + $0x30] sm:$0xff]   ;;  %v7057_v27 = vld [vmem:[#allocation2 + $0x3c] sm:$0xff]  }
 0x1e0   : > { %v2990_v48 = vsel %vm7223_vm9, %v2985_v15, %v9172_v28  ;;  %v6204_v61 = vcombine.low %v8674_v20, %v8679_v23  ;;  %v5071_v14 = vsel %vm7578_vm0, %v5069_v43, %v5070_v2  ;;  %v5078_v44 = vsel %vm7578_vm0, %v5076_v11, %v5077_v58  ;;  %v4998_v15 = vld [vmem:[#allocation2 + $0x48] sm:$0xe]  ;;  %v9176_v21 = vld [vmem:[#allocation10_spill] sm:$0xff] }
 0x1e1   : > { %v8688_v60 = vcombine.low %v2990_v48, %v3000_v5  ;;  %v5088_v1 = vrot.slane %v7120_v22, 5  ;;  %v5068_v5 = vsel %vm7578_vm0, %v6173_v39, %v5067_v24  ;;  %v5075_v29 = vsel %vm7578_vm0, %v6174_v55, %v5074_v51  ;;  %v9174_v24 = vld [vmem:[#allocation8_spill] sm:$0xff]  ;;  %v9175_v11 = vld [vmem:[#allocation9_spill] sm:$0xff]  ;;  %v4999_v25 = vld [vmem:[#allocation2 + $0x54] sm:$0xe] }
 0x1e2   : > { %6681 = vmatmul.mubr.msk.bf16.gmra.mrb[28].mxu0 %vm1392_vm10, %v6155_v50  ;;  %v6190_v10 = vcombine.low %v5068_v5, %v5071_v14  ;;  %v6191_v50 = vcombine.low %v5075_v29, %v5078_v44  ;;  %v5083_v57 = vrot.slane %v5081_v17, 4  ;;  %v6175_v51 = vrot.slane %v4997_v36, 9  ;;  %v7058_v14 = vld [vmem:[#allocation2 + $0x48] sm:$0xff]   ;;  %v7059_v44 = vld [vmem:[#allocation2 + $0x54] sm:$0xff]  }
 0x1e3   : > { %6686 = vmatprep.mubr.msk.bf16.mxu0 %vm1392_vm10, %v6189_v41  ;;  %v5090_v56 = vrot.slane %v5088_v1, 4  ;;  %v7121_v41 = vld [vmem:[#allocation2 + $0x44] sm:$0x1]  ;;  %v6176_v12 = vrot.slane %v4998_v15, 9  ;;  %v5102_v28 = vrot.slane %v9176_v21, 5  ;;  %v9177_v22 = vld [vmem:[#allocation11_spill] sm:$0xff] }
 0x1e4   : > { %6517 = vmatmul.mubr.msk.bf16.vlgmr.msra.gmra.mrb[0].mxu1 %vm1392_vm10, %v7054_v53  ;;  %v5084_v43 = vrot.slane %v7121_v41, 5  ;;  %v5091_v53 = vrot.slane %v9174_v24, 5  ;;  %v5082_v48 = vsel %vm7578_vm0, %v6175_v51, %v5081_v17  ;;  %v5098_v5 = vrot.slane %v9177_v22, 5  ;;  %v9178_v17 = vld [vmem:[#allocation12_spill] sm:$0xff]  ;;  %v7061_v15 = vld [vmem:[#allocation2 + $0x6c] sm:$0xff]   ;;  %v7062_v24 = vld [vmem:[#allocation2 + $0x78] sm:$0xff]  }
 0x1e5   : > { %6719 = vmatpush3.bf16.msra.mxu1 %v9173_v46  ;;  %6520 = vmatprep.mubr.msk.bf16.mxu1 %vm1392_vm10, %v7055_v32  ;;  %v5095_v32 = vrot.slane %v9175_v11, 5  ;;  %v5089_v58 = vsel %vm7578_vm0, %v6176_v12, %v5088_v1  ;;  %v5104_v55 = vrot.slane %v5102_v28, 4  ;;  %v5105_v29 = vrot.slane %v9178_v17, 5  ;;  %v7122_v51 = vld [vmem:[#allocation2 + $0x70] sm:$0xf] }
 0x1e6   : > { %v5085_v33 = vsel %vm7578_vm0, %v5083_v57, %v5084_v43  ;;  %v5092_v2 = vsel %vm7578_vm0, %v5090_v56, %v5091_v53  ;;  %v6177_v1 = vrot.slane %v4999_v25, 9  ;;  %v7060_v43 = vld [vmem:[#allocation2 + $0x60] sm:$0xff]   ;;  %v2967_v11 = vshrl.u32 %v7122_v51, 16  ;;  %v2746_v22 = vld [vmem:[#allocation2 + $0x90] sm:$0xf] }
 0x1e7   : > { %v6192_v16 = vcombine.low %v5082_v48, %v5085_v33  ;;  %v6193_v46 = vcombine.low %v5089_v58, %v5092_v2  ;;  %v5097_v39 = vrot.slane %v5095_v32, 4  ;;  %v7063_v53 = vld [vmem:[#allocation2 + $0x84] sm:$0xff]   ;;  %v2963_v33 = vshll.u32 %v7122_v51, 16  ;;  %v7064_v2 = vld [vmem:[#allocation2 + $0x90] sm:$0xff]  }
 0x1e8   : > { %v5096_v36 = vsel %vm7578_vm0, %v6177_v1, %v5095_v32  ;;  %v2954_v32 = vshrl.u32 %v2737_v3, 16  ;;  %v2957_v12 = vshll.u32 %v2737_v3, 16  ;;  %v2969_v63 = vrot.slane %v2967_v11, 4 }
 0x1e9   : > { %v2965_v38 = vrot.slane %v2963_v33, 5  ;;  %v3005_v6 = vshll.u32 %v2743_v34, 16  ;;  %v3015_v48 = vshrl.u32 %v7123_v8, 16  ;;  %v3063_v17 = vshrl.u32 %v7126_v54, 16 }
 0x1ea   : > { %6687 = vmatmul.mubr.msk.bf16.vlgmr.msra.gmra.mrb[0].mxu0 %vm1392_vm10, %v6190_v10  ;;  %v5000_v10 = vld [vmem:[#allocation2 + $0x60] sm:$0xe]  ;;  %v2956_v30 = vrot.slane %v2954_v32, 4 }
 0x1eb   : > { %6690 = vmatprep.mubr.msk.bf16.mxu0 %vm1392_vm10, %v6191_v50  ;;  %v5099_v50 = vsel %vm7578_vm0, %v5097_v39, %v5098_v5  ;;  %v6178_v57 = vrot.slane %v5000_v10, 9  ;;  %v2970_v21 = vor.u32 %v2969_v63, %v2965_v38  ;;  %v7066_v39 = vld [vmem:[#allocation2 + $0xa8] sm:$0xff]   ;;  %v3039_v5 = vshrl.u32 %v7125_v13, 16  ;;  %v2749_v10 = vld [vmem:[#allocation2 + $0x9c] sm:$0xf] }
 0x1ec   : > { %6521 = vmatmul.mubr.msk.bf16.gmra.mrb[4].mxu1 %vm1392_vm10, %v7056_v62  ;;  %v5106_v62 = vsel %vm7578_vm0, %v5104_v55, %v5105_v29  ;;  %v6194_v56 = vcombine.low %v5096_v36, %v5099_v50  ;;  %v3017_v55 = vrot.slane %v3015_v48, 4  ;;  %v3026_v50 = vshrl.u32 %v2746_v22, 16  ;;  %v7131_v48 = vld [vmem:[#allocation2 + $0xb8] sm:$0xf] }
 0x1ed   : > { %6524 = vmatprep.mubr.msk.bf16.mxu1 %vm1392_vm10, %v7057_v27  ;;  %v5103_v27 = vsel %vm7578_vm0, %v6178_v57, %v5102_v28  ;;  %v3002_v28 = vshrl.u32 %v2743_v34, 16  ;;  %v2971_v18 = vrot.slane %v2970_v21, 4  ;;  %v3029_v57 = vshll.u32 %v2746_v22, 16 }
 0x1ee   : > { %v6195_v41 = vcombine.low %v5103_v27, %v5106_v62  ;;  %v3050_v62 = vshrl.u32 %v2749_v10, 16  ;;  %v3053_v36 = vshll.u32 %v2749_v10, 16  ;;  %v7127_v27 = vld [vmem:[#allocation2 + $0x8c] sm:$0x1]  ;;  %v3065_v51 = vrot.slane %v3063_v17, 4 }
 0x1ef   : > { %v3028_v32 = vrot.slane %v3026_v50, 4  ;;  %v2758_v10 = vld [vmem:[#allocation2 + $0xc0] sm:$0xf]  ;;  %v7132_v50 = vld [vmem:[#allocation2 + $0xc4] sm:$0xf] }
 0x1f2   : > { %6691 = vmatmul.mubr.msk.bf16.gmra.mrb[4].mxu0 %vm1392_vm10, %v6192_v16  ;;  %v7124_v16 = vld [vmem:[#allocation2 + $0x74] sm:$0x1] }
 0x1f3   : > { %6694 = vmatprep.mubr.msk.bf16.mxu0 %vm1392_vm10, %v6193_v46  ;;  %v2973_v58 = vshll.u32 %v7124_v16, 16  ;;  %v3107_v16 = vshll.u32 %v7131_v48, 16 }
 0x1f4   : > { %6525 = vmatmul.mubr.msk.bf16.gmra.mrb[8].mxu1 %vm1392_vm10, %v7058_v14  ;;  %v3007_v14 = vrot.slane %v3005_v6, 5 }
 0x1f5   : > { %6528 = vmatprep.mubr.msk.bf16.mxu1 %vm1392_vm10, %v7059_v44  ;;  %v2975_v44 = vrot.slane %v2973_v58, 5  ;;  %v3111_v58 = vshrl.u32 %v7131_v48, 16 }
 0x1f7   : > { %v2976_v47 = vsel %vm7223_vm9, %v2971_v18, %v2975_v44  ;;  %v3077_v18 = vshll.u32 %v2752_v26, 16 }
 0x1fa   : > { %6695 = vmatmul.mubr.msk.bf16.gmra.mrb[8].mxu0 %vm1392_vm10, %v6194_v56 }
 0x1fb   : > { %6698 = vmatprep.mubr.msk.bf16.mxu0 %vm1392_vm10, %v6195_v41  ;;  %v3021_v41 = vshll.u32 %v7127_v27, 16 }
 0x1fc   : > { %6529 = vmatmul.mubr.msk.bf16.gmra.mrb[12].mxu1 %vm1392_vm10, %v7060_v43 }
 0x1fd   : > { %6532 = vmatprep.mubr.msk.bf16.mxu1 %vm1392_vm10, %v7061_v15  ;;  %v3041_v15 = vrot.slane %v3039_v5, 4  ;;  %v3023_v0 = vrot.slane %v3021_v41, 5  ;;  %v3113_v5 = vrot.slane %v3111_v58, 4 }
 0x202   : > { %6699 = vmatmul.mubr.msk.bf16.gmra.mrb[12].mxu0 %vm1392_vm10, %v6196_v49  ;;  %v7065_v49 = vld [vmem:[#allocation2 + $0x9c] sm:$0xff]  }
 0x203   : > { %6702 = vmatprep.mubr.msk.bf16.mxu0 %vm1392_vm10, %v6197_v31  ;;  %v2959_v31 = vrot.slane %v2957_v12, 5  ;;  %v3031_v12 = vrot.slane %v3029_v57, 5  ;;  %v3131_v57 = vshll.u32 %v7132_v50, 16 }
 0x204   : > { %6533 = vmatmul.mubr.msk.bf16.gmra.mrb[16].mxu1 %vm1392_vm10, %v7062_v24  ;;  %v7068_v24 = vld [vmem:[#allocation2 + $0xc0] sm:$0xff]  }
 0x205   : > { %6536 = vmatprep.mubr.msk.bf16.mxu1 %vm1392_vm10, %v7063_v53  ;;  %v2960_v46 = vor.u32 %v2959_v31, %v2956_v30  ;;  %v3032_v30 = vor.u32 %v3031_v12, %v3028_v32  ;;  %v7129_v31 = vld [vmem:[#allocation2 + $0x98] sm:$0x1]  ;;  %v7134_v32 = vld [vmem:[#allocation2 + $0xbc] sm:$0x1] }
 0x206   : > { %v3045_v21 = vshll.u32 %v7129_v31, 16  ;;  %v3117_v12 = vshll.u32 %v7134_v32, 16 }
 0x207   : > { %v2961_v52 = vrot.slane %v2960_v46, 4 }
 0x208   : > { %v3047_v22 = vrot.slane %v3045_v21, 5 }
 0x209   : > { %v2966_v56 = vsel %vm7223_vm9, %v2961_v52, %v2965_v38  ;;  %v3055_v38 = vrot.slane %v3053_v36, 5  ;;  %v3033_v52 = vrot.slane %v3032_v30, 4 }
 0x20a   : > { %6703 = vmatmul.mubr.msk.bf16.gmra.mrb[16].mxu0 %vm1392_vm10, %v6198_v7  ;;  %v3011_v7 = vshll.u32 %v7123_v8, 16  ;;  %v6033_v53 = vcombine.low %v2966_v56, %v2976_v47  ;;  %v7130_v8 = vld [vmem:[#allocation2 + $0xa4] sm:$0x1]  ;;  %v3079_v47 = vrot.slane %v3077_v18, 5 }
 0x20b   : > { %6706 = vmatprep.mubr.msk.bf16.mxu0 %vm1392_vm10, %v6199_v35  ;;  %v3004_v35 = vrot.slane %v3002_v28, 4  ;;  %v2755_v28 = vld [vmem:[#allocation2 + $0xb4] sm:$0xf] }
 0x20c   : > { %6537 = vmatmul.mubr.msk.bf16.gmra.mrb[20].mxu1 %vm1392_vm10, %v7064_v2  ;;  %v8761_v25 = vrot.slane %v3011_v7, 5  ;;  %v3052_v2 = vrot.slane %v3050_v62, 4  ;;  %v3069_v7 = vshll.u32 %v7130_v8, 16  ;;  %v3135_v62 = vshrl.u32 %v7132_v50, 16 }
 0x20d   : > { %6540 = vmatprep.mubr.msk.bf16.mxu1 %vm1392_vm10, %v7065_v49  ;;  %v3008_v29 = vor.u32 %v3007_v14, %v3004_v35 }
 0x20e   : > { %v3018_v1 = vor.u32 %v3017_v55, %v8761_v25  ;;  %v3056_v6 = vor.u32 %v3055_v38, %v3052_v2  ;;  %v3101_v55 = vshll.u32 %v2755_v28, 16 }
 0x20f   : > { %v3009_v33 = vrot.slane %v3008_v29, 4 }
 0x210   : > { %v3019_v11 = vrot.slane %v3018_v1, 4  ;;  %v3057_v23 = vrot.slane %v3056_v6, 4  ;;  %v3103_v29 = vrot.slane %v3101_v55, 5  ;;  %v3125_v1 = vshll.u32 %v2758_v10, 16 }
 0x212   : > { %6707 = vmatmul.mubr.msk.bf16.gmra.mrb[20].mxu0 %vm1392_vm10, %v6200_v4  ;;  %v3035_v4 = vshll.u32 %v7125_v13, 16  ;;  %v3024_v34 = vsel %vm7223_vm9, %v3019_v11, %v3023_v0  ;;  %v3071_v13 = vrot.slane %v3069_v7, 5  ;;  %v3127_v38 = vrot.slane %v3125_v1, 5 }
 0x213   : > { %6710 = vmatprep.mubr.msk.bf16.mxu0 %vm1392_vm10, %v6201_v19  ;;  %v3059_v19 = vshll.u32 %v7126_v54, 16  ;;  %v3133_v0 = vrot.slane %v3131_v57, 5 }
 0x214   : > { %6541 = vmatmul.mubr.msk.bf16.gmra.mrb[24].mxu1 %vm1392_vm10, %v7066_v39  ;;  %v8770_v43 = vrot.slane %v3035_v4, 5  ;;  %v3074_v39 = vshrl.u32 %v2752_v26, 16  ;;  %v3109_v4 = vrot.slane %v3107_v16, 5 }
 0x215   : > { %6544 = vmatprep.mubr.msk.bf16.mxu1 %vm1392_vm10, %v7067_v45  ;;  %v8776_v3 = vrot.slane %v3059_v19, 5 }
 0x216   : > { %v3042_v59 = vor.u32 %v3041_v15, %v8770_v43  ;;  %v3038_v36 = vsel %vm7223_vm9, %v3033_v52, %v8770_v43  ;;  %v3114_v56 = vor.u32 %v3113_v5, %v3109_v4 }
 0x217   : > { %v3066_v49 = vor.u32 %v3065_v51, %v8776_v3  ;;  %v3062_v41 = vsel %vm7223_vm9, %v3057_v23, %v8776_v3 }
 0x218   : > { %v3043_v46 = vrot.slane %v3042_v59, 4  ;;  %v3137_v59 = vrot.slane %v3135_v62, 4  ;;  %v3115_v43 = vrot.slane %v3114_v56, 4 }
 0x219   : > { %v3067_v35 = vrot.slane %v3066_v49, 4  ;;  %v3119_v49 = vrot.slane %v3117_v12, 5 }
 0x21a   : > { %6711 = vmatmul.mubr.msk.bf16.gmra.mrb[24].mxu0 %vm1392_vm10, %v6202_v37  ;;  %v7128_v37 = vld [vmem:[#allocation2 + $0xac] sm:$0xf]  ;;  %v3048_v20 = vsel %vm7223_vm9, %v3043_v46, %v3047_v22 }
 0x21b   : > { %6714 = vmatprep.mubr.msk.bf16.mxu0 %vm1392_vm10, %v6203_v9  ;;  %v3083_v63 = vshll.u32 %v7128_v37, 16  ;;  %v3087_v42 = vshrl.u32 %v7128_v37, 16  ;;  %v3014_v9 = vsel %vm7223_vm9, %v3009_v33, %v8761_v25  ;;  %v3098_v25 = vshrl.u32 %v2755_v28, 16 }
 0x21c   : > { %6545 = vmatmul.mubr.msk.bf16.gmra.mrb[28].mxu1 %vm1392_vm10, %v7068_v24  ;;  %v6035_v44 = vcombine.low %v3014_v9, %v3024_v34  ;;  %v3072_v54 = vsel %vm7223_vm9, %v3067_v35, %v3071_v13  ;;  %v6036_v27 = vcombine.low %v3038_v36, %v3048_v20  ;;  %v7133_v24 = vld [vmem:[#allocation2 + $0xb0] sm:$0x1]  ;;  %v3138_v9 = vor.u32 %v3137_v59, %v3133_v0  ;;  %v7135_v34 = vld [vmem:[#allocation2 + $0xc8] sm:$0x1] }
 0x21d   : > { %6566 = vmatprep.mubr.msk.bf16.mxu1 %vm1392_vm10, %v6033_v53  ;;  %v3085_v45 = vrot.slane %v3083_v63, 5  ;;  %v3089_v14 = vrot.slane %v3087_v42, 4  ;;  %v3100_v17 = vrot.slane %v3098_v25, 4  ;;  %v3093_v53 = vshll.u32 %v7133_v24, 16 }
 0x21e   : > { %v6037_v51 = vcombine.low %v3062_v41, %v3072_v54  ;;  %v3141_v30 = vshll.u32 %v7135_v34, 16  ;;  %v3120_v31 = vsel %vm7223_vm9, %v3115_v43, %v3119_v49  ;;  %v3139_v48 = vrot.slane %v3138_v9, 4 }
 0x21f   : > { %v3090_v19 = vor.u32 %v3089_v14, %v3085_v45  ;;  %v3104_v11 = vor.u32 %v3103_v29, %v3100_v17  ;;  %v3095_v63 = vrot.slane %v3093_v53, 5 }
 0x220   : > { %v3143_v16 = vrot.slane %v3141_v30, 5 }
 0x221   : > { %v3091_v33 = vrot.slane %v3090_v19, 4  ;;  %v3105_v3 = vrot.slane %v3104_v11, 4 }
 0x222   : > { %6715 = vmatmul.mubr.msk.bf16.gmra.mrb[28].mxu0 %vm1392_vm10, %v6204_v61  ;;  %v3076_v61 = vrot.slane %v3074_v39, 4  ;;  %v3144_v46 = vsel %vm7223_vm9, %v3139_v48, %v3143_v16 }
 0x223   : > { %v3096_v26 = vsel %vm7223_vm9, %v3091_v33, %v3095_v63  ;;  %v3110_v6 = vsel %vm7223_vm9, %v3105_v3, %v3109_v4 }
 0x224   : > { %6567 = vmatmul.mubr.msk.bf16.vlgmr.msra.gmra.mrb[16].mxu1 %vm1392_vm10, %v8688_v60  ;;  %v3122_v60 = vshrl.u32 %v2758_v10, 16  ;;  %v3080_v15 = vor.u32 %v3079_v47, %v3076_v61  ;;  %v6039_v8 = vcombine.low %v3110_v6, %v3120_v31 }
 0x225   : > { %6570 = vmatprep.mubr.msk.bf16.mxu1 %vm1392_vm10, %v6035_v44 }
 0x226   : > { %v3124_v2 = vrot.slane %v3122_v60, 4  ;;  %v3081_v37 = vrot.slane %v3080_v15, 4 }
 0x228   : > { %v3128_v42 = vor.u32 %v3127_v38, %v3124_v2  ;;  %v3086_v21 = vsel %vm7223_vm9, %v3081_v37, %v3085_v45 }
 0x229   : > { %v6038_v28 = vcombine.low %v3086_v21, %v3096_v26 }
 0x22a   : > { %v3129_v7 = vrot.slane %v3128_v42, 4 }
 0x22c   : > { %6571 = vmatmul.mubr.msk.bf16.gmra.mrb[20].mxu1 %vm1392_vm10, %v6036_v27  ;;  %v3134_v58 = vsel %vm7223_vm9, %v3129_v7, %v3133_v0 }
 0x22d   : > { %6574 = vmatprep.mubr.msk.bf16.mxu1 %vm1392_vm10, %v6037_v51  ;;  %v6040_v39 = vcombine.low %v3134_v58, %v3144_v46 }
 0x234   : > { %6575 = vmatmul.mubr.msk.bf16.gmra.mrb[24].mxu1 %vm1392_vm10, %v6038_v28 }
 0x235   : > { %6578 = vmatprep.mubr.msk.bf16.mxu1 %vm1392_vm10, %v6039_v8 }
 0x23c   : > { %6579 = vmatmul.mubr.msk.bf16.gmra.mrb[28].mxu1 %vm1392_vm10, %v6040_v39 }
 0x2b7   : > { %v6518_v18 = vpop.f32.mrb[0].mxu1 }
 0x2b8   : > { %v2554_v45 = vpop.f32.mrb[1].mxu1 }
 0x2b9   : > { %v6519_v35 = vpop.f32.mrb[2].mxu1 }
 0x2ba   : > { %v2557_v14 = vpop.f32.mrb[3].mxu1 }
 0x2bd   : > { %v6688_v25 = vpop.f32.mrb[0].mxu0 }
 0x2be   : > { %v8825_v55 = vadd.f32 %v6688_v25, %v6518_v18  ;;  %v5305_v44 = vpop.f32.mrb[1].mxu0 }
 0x2bf   : > { %v6522_v22 = vpop.f32.mrb[4].mxu1  ;;  %v8827_v52 = vadd.f32 %v5305_v44, %v2554_v45  ;;  %v6689_v13 = vpop.f32.mrb[2].mxu0 }
 0x2c0   : > { %v2570_v4 = vpop.f32.mrb[5].mxu1  ;;  %v8829_v5 = vadd.f32 %v6689_v13, %v6519_v35  ;;  %v5308_v40 = vpop.f32.mrb[3].mxu0  ;;  %v5467_v19 = vsel %vm1392_vm10, %v8825_v55, 0.0 }
 0x2c1   : > { %v6523_v10 = vpop.f32.mrb[6].mxu1  ;;  %v8831_v20 = vadd.f32 %v5308_v40, %v2557_v14  ;;  %v5464_v61 = vsel %vm1392_vm10, %v8827_v52, 0.0 }
 0x2c2   : > { %v2573_v23 = vpop.f32.mrb[7].mxu1  ;;  %v5469_v41 = vsel %vm1392_vm10, %v8829_v5, 0.0 }
 0x2c3   : > { %v5465_v47 = vsel %vm1392_vm10, %v8831_v20, 0.0 }
 0x2c4   : > { %v5466_v54 = vadd.f32 %v5465_v47, %v5464_v61 }
 0x2c5   : > { %v6692_v17 = vpop.f32.mrb[4].mxu0 }
 0x2c6   : > { %v5468_v29 = vadd.f32 %v5467_v19, %v5466_v54  ;;  %v8839_v60 = vadd.f32 %v6692_v17, %v6522_v22  ;;  %v5321_v1 = vpop.f32.mrb[5].mxu0 }
 0x2c7   : > { %v6526_v50 = vpop.f32.mrb[8].mxu1  ;;  %v8841_v57 = vadd.f32 %v5321_v1, %v2570_v4  ;;  %v6693_v62 = vpop.f32.mrb[6].mxu0 }
 0x2c8   : > { %v2586_v36 = vpop.f32.mrb[9].mxu1  ;;  %v8843_v56 = vadd.f32 %v6693_v62, %v6523_v10  ;;  %v5324_v27 = vpop.f32.mrb[7].mxu0  ;;  %v5470_v53 = vadd.f32 %v5469_v41, %v5468_v29  ;;  %v5475_v34 = vsel %vm1392_vm10, %v8839_v60, 0.0 }
 0x2c9   : > { %v6527_v15 = vpop.f32.mrb[10].mxu1  ;;  %v8847_v24 = vadd.f32 %v5324_v27, %v2573_v23  ;;  %v5471_v33 = vsel %vm1392_vm10, %v8841_v57, 0.0 }
 0x2ca   : > { %v2589_v51 = vpop.f32.mrb[11].mxu1  ;;  %v5472_v32 = vadd.f32 %v5471_v33, %v5470_v53  ;;  %v5477_v16 = vsel %vm1392_vm10, %v8843_v56, 0.0 }
 0x2cb   : > { %v5473_v38 = vsel %vm1392_vm10, %v8847_v24, 0.0 }
 0x2cc   : > { %v5474_v42 = vadd.f32 %v5473_v38, %v5472_v32 }
 0x2cd   : > { %v6696_v11 = vpop.f32.mrb[8].mxu0 }
 0x2ce   : > { %v8851_v12 = vadd.f32 %v6696_v11, %v6526_v50  ;;  %v5337_v2 = vpop.f32.mrb[9].mxu0  ;;  %v5476_v31 = vadd.f32 %v5475_v34, %v5474_v42 }
 0x2cf   : > { %v6530_v0 = vpop.f32.mrb[12].mxu1  ;;  %v8855_v59 = vadd.f32 %v5337_v2, %v2586_v36  ;;  %v6697_v43 = vpop.f32.mrb[10].mxu0 }
 0x2d0   : > { %v2602_v37 = vpop.f32.mrb[13].mxu1  ;;  %v8857_v63 = vadd.f32 %v6697_v43, %v6527_v15  ;;  %v5340_v3 = vpop.f32.mrb[11].mxu0  ;;  %v5478_v46 = vadd.f32 %v5477_v16, %v5476_v31  ;;  %v5483_v13 = vsel %vm1392_vm10, %v8851_v12, 0.0 }
 0x2d1   : > { %v6531_v49 = vpop.f32.mrb[14].mxu1  ;;  %v8859_v26 = vadd.f32 %v5340_v3, %v2589_v51  ;;  %v5479_v39 = vsel %vm1392_vm10, %v8855_v59, 0.0 }
 0x2d2   : > { %v2605_v9 = vpop.f32.mrb[15].mxu1  ;;  %v5480_v45 = vadd.f32 %v5479_v39, %v5478_v46  ;;  %v5485_v47 = vsel %vm1392_vm10, %v8857_v63, 0.0 }
 0x2d3   : > { %v5481_v14 = vsel %vm1392_vm10, %v8859_v26, 0.0 }
 0x2d4   : > { %v5482_v22 = vadd.f32 %v5481_v14, %v5480_v45 }
 0x2d5   : > { %v6700_v30 = vpop.f32.mrb[12].mxu0 }
 0x2d6   : > { %v8863_v21 = vadd.f32 %v6700_v30, %v6530_v0  ;;  %v5353_v28 = vpop.f32.mrb[13].mxu0  ;;  %v5484_v40 = vadd.f32 %v5483_v13, %v5482_v22 }
 0x2d7   : > { %v8865_v6 = vadd.f32 %v5353_v28, %v2602_v37  ;;  %v6701_v8 = vpop.f32.mrb[14].mxu0 }
 0x2d8   : > { %v8867_v7 = vadd.f32 %v6701_v8, %v6531_v49  ;;  %v5356_v48 = vpop.f32.mrb[15].mxu0  ;;  %v5486_v54 = vadd.f32 %v5485_v47, %v5484_v40  ;;  %v5491_v41 = vsel %vm1392_vm10, %v8863_v21, 0.0 }
 0x2d9   : > { %v8871_v58 = vadd.f32 %v5356_v48, %v2605_v9  ;;  %v5487_v19 = vsel %vm1392_vm10, %v8865_v6, 0.0 }
 0x2da   : > { %v5488_v29 = vadd.f32 %v5487_v19, %v5486_v54  ;;  %v5493_v0 = vsel %vm1392_vm10, %v8867_v7, 0.0 }
 0x2db   : > { %v5489_v50 = vsel %vm1392_vm10, %v8871_v58, 0.0 }
 0x2dc   : > { %v5490_v27 = vadd.f32 %v5489_v50, %v5488_v29 }
 0x2dd   : > { %v6704_v18 = vpop.f32.mrb[16].mxu0 }
 0x2de   : > { %v5369_v35 = vpop.f32.mrb[17].mxu0  ;;  %v5492_v53 = vadd.f32 %v5491_v41, %v5490_v27 }
 0x2df   : > { %v6705_v25 = vpop.f32.mrb[18].mxu0 }
 0x2e0   : > { %v5372_v44 = vpop.f32.mrb[19].mxu0  ;;  %v5494_v3 = vadd.f32 %v5493_v0, %v5492_v53 }
 0x2e5   : > { %v6708_v4 = vpop.f32.mrb[20].mxu0 }
 0x2e6   : > { %v5385_v10 = vpop.f32.mrb[21].mxu0 }
 0x2e7   : > { %v6709_v23 = vpop.f32.mrb[22].mxu0 }
 0x2e8   : > { %v5388_v61 = vpop.f32.mrb[23].mxu0 }
 0x2ed   : > { %v6712_v17 = vpop.f32.mrb[24].mxu0 }
 0x2ee   : > { %v5401_v1 = vpop.f32.mrb[25].mxu0 }
 0x2ef   : > { %v6713_v62 = vpop.f32.mrb[26].mxu0 }
 0x2f0   : > { %v5404_v36 = vpop.f32.mrb[27].mxu0 }
 0x2f5   : > { %v8887_v15 = vpop.f32.mrb[28].mxu0 }
 0x2f6   : > { %v8889_v51 = vpop.f32.mrb[29].mxu0 }
 0x2f7   : > { %v6568_v33 = vpop.f32.mrb[16].mxu1  ;;  %v8891_v11 = vpop.f32.mrb[30].mxu0 }
 0x2f8   : > { %v8893_v32 = vadd.f32 %v6704_v18, %v6568_v33  ;;  %v3344_v2 = vpop.f32.mrb[17].mxu1  ;;  %v8895_v38 = vpop.f32.mrb[31].mxu0 }
 0x2f9   : > { %v8899_v43 = vadd.f32 %v5369_v35, %v3344_v2  ;;  %v6569_v37 = vpop.f32.mrb[18].mxu1 }
 0x2fa   : > { %v8901_v49 = vadd.f32 %v6705_v25, %v6569_v37  ;;  %v3347_v42 = vpop.f32.mrb[19].mxu1  ;;  %v5499_v48 = vsel %vm1392_vm10, %v8893_v32, 0.0 }
 0x2fb   : > { %v5495_v9 = vsel %vm1392_vm10, %v8899_v43, 0.0  ;;  %v8905_v34 = vadd.f32 %v5372_v44, %v3347_v42  ;;  %v6996_v30 = vpack.i.bf16 %v8899_v43, %v8827_v52 }
 0x2fc   : > { %v5496_v31 = vadd.f32 %v5495_v9, %v5494_v3  ;;  %v5501_v35 = vsel %vm1392_vm10, %v8901_v49, 0.0  ;;  %v7002_v50 = vpack.i.bf16 %v8901_v49, %v8829_v5 }
 0x2fd   : > { %v5497_v28 = vsel %vm1392_vm10, %v8905_v34, 0.0  ;;  %6997 = vxpose.xlu1.b32.start [1/16] (narrow) %v6996_v30, 8  ;;  %v6998_v46 = vpack.i.bf16 %v8905_v34, %v8831_v20 }
 0x2fe   : > { %v5498_v8 = vadd.f32 %v5497_v28, %v5496_v31 }
 0x2ff   : > { %v6572_v16 = vpop.f32.mrb[20].mxu1 }
 0x300   : > { %v5500_v39 = vadd.f32 %v5499_v48, %v5498_v8  ;;  %v8915_v18 = vadd.f32 %v6708_v4, %v6572_v16  ;;  %v3360_v45 = vpop.f32.mrb[21].mxu1  ;;  %v7000_v4 = vpack.i.bf16 %v8893_v32, %v8825_v55 }
 0x301   : > { %v8919_v14 = vadd.f32 %v5385_v10, %v3360_v45  ;;  %6999 = vxpose.xlu1.b32.cont [2/16] (narrow) %v6998_v46, 8  ;;  %v6573_v25 = vpop.f32.mrb[22].mxu1 }
 0x302   : > { %v5502_v44 = vadd.f32 %v5501_v35, %v5500_v39  ;;  %v8921_v22 = vadd.f32 %v6709_v23, %v6573_v25  ;;  %v3363_v13 = vpop.f32.mrb[23].mxu1  ;;  %v5507_v29 = vsel %vm1392_vm10, %v8915_v18, 0.0 }
 0x303   : > { %v5503_v40 = vsel %vm1392_vm10, %v8919_v14, 0.0  ;;  %v8925_v47 = vadd.f32 %v5388_v61, %v3363_v13 }
 0x304   : > { %v5504_v54 = vadd.f32 %v5503_v40, %v5502_v44  ;;  %v5509_v53 = vsel %vm1392_vm10, %v8921_v22, 0.0  ;;  %v7008_v40 = vpack.i.bf16 %v8915_v18, %v8839_v60 }
 0x305   : > { %v5505_v19 = vsel %vm1392_vm10, %v8925_v47, 0.0  ;;  %7001 = vxpose.xlu1.b32.cont [3/16] (narrow) %v7000_v4, 8  ;;  %v7006_v8 = vpack.i.bf16 %v8925_v47, %v8847_v24 }
 0x306   : > { %v5506_v10 = vadd.f32 %v5505_v19, %v5504_v54  ;;  %v7010_v19 = vpack.i.bf16 %v8921_v22, %v8843_v56 }
 0x307   : > { %v6576_v23 = vpop.f32.mrb[24].mxu1 }
 0x308   : > { %v5508_v27 = vadd.f32 %v5507_v29, %v5506_v10  ;;  %v8935_v41 = vadd.f32 %v6712_v17, %v6576_v23  ;;  %v3376_v61 = vpop.f32.mrb[25].mxu1  ;;  %v7004_v17 = vpack.i.bf16 %v8919_v14, %v8841_v57 }
 0x309   : > { %v8939_v33 = vadd.f32 %v5401_v1, %v3376_v61  ;;  %7003 = vxpose.xlu1.b32.cont [4/16] (narrow) %v7002_v50, 8  ;;  %v6577_v2 = vpop.f32.mrb[26].mxu1 }
 0x30a   : > { %v5510_v0 = vadd.f32 %v5509_v53, %v5508_v27  ;;  %v8941_v37 = vadd.f32 %v6713_v62, %v6577_v2  ;;  %v3379_v3 = vpop.f32.mrb[27].mxu1  ;;  %v5515_v28 = vsel %vm1392_vm10, %v8935_v41, 0.0 }
 0x30b   : > { %v5511_v42 = vsel %vm1392_vm10, %v8939_v33, 0.0  ;;  %v8945_v9 = vadd.f32 %v5404_v36, %v3379_v3  ;;  %v7012_v23 = vpack.i.bf16 %v8939_v33, %v8855_v59 }
 0x30c   : > { %v5512_v30 = vadd.f32 %v5511_v42, %v5510_v0  ;;  %v5517_v46 = vsel %vm1392_vm10, %v8941_v37, 0.0  ;;  %v7016_v0 = vpack.i.bf16 %v8935_v41, %v8851_v12  ;;  %v7018_v42 = vpack.i.bf16 %v8941_v37, %v8857_v63 }
 0x30d   : > { %v5513_v31 = vsel %vm1392_vm10, %v8945_v9, 0.0  ;;  %7005 = vxpose.xlu1.b32.cont [5/16] (narrow) %v7004_v17, 8  ;;  %v7014_v61 = vpack.i.bf16 %v8945_v9, %v8859_v26 }
 0x30e   : > { %v5514_v1 = vadd.f32 %v5513_v31, %v5512_v30 }
 0x30f   : > { %v6580_v62 = vpop.f32.mrb[28].mxu1 }
 0x310   : > { %v5516_v48 = vadd.f32 %v5515_v28, %v5514_v1  ;;  %v8956_v36 = vadd.f32 %v8887_v15, %v6580_v62  ;;  %v3392_v16 = vpop.f32.mrb[29].mxu1 }
 0x311   : > { %v8961_v39 = vadd.f32 %v8889_v51, %v3392_v16  ;;  %7007 = vxpose.xlu1.b32.cont [6/16] (narrow) %v7006_v8, 8  ;;  %v6581_v45 = vpop.f32.mrb[30].mxu1 }
 0x312   : > { %v5518_v35 = vadd.f32 %v5517_v46, %v5516_v48  ;;  %v8964_v25 = vadd.f32 %v8891_v11, %v6581_v45  ;;  %v3395_v44 = vpop.f32.mrb[31].mxu1  ;;  %v5523_v11 = vsel %vm1392_vm10, %v8956_v36, 0.0  ;;  %v7024_v8 = vpack.i.bf16 %v8956_v36, %v8863_v21 }
 0x313   : > { %v5519_v13 = vsel %vm1392_vm10, %v8961_v39, 0.0  ;;  %v8969_v15 = vadd.f32 %v8895_v38, %v3395_v44  ;;  %v7020_v30 = vpack.i.bf16 %v8961_v39, %v8865_v6 }
 0x314   : > { %v5520_v4 = vadd.f32 %v5519_v13, %v5518_v35  ;;  %v5525_v38 = vsel %vm1392_vm10, %v8964_v25, 0.0  ;;  %v7026_v35 = vpack.i.bf16 %v8964_v25, %v8867_v7 }
 0x315   : > { %v5521_v51 = vsel %vm1392_vm10, %v8969_v15, 0.0  ;;  %7009 = vxpose.xlu1.b32.cont [7/16] (narrow) %v7008_v40, 8  ;;  %v7022_v1 = vpack.i.bf16 %v8969_v15, %v8871_v58 }
 0x316   : > { %v5522_v54 = vadd.f32 %v5521_v51, %v5520_v4 }
 0x318   : > { %v5524_v10 = vadd.f32 %v5523_v11, %v5522_v54 }
 0x319   : > { %7011 = vxpose.xlu1.b32.cont [8/16] (narrow) %v7010_v19, 8 }
 0x31a   : > { %v5526_v29 = vadd.f32 %v5525_v38, %v5524_v10 }
 0x31c   : > { %v5527_v50 = vrot.slane %v5526_v29, 4 }
 0x31d   : > { %7013 = vxpose.xlu1.b32.cont [9/16] (narrow) %v7012_v23, 8 }
 0x31e   : > { %v5528_v27 = vadd.f32 %v5527_v50, %v5526_v29 }
 0x320   : > { %v5529_v53 = vrot.slane %v5528_v27, 2 }
 0x321   : > { %7015 = vxpose.xlu1.b32.cont [10/16] (narrow) %v7014_v61, 8 }
 0x322   : > { %v5530_v2 = vadd.f32 %v5529_v53, %v5528_v27 }
 0x324   : > { %v5531_v3 = vrot.slane %v5530_v2, 1 }
 0x325   : > { %7017 = vxpose.xlu1.b32.cont [11/16] (narrow) %v7016_v0, 8 }
 0x326   : > { %v8989_v17 = vadd.f32 %v5531_v3, %v5530_v2 }
 0x328   : > { %v8994_v31 = vmul.f32 0.00390625, %v8989_v17 }
 0x329   : > { %7019 = vxpose.xlu1.b32.cont [12/16] (narrow) %v7018_v42, 8 }
 0x32a   : > { %v5534_v28 = vsub.f32 %v8827_v52, %v8994_v31  ;;  %v5535_v62 = vsub.f32 %v8831_v20, %v8994_v31  ;;  %v5536_v48 = vsub.f32 %v8825_v55, %v8994_v31  ;;  %v5537_v16 = vsub.f32 %v8829_v5, %v8994_v31 }
 0x32b   : > { %v5538_v52 = vsub.f32 %v8841_v57, %v8994_v31  ;;  %v5539_v20 = vsub.f32 %v8847_v24, %v8994_v31  ;;  %v5540_v5 = vsub.f32 %v8839_v60, %v8994_v31  ;;  %v5541_v57 = vsub.f32 %v8843_v56, %v8994_v31 }
 0x32c   : > { %v5566_v46 = vmul.f32 %v5534_v28, %v5534_v28  ;;  %v5567_v45 = vmul.f32 %v5535_v62, %v5535_v62  ;;  %v5568_v44 = vmul.f32 %v5536_v48, %v5536_v48  ;;  %v5569_v13 = vmul.f32 %v5537_v16, %v5537_v16 }
 0x32d   : > { %7021 = vxpose.xlu1.b32.cont [13/16] (narrow) %v7020_v30, 8  ;;  %v5570_v51 = vmul.f32 %v5538_v52, %v5538_v52  ;;  %v5571_v19 = vmul.f32 %v5539_v20, %v5539_v20  ;;  %v5542_v38 = vsub.f32 %v8855_v59, %v8994_v31  ;;  %v5572_v29 = vmul.f32 %v5540_v5, %v5540_v5 }
 0x32e   : > { %v5598_v55 = vsel %vm1392_vm10, %v5566_v46, 0.0  ;;  %v5599_v40 = vsel %vm1392_vm10, %v5567_v45, 0.0  ;;  %v5601_v54 = vsel %vm1392_vm10, %v5568_v44, 0.0  ;;  %v5603_v10 = vsel %vm1392_vm10, %v5569_v13, 0.0 }
 0x32f   : > { %v5600_v4 = vadd.f32 %v5599_v40, %v5598_v55  ;;  %v5605_v23 = vsel %vm1392_vm10, %v5570_v51, 0.0  ;;  %v5543_v60 = vsub.f32 %v8859_v26, %v8994_v31  ;;  %v5573_v27 = vmul.f32 %v5541_v57, %v5541_v57 }
 0x330   : > { %v5607_v61 = vsel %vm1392_vm10, %v5571_v19, 0.0  ;;  %v5544_v56 = vsub.f32 %v8851_v12, %v8994_v31  ;;  %v5574_v2 = vmul.f32 %v5542_v38, %v5542_v38  ;;  %v5609_v0 = vsel %vm1392_vm10, %v5572_v29, 0.0 }
 0x331   : > { %7023 = vxpose.xlu1.b32.cont [14/16] (narrow) %v7022_v1, 8  ;;  %v5602_v11 = vadd.f32 %v5601_v54, %v5600_v4  ;;  %v5545_v59 = vsub.f32 %v8857_v63, %v8994_v31  ;;  %v5575_v42 = vmul.f32 %v5543_v60, %v5543_v60  ;;  %v5611_v30 = vsel %vm1392_vm10, %v5573_v27, 0.0 }
 0x332   : > { %v5546_v26 = vsub.f32 %v8865_v6, %v8994_v31  ;;  %v5576_v28 = vmul.f32 %v5544_v56, %v5544_v56  ;;  %v5613_v62 = vsel %vm1392_vm10, %v5574_v2, 0.0  ;;  %v5547_v12 = vsub.f32 %v8871_v58, %v8994_v31 }
 0x333   : > { %v5604_v24 = vadd.f32 %v5603_v10, %v5602_v11  ;;  %v5577_v48 = vmul.f32 %v5545_v59, %v5545_v59  ;;  %v5615_v16 = vsel %vm1392_vm10, %v5575_v42, 0.0  ;;  %v5548_v63 = vsub.f32 %v8863_v21, %v8994_v31 }
 0x334   : > { %v5578_v45 = vmul.f32 %v5546_v26, %v5546_v26  ;;  %v5549_v6 = vsub.f32 %v8867_v7, %v8994_v31  ;;  %v5579_v44 = vmul.f32 %v5547_v12, %v5547_v12  ;;  %v5550_v58 = vsub.f32 %v8899_v43, %v8994_v31 }
 0x335   : > { %7025 = vxpose.xlu1.b32.cont [15/16] (narrow) %v7024_v8, 8  ;;  %v5606_v50 = vadd.f32 %v5605_v23, %v5604_v24  ;;  %v5619_v20 = vsel %vm1392_vm10, %v5577_v48, 0.0  ;;  %v5580_v55 = vmul.f32 %v5548_v63, %v5548_v63  ;;  %v5551_v21 = vsub.f32 %v8905_v34, %v8994_v31 }
 0x336   : > { %v5621_v40 = vsel %vm1392_vm10, %v5578_v45, 0.0  ;;  %v5581_v5 = vmul.f32 %v5549_v6, %v5549_v6  ;;  %v5623_v51 = vsel %vm1392_vm10, %v5579_v44, 0.0  ;;  %v5552_v7 = vsub.f32 %v8893_v32, %v8994_v31 }
 0x337   : > { %v5608_v53 = vadd.f32 %v5607_v61, %v5606_v50  ;;  %v5582_v11 = vmul.f32 %v5550_v58, %v5550_v58  ;;  %v5625_v57 = vsel %vm1392_vm10, %v5580_v55, 0.0  ;;  %v5553_v43 = vsub.f32 %v8901_v49, %v8994_v31 }
 0x338   : > { %v5583_v10 = vmul.f32 %v5551_v21, %v5551_v21  ;;  %v5627_v24 = vsel %vm1392_vm10, %v5581_v5, 0.0  ;;  %v5554_v34 = vsub.f32 %v8919_v14, %v8994_v31  ;;  %v5584_v29 = vmul.f32 %v5552_v7, %v5552_v7 }
 0x339   : > { %7027 = vxpose.xlu1.b32.end [16/16] (narrow) %v7026_v35, 8  ;;  %v5610_v3 = vadd.f32 %v5609_v0, %v5608_v53  ;;  %v5617_v35 = vsel %vm1392_vm10, %v5576_v28, 0.0  ;;  %v5629_v23 = vsel %vm1392_vm10, %v5582_v11, 0.0  ;;  %v5555_v32 = vsub.f32 %v8925_v47, %v8994_v31 }
 0x33a   : > { %v5585_v60 = vmul.f32 %v5553_v43, %v5553_v43  ;;  %v5631_v27 = vsel %vm1392_vm10, %v5583_v10, 0.0  ;;  %v5556_v49 = vsub.f32 %v8915_v18, %v8994_v31  ;;  %v5586_v53 = vmul.f32 %v5554_v34, %v5554_v34 }
 0x33b   : > { %v5612_v1 = vadd.f32 %v5611_v30, %v5610_v3  ;;  %v5633_v56 = vsel %vm1392_vm10, %v5584_v29, 0.0  ;;  %v5557_v14 = vsub.f32 %v8921_v22, %v8994_v31  ;;  %v5587_v0 = vmul.f32 %v5555_v32, %v5555_v32 }
 0x33c   : > { %v5635_v3 = vsel %vm1392_vm10, %v5585_v60, 0.0  ;;  %v5558_v47 = vsub.f32 %v8939_v33, %v8994_v31  ;;  %v5588_v42 = vmul.f32 %v5556_v49, %v5556_v49  ;;  %v5637_v30 = vsel %vm1392_vm10, %v5586_v53, 0.0 }
 0x33d   : > { %v5614_v8 = vadd.f32 %v5613_v62, %v5612_v1  ;;  %v5559_v18 = vsub.f32 %v8945_v9, %v8994_v31  ;;  %v5589_v26 = vmul.f32 %v5557_v14, %v5557_v14  ;;  %v5639_v28 = vsel %vm1392_vm10, %v5587_v0, 0.0 }
 0x33e   : > { %v5560_v22 = vsub.f32 %v8935_v41, %v8994_v31  ;;  %v5641_v12 = vsel %vm1392_vm10, %v5588_v42, 0.0  ;;  %v5561_v33 = vsub.f32 %v8941_v37, %v8994_v31  ;;  %v5562_v9 = vsub.f32 %v8961_v39, %v8994_v31 }
 0x33f   : > { %v5616_v46 = vadd.f32 %v5615_v16, %v5614_v8  ;;  %v5590_v8 = vmul.f32 %v5558_v47, %v5558_v47  ;;  %v5591_v16 = vmul.f32 %v5559_v18, %v5559_v18  ;;  %v5563_v41 = vsub.f32 %v8969_v15, %v8994_v31 }
 0x340   : > { %v5592_v45 = vmul.f32 %v5560_v22, %v5560_v22  ;;  %v5593_v6 = vmul.f32 %v5561_v33, %v5561_v33  ;;  %v5564_v37 = vsub.f32 %v8956_v36, %v8994_v31  ;;  %v5565_v39 = vsub.f32 %v8964_v25, %v8994_v31 }
 0x341   : > { %v5618_v52 = vadd.f32 %v5617_v35, %v5616_v46  ;;  %v5643_v46 = vsel %vm1392_vm10, %v5589_v26, 0.0  ;;  %v5645_v35 = vsel %vm1392_vm10, %v5590_v8, 0.0  ;;  %v5647_v44 = vsel %vm1392_vm10, %v5591_v16, 0.0 }
 0x342   : > { %v5649_v58 = vsel %vm1392_vm10, %v5592_v45, 0.0  ;;  %v5596_v15 = vmul.f32 %v5564_v37, %v5564_v37 }
 0x343   : > { %v5620_v13 = vadd.f32 %v5619_v20, %v5618_v52 }
 0x344   : > { %v5657_v11 = vsel %vm1392_vm10, %v5596_v15, 0.0 }
 0x345   : > { %v5622_v4 = vadd.f32 %v5621_v40, %v5620_v13  ;;  %v5594_v13 = vmul.f32 %v5562_v9, %v5562_v9  ;;  %v5595_v40 = vmul.f32 %v5563_v41, %v5563_v41 }
 0x347   : > { %v5624_v54 = vadd.f32 %v5623_v51, %v5622_v4  ;;  %v5651_v4 = vsel %vm1392_vm10, %v5593_v6, 0.0  ;;  %v5653_v5 = vsel %vm1392_vm10, %v5594_v13, 0.0  ;;  %v5655_v36 = vsel %vm1392_vm10, %v5595_v40, 0.0 }
 0x349   : > { %v5626_v19 = vadd.f32 %v5625_v57, %v5624_v54  ;;  %v5597_v54 = vmul.f32 %v5565_v39, %v5565_v39 }
 0x34b   : > { %v5628_v38 = vadd.f32 %v5627_v24, %v5626_v19  ;;  %v5659_v19 = vsel %vm1392_vm10, %v5597_v54, 0.0 }
 0x34d   : > { %v5630_v50 = vadd.f32 %v5629_v23, %v5628_v38 }
 0x34f   : > { %v5632_v61 = vadd.f32 %v5631_v27, %v5630_v50 }
 0x351   : > { %v5634_v2 = vadd.f32 %v5633_v56, %v5632_v61 }
 0x353   : > { %v5636_v59 = vadd.f32 %v5635_v3, %v5634_v2 }
 0x355   : > { %v5638_v1 = vadd.f32 %v5637_v30, %v5636_v59 }
 0x357   : > { %v5640_v62 = vadd.f32 %v5639_v28, %v5638_v1 }
 0x359   : > { %v5642_v48 = vadd.f32 %v5641_v12, %v5640_v62 }
 0x35b   : > { %v5644_v63 = vadd.f32 %v5643_v46, %v5642_v48 }
 0x35d   : > { %v5646_v52 = vadd.f32 %v5645_v35, %v5644_v63 }
 0x35f   : > { %v5648_v20 = vadd.f32 %v5647_v44, %v5646_v52 }
 0x361   : > { %v5650_v55 = vadd.f32 %v5649_v58, %v5648_v20 }
 0x363   : > { %v5652_v21 = vadd.f32 %v5651_v4, %v5650_v55 }
 0x365   : > { %v5654_v51 = vadd.f32 %v5653_v5, %v5652_v21 }
 0x367   : > { %v5656_v7 = vadd.f32 %v5655_v36, %v5654_v51 }
 0x369   : > { %v5658_v57 = vadd.f32 %v5657_v11, %v5656_v7 }
 0x36b   : > { %v5660_v25 = vadd.f32 %v5659_v19, %v5658_v57 }
 0x36d   : > { %v5661_v31 = vrot.slane %v5660_v25, 4 }
 0x36f   : > { %v5662_v43 = vadd.f32 %v5661_v31, %v5660_v25 }
 0x371   : > { %v5663_v10 = vrot.slane %v5662_v43, 2 }
 0x373   : > { %v5664_v29 = vadd.f32 %v5663_v10, %v5662_v43 }
 0x375   : > { %v5665_v50 = vrot.slane %v5664_v29, 1 }
 0x377   : > { %v5666_v32 = vadd.f32 %v5665_v50, %v5664_v29 }
 0x379   : > { %v5668_v60 = vsel %vm5667_vm1, %v8989_v17, %v5666_v32 }
 0x37a   : > { %5670 = vst.msk [vmem:[%s181_s24] sm:$0x3] %vm5669_vm2, %v5668_v60 }
 0x37d   : > { %v7028_v24 = vpop.trf.xlu1 }
 0x37e   : > { %v7032_v38 = vunpack.i.h.bf16 %v7028_v24  ;;  %v7029_v34 = vunpack.i.l.bf16 %v7028_v24 }
 0x380   : > { %v6221_v23 = vpack.c.bf16 %v7032_v38, %v7029_v34 }
 0x382   : > { %6222 = vst.sshfl [vmem:[%s177_s20] sm:$0x33 pattern:$0x76325410] %v6221_v23 }
 0x383 PF: > { %s14_s12 = sadd.s32 1, %s7142_s12  }
 0x384   : > { %p11_p4 = scmp.ge.s32.totalorder %s14_s12, 4  }
 0x386   :  { %13 = sbr.rel (!%p11_p4) target bundleno = 1 (0x1), region = 81 }

// kernel: basic_block_forward.4
= control target key start
LH: loop header
LB: loop body
LE: loop exit
PB: predicated region body
PF: predicated region fallthrough
CT: control target
= control target key end

     0   :  { %s7261_s18 = smov 0   ;;  %s9221_s0 = inlined_call_operand.vmem [shape: bf16[2,4,256], index: 0, kind: input, shape index: {}]   ;;  %s9222_s1 = inlined_call_operand.vmem [shape: f32[4,1], index: 1, kind: input, shape index: {}]   ;;  %s9223_s2 = inlined_call_operand.vmem [shape: f32[4,1], index: 2, kind: input, shape index: {}]   ;;  %s9224_s3 = inlined_call_operand.vmem [shape: bf16[9,4,4], index: 3, kind: input, shape index: {}]   ;;  %s9225_s4 = inlined_call_operand.vmem [shape: bf16[2,4,256], index: 4, kind: output, shape index: {0}]   ;;  %s9226_s5 = inlined_call_operand.vmem [shape: f32[2,2,4], index: 5, kind: output, shape index: {1}]  }
   0x1 LB: > { %s5919_s19 = sadd.s32 4294967295, %s7227_s18   ;;  %p5923_p0 = scmp.ge.s32.totalorder %s7227_s18, 1  ;;  %s7227_s18 = sphi %s7261_s18, %s16_s18  }
   0x2   : > { %p190_p1 = scmp.lt.s32.totalorder %s7227_s18, 3 }
   0x4   : > { %p191_p2 = pnand %p5923_p0, %p190_p1 }
   0x6   : > { %194 = sbr.rel (%p191_p2) target bundleno = 1033 (0x409), region = 36 }
   0xd   : > { %vm268_vm0 = vcmask 27648   ;;  %vm271_vm1 = vcmask 24576   ;;  %v7229_v0 = vmov 0   ;;  %v239_v1 = vld [vmem:[%s9222_s1] sm:$0xf]  ;;  %p222_p3 = scmp.lt.s32.totalorder %s5919_s19, 1  ;;  %v247_v17 = vlaneseq }
   0xe   : > { %7081 = vset.pattern.permute.xlu0 %v7229_v0  ;;  %269 = vst.msk [vmem:[#allocation2] sm:$0xf] %vm268_vm0, %v7229_v0  ;;  %270 = vst.msk [vmem:[#allocation2 + $0x4] sm:$0xf] %vm268_vm0, %v7229_v0  ;;  %vm278_vm2 = vsmask.f32 256 }
   0xf   : > { %272 = vst.msk [vmem:[#allocation2 + $0x8] sm:$0x1] %vm271_vm1, %v7229_v0  ;;  %276 = vst.msk [vmem:[#allocation2 + $0xd4] sm:$0x1] %vm271_vm1, %v7229_v0  ;;  %242 = vperm.xlu0 %7081, %v239_v1   ;;  %v253_v2 = vld [vmem:[%s9223_s2] sm:$0xf] }
  0x10   : > { %274 = vst.msk [vmem:[#allocation2 + $0xcc] sm:$0xf] %vm268_vm0, %v7229_v0  ;;  %275 = vst.msk [vmem:[#allocation2 + $0xd0] sm:$0xf] %vm268_vm0, %v7229_v0  ;;  %vm334_vm3 = vsmask.f32 7938 }
  0x11   : > { %vm7283_vm4 = vmand %vm271_vm1, %vm278_vm2  ;;  %v283_v13 = vld [vmem:[#allocation2 + $0xc] sm:$0x1]  ;;  %s9297_s19 = smov (!%p222_p3, %s5919_s19), 1  ;;  %v7230_v15 = vmov 839922192   ;;  %v248_v19 = vshrl.u32 %v247_v17, 7 }
  0x12   : > { %vm7289_vm5 = vmand %vm271_vm1, %vm334_vm3  ;;  %v284_v14 = vsel %vm7283_vm4, 0, %v283_v13  ;;  %v245_v16 = vunpack.c.l.s4 %v7230_v15  ;;  %s6309_s24 = sshll.u32 %s9297_s19, 2  ;;  %v339_v30 = vld [vmem:[#allocation2 + $0x14] sm:$0x1]  ;;  %v286_v32 = vld [vmem:[#allocation2 + $0x18] sm:$0x1] }
  0x13   : > { %256 = vperm.xlu0 %7081, %v253_v2   ;;  %285 = vst [vmem:[#allocation2 + $0xc] sm:$0x1] %v284_v14  ;;  %s226_s27 = scalar_lea.vmem %s9221_s0, %s6309_s24  ;;  %v340_v31 = vsel %vm7289_vm5, 0, %v339_v30  ;;  %v287_v33 = vsel %vm7283_vm4, 0, %v286_v32  ;;  %v342_v34 = vld [vmem:[#allocation2 + $0x20] sm:$0x1]  ;;  %vm7406_vm11 = vmand %vm268_vm0, %vm334_vm3  ;;  %s231_s7 = scalar_lea.vmem %s9225_s4, %s6309_s24 }
  0x14   : > { %v246_v18 = vunpack.c.0.s8 %v245_v16  ;;  %v237_v21 = vld [vmem:[%s226_s27] sm:$0xf]  ;;  %341 = vst [vmem:[#allocation2 + $0x14] sm:$0x1] %v340_v31  ;;  %288 = vst [vmem:[#allocation2 + $0x18] sm:$0x1] %v287_v33 }
  0x15   : > { %v280_v5 = vld [vmem:[#allocation2] sm:$0x1]  ;;  %v238_v23 = vunpack.c.l.bf16 %v237_v21  ;;  %v343_v35 = vsel %vm7289_vm5, 0, %v342_v34  ;;  %v289_v36 = vld [vmem:[#allocation2 + $0x24] sm:$0x1]  ;;  %vm1525_vm8 = vcmask 1041408  }
  0x16   : > { %v336_v7 = vld [vmem:[#allocation2 + $0x8] sm:$0x1]  ;;  %v281_v8 = vsel %vm7283_vm4, 0, %v280_v5  ;;  %v387_v11 = vld [vmem:[#allocation2 + $0xd4] sm:$0x1]  ;;  %v249_v20 = vsub.s32 %v246_v18, %v248_v19  ;;  %v290_v37 = vsel %vm7283_vm4, 0, %v289_v36 }
  0x17   : > { %v331_v6 = vld [vmem:[#allocation2 + $0xcc] sm:$0x1]  ;;  %v337_v10 = vsel %vm7289_vm5, 0, %v336_v7  ;;  %282 = vst [vmem:[#allocation2] sm:$0x1] %v281_v8  ;;  %v388_v12 = vsel %vm7289_vm5, 0, %v387_v11 }
  0x18   : > { %v332_v9 = vsel %vm7283_vm4, 0, %v331_v6  ;;  %338 = vst [vmem:[#allocation2 + $0x8] sm:$0x1] %v337_v10  ;;  %389 = vst [vmem:[#allocation2 + $0xd4] sm:$0x1] %v388_v12  ;;  %vm1476_vm10 = vcmask 31744  }
  0x19   : > { %333 = vst [vmem:[#allocation2 + $0xcc] sm:$0x1] %v332_v9  ;;  %344 = vst [vmem:[#allocation2 + $0x20] sm:$0x1] %v343_v35  ;;  %v345_v38 = vld [vmem:[#allocation2 + $0x2c] sm:$0x1] }
  0x1a   : > { %291 = vst [vmem:[#allocation2 + $0x24] sm:$0x1] %v290_v37  ;;  %v346_v39 = vsel %vm7289_vm5, 0, %v345_v38  ;;  %v991_v41 = vld [vmem:[#allocation2 + $0x4] sm:$0xf]  ;;  %vm2030_vm14 = vcmask 1042432  }
  0x1b   : > { %347 = vst [vmem:[#allocation2 + $0x2c] sm:$0x1] %v346_v39  ;;  %v1052_v44 = vshll.u32 %v991_v41, 16  ;;  %v1056_v45 = vshrl.u32 %v991_v41, 16  ;;  %v292_v46 = vld [vmem:[#allocation2 + $0x30] sm:$0x1] }
  0x1c   : > { %v293_v49 = vsel %vm7283_vm4, 0, %v292_v46  ;;  %vm1039_vm6 = vsmask.f32 3328  ;;  %vm1040_vm7 = vsmask.f32 7440  ;;  %vm2031_vm15 = vcmask 1046532  }
  0x1d   : > { %v1054_v51 = vrot.slane %v1052_v44, 5  ;;  %294 = vst [vmem:[#allocation2 + $0x30] sm:$0x1] %v293_v49  ;;  %v1058_v53 = vrot.slane %v1056_v45, 4  ;;  %v348_v55 = vld [vmem:[#allocation2 + $0x38] sm:$0x1]  ;;  %vm7335_vm9 = vmor %vm1039_vm6, %vm1040_vm7 }
  0x1e   : > { %v990_v40 = vld [vmem:[#allocation2] sm:$0xf]  ;;  %v349_v58 = vsel %vm7289_vm5, 0, %v348_v55  ;;  %v5961_v59 = vld [vmem:[%s9224_s3 + $0x2] sm:$0x3]  ;;  %vm7690_vm1 = vmor %vm2030_vm14, %vm2031_vm15  ;;  %s5928_s8 = sshll.u32 %s9297_s19, 1 }
  0x1f   : > { %v1043_v42 = vshrl.u32 %v990_v40, 16  ;;  %v1046_v43 = vshll.u32 %v990_v40, 16  ;;  %v1023_v50 = vld [vmem:[#allocation2 + $0x8] sm:$0x1]  ;;  %v1059_v57 = vor.u32 %v1058_v53, %v1054_v51  ;;  %350 = vst [vmem:[#allocation2 + $0x38] sm:$0x1] %v349_v58  ;;  %7060 = vmatprep.subr.msk.bf16.mxu1 %vm1525_vm8, %v5961_v59  ;;  %s235_s11 = scalar_lea.vmem %s9226_s5, %s5928_s8 }
  0x20   : > { %v1062_v54 = vshll.u32 %v1023_v50, 16  ;;  %v1527_v61 = vsel %vm1525_vm8, %v5961_v59, 0  ;;  %v295_v2 = vld [vmem:[#allocation2 + $0x3c] sm:$0x1]  ;;  %v351_v7 = vld [vmem:[#allocation2 + $0x44] sm:$0x1] }
  0x21   : > { %v1045_v47 = vrot.slane %v1043_v42, 4  ;;  %v1048_v48 = vrot.slane %v1046_v43, 5  ;;  %v1060_v63 = vrot.slane %v1059_v57, 4  ;;  %6497 = vmatpush3.bf16.msra.mxu1 %v1527_v61  ;;  %v296_v6 = vsel %vm7283_vm4, 0, %v295_v2  ;;  %v6108_v9 = vld [vmem:[%s9224_s3 + $0x8] sm:$0x3] }
  0x22   : > { %v1064_v0 = vrot.slane %v1062_v54, 5  ;;  %297 = vst [vmem:[#allocation2 + $0x3c] sm:$0x1] %v296_v6  ;;  %v352_v8 = vsel %vm7289_vm5, 0, %v351_v7  ;;  %v298_v10 = vld [vmem:[#allocation2 + $0x48] sm:$0x1]  ;;  %7064 = vmatprep.subr.msk.bf16.mxu0 %vm1525_vm8, %v6108_v9 }
  0x23   : > { %v1049_v52 = vor.u32 %v1048_v48, %v1045_v47  ;;  %353 = vst [vmem:[#allocation2 + $0x44] sm:$0x1] %v352_v8  ;;  %v7355_v11 = vsel %vm1525_vm8, %v6108_v9, 0  ;;  %v299_v12 = vsel %vm7283_vm4, 0, %v298_v10  ;;  %v354_v13 = vld [vmem:[#allocation2 + $0x50] sm:$0x1] }
  0x24   : > { %v1065_v1 = vsel %vm7335_vm9, %v1060_v63, %v1064_v0  ;;  %9243 = vst [vmem:[#allocation3_spill] sm:$0xff] %v7355_v11  ;;  %6633 = vmatpush3.bf16.msra.mxu0 %v7355_v11  ;;  %300 = vst [vmem:[#allocation2 + $0x48] sm:$0x1] %v299_v12  ;;  %v355_v14 = vsel %vm7289_vm5, 0, %v354_v13  ;;  %v301_v15 = vld [vmem:[#allocation2 + $0x54] sm:$0x1] }
  0x25   : > { %v1050_v56 = vrot.slane %v1049_v52, 4  ;;  %356 = vst [vmem:[#allocation2 + $0x50] sm:$0x1] %v355_v14  ;;  %v302_v17 = vsel %vm7283_vm4, 0, %v301_v15  ;;  %v357_v18 = vld [vmem:[#allocation2 + $0x5c] sm:$0x1] }
  0x26   : > { %303 = vst [vmem:[#allocation2 + $0x54] sm:$0x1] %v302_v17  ;;  %v304_v19 = vld [vmem:[#allocation2 + $0x60] sm:$0x1]  ;;  %v313_v32 = vld [vmem:[#allocation2 + $0x84] sm:$0x1] }
  0x27   : > { %v1055_v62 = vsel %vm7335_vm9, %v1050_v56, %v1054_v51  ;;  %v305_v21 = vsel %vm7283_vm4, 0, %v304_v19  ;;  %v366_v30 = vld [vmem:[#allocation2 + $0x80] sm:$0x1]  ;;  %v314_v33 = vsel %vm7283_vm4, 0, %v313_v32  ;;  %v369_v34 = vld [vmem:[#allocation2 + $0x8c] sm:$0x1] }
  0x28   : > { %v5962_v5 = vcombine.low %v1055_v62, %v1065_v1  ;;  %306 = vst [vmem:[#allocation2 + $0x60] sm:$0x1] %v305_v21  ;;  %v367_v31 = vsel %vm7289_vm5, 0, %v366_v30  ;;  %315 = vst [vmem:[#allocation2 + $0x84] sm:$0x1] %v314_v33  ;;  %v370_v37 = vsel %vm7289_vm5, 0, %v369_v34 }
  0x29   : > { %368 = vst [vmem:[#allocation2 + $0x80] sm:$0x1] %v367_v31  ;;  %v7385_v35 = vld [vmem:[%s9224_s3] sm:$0x3]  ;;  %v7390_v36 = vld [vmem:[%s9224_s3 + $0xa] sm:$0x3] }
  0x2a   : > { %6498 = vmatprep.mubr.msk.bf16.mxu1 %vm1476_vm10, %v5962_v5  ;;  %7061 = vmatprep.subr.msk.bf16.mxu1 %vm1525_vm8, %v7385_v35  ;;  %v316_v38 = vld [vmem:[#allocation2 + $0x90] sm:$0x1]  ;;  %371 = vst [vmem:[#allocation2 + $0x8c] sm:$0x1] %v370_v37  ;;  %v372_v42 = vld [vmem:[#allocation2 + $0x98] sm:$0x1] }
  0x2b   : > { %7066 = vmatprep.subr.msk.bf16.mxu0 %vm1525_vm8, %v7390_v36  ;;  %v317_v39 = vsel %vm7283_vm4, 0, %v316_v38  ;;  %v373_v44 = vsel %vm7289_vm5, 0, %v372_v42  ;;  %v319_v46 = vld [vmem:[#allocation2 + $0x9c] sm:$0x1]  ;;  %v878_v52 = vld [vmem:[#allocation2 + $0xc] sm:$0xf] }
  0x2c   : > { %318 = vst [vmem:[#allocation2 + $0x90] sm:$0x1] %v317_v39  ;;  %374 = vst [vmem:[#allocation2 + $0x98] sm:$0x1] %v373_v44  ;;  %v320_v50 = vsel %vm7283_vm4, 0, %v319_v46 }
  0x2d   : > { %321 = vst [vmem:[#allocation2 + $0x9c] sm:$0x1] %v320_v50  ;;  %vm553_vm12 = vsmask.f32 4368  ;;  %v882_v62 = vld [vmem:[#allocation2 + $0x14] sm:$0x1] }
  0x2e   : > { %vm7413_vm13 = vmor %vm278_vm2, %vm553_vm12  ;;  %v375_v7 = vld [vmem:[#allocation2 + $0xa4] sm:$0x1]  ;;  %v885_v13 = vld [vmem:[#allocation2 + $0x18] sm:$0xf]  ;;  %vm5753_vm2 = vcmask 25600  }
  0x2f   : > { %v376_v14 = vsel %vm7289_vm5, 0, %v375_v7  ;;  %v322_v15 = vld [vmem:[#allocation2 + $0xa8] sm:$0x1] }
  0x30   : > { %377 = vst [vmem:[#allocation2 + $0xa4] sm:$0x1] %v376_v14 }
  0x8e   : > { %v243_v22 = vpop.permute.xlu0 %242 }
  0x8f   : > { %v250_v24 = vrot.slane %v243_v22, %v249_v20  ;;  %v360_v22 = vld [vmem:[#allocation2 + $0x68] sm:$0x1] }
  0x91   : > { %v252_v26 = vmul.f32 %v250_v24, %v238_v23  ;;  %v307_v23 = vld [vmem:[#allocation2 + $0x6c] sm:$0x1]  ;;  %v361_v24 = vsel %vm7289_vm5, 0, %v360_v22 }
  0x92   : > { %v257_v25 = vpop.permute.xlu0 %256  ;;  %362 = vst [vmem:[#allocation2 + $0x68] sm:$0x1] %v361_v24 }
  0x93   : > { %v264_v27 = vrot.slane %v257_v25, %v249_v20  ;;  %v358_v20 = vsel %vm7289_vm5, 0, %v357_v18  ;;  %v308_v25 = vsel %vm7283_vm4, 0, %v307_v23 }
  0x94   : > { %359 = vst [vmem:[#allocation2 + $0x5c] sm:$0x1] %v358_v20  ;;  %309 = vst [vmem:[#allocation2 + $0x6c] sm:$0x1] %v308_v25  ;;  %v323_v20 = vsel %vm7283_vm4, 0, %v322_v15 }
  0x95   : > { %v266_v28 = vadd.f32 %v264_v27, %v252_v26  ;;  %v363_v26 = vld [vmem:[#allocation2 + $0x74] sm:$0x1]  ;;  %v310_v27 = vld [vmem:[#allocation2 + $0x78] sm:$0x1]  ;;  %324 = vst [vmem:[#allocation2 + $0xa8] sm:$0x1] %v323_v20 }
  0x97   : > { %v7315_v29 = vmax.f32 %v266_v28, 0.0  ;;  %v364_v28 = vsel %vm7289_vm5, 0, %v363_v26 }
  0x98   : > { %365 = vst [vmem:[#allocation2 + $0x74] sm:$0x1] %v364_v28 }
  0x99   : > { %393 = vxpose.xlu1.b32.start.end [1/1] (short) %v7315_v29, 128  ;;  %v391_v16 = vcombine.high %v7315_v29, %v7315_v29  ;;  %v311_v29 = vsel %vm7283_vm4, 0, %v310_v27  ;;  %v889_v27 = vld [vmem:[#allocation2 + $0x20] sm:$0x1] }
  0x9a   : > { %312 = vst [vmem:[#allocation2 + $0x78] sm:$0x1] %v311_v29 }
  0xd6   : > { %425 = vxpose.xlu1.b32.start.end [1/1] (short) %v391_v16, 128 }
 0x119   : > { %v409_v40 = vpop.trf.xlu1 }
 0x11a   : > { %v6311_v41 = vpack.c.bf16 %v409_v40, %v409_v40 }
 0x11c   : > { %v556_v43 = vshrl.u32 %v6311_v41, 16  ;;  %v559_v48 = vshll.u32 %v6311_v41, 16 }
 0x11d   : > { %v410_v45 = vpop.trf.xlu1 }
 0x11e   : > { %v558_v47 = vrot.slane %v556_v43, 7  ;;  %v6312_v49 = vpack.c.bf16 %v410_v45, %v410_v45 }
 0x120   : > { %v561_v53 = vor.u32 %v559_v48, %v558_v47  ;;  %v564_v54 = vshrl.u32 %v6312_v49, 16  ;;  %v567_v58 = vshll.u32 %v6312_v49, 16  ;;  %v562_v63 = vrot.slane %v558_v47, 4  ;;  %v892_v49 = vld [vmem:[#allocation2 + $0x24] sm:$0xf] }
 0x121   : > { %v411_v55 = vpop.trf.xlu1 }
 0x122   : > { %v879_v56 = vsel %vm7406_vm11, %v561_v53, %v878_v52  ;;  %v566_v57 = vrot.slane %v564_v54, 7  ;;  %v6313_v59 = vpack.c.bf16 %v411_v55, %v411_v55 }
 0x123   : > { %880 = vst [vmem:[#allocation2 + $0xc] sm:$0xf] %v879_v56 }
 0x124   : > { %v569_v0 = vor.u32 %v567_v58, %v566_v57  ;;  %v571_v1 = vrot.slane %v566_v57, 4  ;;  %v573_v2 = vshrl.u32 %v6313_v59, 16  ;;  %v576_v5 = vshll.u32 %v6313_v59, 16 }
 0x125   : > { %v412_v6 = vpop.trf.xlu1  ;;  %v7435_v57 = vsel %vm1525_vm8, %v7385_v35, 0  ;;  %v7439_v58 = vsel %vm1525_vm8, %v7390_v36, 0  ;;  %v896_v35 = vld [vmem:[#allocation2 + $0x2c] sm:$0x1] }
 0x126   : > { %v570_v8 = vsel %vm7413_vm13, %v562_v63, %v569_v0  ;;  %v883_v9 = vsel %vm7283_vm4, %v571_v1, %v882_v62  ;;  %v575_v10 = vrot.slane %v573_v2, 7  ;;  %v6314_v12 = vpack.c.bf16 %v412_v6, %v412_v6 }
 0x127   : > { %881 = vst.msk [vmem:[#allocation2 + $0x10] sm:$0xf] %vm268_vm0, %v570_v8  ;;  %884 = vst [vmem:[#allocation2 + $0x14] sm:$0x1] %v883_v9 }
 0x128   : > { %v578_v16 = vor.u32 %v576_v5, %v575_v10  ;;  %v581_v17 = vshrl.u32 %v6314_v12, 16  ;;  %v579_v18 = vrot.slane %v575_v10, 4  ;;  %v584_v23 = vshll.u32 %v6314_v12, 16 }
 0x129   : > { %v413_v19 = vpop.trf.xlu1 }
 0x12a   : > { %v886_v21 = vsel %vm7406_vm11, %v578_v16, %v885_v13  ;;  %v583_v22 = vrot.slane %v581_v17, 7  ;;  %v6315_v24 = vpack.c.bf16 %v413_v19, %v413_v19  ;;  %v992_v25 = vld [vmem:[#allocation2 + $0xc] sm:$0xf] }
 0x12b   : > { %v2797_v26 = vld [vmem:[#allocation2 + $0xc] sm:$0xf]  ;;  %887 = vst [vmem:[#allocation2 + $0x18] sm:$0xf] %v886_v21  ;;  %v1067_v28 = vshrl.u32 %v992_v25, 16  ;;  %v1070_v29 = vshll.u32 %v992_v25, 16 }
 0x12c   : > { %v2846_v30 = vshrl.u32 %v2797_v26, 16  ;;  %v2849_v31 = vshll.u32 %v2797_v26, 16  ;;  %v586_v32 = vor.u32 %v584_v23, %v583_v22  ;;  %v588_v33 = vrot.slane %v583_v22, 4 }
 0x12d   : > { %v590_v34 = vshrl.u32 %v6315_v24, 16  ;;  %v593_v37 = vshll.u32 %v6315_v24, 16  ;;  %v414_v38 = vpop.trf.xlu1  ;;  %v1069_v39 = vrot.slane %v1067_v28, 4  ;;  %v1072_v40 = vrot.slane %v1070_v29, 5 }
 0x12e   : > { %v2848_v41 = vrot.slane %v2846_v30, 4  ;;  %v2851_v42 = vrot.slane %v2849_v31, 5  ;;  %v587_v43 = vsel %vm7413_vm13, %v579_v18, %v586_v32  ;;  %v890_v44 = vsel %vm7283_vm4, %v588_v33, %v889_v27  ;;  %v993_v47 = vld [vmem:[#allocation2 + $0x10] sm:$0xf]  ;;  %v1024_v48 = vld [vmem:[#allocation2 + $0x14] sm:$0x1] }
 0x12f   : > { %v592_v45 = vrot.slane %v590_v34, 7  ;;  %v6316_v46 = vpack.c.bf16 %v414_v38, %v414_v38  ;;  %888 = vst.msk [vmem:[#allocation2 + $0x1c] sm:$0xf] %vm268_vm0, %v587_v43  ;;  %891 = vst [vmem:[#allocation2 + $0x20] sm:$0x1] %v890_v44  ;;  %v1073_v50 = vor.u32 %v1072_v40, %v1069_v39  ;;  %v1076_v52 = vshll.u32 %v993_v47, 16 }
 0x130   : > { %v1080_v53 = vshrl.u32 %v993_v47, 16  ;;  %v1086_v54 = vshll.u32 %v1024_v48, 16  ;;  %v7443_v8 = vld [vmem:[#allocation2 + $0x10] sm:$0xf]  ;;  %v2852_v12 = vor.u32 %v2851_v42, %v2848_v41  ;;  %v7447_v17 = vld [vmem:[#allocation2 + $0x14] sm:$0x1] }
 0x131   : > { %v595_v55 = vor.u32 %v593_v37, %v592_v45  ;;  %v598_v56 = vshrl.u32 %v6316_v46, 16  ;;  %v596_v59 = vrot.slane %v592_v45, 4  ;;  %v415_v62 = vpop.trf.xlu1  ;;  %v1074_v63 = vrot.slane %v1073_v50, 4  ;;  %v899_v27 = vld [vmem:[#allocation2 + $0x30] sm:$0xf] }
 0x132   : > { %v1078_v0 = vrot.slane %v1076_v52, 5  ;;  %v1082_v1 = vrot.slane %v1080_v53, 4  ;;  %v601_v6 = vshll.u32 %v6316_v46, 16  ;;  %v6317_v7 = vpack.c.bf16 %v415_v62, %v415_v62  ;;  %v994_v38 = vld [vmem:[#allocation2 + $0x18] sm:$0xf] }
 0x133   : > { %v893_v2 = vsel %vm7406_vm11, %v595_v55, %v892_v49  ;;  %v600_v5 = vrot.slane %v598_v56, 7  ;;  %v1088_v10 = vrot.slane %v1086_v54, 5  ;;  %v2853_v20 = vrot.slane %v2852_v12, 4  ;;  %v903_v45 = vld [vmem:[#allocation2 + $0x38] sm:$0x1] }
 0x134   : > { %894 = vst [vmem:[#allocation2 + $0x24] sm:$0xf] %v893_v2  ;;  %v1079_v9 = vsel %vm7335_vm9, %v1074_v63, %v1078_v0  ;;  %v1083_v36 = vor.u32 %v1082_v1, %v1078_v0  ;;  %v607_v15 = vshrl.u32 %v6317_v7, 16  ;;  %v610_v16 = vshll.u32 %v6317_v7, 16  ;;  %v2800_v55 = vld [vmem:[#allocation2 + $0x18] sm:$0xf] }
 0x135   : > { %v603_v13 = vor.u32 %v601_v6, %v600_v5  ;;  %v605_v14 = vrot.slane %v600_v5, 4  ;;  %v416_v18 = vpop.trf.xlu1  ;;  %v2855_v21 = vshll.u32 %v7443_v8, 16  ;;  %v2859_v22 = vshrl.u32 %v7443_v8, 16  ;;  %v906_v12 = vld [vmem:[#allocation2 + $0x3c] sm:$0xf] }
 0x136   : > { %v1084_v19 = vrot.slane %v1083_v36, 4  ;;  %v609_v25 = vrot.slane %v607_v15, 7  ;;  %v6318_v26 = vpack.c.bf16 %v416_v18, %v416_v18  ;;  %v2865_v31 = vshll.u32 %v7447_v17, 16  ;;  %v995_v49 = vld [vmem:[#allocation2 + $0x1c] sm:$0xf] }
 0x137   : > { %v604_v23 = vsel %vm7413_vm13, %v596_v59, %v603_v13  ;;  %v897_v24 = vsel %vm7283_vm4, %v605_v14, %v896_v35  ;;  %v2857_v29 = vrot.slane %v2855_v21, 5  ;;  %v2861_v30 = vrot.slane %v2859_v22, 4  ;;  %v1025_v0 = vld [vmem:[#allocation2 + $0x20] sm:$0x1] }
 0x138   : > { %895 = vst.msk [vmem:[#allocation2 + $0x28] sm:$0xf] %vm268_vm0, %v604_v23  ;;  %898 = vst [vmem:[#allocation2 + $0x2c] sm:$0x1] %v897_v24  ;;  %v1089_v28 = vsel %vm7335_vm9, %v1084_v19, %v1088_v10  ;;  %v612_v32 = vor.u32 %v610_v16, %v609_v25  ;;  %v613_v33 = vrot.slane %v609_v25, 4  ;;  %v615_v34 = vshrl.u32 %v6318_v26, 16 }
 0x139   : > { %v618_v37 = vshll.u32 %v6318_v26, 16  ;;  %v417_v39 = vpop.trf.xlu1  ;;  %v5963_v40 = vcombine.low %v1079_v9, %v1089_v28  ;;  %v2858_v41 = vsel %vm7335_vm9, %v2853_v20, %v2857_v29  ;;  %v2862_v42 = vor.u32 %v2861_v30, %v2857_v29  ;;  %v7475_v20 = vld [vmem:[#allocation2 + $0x1c] sm:$0xf]  ;;  %v910_v28 = vld [vmem:[#allocation2 + $0x44] sm:$0x1] }
 0x13a   : > { %v2867_v43 = vrot.slane %v2865_v31, 5  ;;  %v900_v44 = vsel %vm7406_vm11, %v612_v32, %v899_v27  ;;  %v617_v46 = vrot.slane %v615_v34, 7  ;;  %v6319_v47 = vpack.c.bf16 %v417_v39, %v417_v39 }
 0x13b   : > { %v3589_v48 = vrot.slane %v7443_v8, 5  ;;  %901 = vst [vmem:[#allocation2 + $0x30] sm:$0xf] %v900_v44  ;;  %6499 = vmatmul.mubr.msk.bf16.vlgmr.msra.gmra.mrb[0].mxu1 %vm1476_vm10, %v5963_v40  ;;  %v2863_v50 = vrot.slane %v2862_v42, 4  ;;  %v3592_v52 = vrot.slane %v7447_v17, 5  ;;  %v1091_v53 = vshrl.u32 %v994_v38, 16 }
 0x13c   : > { %v1094_v54 = vshll.u32 %v994_v38, 16  ;;  %v620_v56 = vor.u32 %v618_v37, %v617_v46  ;;  %v622_v59 = vrot.slane %v617_v46, 4  ;;  %v624_v62 = vshrl.u32 %v6319_v47, 16  ;;  %6531 = vmatpush3.bf16.msra.mxu1 %v7435_v57  ;;  %v7481_v37 = vld [vmem:[#allocation2 + $0x20] sm:$0x1] }
 0x13d   : > { %v627_v63 = vshll.u32 %v6319_v47, 16  ;;  %v2868_v1 = vsel %vm7335_vm9, %v2863_v50, %v2867_v43  ;;  %v418_v2 = vpop.trf.xlu1  ;;  %v1093_v5 = vrot.slane %v1091_v53, 4  ;;  %v1100_v7 = vshll.u32 %v995_v49, 16 }
 0x13e   : > { %v1096_v6 = vrot.slane %v1094_v54, 5  ;;  %v621_v35 = vsel %vm7413_vm13, %v613_v33, %v620_v56  ;;  %v904_v9 = vsel %vm7283_vm4, %v622_v59, %v903_v45  ;;  %v626_v36 = vrot.slane %v624_v62, 7  ;;  %v913_v59 = vld [vmem:[#allocation2 + $0x48] sm:$0xf] }
 0x13f   : > { %v6109_v10 = vcombine.low %v2858_v41, %v2868_v1  ;;  %902 = vst.msk [vmem:[#allocation2 + $0x34] sm:$0xf] %vm268_vm0, %v621_v35  ;;  %905 = vst [vmem:[#allocation2 + $0x38] sm:$0x1] %v904_v9  ;;  %v6320_v57 = vpack.c.bf16 %v418_v2, %v418_v2  ;;  %v1102_v14 = vrot.slane %v1100_v7, 5  ;;  %v1104_v15 = vshrl.u32 %v995_v49, 16 }
 0x140   : > { %v1097_v13 = vor.u32 %v1096_v6, %v1093_v5  ;;  %v629_v16 = vor.u32 %v627_v63, %v626_v36  ;;  %v630_v18 = vrot.slane %v626_v36, 4  ;;  %v1110_v19 = vshll.u32 %v1025_v0, 16  ;;  %v996_v0 = vld [vmem:[#allocation2 + $0x24] sm:$0xf] }
 0x141   : > { %6634 = vmatprep.mubr.msk.bf16.mxu0 %vm1476_vm10, %v6109_v10  ;;  %v2870_v21 = vshrl.u32 %v2800_v55, 16  ;;  %v632_v22 = vshrl.u32 %v6320_v57, 16  ;;  %v635_v23 = vshll.u32 %v6320_v57, 16  ;;  %v419_v24 = vpop.trf.xlu1  ;;  %v1106_v26 = vrot.slane %v1104_v15, 4  ;;  %v997_v15 = vld [vmem:[#allocation2 + $0x28] sm:$0xf] }
 0x142   : > { %v1098_v25 = vrot.slane %v1097_v13, 4  ;;  %v907_v27 = vsel %vm7406_vm11, %v629_v16, %v906_v12  ;;  %v6321_v29 = vpack.c.bf16 %v419_v24, %v419_v24  ;;  %v1112_v30 = vrot.slane %v1110_v19, 5  ;;  %v2803_v16 = vld [vmem:[#allocation2 + $0x24] sm:$0xf] }
 0x143   : > { %v2872_v31 = vrot.slane %v2870_v21, 4  ;;  %908 = vst [vmem:[#allocation2 + $0x3c] sm:$0xf] %v907_v27  ;;  %v634_v32 = vrot.slane %v632_v22, 7  ;;  %v1107_v34 = vor.u32 %v1106_v26, %v1102_v14  ;;  %v2873_v38 = vshll.u32 %v2800_v55, 16 }
 0x144   : > { %v1103_v33 = vsel %vm7335_vm9, %v1098_v25, %v1102_v14  ;;  %v641_v39 = vshrl.u32 %v6321_v29, 16  ;;  %v644_v40 = vshll.u32 %v6321_v29, 16  ;;  %v2879_v41 = vshll.u32 %v7475_v20, 16  ;;  %v1026_v21 = vld [vmem:[#allocation2 + $0x2c] sm:$0x1] }
 0x145   : > { %v2883_v42 = vshrl.u32 %v7475_v20, 16  ;;  %v637_v43 = vor.u32 %v635_v23, %v634_v32  ;;  %v639_v44 = vrot.slane %v634_v32, 4  ;;  %v1108_v45 = vrot.slane %v1107_v34, 4  ;;  %v420_v47 = vpop.trf.xlu1 }
 0x146   : > { %v2875_v46 = vrot.slane %v2873_v38, 5  ;;  %v7485_v49 = vrot.slane %v641_v39, 7  ;;  %v2881_v50 = vrot.slane %v2879_v41, 5  ;;  %v2889_v54 = vshll.u32 %v7481_v37, 16  ;;  %v7178_v11 = vld [vmem:[#allocation2 + $0x38] sm:$0x1] }
 0x147   : > { %v2885_v53 = vrot.slane %v2883_v42, 4  ;;  %v638_v55 = vsel %vm7413_vm13, %v630_v18, %v637_v43  ;;  %v911_v56 = vsel %vm7283_vm4, %v639_v44, %v910_v28  ;;  %v1113_v62 = vsel %vm7335_vm9, %v1108_v45, %v1112_v30  ;;  %v6190_v28 = vld [vmem:[%s9224_s3 + $0xc] sm:$0x3]  ;;  %v917_v30 = vld [vmem:[#allocation2 + $0x50] sm:$0x1] }
 0x148   : > { %v2876_v63 = vor.u32 %v2875_v46, %v2872_v31  ;;  %909 = vst.msk [vmem:[#allocation2 + $0x40] sm:$0xf] %vm268_vm0, %v638_v55  ;;  %912 = vst [vmem:[#allocation2 + $0x44] sm:$0x1] %v911_v56  ;;  %v646_v1 = vor.u32 %v644_v40, %v7485_v49  ;;  %v647_v2 = vrot.slane %v7485_v49, 4  ;;  %v5964_v5 = vcombine.low %v1103_v33, %v1113_v62 }
 0x149   : > { %v2886_v6 = vor.u32 %v2885_v53, %v2881_v50  ;;  %v2891_v35 = vrot.slane %v2889_v54, 5  ;;  %v3596_v9 = vrot.slane %v7475_v20, 5  ;;  %v3599_v36 = vrot.slane %v7481_v37, 5  ;;  %v421_v10 = vpop.trf.xlu1  ;;  %v920_v42 = vld [vmem:[#allocation2 + $0x54] sm:$0xf] }
 0x14a   : > { %v2877_v7 = vrot.slane %v2876_v63, 4  ;;  %v914_v12 = vsel %vm7406_vm11, %v646_v1, %v913_v59  ;;  %6502 = vmatprep.mubr.msk.bf16.mxu1 %vm1476_vm10, %v5964_v5  ;;  %v6322_v13 = vpack.c.bf16 %v420_v47, %v420_v47  ;;  %v6323_v14 = vpack.c.bf16 %v421_v10, %v421_v10  ;;  %v7518_v54 = vld [vmem:[#allocation2 + $0x28] sm:$0xf]  ;;  %v7521_v63 = vld [vmem:[#allocation2 + $0x2c] sm:$0x1] }
 0x14b   : > { %v2887_v57 = vrot.slane %v2886_v6, 4  ;;  %915 = vst [vmem:[#allocation2 + $0x48] sm:$0xf] %v914_v12  ;;  %v7506_v19 = vrot.slane %v3596_v9, 4  ;;  %v1115_v22 = vshrl.u32 %v996_v0, 16  ;;  %v1118_v23 = vshll.u32 %v996_v0, 16 }
 0x14c   : > { %v2882_v18 = vsel %vm7335_vm9, %v2877_v7, %v2881_v50  ;;  %v649_v25 = vshrl.u32 %v6322_v13, 16  ;;  %v652_v26 = vshll.u32 %v6322_v13, 16  ;;  %v658_v27 = vshrl.u32 %v6323_v14, 16 }
 0x14d   : > { %v2892_v24 = vsel %vm7335_vm9, %v2887_v57, %v2891_v35  ;;  %v661_v31 = vshll.u32 %v6323_v14, 16  ;;  %v1117_v32 = vrot.slane %v1115_v22, 4  ;;  %v1120_v33 = vrot.slane %v1118_v23, 5  ;;  %v422_v34 = vpop.trf.xlu1 }
 0x14e   : > { %v6110_v29 = vcombine.low %v2882_v18, %v2892_v24  ;;  %v651_v38 = vrot.slane %v649_v25, 7  ;;  %v7513_v39 = vrot.slane %v658_v27, 7  ;;  %v1124_v40 = vshll.u32 %v997_v15, 16 }
 0x14f   : > { %v1128_v41 = vshrl.u32 %v997_v15, 16  ;;  %v1121_v43 = vor.u32 %v1120_v33, %v1117_v32  ;;  %v1134_v44 = vshll.u32 %v1026_v21, 16  ;;  %v2894_v45 = vshrl.u32 %v2803_v16, 16 }
 0x150   : > { %6635 = vmatmul.mubr.msk.bf16.vlgmr.msra.gmra.mrb[0].mxu0 %vm1476_vm10, %v6110_v29  ;;  %v2897_v46 = vshll.u32 %v2803_v16, 16  ;;  %v654_v47 = vor.u32 %v652_v26, %v651_v38  ;;  %v656_v49 = vrot.slane %v651_v38, 4  ;;  %v663_v50 = vor.u32 %v661_v31, %v7513_v39  ;;  %v999_v16 = vld [vmem:[#allocation2 + $0x34] sm:$0xf] }
 0x151   : > { %v664_v53 = vrot.slane %v7513_v39, 4  ;;  %6667 = vmatpush3.bf16.msra.mxu0 %v7439_v58  ;;  %v1122_v55 = vrot.slane %v1121_v43, 4  ;;  %v1126_v56 = vrot.slane %v1124_v40, 5  ;;  %v1130_v59 = vrot.slane %v1128_v41, 4  ;;  %v423_v0 = vpop.trf.xlu1  ;;  %v998_v58 = vld [vmem:[#allocation2 + $0x30] sm:$0xf] }
 0x152   : > { %v1136_v62 = vrot.slane %v1134_v44, 5  ;;  %7067 = vmatprep.subr.msk.bf16.mxu0 %vm1525_vm8, %v6190_v28  ;;  %v655_v1 = vsel %vm7413_vm13, %v647_v2, %v654_v47  ;;  %v918_v5 = vsel %vm7283_vm4, %v656_v49, %v917_v30  ;;  %v921_v6 = vsel %vm7406_vm11, %v663_v50, %v920_v42  ;;  %v924_v30 = vld [vmem:[#allocation2 + $0x5c] sm:$0x1]  ;;  %v927_v40 = vld [vmem:[#allocation2 + $0x60] sm:$0xf] }
 0x153   : > { %v2896_v7 = vrot.slane %v2894_v45, 4  ;;  %916 = vst.msk [vmem:[#allocation2 + $0x4c] sm:$0xf] %vm268_vm0, %v655_v1  ;;  %919 = vst [vmem:[#allocation2 + $0x50] sm:$0x1] %v918_v5  ;;  %v1127_v35 = vsel %vm7335_vm9, %v1122_v55, %v1126_v56  ;;  %v1131_v10 = vor.u32 %v1130_v59, %v1126_v56  ;;  %v2899_v12 = vrot.slane %v2897_v46, 5 }
 0x154   : > { %922 = vst [vmem:[#allocation2 + $0x54] sm:$0xf] %v921_v6  ;;  %v2903_v57 = vshll.u32 %v7518_v54, 16  ;;  %v2907_v2 = vshrl.u32 %v7518_v54, 16  ;;  %v2913_v13 = vshll.u32 %v7521_v63, 16  ;;  %v6324_v14 = vpack.c.bf16 %v422_v34, %v422_v34 }
 0x155   : > { %v6325_v15 = vpack.c.bf16 %v423_v0, %v423_v0  ;;  %v1132_v18 = vrot.slane %v1131_v10, 4  ;;  %v2900_v21 = vor.u32 %v2899_v12, %v2896_v7  ;;  %v1139_v23 = vshrl.u32 %v998_v58, 16  ;;  %v2806_v46 = vld [vmem:[#allocation2 + $0x30] sm:$0xf]  ;;  %v424_v47 = vpop.trf.xlu1  ;;  %v1027_v56 = vld [vmem:[#allocation2 + $0x38] sm:$0x1] }
 0x156   : > { %v2905_v22 = vrot.slane %v2903_v57, 5  ;;  %v2909_v24 = vrot.slane %v2907_v2, 4  ;;  %v2915_v25 = vrot.slane %v2913_v13, 5  ;;  %v666_v26 = vshrl.u32 %v6324_v14, 16  ;;  %v7545_v6 = vld [vmem:[#allocation2 + $0x34] sm:$0xf] }
 0x157   : > { %v669_v27 = vshll.u32 %v6324_v14, 16  ;;  %v1137_v28 = vsel %vm7335_vm9, %v1132_v18, %v1136_v62  ;;  %v2901_v29 = vrot.slane %v2900_v21, 4  ;;  %v675_v31 = vshrl.u32 %v6325_v15, 16  ;;  %v7555_v12 = vld [vmem:[#allocation2 + $0x38] sm:$0x1] }
 0x158   : > { %v678_v32 = vshll.u32 %v6325_v15, 16  ;;  %v5965_v33 = vcombine.low %v1127_v35, %v1137_v28  ;;  %v2910_v38 = vor.u32 %v2909_v24, %v2905_v22  ;;  %v668_v34 = vrot.slane %v666_v26, 7  ;;  %v1000_v18 = vld [vmem:[#allocation2 + $0x3c] sm:$0xf] }
 0x159   : > { %v1141_v41 = vrot.slane %v1139_v23, 4  ;;  %v2906_v42 = vsel %vm7335_vm9, %v2901_v29, %v2905_v22  ;;  %v7540_v43 = vrot.slane %v675_v31, 7  ;;  %v1142_v44 = vshll.u32 %v998_v58, 16 }
 0x15a   : > { %v1148_v45 = vshll.u32 %v999_v16, 16  ;;  %6503 = vmatmul.mubr.msk.bf16.gmra.mrb[4].mxu1 %vm1476_vm10, %v5965_v33  ;;  %v2911_v49 = vrot.slane %v2910_v38, 4  ;;  %v671_v50 = vor.u32 %v669_v27, %v668_v34  ;;  %v673_v55 = vrot.slane %v668_v34, 4 }
 0x15b   : > { %v1152_v59 = vshrl.u32 %v999_v16, 16  ;;  %v680_v62 = vor.u32 %v678_v32, %v7540_v43  ;;  %v681_v0 = vrot.slane %v7540_v43, 4  ;;  %v1144_v1 = vrot.slane %v1142_v44, 5 }
 0x15c   : > { %v1150_v5 = vrot.slane %v1148_v45, 5  ;;  %v2916_v7 = vsel %vm7335_vm9, %v2911_v49, %v2915_v25  ;;  %v672_v58 = vsel %vm7413_vm13, %v664_v53, %v671_v50  ;;  %v925_v35 = vsel %vm7283_vm4, %v673_v55, %v924_v30  ;;  %v441_v25 = vpop.trf.xlu1  ;;  %v1028_v50 = vld [vmem:[#allocation2 + $0x44] sm:$0x1] }
 0x15d   : > { %v1154_v10 = vrot.slane %v1152_v59, 4  ;;  %v6111_v57 = vcombine.low %v2906_v42, %v2916_v7  ;;  %923 = vst.msk [vmem:[#allocation2 + $0x58] sm:$0xf] %vm268_vm0, %v672_v58  ;;  %926 = vst [vmem:[#allocation2 + $0x5c] sm:$0x1] %v925_v35  ;;  %v928_v2 = vsel %vm7406_vm11, %v680_v62, %v927_v40  ;;  %v1145_v13 = vor.u32 %v1144_v1, %v1141_v41 }
 0x15e   : > { %v1158_v14 = vshll.u32 %v1027_v56, 16  ;;  %929 = vst [vmem:[#allocation2 + $0x60] sm:$0xf] %v928_v2  ;;  %v2918_v15 = vshrl.u32 %v2806_v46, 16  ;;  %v2921_v16 = vshll.u32 %v2806_v46, 16  ;;  %v2927_v53 = vshll.u32 %v7545_v6, 16 }
 0x15f   : > { %v1155_v39 = vor.u32 %v1154_v10, %v1150_v5  ;;  %6638 = vmatprep.mubr.msk.bf16.mxu0 %vm1476_vm10, %v6111_v57  ;;  %v1146_v21 = vrot.slane %v1145_v13, 4  ;;  %v2931_v23 = vshrl.u32 %v7545_v6, 16  ;;  %v2937_v24 = vshll.u32 %v7555_v12, 16  ;;  %v1001_v41 = vld [vmem:[#allocation2 + $0x40] sm:$0xf] }
 0x160   : > { %v1160_v22 = vrot.slane %v1158_v14, 5  ;;  %v2920_v27 = vrot.slane %v2918_v15, 4  ;;  %v2923_v28 = vrot.slane %v2921_v16, 5  ;;  %v2929_v29 = vrot.slane %v2927_v53, 5  ;;  %v442_v58 = vpop.trf.xlu1  ;;  %v931_v10 = vld [vmem:[#allocation2 + $0x68] sm:$0x1] }
 0x161   : > { %v1156_v26 = vrot.slane %v1155_v39, 4  ;;  %v1151_v30 = vsel %vm7335_vm9, %v1146_v21, %v1150_v5  ;;  %v2933_v31 = vrot.slane %v2931_v23, 4  ;;  %v2939_v32 = vrot.slane %v2937_v24, 5  ;;  %v934_v16 = vld [vmem:[#allocation2 + $0x6c] sm:$0xf] }
 0x162   : > { %v6326_v33 = vpack.c.bf16 %v424_v47, %v424_v47  ;;  %v2924_v34 = vor.u32 %v2923_v28, %v2920_v27  ;;  %v6327_v40 = vpack.c.bf16 %v441_v25, %v441_v25  ;;  %v1163_v42 = vshrl.u32 %v1000_v18, 16  ;;  %v2809_v21 = vld [vmem:[#allocation2 + $0x3c] sm:$0xf]  ;;  %v7577_v25 = vld [vmem:[#allocation2 + $0x40] sm:$0xf] }
 0x163   : > { %v1161_v38 = vsel %vm7335_vm9, %v1156_v26, %v1160_v22  ;;  %v2934_v45 = vor.u32 %v2933_v31, %v2929_v29  ;;  %v1166_v5 = vshll.u32 %v1000_v18, 16  ;;  %v1172_v7 = vshll.u32 %v1001_v41, 16  ;;  %v7579_v26 = vld [vmem:[#allocation2 + $0x44] sm:$0x1]  ;;  %v6042_v31 = vld [vmem:[%s9224_s3 + $0x4] sm:$0x3] }
 0x164   : > { %v5966_v44 = vcombine.low %v1151_v30, %v1161_v38  ;;  %v683_v46 = vshrl.u32 %v6326_v33, 16  ;;  %v686_v49 = vshll.u32 %v6326_v33, 16  ;;  %v2925_v55 = vrot.slane %v2924_v34, 4  ;;  %v1002_v38 = vld [vmem:[#allocation2 + $0x48] sm:$0xf]  ;;  %7062 = vmatprep.subr.msk.bf16.mxu1 %vm1525_vm8, %v6042_v31 }
 0x165   : > { %v692_v56 = vshrl.u32 %v6327_v40, 16  ;;  %v695_v59 = vshll.u32 %v6327_v40, 16  ;;  %v1165_v62 = vrot.slane %v1163_v42, 4  ;;  %v2935_v1 = vrot.slane %v2934_v45, 4 }
 0x166   : > { %6506 = vmatprep.mubr.msk.bf16.mxu1 %vm1476_vm10, %v5966_v44  ;;  %v685_v47 = vrot.slane %v683_v46, 7  ;;  %v2930_v35 = vsel %vm7335_vm9, %v2925_v55, %v2929_v29  ;;  %v1176_v2 = vshrl.u32 %v1001_v41, 16  ;;  %v1182_v13 = vshll.u32 %v1028_v50, 16  ;;  %v443_v44 = vpop.trf.xlu1 }
 0x167   : > { %v7571_v57 = vrot.slane %v692_v56, 7  ;;  %v2940_v14 = vsel %vm7335_vm9, %v2935_v1, %v2939_v32  ;;  %v1168_v53 = vrot.slane %v1166_v5, 5  ;;  %v1174_v24 = vrot.slane %v1172_v7, 5 }
 0x168   : > { %v688_v39 = vor.u32 %v686_v49, %v685_v47  ;;  %v690_v15 = vrot.slane %v685_v47, 4  ;;  %v6112_v22 = vcombine.low %v2930_v35, %v2940_v14  ;;  %v1178_v30 = vrot.slane %v1176_v2, 4 }
 0x169   : > { %v697_v18 = vor.u32 %v695_v59, %v7571_v57  ;;  %v698_v23 = vrot.slane %v7571_v57, 4  ;;  %v1169_v29 = vor.u32 %v1168_v53, %v1165_v62  ;;  %v1184_v32 = vrot.slane %v1182_v13, 5 }
 0x16a   : > { %v689_v27 = vsel %vm7413_vm13, %v681_v0, %v688_v39  ;;  %v932_v28 = vsel %vm7283_vm4, %v690_v15, %v931_v10  ;;  %6639 = vmatmul.mubr.msk.bf16.gmra.mrb[4].mxu0 %vm1476_vm10, %v6112_v22  ;;  %v2942_v33 = vshrl.u32 %v2809_v21, 16  ;;  %v2945_v0 = vshll.u32 %v2809_v21, 16  ;;  %v938_v21 = vld [vmem:[#allocation2 + $0x74] sm:$0x1] }
 0x16b   : > { %930 = vst.msk [vmem:[#allocation2 + $0x64] sm:$0xf] %vm268_vm0, %v689_v27  ;;  %933 = vst [vmem:[#allocation2 + $0x68] sm:$0x1] %v932_v28  ;;  %v935_v43 = vsel %vm7406_vm11, %v697_v18, %v934_v16  ;;  %v1170_v34 = vrot.slane %v1169_v29, 4  ;;  %v1179_v40 = vor.u32 %v1178_v30, %v1174_v24  ;;  %v2951_v41 = vshll.u32 %v7577_v25, 16  ;;  %v444_v27 = vpop.trf.xlu1 }
 0x16c   : > { %936 = vst [vmem:[#allocation2 + $0x6c] sm:$0xf] %v935_v43  ;;  %v2955_v42 = vshrl.u32 %v7577_v25, 16  ;;  %v2944_v45 = vrot.slane %v2942_v33, 4  ;;  %v2947_v46 = vrot.slane %v2945_v0, 5  ;;  %v2961_v49 = vshll.u32 %v7579_v26, 16 }
 0x16d   : > { %v6328_v50 = vpack.c.bf16 %v442_v58, %v442_v58  ;;  %v1175_v55 = vsel %vm7335_vm9, %v1170_v34, %v1174_v24  ;;  %v1180_v56 = vrot.slane %v1179_v40, 4  ;;  %v2953_v59 = vrot.slane %v2951_v41, 5  ;;  %v1003_v58 = vld [vmem:[#allocation2 + $0x4c] sm:$0xf]  ;;  %v2812_v43 = vld [vmem:[#allocation2 + $0x48] sm:$0xf] }
 0x16e   : > { %v2957_v62 = vrot.slane %v2955_v42, 4  ;;  %v2948_v1 = vor.u32 %v2947_v46, %v2944_v45  ;;  %v2963_v47 = vrot.slane %v2961_v49, 5  ;;  %v6329_v2 = vpack.c.bf16 %v443_v44, %v443_v44  ;;  %v1029_v0 = vld [vmem:[#allocation2 + $0x50] sm:$0x1]  ;;  %v941_v44 = vld [vmem:[#allocation2 + $0x78] sm:$0xf] }
 0x16f   : > { %v700_v5 = vshrl.u32 %v6328_v50, 16  ;;  %v703_v7 = vshll.u32 %v6328_v50, 16  ;;  %v1185_v35 = vsel %vm7335_vm9, %v1180_v56, %v1184_v32  ;;  %v1187_v13 = vshrl.u32 %v1002_v38, 16  ;;  %v7615_v46 = vld [vmem:[#allocation2 + $0x4c] sm:$0xf] }
 0x170   : > { %v2958_v10 = vor.u32 %v2957_v62, %v2953_v59  ;;  %v5967_v14 = vcombine.low %v1175_v55, %v1185_v35  ;;  %v2949_v39 = vrot.slane %v2948_v1, 4  ;;  %v1190_v16 = vshll.u32 %v1002_v38, 16 }
 0x171   : > { %v702_v15 = vrot.slane %v700_v5, 7  ;;  %v709_v22 = vshrl.u32 %v6329_v2, 16  ;;  %v712_v18 = vshll.u32 %v6329_v2, 16  ;;  %v1189_v24 = vrot.slane %v1187_v13, 4  ;;  %v1004_v2 = vld [vmem:[#allocation2 + $0x54] sm:$0xf] }
 0x172   : > { %v2959_v53 = vrot.slane %v2958_v10, 4  ;;  %6507 = vmatmul.mubr.msk.bf16.gmra.mrb[8].mxu1 %vm1476_vm10, %v5967_v14  ;;  %v2954_v28 = vsel %vm7335_vm9, %v2949_v39, %v2953_v59  ;;  %v1192_v31 = vrot.slane %v1190_v16, 5  ;;  %v1196_v38 = vshll.u32 %v1003_v58, 16  ;;  %v7621_v59 = vld [vmem:[#allocation2 + $0x50] sm:$0x1]  ;;  %v445_v10 = vpop.trf.xlu1 }
 0x173   : > { %v705_v29 = vor.u32 %v703_v7, %v702_v15  ;;  %v707_v30 = vrot.slane %v702_v15, 4  ;;  %v7607_v33 = vrot.slane %v709_v22, 7  ;;  %v1200_v34 = vshrl.u32 %v1003_v58, 16 }
 0x174   : > { %v2964_v32 = vsel %vm7335_vm9, %v2959_v53, %v2963_v47  ;;  %v1193_v45 = vor.u32 %v1192_v31, %v1189_v24  ;;  %v1198_v55 = vrot.slane %v1196_v38, 5  ;;  %v2966_v62 = vshrl.u32 %v2812_v43, 16 }
 0x175   : > { %v6113_v40 = vcombine.low %v2954_v28, %v2964_v32  ;;  %v706_v41 = vsel %vm7413_vm13, %v698_v23, %v705_v29  ;;  %v939_v42 = vsel %vm7283_vm4, %v707_v30, %v938_v21  ;;  %v714_v49 = vor.u32 %v712_v18, %v7607_v33 }
 0x176   : > { %937 = vst.msk [vmem:[#allocation2 + $0x70] sm:$0xf] %vm268_vm0, %v706_v41  ;;  %940 = vst [vmem:[#allocation2 + $0x74] sm:$0x1] %v939_v42  ;;  %v715_v50 = vrot.slane %v7607_v33, 4  ;;  %v1202_v56 = vrot.slane %v1200_v34, 4  ;;  %v6330_v18 = vpack.c.bf16 %v444_v27, %v444_v27  ;;  %v6331_v24 = vpack.c.bf16 %v445_v10, %v445_v10  ;;  %v446_v27 = vpop.trf.xlu1 }
 0x177   : > { %6642 = vmatprep.mubr.msk.bf16.mxu0 %vm1476_vm10, %v6113_v40  ;;  %v1194_v57 = vrot.slane %v1193_v45, 4  ;;  %v1206_v23 = vshll.u32 %v1029_v0, 16  ;;  %v2969_v1 = vshll.u32 %v2812_v43, 16  ;;  %v942_v47 = vsel %vm7406_vm11, %v714_v49, %v941_v44  ;;  %v1005_v43 = vld [vmem:[#allocation2 + $0x58] sm:$0xf] }
 0x178   : > { %v1203_v5 = vor.u32 %v1202_v56, %v1198_v55  ;;  %v2975_v7 = vshll.u32 %v7615_v46, 16  ;;  %v2979_v35 = vshrl.u32 %v7615_v46, 16  ;;  %943 = vst [vmem:[#allocation2 + $0x78] sm:$0xf] %v942_v47  ;;  %v2968_v39 = vrot.slane %v2966_v62, 4 }
 0x179   : > { %v1199_v13 = vsel %vm7335_vm9, %v1194_v57, %v1198_v55  ;;  %v1208_v14 = vrot.slane %v1206_v23, 5  ;;  %v2971_v15 = vrot.slane %v2969_v1, 5  ;;  %v2985_v21 = vshll.u32 %v7621_v59, 16  ;;  %v1030_v41 = vld [vmem:[#allocation2 + $0x5c] sm:$0x1] }
 0x17a   : > { %v1204_v58 = vrot.slane %v1203_v5, 4  ;;  %v2977_v16 = vrot.slane %v2975_v7, 5  ;;  %v2981_v53 = vrot.slane %v2979_v35, 4  ;;  %v1211_v28 = vshrl.u32 %v1004_v2, 16  ;;  %v945_v44 = vld [vmem:[#allocation2 + $0x80] sm:$0x1] }
 0x17b   : > { %v2972_v22 = vor.u32 %v2971_v15, %v2968_v39  ;;  %v2987_v31 = vrot.slane %v2985_v21, 5  ;;  %v1214_v32 = vshll.u32 %v1004_v2, 16  ;;  %v717_v34 = vshrl.u32 %v6330_v18, 16  ;;  %v948_v23 = vld [vmem:[#allocation2 + $0x84] sm:$0xf] }
 0x17c   : > { %v1209_v29 = vsel %vm7335_vm9, %v1204_v58, %v1208_v14  ;;  %v2982_v30 = vor.u32 %v2981_v53, %v2977_v16  ;;  %v720_v40 = vshll.u32 %v6330_v18, 16  ;;  %v726_v45 = vshrl.u32 %v6331_v24, 16  ;;  %v2815_v10 = vld [vmem:[#allocation2 + $0x54] sm:$0xf]  ;;  %v7639_v15 = vld [vmem:[#allocation2 + $0x58] sm:$0xf] }
 0x17d   : > { %v5968_v0 = vcombine.low %v1199_v13, %v1209_v29  ;;  %v2973_v38 = vrot.slane %v2972_v22, 4  ;;  %v729_v49 = vshll.u32 %v6331_v24, 16  ;;  %v1213_v55 = vrot.slane %v1211_v28, 4  ;;  %v7641_v58 = vld [vmem:[#allocation2 + $0x5c] sm:$0x1] }
 0x17e   : > { %v2983_v42 = vrot.slane %v2982_v30, 4  ;;  %v719_v57 = vrot.slane %v717_v34, 7  ;;  %v1216_v62 = vrot.slane %v1214_v32, 5  ;;  %v1220_v1 = vshll.u32 %v1005_v43, 16 }
 0x17f   : > { %6510 = vmatprep.mubr.msk.bf16.mxu1 %vm1476_vm10, %v5968_v0  ;;  %v2978_v56 = vsel %vm7335_vm9, %v2973_v38, %v2977_v16  ;;  %v7637_v5 = vrot.slane %v726_v45, 7  ;;  %v1224_v7 = vshrl.u32 %v1005_v43, 16  ;;  %v1230_v35 = vshll.u32 %v1030_v41, 16  ;;  %v447_v0 = vpop.trf.xlu1 }
 0x180   : > { %v2988_v47 = vsel %vm7335_vm9, %v2983_v42, %v2987_v31  ;;  %v722_v13 = vor.u32 %v720_v40, %v719_v57  ;;  %v724_v14 = vrot.slane %v719_v57, 4  ;;  %v1217_v39 = vor.u32 %v1216_v62, %v1213_v55  ;;  %v1006_v57 = vld [vmem:[#allocation2 + $0x60] sm:$0xf] }
 0x181   : > { %v6114_v2 = vcombine.low %v2978_v56, %v2988_v47  ;;  %v731_v16 = vor.u32 %v729_v49, %v7637_v5  ;;  %v732_v53 = vrot.slane %v7637_v5, 4  ;;  %v1222_v21 = vrot.slane %v1220_v1, 5 }
 0x182   : > { %v1226_v22 = vrot.slane %v1224_v7, 4  ;;  %v723_v18 = vsel %vm7413_vm13, %v715_v50, %v722_v13  ;;  %v946_v24 = vsel %vm7283_vm4, %v724_v14, %v945_v44  ;;  %v1218_v28 = vrot.slane %v1217_v39, 4  ;;  %v1007_v7 = vld [vmem:[#allocation2 + $0x64] sm:$0xf] }
 0x183   : > { %6643 = vmatmul.mubr.msk.bf16.gmra.mrb[8].mxu0 %vm1476_vm10, %v6114_v2  ;;  %v1232_v29 = vrot.slane %v1230_v35, 5  ;;  %944 = vst.msk [vmem:[#allocation2 + $0x7c] sm:$0xf] %vm268_vm0, %v723_v18  ;;  %947 = vst [vmem:[#allocation2 + $0x80] sm:$0x1] %v946_v24  ;;  %v949_v30 = vsel %vm7406_vm11, %v731_v16, %v948_v23  ;;  %v2990_v43 = vshrl.u32 %v2815_v10, 16  ;;  %v6332_v44 = vpack.c.bf16 %v446_v27, %v446_v27 }
 0x184   : > { %v1227_v31 = vor.u32 %v1226_v22, %v1222_v21  ;;  %v2993_v32 = vshll.u32 %v2815_v10, 16  ;;  %950 = vst [vmem:[#allocation2 + $0x84] sm:$0xf] %v949_v30  ;;  %v1223_v33 = vsel %vm7335_vm9, %v1218_v28, %v1222_v21  ;;  %v2999_v50 = vshll.u32 %v7639_v15, 16  ;;  %v952_v22 = vld [vmem:[#allocation2 + $0x8c] sm:$0x1] }
 0x185   : > { %v3003_v38 = vshrl.u32 %v7639_v15, 16  ;;  %v3009_v34 = vshll.u32 %v7641_v58, 16  ;;  %v2992_v41 = vrot.slane %v2990_v43, 4  ;;  %v6333_v56 = vpack.c.bf16 %v447_v0, %v447_v0  ;;  %v1031_v0 = vld [vmem:[#allocation2 + $0x68] sm:$0x1] }
 0x186   : > { %v1228_v40 = vrot.slane %v1227_v31, 4  ;;  %v2995_v42 = vrot.slane %v2993_v32, 5  ;;  %v3001_v45 = vrot.slane %v2999_v50, 5  ;;  %v734_v1 = vshrl.u32 %v6332_v44, 16  ;;  %v955_v32 = vld [vmem:[#allocation2 + $0x90] sm:$0xf] }
 0x187   : > { %v3005_v49 = vrot.slane %v3003_v38, 4  ;;  %v3011_v55 = vrot.slane %v3009_v34, 5  ;;  %v737_v47 = vshll.u32 %v6332_v44, 16  ;;  %v743_v2 = vshrl.u32 %v6333_v56, 16 }
 0x188   : > { %v1233_v23 = vsel %vm7335_vm9, %v1228_v40, %v1232_v29  ;;  %v2996_v62 = vor.u32 %v2995_v42, %v2992_v41  ;;  %v746_v13 = vshll.u32 %v6333_v56, 16  ;;  %v736_v27 = vrot.slane %v734_v1, 7  ;;  %v448_v29 = vpop.trf.xlu1  ;;  %v2818_v41 = vld [vmem:[#allocation2 + $0x60] sm:$0xf]  ;;  %v7671_v42 = vld [vmem:[#allocation2 + $0x64] sm:$0xf] }
 0x189   : > { %v5969_v35 = vcombine.low %v1223_v33, %v1233_v23  ;;  %v3006_v10 = vor.u32 %v3005_v49, %v3001_v45  ;;  %v1235_v39 = vshrl.u32 %v1006_v57, 16  ;;  %v1238_v16 = vshll.u32 %v1006_v57, 16  ;;  %v7679_v57 = vld [vmem:[#allocation2 + $0x68] sm:$0x1] }
 0x18a   : > { %v2997_v14 = vrot.slane %v2996_v62, 4  ;;  %v7663_v18 = vrot.slane %v743_v2, 7  ;;  %v1244_v24 = vshll.u32 %v1007_v7, 16  ;;  %v1248_v28 = vshrl.u32 %v1007_v7, 16 }
 0x18b   : > { %6511 = vmatmul.mubr.msk.bf16.gmra.mrb[12].mxu1 %vm1476_vm10, %v5969_v35  ;;  %v3007_v21 = vrot.slane %v3006_v10, 4  ;;  %v739_v31 = vor.u32 %v737_v47, %v736_v27  ;;  %v741_v43 = vrot.slane %v736_v27, 4  ;;  %v1237_v33 = vrot.slane %v1235_v39, 4  ;;  %v3523_v35 = vld [vmem:[#allocation2 + $0xc] sm:$0xe] }
 0x18c   : > { %v3002_v30 = vsel %vm7335_vm9, %v2997_v14, %v3001_v45  ;;  %v748_v38 = vor.u32 %v746_v13, %v7663_v18  ;;  %v749_v34 = vrot.slane %v7663_v18, 4  ;;  %v1240_v40 = vrot.slane %v1238_v16, 5  ;;  %v449_v27 = vpop.trf.xlu1 }
 0x18d   : > { %v3012_v50 = vsel %vm7335_vm9, %v3007_v21, %v3011_v55  ;;  %v740_v45 = vsel %vm7413_vm13, %v732_v53, %v739_v31  ;;  %v953_v49 = vsel %vm7283_vm4, %v741_v43, %v952_v22  ;;  %v1246_v56 = vrot.slane %v1244_v24, 5  ;;  %v2821_v24 = vld [vmem:[#allocation2 + $0x6c] sm:$0xf] }
 0x18e   : > { %v6115_v44 = vcombine.low %v3002_v30, %v3012_v50  ;;  %951 = vst.msk [vmem:[#allocation2 + $0x88] sm:$0xf] %vm268_vm0, %v740_v45  ;;  %954 = vst [vmem:[#allocation2 + $0x8c] sm:$0x1] %v953_v49  ;;  %v956_v55 = vsel %vm7406_vm11, %v748_v38, %v955_v32  ;;  %v1241_v23 = vor.u32 %v1240_v40, %v1237_v33  ;;  %v1250_v62 = vrot.slane %v1248_v28, 4 }
 0x18f   : > { %v1254_v1 = vshll.u32 %v1031_v0, 16  ;;  %957 = vst [vmem:[#allocation2 + $0x90] sm:$0xf] %v956_v55  ;;  %v3014_v5 = vshrl.u32 %v2818_v41, 16  ;;  %v3017_v53 = vshll.u32 %v2818_v41, 16  ;;  %v3023_v47 = vshll.u32 %v7671_v42, 16 }
 0x190   : > { %6646 = vmatprep.mubr.msk.bf16.mxu0 %vm1476_vm10, %v6115_v44  ;;  %v3027_v7 = vshrl.u32 %v7671_v42, 16  ;;  %v1242_v10 = vrot.slane %v1241_v23, 4  ;;  %v1251_v2 = vor.u32 %v1250_v62, %v1246_v56  ;;  %v3033_v14 = vshll.u32 %v7679_v57, 16  ;;  %v7694_v28 = vld [vmem:[#allocation2 + $0x6c] sm:$0xf] }
 0x191   : > { %v1256_v13 = vrot.slane %v1254_v1, 5  ;;  %v3016_v39 = vrot.slane %v3014_v5, 4  ;;  %v3019_v16 = vrot.slane %v3017_v53, 5  ;;  %v3025_v21 = vrot.slane %v3023_v47, 5  ;;  %v3524_v62 = vld [vmem:[#allocation2 + $0x18] sm:$0xe] }
 0x192   : > { %v3029_v22 = vrot.slane %v3027_v7, 4  ;;  %v1247_v30 = vsel %vm7335_vm9, %v1242_v10, %v1246_v56  ;;  %v1252_v31 = vrot.slane %v1251_v2, 4  ;;  %v3035_v43 = vrot.slane %v3033_v14, 5  ;;  %v1032_v47 = vld [vmem:[#allocation2 + $0x74] sm:$0x1] }
 0x193   : > { %v6141_v32 = vrot.slane %v3523_v35, 9  ;;  %v3020_v0 = vor.u32 %v3019_v16, %v3016_v39  ;;  %v3591_v50 = vrot.slane %v3589_v48, 4  ;;  %v6334_v38 = vpack.c.bf16 %v448_v29, %v448_v29  ;;  %v7711_v29 = vld [vmem:[#allocation2 + $0x70] sm:$0xf]  ;;  %v959_v35 = vld [vmem:[#allocation2 + $0x98] sm:$0x1] }
 0x194   : > { %v3030_v33 = vor.u32 %v3029_v22, %v3025_v21  ;;  %v1257_v40 = vsel %vm7335_vm9, %v1252_v31, %v1256_v13  ;;  %v6335_v44 = vpack.c.bf16 %v449_v27, %v449_v27  ;;  %v1259_v45 = vshrl.u32 %v7694_v28, 16  ;;  %v962_v14 = vld [vmem:[#allocation2 + $0x9c] sm:$0xf] }
 0x195   : > { %v3590_v41 = vsel %vm7690_vm1, %v6141_v32, %v3589_v48  ;;  %v5970_v49 = vcombine.low %v1247_v30, %v1257_v40  ;;  %v3021_v56 = vrot.slane %v3020_v0, 4  ;;  %v3593_v23 = vsel %vm7690_vm1, %v3591_v50, %v3592_v52  ;;  %v450_v48 = vpop.trf.xlu1 }
 0x196   : > { %v3031_v55 = vrot.slane %v3030_v33, 4  ;;  %v6158_v1 = vcombine.low %v3590_v41, %v3593_v23  ;;  %v751_v5 = vshrl.u32 %v6334_v38, 16  ;;  %v754_v8 = vshll.u32 %v6334_v38, 16  ;;  %v3525_v33 = vld [vmem:[#allocation2 + $0x24] sm:$0xe] }
 0x197   : > { %v760_v53 = vshrl.u32 %v6335_v44, 16  ;;  %6514 = vmatprep.mubr.msk.bf16.mxu1 %vm1476_vm10, %v5970_v49  ;;  %v3026_v7 = vsel %vm7335_vm9, %v3021_v56, %v3025_v21  ;;  %v763_v10 = vshll.u32 %v6335_v44, 16  ;;  %v1261_v52 = vrot.slane %v1259_v45, 4  ;;  %v7739_v23 = vld [vmem:[#allocation2 + $0x78] sm:$0xf] }
 0x198   : > { %v3036_v17 = vsel %vm7335_vm9, %v3031_v55, %v3035_v43  ;;  %v753_v13 = vrot.slane %v751_v5, 7  ;;  %v1262_v39 = vshll.u32 %v7694_v28, 16  ;;  %v1268_v16 = vshll.u32 %v7711_v29, 16  ;;  %v3534_v3 = vld [vmem:[#allocation2 + $0x90] sm:$0xe] }
 0x199   : > { %v6116_v2 = vcombine.low %v3026_v7, %v3036_v17  ;;  %v7718_v27 = vrot.slane %v760_v53, 7  ;;  %v1272_v22 = vshrl.u32 %v7711_v29, 16  ;;  %v1278_v30 = vshll.u32 %v1032_v47, 16  ;;  %v451_v55 = vpop.trf.xlu1 }
 0x19a   : > { %v6142_v31 = vrot.slane %v3524_v62, 9  ;;  %v756_v21 = vor.u32 %v754_v8, %v753_v13  ;;  %v758_v43 = vrot.slane %v753_v13, 4  ;;  %v1264_v50 = vrot.slane %v1262_v39, 5  ;;  %v966_v39 = vld [vmem:[#allocation2 + $0xa4] sm:$0x1] }
 0x19b   : > { %6647 = vmatmul.mubr.msk.bf16.gmra.mrb[12].mxu0 %vm1476_vm10, %v6116_v2  ;;  %v765_v32 = vor.u32 %v763_v10, %v7718_v27  ;;  %v766_v0 = vrot.slane %v7718_v27, 4  ;;  %v1270_v38 = vrot.slane %v1268_v16, 5  ;;  %v1274_v40 = vrot.slane %v1272_v22, 4  ;;  %v7752_v2 = vld [vmem:[#allocation2 + $0x7c] sm:$0xf] }
 0x19c   : > { %6668 = vmatprep.mubr.msk.bf16.mxu0 %vm1476_vm10, %v6158_v1  ;;  %v1280_v41 = vrot.slane %v1278_v30, 5  ;;  %v757_v44 = vsel %vm7413_vm13, %v749_v34, %v756_v21  ;;  %v960_v45 = vsel %vm7283_vm4, %v758_v43, %v959_v35  ;;  %v3597_v56 = vsel %vm7690_vm1, %v6142_v31, %v3596_v9  ;;  %v969_v31 = vld [vmem:[#allocation2 + $0xa8] sm:$0xf]  ;;  %v325_v27 = vld [vmem:[#allocation2 + $0xb4] sm:$0x1] }
 0x19d   : > { %v963_v49 = vsel %vm7406_vm11, %v765_v32, %v962_v14  ;;  %958 = vst.msk [vmem:[#allocation2 + $0x94] sm:$0xf] %vm268_vm0, %v757_v44  ;;  %961 = vst [vmem:[#allocation2 + $0x98] sm:$0x1] %v960_v45  ;;  %v1265_v18 = vor.u32 %v1264_v50, %v1261_v52  ;;  %v1275_v34 = vor.u32 %v1274_v40, %v1270_v38  ;;  %v6143_v1 = vrot.slane %v3525_v33, 9  ;;  %v452_v33 = vpop.trf.xlu1 }
 0x19e   : > { %964 = vst [vmem:[#allocation2 + $0x9c] sm:$0xf] %v963_v49  ;;  %v3600_v62 = vsel %vm7690_vm1, %v7506_v19, %v3599_v36  ;;  %v3603_v5 = vrot.slane %v7518_v54, 5  ;;  %v3606_v9 = vrot.slane %v7521_v63, 5  ;;  %v6336_v8 = vpack.c.bf16 %v450_v48, %v450_v48  ;;  %v1033_v48 = vld [vmem:[#allocation2 + $0x80] sm:$0x1] }
 0x19f   : > { %v6159_v20 = vcombine.low %v3597_v56, %v3600_v62  ;;  %v1266_v53 = vrot.slane %v1265_v18, 4  ;;  %v1276_v47 = vrot.slane %v1275_v34, 4  ;;  %v6337_v7 = vpack.c.bf16 %v451_v55, %v451_v55  ;;  %v3526_v44 = vld [vmem:[#allocation2 + $0x30] sm:$0xe]  ;;  %v3527_v18 = vld [vmem:[#allocation2 + $0x3c] sm:$0xe] }
 0x1a0   : > { %v1283_v17 = vshrl.u32 %v7739_v23, 16  ;;  %v3604_v35 = vsel %vm7690_vm1, %v6143_v1, %v3603_v5  ;;  %v3605_v37 = vrot.slane %v3603_v5, 4  ;;  %v768_v10 = vshrl.u32 %v6336_v8, 16 }
 0x1a1   : > { %v771_v52 = vshll.u32 %v6336_v8, 16  ;;  %v1271_v36 = vsel %vm7335_vm9, %v1266_v53, %v1270_v38  ;;  %v1281_v19 = vsel %vm7335_vm9, %v1276_v47, %v1280_v41  ;;  %v777_v54 = vshrl.u32 %v6337_v7, 16  ;;  %v378_v47 = vld [vmem:[#allocation2 + $0xb0] sm:$0x1] }
 0x1a2   : > { %v780_v63 = vshll.u32 %v6337_v7, 16  ;;  %v5971_v13 = vcombine.low %v1271_v36, %v1281_v19  ;;  %v3607_v14 = vsel %vm7690_vm1, %v3605_v37, %v3606_v9  ;;  %v770_v16 = vrot.slane %v768_v10, 7  ;;  %v453_v19 = vpop.trf.xlu1 }
 0x1a3   : > { %6669 = vmatmul.mubr.msk.bf16.vlgmr.msra.gmra.mrb[0].mxu0 %vm1476_vm10, %v6159_v20  ;;  %v1285_v22 = vrot.slane %v1283_v17, 4  ;;  %v6160_v30 = vcombine.low %v3604_v35, %v3607_v14  ;;  %v7761_v21 = vrot.slane %v777_v54, 7  ;;  %v1286_v43 = vshll.u32 %v7739_v23, 16  ;;  %v7795_v14 = vld [vmem:[#allocation2 + $0x84] sm:$0xf] }
 0x1a4   : > { %v1292_v32 = vshll.u32 %v7752_v2, 16  ;;  %6515 = vmatmul.mubr.msk.bf16.gmra.mrb[16].mxu1 %vm1476_vm10, %v5971_v13  ;;  %v773_v50 = vor.u32 %v771_v52, %v770_v16  ;;  %v775_v38 = vrot.slane %v770_v16, 4  ;;  %v1296_v40 = vshrl.u32 %v7752_v2, 16 }
 0x1a5   : > { %v1302_v41 = vshll.u32 %v1033_v48, 16  ;;  %6672 = vmatprep.mubr.msk.bf16.mxu0 %vm1476_vm10, %v6160_v30  ;;  %v782_v45 = vor.u32 %v780_v63, %v7761_v21  ;;  %v783_v49 = vrot.slane %v7761_v21, 4  ;;  %v1288_v56 = vrot.slane %v1286_v43, 5  ;;  %v1034_v43 = vld [vmem:[#allocation2 + $0x8c] sm:$0x1] }
 0x1a6   : > { %v1294_v55 = vrot.slane %v1292_v32, 5  ;;  %v774_v34 = vsel %vm7413_vm13, %v766_v0, %v773_v50  ;;  %v967_v62 = vsel %vm7283_vm4, %v775_v38, %v966_v39  ;;  %v1298_v1 = vrot.slane %v1296_v40, 4  ;;  %v3528_v40 = vld [vmem:[#allocation2 + $0x48] sm:$0xe] }
 0x1a7   : > { %v1304_v20 = vrot.slane %v1302_v41, 5  ;;  %965 = vst.msk [vmem:[#allocation2 + $0xa0] sm:$0xf] %vm268_vm0, %v774_v34  ;;  %968 = vst [vmem:[#allocation2 + $0xa4] sm:$0x1] %v967_v62  ;;  %v970_v5 = vsel %vm7406_vm11, %v782_v45, %v969_v31  ;;  %v1289_v9 = vor.u32 %v1288_v56, %v1285_v22  ;;  %v6144_v8 = vrot.slane %v3526_v44, 9 }
 0x1a8   : > { %v3610_v53 = vrot.slane %v7545_v6, 5  ;;  %971 = vst [vmem:[#allocation2 + $0xa8] sm:$0xf] %v970_v5  ;;  %v1299_v7 = vor.u32 %v1298_v1, %v1294_v55  ;;  %v3613_v0 = vrot.slane %v7555_v12, 5  ;;  %v6145_v17 = vrot.slane %v3527_v18, 9 }
 0x1a9   : > { %v3617_v35 = vrot.slane %v7577_v25, 5  ;;  %v1290_v37 = vrot.slane %v1289_v9, 4  ;;  %v3620_v36 = vrot.slane %v7579_v26, 5  ;;  %v379_v48 = vsel %vm7289_vm5, 0, %v378_v47  ;;  %v7801_v31 = vld [vmem:[#allocation2 + $0x88] sm:$0xf] }
 0x1aa   : > { %v3611_v10 = vsel %vm7690_vm1, %v6144_v8, %v3610_v53  ;;  %v3612_v52 = vrot.slane %v3610_v53, 4  ;;  %v1300_v54 = vrot.slane %v1299_v7, 4  ;;  %380 = vst [vmem:[#allocation2 + $0xb0] sm:$0x1] %v379_v48  ;;  %v6338_v13 = vpack.c.bf16 %v452_v33, %v452_v33  ;;  %v3529_v7 = vld [vmem:[#allocation2 + $0x54] sm:$0xe]  ;;  %v454_v48 = vpop.trf.xlu1 }
 0x1ab   : > { %v3618_v6 = vsel %vm7690_vm1, %v6145_v17, %v3617_v35  ;;  %v3619_v63 = vrot.slane %v3617_v35, 4  ;;  %v1295_v12 = vsel %vm7335_vm9, %v1290_v37, %v1294_v55  ;;  %v326_v26 = vsel %vm7283_vm4, 0, %v325_v27 }
 0x1ac   : > { %v3614_v25 = vsel %vm7690_vm1, %v3612_v52, %v3613_v0  ;;  %v1305_v39 = vsel %vm7335_vm9, %v1300_v54, %v1304_v20  ;;  %327 = vst [vmem:[#allocation2 + $0xb4] sm:$0x1] %v326_v26  ;;  %v6339_v30 = vpack.c.bf16 %v453_v19, %v453_v19  ;;  %v785_v33 = vshrl.u32 %v6338_v13, 16 }
 0x1ad   : > { %v6161_v16 = vcombine.low %v3611_v10, %v3614_v25  ;;  %v3621_v22 = vsel %vm7690_vm1, %v3619_v63, %v3620_v36  ;;  %v5972_v32 = vcombine.low %v1295_v12, %v1305_v39  ;;  %v788_v38 = vshll.u32 %v6338_v13, 16  ;;  %v381_v63 = vld [vmem:[#allocation2 + $0xbc] sm:$0x1] }
 0x1ae   : > { %v6162_v50 = vcombine.low %v3618_v6, %v3621_v22  ;;  %v794_v41 = vshrl.u32 %v6339_v30, 16  ;;  %v797_v44 = vshll.u32 %v6339_v30, 16  ;;  %v1307_v45 = vshrl.u32 %v7795_v14, 16 }
 0x1af   : > { %6673 = vmatmul.mubr.msk.bf16.gmra.mrb[4].mxu0 %vm1476_vm10, %v6161_v16  ;;  %v1310_v56 = vshll.u32 %v7795_v14, 16  ;;  %6518 = vmatprep.mubr.msk.bf16.mxu1 %vm1476_vm10, %v5972_v32  ;;  %v787_v55 = vrot.slane %v785_v33, 7  ;;  %v1316_v18 = vshll.u32 %v7801_v31, 16  ;;  %v1320_v34 = vshrl.u32 %v7801_v31, 16  ;;  %v7833_v32 = vld [vmem:[#allocation2 + $0x90] sm:$0xf] }
 0x1b0   : > { %6676 = vmatprep.mubr.msk.bf16.mxu0 %vm1476_vm10, %v6162_v50  ;;  %v1326_v62 = vshll.u32 %v1034_v43, 16  ;;  %v7810_v1 = vrot.slane %v794_v41, 7  ;;  %v1309_v20 = vrot.slane %v1307_v45, 4  ;;  %v6146_v9 = vrot.slane %v3528_v40, 9  ;;  %v7910_v51 = vld [vmem:[#allocation2 + $0xa8] sm:$0xf] }
 0x1b1   : > { %v1312_v5 = vrot.slane %v1310_v56, 5  ;;  %v790_v8 = vor.u32 %v788_v38, %v787_v55  ;;  %v792_v53 = vrot.slane %v787_v55, 4  ;;  %v1318_v47 = vrot.slane %v1316_v18, 5  ;;  %v973_v0 = vld [vmem:[#allocation2 + $0xb0] sm:$0x1] }
 0x1b2   : > { %v1322_v27 = vrot.slane %v1320_v34, 4  ;;  %v799_v17 = vor.u32 %v797_v44, %v7810_v1  ;;  %v800_v35 = vrot.slane %v7810_v1, 4  ;;  %v1328_v10 = vrot.slane %v1326_v62, 5  ;;  %v3530_v56 = vld [vmem:[#allocation2 + $0x60] sm:$0xe] }
 0x1b3   : > { %v1313_v37 = vor.u32 %v1312_v5, %v1309_v20  ;;  %v791_v52 = vsel %vm7413_vm13, %v783_v49, %v790_v8  ;;  %v974_v36 = vsel %vm7283_vm4, %v792_v53, %v973_v0  ;;  %v976_v19 = vld [vmem:[#allocation2 + $0xb4] sm:$0xf]  ;;  %v3624_v6 = vrot.slane %v7615_v46, 5  ;;  %v3531_v53 = vld [vmem:[#allocation2 + $0x6c] sm:$0xe] }
 0x1b4   : > { %v1323_v54 = vor.u32 %v1322_v27, %v1318_v47  ;;  %972 = vst.msk [vmem:[#allocation2 + $0xac] sm:$0xf] %vm268_vm0, %v791_v52  ;;  %975 = vst [vmem:[#allocation2 + $0xb0] sm:$0x1] %v974_v36  ;;  %v977_v12 = vsel %vm7406_vm11, %v799_v17, %v976_v19  ;;  %v3627_v21 = vrot.slane %v7621_v59, 5  ;;  %v6147_v13 = vrot.slane %v3529_v7, 9 }
 0x1b5   : > { %v1314_v25 = vrot.slane %v1313_v37, 4  ;;  %978 = vst [vmem:[#allocation2 + $0xb4] sm:$0xf] %v977_v12  ;;  %v3625_v26 = vsel %vm7690_vm1, %v6146_v9, %v3624_v6  ;;  %v3626_v39 = vrot.slane %v3624_v6, 4  ;;  %v3631_v46 = vrot.slane %v7639_v15, 5  ;;  %v455_v37 = vpop.trf.xlu1 }
 0x1b6   : > { %v1324_v49 = vrot.slane %v1323_v54, 4  ;;  %v3634_v22 = vrot.slane %v7641_v58, 5  ;;  %v382_v30 = vsel %vm7289_vm5, 0, %v381_v63  ;;  %v6340_v43 = vpack.c.bf16 %v454_v48, %v454_v48  ;;  %v7835_v59 = vld [vmem:[#allocation2 + $0x94] sm:$0xf] }
 0x1b7   : > { %v1319_v16 = vsel %vm7335_vm9, %v1314_v25, %v1318_v47  ;;  %v3628_v33 = vsel %vm7690_vm1, %v3626_v39, %v3627_v21  ;;  %v3632_v15 = vsel %vm7690_vm1, %v6147_v13, %v3631_v46  ;;  %v3633_v38 = vrot.slane %v3631_v46, 4  ;;  %383 = vst [vmem:[#allocation2 + $0xbc] sm:$0x1] %v382_v30  ;;  %v1035_v58 = vld [vmem:[#allocation2 + $0x98] sm:$0x1] }
 0x1b8   : > { %v1329_v50 = vsel %vm7335_vm9, %v1324_v49, %v1328_v10  ;;  %v6163_v41 = vcombine.low %v3625_v26, %v3628_v33  ;;  %v802_v44 = vshrl.u32 %v6340_v43, 16  ;;  %v805_v45 = vshll.u32 %v6340_v43, 16  ;;  %v2822_v17 = vld [vmem:[#allocation2 + $0x70] sm:$0xf]  ;;  %v7855_v54 = vld [vmem:[%s9224_s3 + $0xe] sm:$0x3] }
 0x1b9   : > { %v5973_v40 = vcombine.low %v1319_v16, %v1329_v50  ;;  %v3635_v55 = vsel %vm7690_vm1, %v3633_v38, %v3634_v22  ;;  %v1331_v18 = vshrl.u32 %v7833_v32, 16  ;;  %v1334_v34 = vshll.u32 %v7833_v32, 16  ;;  %v7154_v12 = vld [vmem:[%s9224_s3 + $0xc] sm:$0x3]  ;;  %v2823_v21 = vld [vmem:[#allocation2 + $0x74] sm:$0x1] }
 0x1ba   : > { %v1340_v62 = vshll.u32 %v7835_v59, 16  ;;  %6677 = vmatmul.mubr.msk.bf16.gmra.mrb[8].mxu0 %vm1476_vm10, %v6163_v41  ;;  %v6164_v20 = vcombine.low %v3632_v15, %v3635_v55  ;;  %v804_v5 = vrot.slane %v802_v44, 7  ;;  %v1344_v9 = vshrl.u32 %v7835_v59, 16  ;;  %v384_v43 = vld [vmem:[#allocation2 + $0xc8] sm:$0x1]  ;;  %v456_v44 = vpop.trf.xlu1 }
 0x1bb   : > { %6519 = vmatmul.mubr.msk.bf16.gmra.mrb[20].mxu1 %vm1476_vm10, %v5973_v40  ;;  %v1350_v8 = vshll.u32 %v1035_v58, 16  ;;  %v1333_v47 = vrot.slane %v1331_v18, 4  ;;  %v1336_v27 = vrot.slane %v1334_v34, 5  ;;  %v6148_v0 = vrot.slane %v3530_v56, 9  ;;  %v7872_v1 = vld [vmem:[#allocation2 + $0x9c] sm:$0xf] }
 0x1bc   : > { %v1342_v7 = vrot.slane %v1340_v62, 5  ;;  %6680 = vmatprep.mubr.msk.bf16.mxu0 %vm1476_vm10, %v6164_v20  ;;  %v807_v10 = vor.u32 %v805_v45, %v804_v5  ;;  %v809_v52 = vrot.slane %v804_v5, 4  ;;  %v1346_v36 = vrot.slane %v1344_v9, 4  ;;  %v7884_v45 = vld [vmem:[#allocation2 + $0xa0] sm:$0xf] }
 0x1bd   : > { %v1352_v19 = vrot.slane %v1350_v8, 5  ;;  %v1337_v6 = vor.u32 %v1336_v27, %v1333_v47  ;;  %v3638_v63 = vrot.slane %v7671_v42, 5  ;;  %v3641_v48 = vrot.slane %v7679_v57, 5  ;;  %v328_v42 = vld [vmem:[#allocation2 + $0xc0] sm:$0x1] }
 0x1be   : > { %v4157_v25 = vsel %vm1525_vm8, %v7154_v12, 0  ;;  %v980_v13 = vld [vmem:[#allocation2 + $0xbc] sm:$0x1]  ;;  %v808_v49 = vsel %vm7413_vm13, %v800_v35, %v807_v10  ;;  %v1347_v26 = vor.u32 %v1346_v36, %v1342_v7  ;;  %v6149_v39 = vrot.slane %v3531_v53, 9  ;;  %v1036_v8 = vld [vmem:[#allocation2 + $0xa4] sm:$0x1] }
 0x1bf   : > { %6701 = vmatpush3.bf16.msra.mxu0 %v4157_v25  ;;  %v3645_v46 = vrot.slane %v2822_v17, 5  ;;  %979 = vst.msk [vmem:[#allocation2 + $0xb8] sm:$0xf] %vm268_vm0, %v808_v49  ;;  %v981_v57 = vsel %vm7283_vm4, %v809_v52, %v980_v13  ;;  %v1338_v16 = vrot.slane %v1337_v6, 4  ;;  %v3639_v22 = vsel %vm7690_vm1, %v6148_v0, %v3638_v63  ;;  %v3532_v13 = vld [vmem:[#allocation2 + $0x78] sm:$0xe] }
 0x1c0   : > { %v3640_v30 = vrot.slane %v3638_v63, 4  ;;  %7068 = vmatprep.subr.msk.bf16.mxu0 %vm1525_vm8, %v7855_v54  ;;  %982 = vst [vmem:[#allocation2 + $0xbc] sm:$0x1] %v981_v57  ;;  %v1348_v35 = vrot.slane %v1347_v26, 4  ;;  %v3648_v15 = vrot.slane %v2823_v21, 5  ;;  %v329_v40 = vsel %vm7283_vm4, 0, %v328_v42 }
 0x1c1   : > { %v3646_v50 = vsel %vm7690_vm1, %v6149_v39, %v3645_v46  ;;  %v3647_v33 = vrot.slane %v3645_v46, 4  ;;  %v1343_v38 = vsel %vm7335_vm9, %v1338_v16, %v1342_v7  ;;  %v6341_v41 = vpack.c.bf16 %v455_v37, %v455_v37  ;;  %330 = vst [vmem:[#allocation2 + $0xc0] sm:$0x1] %v329_v40  ;;  %v7899_v21 = vld [vmem:[#allocation2 + $0x7c] sm:$0xf] }
 0x1c2   : > { %v3642_v58 = vsel %vm7690_vm1, %v3640_v30, %v3641_v48  ;;  %v1353_v56 = vsel %vm7335_vm9, %v1348_v35, %v1352_v19  ;;  %v385_v34 = vsel %vm7289_vm5, 0, %v384_v43  ;;  %v6342_v53 = vpack.c.bf16 %v456_v44, %v456_v44  ;;  %v7901_v39 = vld [vmem:[#allocation2 + $0x80] sm:$0x1]  ;;  %v3533_v46 = vld [vmem:[#allocation2 + $0x84] sm:$0xe] }
 0x1c3   : > { %v6165_v55 = vcombine.low %v3639_v22, %v3642_v58  ;;  %v3649_v18 = vsel %vm7690_vm1, %v3647_v33, %v3648_v15  ;;  %v5974_v62 = vcombine.low %v1343_v38, %v1353_v56  ;;  %v811_v5 = vshrl.u32 %v6341_v41, 16  ;;  %386 = vst [vmem:[#allocation2 + $0xc8] sm:$0x1] %v385_v34  ;;  %v2828_v43 = vld [vmem:[#allocation2 + $0x88] sm:$0xf] }
 0x1c4   : > { %v6166_v20 = vcombine.low %v3646_v50, %v3649_v18  ;;  %v814_v9 = vshll.u32 %v6341_v41, 16  ;;  %v1355_v47 = vshrl.u32 %v7872_v1, 16  ;;  %v1358_v27 = vshll.u32 %v7872_v1, 16  ;;  %v2829_v40 = vld [vmem:[#allocation2 + $0x8c] sm:$0x1] }
 0x1c5   : > { %6681 = vmatmul.mubr.msk.bf16.gmra.mrb[12].mxu0 %vm1476_vm10, %v6165_v55  ;;  %v1364_v7 = vshll.u32 %v7884_v45, 16  ;;  %6522 = vmatprep.mubr.msk.bf16.mxu1 %vm1476_vm10, %v5974_v62  ;;  %v813_v4 = vrot.slane %v811_v5, 7  ;;  %v1368_v0 = vshrl.u32 %v7884_v45, 16  ;;  %v819_v17 = vshrl.u32 %v6342_v53, 16  ;;  %v7918_v55 = vld [vmem:[#allocation2 + $0xac] sm:$0xf] }
 0x1c6   : > { %6684 = vmatprep.mubr.msk.bf16.mxu0 %vm1476_vm10, %v6166_v20  ;;  %v822_v37 = vshll.u32 %v6342_v53, 16  ;;  %v1357_v10 = vrot.slane %v1355_v47, 4  ;;  %v1360_v52 = vrot.slane %v1358_v27, 5  ;;  %v1374_v63 = vshll.u32 %v1036_v8, 16  ;;  %v1037_v5 = vld [vmem:[#allocation2 + $0xb0] sm:$0x1] }
 0x1c7   : > { %v816_v36 = vor.u32 %v814_v9, %v813_v4  ;;  %v1366_v19 = vrot.slane %v1364_v7, 5  ;;  %v1370_v6 = vrot.slane %v1368_v0, 4  ;;  %v817_v48 = vrot.slane %v813_v4, 4  ;;  %v2831_v9 = vld [vmem:[#allocation2 + $0x94] sm:$0xf] }
 0x1c8   : > { %v821_v12 = vrot.slane %v819_v17, 7  ;;  %v1361_v25 = vor.u32 %v1360_v52, %v1357_v10  ;;  %v983_v49 = vld [vmem:[#allocation2 + $0xc0] sm:$0xf]  ;;  %v1376_v50 = vrot.slane %v1374_v63, 5  ;;  %v3652_v33 = vrot.slane %v7899_v21, 5 }
 0x1c9   : > { %v1371_v26 = vor.u32 %v1370_v6, %v1366_v19  ;;  %v984_v42 = vsel %vm7406_vm11, %v816_v36, %v983_v49  ;;  %v6150_v58 = vrot.slane %v3532_v13, 9  ;;  %v3655_v61 = vrot.slane %v7901_v39, 5  ;;  %v2832_v7 = vld [vmem:[#allocation2 + $0x98] sm:$0x1]  ;;  %v2834_v10 = vld [vmem:[#allocation2 + $0xa0] sm:$0xf] }
 0x1ca   : > { %v987_v57 = vld [vmem:[#allocation2 + $0xc8] sm:$0x1]  ;;  %v824_v16 = vor.u32 %v822_v37, %v821_v12  ;;  %v826_v22 = vrot.slane %v821_v12, 4  ;;  %v1362_v30 = vrot.slane %v1361_v25, 4  ;;  %985 = vst [vmem:[#allocation2 + $0xc0] sm:$0xf] %v984_v42 }
 0x1cb   : > { %v1372_v35 = vrot.slane %v1371_v26, 4  ;;  %v3654_v56 = vrot.slane %v3652_v33, 4  ;;  %v3653_v34 = vsel %vm7690_vm1, %v6150_v58, %v3652_v33  ;;  %v6151_v62 = vrot.slane %v3533_v46, 9  ;;  %v3535_v52 = vld [vmem:[#allocation2 + $0x9c] sm:$0xe] }
 0x1cc   : > { %v825_v15 = vsel %vm7413_vm13, %v817_v48, %v824_v16  ;;  %v988_v38 = vsel %vm7283_vm4, %v826_v22, %v987_v57  ;;  %v1367_v41 = vsel %vm7335_vm9, %v1362_v30, %v1366_v19  ;;  %v3659_v20 = vrot.slane %v2828_v43, 5  ;;  %v7934_v49 = vld [vmem:[#allocation2 + $0xb4] sm:$0xf]  ;;  %v7936_v57 = vld [vmem:[#allocation2 + $0xb8] sm:$0xf] }
 0x1cd   : > { %986 = vst.msk [vmem:[#allocation2 + $0xc4] sm:$0xf] %vm268_vm0, %v825_v15  ;;  %989 = vst [vmem:[#allocation2 + $0xc8] sm:$0x1] %v988_v38  ;;  %v1377_v44 = vsel %vm7335_vm9, %v1372_v35, %v1376_v50  ;;  %v3656_v8 = vsel %vm7690_vm1, %v3654_v56, %v3655_v61  ;;  %v3662_v53 = vrot.slane %v2829_v40, 5  ;;  %v1379_v47 = vshrl.u32 %v7910_v51, 16 }
 0x1ce   : > { %v5975_v18 = vcombine.low %v1367_v41, %v1377_v44  ;;  %v1382_v27 = vshll.u32 %v7910_v51, 16  ;;  %v6167_v4 = vcombine.low %v3653_v34, %v3656_v8  ;;  %v3660_v0 = vsel %vm7690_vm1, %v6151_v62, %v3659_v20  ;;  %v2835_v35 = vld [vmem:[#allocation2 + $0xa4] sm:$0x1]  ;;  %v1038_v58 = vld [vmem:[#allocation2 + $0xbc] sm:$0x1] }
 0x1cf   : > { %v3661_v17 = vrot.slane %v3659_v20, 4  ;;  %v1388_v37 = vshll.u32 %v7918_v55, 16  ;;  %v1381_v36 = vrot.slane %v1379_v47, 4  ;;  %v1392_v6 = vshrl.u32 %v7918_v55, 16  ;;  %v2837_v62 = vld [vmem:[#allocation2 + $0xac] sm:$0xf] }
 0x1d0   : > { %6523 = vmatmul.mubr.msk.bf16.gmra.mrb[24].mxu1 %vm1476_vm10, %v5975_v18  ;;  %v1384_v19 = vrot.slane %v1382_v27, 5  ;;  %v1398_v63 = vshll.u32 %v1037_v5, 16  ;;  %6685 = vmatmul.mubr.msk.bf16.gmra.mrb[16].mxu0 %vm1476_vm10, %v6167_v4  ;;  %v6152_v25 = vrot.slane %v3534_v3, 9  ;;  %v3666_v13 = vrot.slane %v2831_v9, 5  ;;  %v3536_v20 = vld [vmem:[#allocation2 + $0xa8] sm:$0xe] }
 0x1d1   : > { %v3663_v48 = vsel %vm7690_vm1, %v3661_v17, %v3662_v53  ;;  %v1390_v12 = vrot.slane %v1388_v37, 5  ;;  %v1394_v42 = vrot.slane %v1392_v6, 4  ;;  %v3669_v43 = vrot.slane %v2832_v7, 5  ;;  %v2838_v47 = vld [vmem:[#allocation2 + $0xb0] sm:$0x1] }
 0x1d2   : > { %v6168_v26 = vcombine.low %v3660_v0, %v3663_v48  ;;  %v1385_v46 = vor.u32 %v1384_v19, %v1381_v36  ;;  %v1400_v16 = vrot.slane %v1398_v63, 5  ;;  %v3667_v22 = vsel %vm7690_vm1, %v6152_v25, %v3666_v13  ;;  %v3537_v17 = vld [vmem:[#allocation2 + $0xb4] sm:$0xe]  ;;  %v2840_v19 = vld [vmem:[#allocation2 + $0xb8] sm:$0xf] }
 0x1d3   : > { %v3668_v30 = vrot.slane %v3666_v13, 4  ;;  %v1395_v33 = vor.u32 %v1394_v42, %v1390_v12  ;;  %v6153_v15 = vrot.slane %v3535_v52, 9  ;;  %v3673_v38 = vrot.slane %v2834_v10, 5  ;;  %v2841_v6 = vld [vmem:[#allocation2 + $0xbc] sm:$0x1] }
 0x1d4   : > { %6688 = vmatprep.mubr.msk.bf16.mxu0 %vm1476_vm10, %v6168_v26  ;;  %v1386_v50 = vrot.slane %v1385_v46, 4  ;;  %v1403_v41 = vshrl.u32 %v7934_v49, 16  ;;  %v1406_v44 = vshll.u32 %v7934_v49, 16  ;;  %v1412_v56 = vshll.u32 %v7936_v57, 16  ;;  %v2844_v25 = vld [vmem:[#allocation2 + $0xc8] sm:$0x1] }
 0x1d5   : > { %v3670_v40 = vsel %vm7690_vm1, %v3668_v30, %v3669_v43  ;;  %v1396_v3 = vrot.slane %v1395_v33, 4  ;;  %v3676_v34 = vrot.slane %v2835_v35, 5  ;;  %v3674_v5 = vsel %vm7690_vm1, %v6153_v15, %v3673_v38  ;;  %v3538_v13 = vld [vmem:[#allocation2 + $0xc0] sm:$0xe] }
 0x1d6   : > { %v1391_v61 = vsel %vm7335_vm9, %v1386_v50, %v1390_v12  ;;  %v6169_v18 = vcombine.low %v3667_v22, %v3670_v40  ;;  %v3675_v9 = vrot.slane %v3673_v38, 4  ;;  %v1405_v8 = vrot.slane %v1403_v41, 4  ;;  %v2843_v12 = vld [vmem:[#allocation2 + $0xc4] sm:$0xf]  ;;  %v7155_v40 = vld [vmem:[#allocation2] sm:$0xf] }
 0x1d7   : > { %v1408_v53 = vrot.slane %v1406_v44, 5  ;;  %v1401_v27 = vsel %vm7335_vm9, %v1396_v3, %v1400_v16  ;;  %v1414_v7 = vrot.slane %v1412_v56, 5  ;;  %v1416_v4 = vshrl.u32 %v7936_v57, 16  ;;  %v7962_v41 = vld [vmem:[#allocation2 + $0x4] sm:$0xf] }
 0x1d8   : > { %v1422_v0 = vshll.u32 %v1038_v58, 16  ;;  %v5976_v37 = vcombine.low %v1391_v61, %v1401_v27  ;;  %6689 = vmatmul.mubr.msk.bf16.gmra.mrb[20].mxu0 %vm1476_vm10, %v6169_v18  ;;  %v3677_v10 = vsel %vm7690_vm1, %v3675_v9, %v3676_v34  ;;  %v3680_v36 = vrot.slane %v2837_v62, 5 }
 0x1d9   : > { %v1409_v52 = vor.u32 %v1408_v53, %v1405_v8  ;;  %v6170_v63 = vcombine.low %v3674_v5, %v3677_v10  ;;  %v1418_v48 = vrot.slane %v1416_v4, 4  ;;  %v6154_v26 = vrot.slane %v3536_v20, 9  ;;  %v7983_v10 = vld [vmem:[#allocation2 + $0x10] sm:$0xf] }
 0x1da   : > { %6526 = vmatprep.mubr.msk.bf16.mxu1 %vm1476_vm10, %v5976_v37  ;;  %v3682_v46 = vrot.slane %v3680_v36, 4  ;;  %v3683_v42 = vrot.slane %v2838_v47, 5  ;;  %v3687_v30 = vrot.slane %v2840_v19, 5  ;;  %v1424_v43 = vrot.slane %v1422_v0, 5  ;;  %v7157_v37 = vld [vmem:[#allocation2 + $0xc] sm:$0xf] }
 0x1db   : > { %6692 = vmatprep.mubr.msk.bf16.mxu0 %vm1476_vm10, %v6170_v63  ;;  %v1410_v16 = vrot.slane %v1409_v52, 4  ;;  %v1419_v22 = vor.u32 %v1418_v48, %v1414_v7  ;;  %v3681_v35 = vsel %vm7690_vm1, %v6154_v26, %v3680_v36  ;;  %v6155_v33 = vrot.slane %v3537_v17, 9  ;;  %v7119_v17 = vld [vmem:[#allocation2 + $0x18] sm:$0xff]   ;;  %v7159_v36 = vld [vmem:[%s9224_s3 + $0x4] sm:$0x3] }
 0x1dc   : > { %v3684_v50 = vsel %vm7690_vm1, %v3682_v46, %v3683_v42  ;;  %v3689_v38 = vrot.slane %v3687_v30, 4  ;;  %v3690_v58 = vrot.slane %v2841_v6, 5  ;;  %v5994_v44 = vcombine.low %v7155_v40, %v7962_v41  ;;  %v7160_v48 = vld [vmem:[#allocation2 + $0x18] sm:$0xf]  ;;  %v8007_v46 = vld [vmem:[#allocation2 + $0x8] sm:$0x1] }
 0x1dd   : > { %v1420_v15 = vrot.slane %v1419_v22, 4  ;;  %v6171_v56 = vcombine.low %v3681_v35, %v3684_v50  ;;  %v6156_v61 = vrot.slane %v3538_v13, 9  ;;  %v3694_v3 = vrot.slane %v2843_v12, 5  ;;  %v7993_v12 = vld [vmem:[#allocation2 + $0x1c] sm:$0xf]  ;;  %v7121_v35 = vld [vmem:[#allocation2 + $0x30] sm:$0xff]  }
 0x1de   : > { %v3697_v18 = vrot.slane %v2844_v25, 5  ;;  %v1415_v34 = vsel %vm7335_vm9, %v1410_v16, %v1414_v7  ;;  %v3688_v20 = vsel %vm7690_vm1, %v6155_v33, %v3687_v30  ;;  %v3691_v5 = vsel %vm7690_vm1, %v3689_v38, %v3690_v58  ;;  %v8000_v25 = vld [vmem:[%s9224_s3 + $0x6] sm:$0x3]  ;;  %v4352_v26 = vld [vmem:[#allocation2 + $0x18] sm:$0xf] }
 0x1df   : > { %v1425_v62 = vsel %vm7335_vm9, %v1420_v15, %v1424_v43  ;;  %v6172_v8 = vcombine.low %v3688_v20, %v3691_v5  ;;  %v3696_v53 = vrot.slane %v3694_v3, 4  ;;  %v3695_v47 = vsel %vm7690_vm1, %v6156_v61, %v3694_v3  ;;  %v8011_v22 = vld [vmem:[#allocation2 + $0x14] sm:$0x1]  ;;  %v1982_v33 = vld [vmem:[#allocation2] sm:$0xe] }
 0x1e0   : > { %v5977_v9 = vcombine.low %v1415_v34, %v1425_v62  ;;  %6693 = vmatmul.mubr.msk.bf16.gmra.mrb[24].mxu0 %vm1476_vm10, %v6171_v56  ;;  %v3071_v4 = vshll.u32 %v7899_v21, 16  ;;  %v3075_v0 = vshrl.u32 %v7899_v21, 16  ;;  %v5995_v52 = vcombine.low %v7157_v37, %v7983_v10  ;;  %v4353_v15 = vld [vmem:[#allocation2 + $0x1c] sm:$0xf]  ;;  %v8023_v56 = vld [vmem:[%s9224_s3 + $0x10] sm:$0x3] }
 0x1e1   : > { %6696 = vmatprep.mubr.msk.bf16.mxu0 %vm1476_vm10, %v6172_v8  ;;  %v3698_v27 = vsel %vm7690_vm1, %v3696_v53, %v3697_v18  ;;  %v2244_v19 = vsel %vm1525_vm8, %v7159_v36, 0  ;;  %v5996_v21 = vcombine.low %v7160_v48, %v7993_v12  ;;  %v3081_v13 = vshll.u32 %v7901_v39, 16  ;;  %v7120_v39 = vld [vmem:[#allocation2 + $0x24] sm:$0xff]   ;;  %v8029_v34 = vld [vmem:[#allocation2 + $0x34] sm:$0xf] }
 0x1e2   : > { %6527 = vmatmul.mubr.msk.bf16.gmra.mrb[28].mxu1 %vm1476_vm10, %v5977_v9  ;;  %v6173_v7 = vcombine.low %v3695_v47, %v3698_v27  ;;  %v7991_v6 = vrot.slane %v3071_v4, 5  ;;  %v3077_v63 = vrot.slane %v3075_v0, 4  ;;  %v2038_v42 = vrot.slane %v8007_v46, 5  ;;  %v7164_v61 = vld [vmem:[#allocation2 + $0x24] sm:$0xf] }
 0x1e3   : > { %6532 = vmatprep.mubr.msk.bf16.mxu1 %vm1476_vm10, %v5994_v44  ;;  %v2042_v16 = vrot.slane %v7983_v10, 5  ;;  %v2045_v30 = vrot.slane %v8011_v22, 5  ;;  %v4883_v50 = vsel %vm1525_vm8, %v7855_v54, 0  ;;  %v8017_v38 = vrot.slane %v3081_v13, 5  ;;  %v8025_v3 = vld [vmem:[#allocation2 + $0x28] sm:$0xf] }
 0x1e4   : > { %9250 = vst [vmem:[#allocation4_spill] sm:$0xff] %v7991_v6  ;;  %v3078_v43 = vor.u32 %v3077_v63, %v7991_v6  ;;  %v2035_v58 = vrot.slane %v7962_v41, 5  ;;  %v4401_v40 = vshrl.u32 %v4352_v26, 16  ;;  %v4404_v44 = vshll.u32 %v4352_v26, 16  ;;  %v7166_v54 = vld [vmem:[#allocation2 + $0x30] sm:$0xf] }
 0x1e5   : > { %9251 = vst [vmem:[#allocation5_spill] sm:$0xff] %v8017_v38  ;;  %v5997_v18 = vcombine.low %v7164_v61, %v8025_v3  ;;  %v5998_v62 = vcombine.low %v7166_v54, %v8029_v34  ;;  %v7168_v41 = vld [vmem:[#allocation2 + $0x3c] sm:$0xf]  ;;  %v8032_v20 = vld [vmem:[#allocation2 + $0x40] sm:$0xf]  ;;  %v6026_v36 = vrot.slane %v1982_v33, 9 }
 0x1e6   : > { %v5999_v5 = vcombine.low %v7168_v41, %v8032_v20  ;;  %v8035_v9 = vld [vmem:[#allocation2 + $0x48] sm:$0xf]  ;;  %v8037_v8 = vld [vmem:[#allocation2 + $0x4c] sm:$0xf]  ;;  %v8041_v47 = vrot.slane %v3078_v43, 4  ;;  %v2044_v63 = vrot.slane %v2042_v16, 4 }
 0x1e7   : > { %v6000_v53 = vcombine.low %v8035_v9, %v8037_v8  ;;  %v8044_v27 = vld [vmem:[#allocation2 + $0x54] sm:$0xf]  ;;  %v8050_v0 = vld [vmem:[#allocation2 + $0x60] sm:$0xf]  ;;  %v4410_v48 = vshll.u32 %v4353_v15, 16  ;;  %v2037_v13 = vrot.slane %v2035_v58, 4  ;;  %v8080_v33 = vsel %vm7690_vm1, %v6026_v36, %v2035_v58 }
 0x1e8   : > { %6697 = vmatmul.mubr.msk.bf16.gmra.mrb[28].mxu0 %vm1476_vm10, %v6173_v7  ;;  %9252 = vst [vmem:[#allocation6_spill] sm:$0xff] %v8041_v47  ;;  %v8046_v7 = vld [vmem:[#allocation2 + $0x58] sm:$0xf]  ;;  %v2049_v43 = vrot.slane %v7993_v12, 5  ;;  %v4355_v54 = vld [vmem:[#allocation2 + $0x24] sm:$0xf] }
 0x1e9   : > { %6702 = vmatprep.mubr.msk.bf16.mxu0 %vm1476_vm10, %v7119_v17  ;;  %v8052_v17 = vld [vmem:[#allocation2 + $0x64] sm:$0xf]  ;;  %v1984_v26 = vld [vmem:[#allocation2 + $0x18] sm:$0xe]  ;;  %v7122_v41 = vld [vmem:[#allocation2 + $0x3c] sm:$0xff]   ;;  %v8088_v12 = vsel %vm7690_vm1, %v2037_v13, %v2038_v42  ;;  %v8106_v42 = vsel %vm1525_vm8, %v8000_v25, 0 }
 0x1ea   : > { %6533 = vmatmul.mubr.msk.bf16.vlgmr.msra.gmra.mrb[0].mxu1 %vm1476_vm10, %v5995_v52  ;;  %v7123_v52 = vld [vmem:[#allocation2 + $0x48] sm:$0xff]   ;;  %v4354_v36 = vld [vmem:[#allocation2 + $0x20] sm:$0x1]  ;;  %v2066_v6 = vrot.slane %v7178_v11, 5  ;;  %v4363_v11 = vld [vmem:[#allocation2 + $0x44] sm:$0x1] }
 0x1eb   : > { %6565 = vmatpush3.bf16.msra.mxu1 %v2244_v19  ;;  %6536 = vmatprep.mubr.msk.bf16.mxu1 %vm1476_vm10, %v5996_v21  ;;  %v1983_v19 = vld [vmem:[#allocation2 + $0xc] sm:$0xe]  ;;  %v4414_v21 = vshrl.u32 %v4353_v15, 16  ;;  %v6028_v15 = vrot.slane %v1984_v26, 9  ;;  %v7176_v22 = vld [vmem:[#allocation2 + $0x20] sm:$0x1] }
 0x1ec   : > { %7063 = vmatprep.subr.msk.bf16.mxu1 %vm1525_vm8, %v8000_v25  ;;  %v4359_v25 = vld [vmem:[#allocation2 + $0x34] sm:$0xf]  ;;  %v4362_v4 = vld [vmem:[#allocation2 + $0x40] sm:$0xf]  ;;  %v4364_v47 = vld [vmem:[#allocation2 + $0x48] sm:$0xf] }
 0x1ed   : > { %v4416_v61 = vrot.slane %v4414_v21, 4  ;;  %v4428_v21 = vshll.u32 %v4355_v54, 16  ;;  %v8115_v10 = vsel %vm7690_vm1, %v6028_v15, %v2049_v43  ;;  %v4462_v37 = vshrl.u32 %v4359_v25, 16 }
 0x1ee   : > { %vm5751_vm0 = vcmask 1040384  }
 0x1f0   : > { %6703 = vmatmul.mubr.msk.bf16.vlgmr.msra.gmra.mrb[0].mxu0 %vm1476_vm10, %v7120_v39  ;;  %v4403_v39 = vrot.slane %v4401_v40, 4  ;;  %v6027_v40 = vrot.slane %v1983_v19, 9  ;;  %v2051_v19 = vrot.slane %v2049_v43, 4  ;;  %v4357_v43 = vld [vmem:[#allocation2 + $0x2c] sm:$0x1] }
 0x1f1   : > { %6706 = vmatprep.mubr.msk.bf16.mxu0 %vm1476_vm10, %v7121_v35  ;;  %6735 = vmatpush3.bf16.msra.mxu0 %v4883_v50  ;;  %v4406_v35 = vrot.slane %v4404_v44, 5  ;;  %v2056_v44 = vrot.slane %v8025_v3, 5  ;;  %v8082_v50 = vrot.slane %v4410_v48, 5  ;;  %v8094_v3 = vsel %vm7690_vm1, %v2044_v63, %v2045_v30 }
 0x1f2   : > { %6537 = vmatmul.mubr.msk.bf16.gmra.mrb[4].mxu1 %vm1476_vm10, %v5997_v18  ;;  %7069 = vmatprep.subr.msk.bf16.mxu0 %vm1525_vm8, %v8023_v56  ;;  %v4425_v48 = vshrl.u32 %v4355_v54, 16  ;;  %v8102_v46 = vsel %vm7690_vm1, %v6027_v40, %v2042_v16  ;;  %v2052_v30 = vrot.slane %v7176_v22, 5  ;;  %v4420_v40 = vshll.u32 %v4354_v36, 16  ;;  %v7177_v54 = vld [vmem:[#allocation2 + $0x2c] sm:$0x1] }
 0x1f3   : > { %6540 = vmatprep.mubr.msk.bf16.mxu1 %vm1476_vm10, %v5998_v62  ;;  %v4356_v62 = vld [vmem:[#allocation2 + $0x28] sm:$0xf]  ;;  %v4407_v58 = vor.u32 %v4406_v35, %v4403_v39  ;;  %v2058_v63 = vrot.slane %v2056_v44, 4  ;;  %v4417_v16 = vor.u32 %v4416_v61, %v8082_v50  ;;  %v1985_v39 = vld [vmem:[#allocation2 + $0x24] sm:$0xe]  ;;  %v4430_v22 = vrot.slane %v4428_v21, 5 }
 0x1f4   : > { %v4434_v26 = vshll.u32 %v4356_v62, 16  ;;  %v4438_v18 = vshrl.u32 %v4356_v62, 16  ;;  %v2059_v62 = vrot.slane %v7177_v54, 5  ;;  %v4427_v15 = vrot.slane %v4425_v48, 4  ;;  %v7125_v48 = vld [vmem:[#allocation2 + $0x60] sm:$0xff]  }
 0x1f5   : > { %v4408_v35 = vrot.slane %v4407_v58, 4  ;;  %v6029_v13 = vrot.slane %v1985_v39, 9  ;;  %v4418_v36 = vrot.slane %v4417_v16, 4  ;;  %v4422_v21 = vrot.slane %v4420_v40, 5  ;;  %v4361_v58 = vld [vmem:[#allocation2 + $0x3c] sm:$0xf] }
 0x1f6   : > { %v8126_v61 = vrot.slane %v4434_v26, 5  ;;  %v8130_v9 = vsel %vm7690_vm1, %v2058_v63, %v2059_v62  ;;  %v4444_v63 = vshll.u32 %v4357_v43, 16  ;;  %v4431_v16 = vor.u32 %v4430_v22, %v4427_v15  ;;  %v1986_v62 = vld [vmem:[#allocation2 + $0x30] sm:$0xe] }
 0x1f7   : > { %9253 = vst [vmem:[#allocation7_spill] sm:$0xff] %v8130_v9  ;;  %v8139_v26 = vsel %vm7690_vm1, %v6029_v13, %v2056_v44  ;;  %v4482_v44 = vshll.u32 %v4362_v4, 16  ;;  %v4486_v13 = vshrl.u32 %v4362_v4, 16  ;;  %v9254_v40 = vcombine.low %v8044_v27, %v8046_v7  ;;  %v4360_v4 = vld [vmem:[#allocation2 + $0x38] sm:$0x1] }
 0x1f8   : > { %6707 = vmatmul.mubr.msk.bf16.gmra.mrb[4].mxu0 %vm1476_vm10, %v7122_v41  ;;  %v4358_v41 = vld [vmem:[#allocation2 + $0x30] sm:$0xf]  ;;  %v4423_v43 = vsel %vm7335_vm9, %v4418_v36, %v4422_v21  ;;  %v9255_v22 = vcombine.low %v8050_v0, %v8052_v17  ;;  %v4432_v27 = vrot.slane %v4431_v16, 4  ;;  %v4365_v36 = vld [vmem:[#allocation2 + $0x4c] sm:$0xf]  ;;  %v4468_v16 = vshll.u32 %v4360_v4, 16 }
 0x1f9   : > { %6710 = vmatprep.mubr.msk.bf16.mxu0 %vm1476_vm10, %v7123_v52  ;;  %v4440_v52 = vrot.slane %v4438_v18, 4  ;;  %v4452_v54 = vshll.u32 %v4358_v41, 16  ;;  %v4413_v18 = vsel %vm7335_vm9, %v4408_v35, %v8082_v50  ;;  %v4464_v35 = vrot.slane %v4462_v37, 4 }
 0x1fa   : > { %6541 = vmatmul.mubr.msk.bf16.gmra.mrb[8].mxu1 %vm1476_vm10, %v5999_v5  ;;  %v8124_v5 = vsel %vm7690_vm1, %v2051_v19, %v2052_v30  ;;  %v7124_v19 = vld [vmem:[#allocation2 + $0x54] sm:$0xff]   ;;  %v4449_v30 = vshrl.u32 %v4358_v41, 16  ;;  %v2063_v41 = vrot.slane %v8029_v34, 5  ;;  %v2070_v34 = vrot.slane %v8032_v20, 5 }
 0x1fb   : > { %6544 = vmatprep.mubr.msk.bf16.mxu1 %vm1476_vm10, %v6000_v53  ;;  %v4458_v53 = vshll.u32 %v4359_v25, 16  ;;  %v4441_v25 = vor.u32 %v4440_v52, %v8126_v61  ;;  %v4454_v15 = vrot.slane %v4452_v54, 5  ;;  %v4446_v37 = vrot.slane %v4444_v63, 5  ;;  %v1987_v54 = vld [vmem:[#allocation2 + $0x3c] sm:$0xe] }
 0x1fc   : > { %v4451_v52 = vrot.slane %v4449_v30, 4  ;;  %v8160_v30 = vcombine.low %v4413_v18, %v4423_v43  ;;  %v8163_v21 = vrot.slane %v4482_v44, 5  ;;  %v4488_v0 = vrot.slane %v4486_v13, 4  ;;  %v7127_v63 = vld [vmem:[#allocation2 + $0x78] sm:$0xff]   ;;  %v7179_v13 = vld [vmem:[#allocation2 + $0x44] sm:$0x1] }
 0x1fd   : > { %v8147_v50 = vrot.slane %v4458_v53, 5  ;;  %v6030_v53 = vrot.slane %v1986_v62, 9  ;;  %v4442_v39 = vrot.slane %v4441_v25, 4  ;;  %v2072_v25 = vrot.slane %v2070_v34, 4 }
 0x1fe   : > { %v4506_v43 = vshll.u32 %v4365_v36, 16  ;;  %v4510_v9 = vshrl.u32 %v4365_v36, 16  ;;  %v4497_v4 = vshrl.u32 %v4364_v47, 16 }
 0x1ff   : > { %v4465_v20 = vor.u32 %v4464_v35, %v8147_v50  ;;  %v8167_v62 = vsel %vm7690_vm1, %v6030_v53, %v2063_v41  ;;  %v4437_v35 = vsel %vm7335_vm9, %v4432_v27, %v8126_v61  ;;  %v4447_v44 = vsel %vm7335_vm9, %v4442_v39, %v4446_v37 }
 0x200   : > { %6711 = vmatmul.mubr.msk.bf16.gmra.mrb[8].mxu0 %vm1476_vm10, %v7124_v19  ;;  %v4473_v19 = vshrl.u32 %v4361_v58, 16  ;;  %v4489_v53 = vor.u32 %v4488_v0, %v8163_v21  ;;  %v4470_v39 = vrot.slane %v4468_v16, 5  ;;  %v6031_v37 = vrot.slane %v1987_v54, 9  ;;  %v7128_v16 = vld [vmem:[#allocation2 + $0x84] sm:$0xff]   ;;  %v4376_v54 = vld [vmem:[#allocation2 + $0x78] sm:$0xf] }
 0x201   : > { %6714 = vmatprep.mubr.msk.bf16.mxu0 %vm1476_vm10, %v7125_v48  ;;  %v4476_v48 = vshll.u32 %v4361_v58, 16  ;;  %v4455_v58 = vor.u32 %v4454_v15, %v4451_v52  ;;  %v2073_v52 = vrot.slane %v7179_v13, 5  ;;  %v4466_v15 = vrot.slane %v4465_v20, 4 }
 0x202   : > { %6545 = vmatmul.mubr.msk.bf16.gmra.mrb[12].mxu1 %vm1476_vm10, %v9254_v40  ;;  %v2065_v40 = vrot.slane %v2063_v41, 4  ;;  %v4475_v38 = vrot.slane %v4473_v19, 4  ;;  %v4500_v19 = vshll.u32 %v4364_v47, 16  ;;  %v4492_v27 = vshll.u32 %v4363_v11, 16  ;;  %v1988_v47 = vld [vmem:[#allocation2 + $0x48] sm:$0xe] }
 0x203   : > { %6548 = vmatprep.mubr.msk.bf16.mxu1 %vm1476_vm10, %v9255_v22  ;;  %v7126_v22 = vld [vmem:[#allocation2 + $0x6c] sm:$0xff]   ;;  %v4478_v18 = vrot.slane %v4476_v48, 5  ;;  %v9256_v48 = vcombine.low %v7694_v28, %v7711_v29  ;;  %v4456_v61 = vrot.slane %v4455_v58, 4  ;;  %v8193_v20 = vrot.slane %v4506_v43, 5 }
 0x204   : > { %v8177_v41 = vsel %vm7690_vm1, %v2065_v40, %v2066_v6  ;;  %v9257_v6 = vcombine.low %v7739_v23, %v7752_v2  ;;  %v8191_v40 = vsel %vm7690_vm1, %v2072_v25, %v2073_v52  ;;  %v4512_v28 = vrot.slane %v4510_v9, 4  ;;  %v8204_v2 = vld [vmem:[#allocation2 + $0x58] sm:$0xf]  ;;  %v7129_v43 = vld [vmem:[#allocation2 + $0x90] sm:$0xff]  }
 0x205   : > { %v4479_v36 = vor.u32 %v4478_v18, %v4475_v38  ;;  %v8195_v29 = vcombine.low %v4437_v35, %v4447_v44  ;;  %v8201_v0 = vsel %vm7690_vm1, %v6031_v37, %v2070_v34  ;;  %v2077_v23 = vrot.slane %v8037_v8, 5  ;;  %9258 = vst [vmem:[#allocation8_spill] sm:$0xff] %v8204_v2  ;;  %v4367_v18 = vld [vmem:[#allocation2 + $0x54] sm:$0xf] }
 0x206   : > { %v4471_v38 = vsel %vm7335_vm9, %v4466_v15, %v4470_v39  ;;  %v4499_v9 = vrot.slane %v4497_v4, 4  ;;  %v4502_v58 = vrot.slane %v4500_v19, 5  ;;  %v4461_v25 = vsel %vm7335_vm9, %v4456_v61, %v8147_v50  ;;  %v8218_v15 = vld [vmem:[#allocation2 + $0x64] sm:$0xf]  ;;  %v7180_v4 = vld [vmem:[#allocation2 + $0x50] sm:$0x1] }
 0x207   : > { %v4494_v11 = vrot.slane %v4492_v27, 5  ;;  %v6032_v8 = vrot.slane %v1988_v47, 9  ;;  %v4480_v35 = vrot.slane %v4479_v36, 4  ;;  %v4513_v44 = vor.u32 %v4512_v28, %v8193_v20  ;;  %9260 = vst [vmem:[#allocation10_spill] sm:$0xff] %v8218_v15 }
 0x208   : > { %6715 = vmatmul.mubr.msk.bf16.gmra.mrb[12].mxu0 %vm1476_vm10, %v7126_v22  ;;  %v4490_v22 = vrot.slane %v4489_v53, 4  ;;  %v4530_v13 = vshll.u32 %v8204_v2, 16  ;;  %v4534_v52 = vshrl.u32 %v8204_v2, 16  ;;  %v8221_v53 = vcombine.low %v4461_v25, %v4471_v38 }
 0x209   : > { %6718 = vmatprep.mubr.msk.bf16.mxu0 %vm1476_vm10, %v7127_v63  ;;  %v8208_v63 = vld [vmem:[#allocation2 + $0x50] sm:$0x1]  ;;  %v8225_v50 = vsel %vm7690_vm1, %v6032_v8, %v2077_v23  ;;  %v2080_v19 = vrot.slane %v7180_v4, 5  ;;  %v2079_v39 = vrot.slane %v2077_v23, 4  ;;  %v4503_v37 = vor.u32 %v4502_v58, %v4499_v9  ;;  %v1989_v58 = vld [vmem:[#allocation2 + $0x54] sm:$0xe] }
 0x20a   : > { %6549 = vmatmul.mubr.msk.bf16.gmra.mrb[16].mxu1 %vm1476_vm10, %v9256_v48  ;;  %9259 = vst [vmem:[#allocation9_spill] sm:$0xff] %v8208_v63  ;;  %v2084_v48 = vrot.slane %v8046_v7, 5  ;;  %v4495_v61 = vsel %vm7335_vm9, %v4490_v22, %v4494_v11  ;;  %v4516_v27 = vshll.u32 %v8208_v63, 16  ;;  %v9261_v36 = vcombine.low %v7795_v14, %v7801_v31  ;;  %v7196_v63 = vld [vmem:[#allocation2 + $0xb8] sm:$0xf] }
 0x20b   : > { %6552 = vmatprep.mubr.msk.bf16.mxu1 %vm1476_vm10, %v9257_v6  ;;  %v4370_v6 = vld [vmem:[#allocation2 + $0x60] sm:$0xf]  ;;  %v4521_v47 = vshrl.u32 %v4367_v18, 16  ;;  %v4524_v28 = vshll.u32 %v4367_v18, 16  ;;  %v4554_v38 = vshll.u32 %v8218_v15, 16  ;;  %v4558_v7 = vshrl.u32 %v8218_v15, 16 }
 0x20c   : > { %v4485_v23 = vsel %vm7335_vm9, %v4480_v35, %v8163_v21  ;;  %v4514_v22 = vrot.slane %v4513_v44, 4  ;;  %v8245_v9 = vrot.slane %v4530_v13, 5  ;;  %v4536_v14 = vrot.slane %v4534_v52, 4  ;;  %v7131_v21 = vld [vmem:[#allocation2 + $0x9c] sm:$0xff]  }
 0x20d   : > { %v8247_v31 = vcombine.low %v4485_v23, %v4495_v61  ;;  %v2086_v25 = vrot.slane %v2084_v48, 4  ;;  %v4545_v11 = vshrl.u32 %v4370_v6, 16  ;;  %v4548_v8 = vshll.u32 %v4370_v6, 16  ;;  %v7133_v61 = vld [vmem:[#allocation2 + $0xa8] sm:$0xff]  }
 0x20e   : > { %v8251_v18 = vsel %vm7690_vm1, %v2079_v39, %v2080_v19  ;;  %v4523_v35 = vrot.slane %v4521_v47, 4  ;;  %v4526_v44 = vrot.slane %v4524_v28, 5  ;;  %v8255_v13 = vrot.slane %v4554_v38, 5  ;;  %v1990_v39 = vld [vmem:[#allocation2 + $0x60] sm:$0xe] }
 0x20f   : > { %v4560_v52 = vrot.slane %v4558_v7, 4  ;;  %v4537_v19 = vor.u32 %v4536_v14, %v8245_v9  ;;  %v8266_v47 = vld [vmem:[#allocation2 + $0x68] sm:$0x1]  ;;  %v4547_v28 = vrot.slane %v4545_v11, 4  ;;  %v4550_v38 = vrot.slane %v4548_v8, 5 }
 0x210   : > { %6719 = vmatmul.mubr.msk.bf16.gmra.mrb[16].mxu0 %vm1476_vm10, %v7128_v16  ;;  %v9262_v16 = vcombine.low %v7833_v32, %v7835_v59  ;;  %v4504_v32 = vrot.slane %v4503_v37, 4  ;;  %v4518_v59 = vrot.slane %v4516_v27, 5  ;;  %v2091_v37 = vrot.slane %v8052_v17, 5  ;;  %9264 = vst [vmem:[#allocation12_spill] sm:$0xff] %v8266_v47  ;;  %v7182_v7 = vld [vmem:[#allocation2 + $0x70] sm:$0xf] }
 0x211   : > { %6722 = vmatprep.mubr.msk.bf16.mxu0 %vm1476_vm10, %v7129_v43  ;;  %v7181_v43 = vld [vmem:[#allocation2 + $0x5c] sm:$0x1]  ;;  %v2098_v23 = vrot.slane %v7182_v7, 5  ;;  %v9265_v11 = vcombine.low %v7872_v1, %v7884_v45  ;;  %v4564_v1 = vshll.u32 %v8266_v47, 16  ;;  %v4551_v45 = vor.u32 %v4550_v38, %v4547_v28 }
 0x212   : > { %6553 = vmatmul.mubr.msk.bf16.gmra.mrb[20].mxu1 %vm1476_vm10, %v9261_v36  ;;  %v2087_v4 = vrot.slane %v7181_v43, 5  ;;  %v8253_v36 = vld [vmem:[#allocation2 + $0x5c] sm:$0x1]  ;;  %v4519_v6 = vsel %vm7335_vm9, %v4514_v22, %v4518_v59  ;;  %v4509_v17 = vsel %vm7335_vm9, %v4504_v32, %v8193_v20  ;;  %v4527_v59 = vor.u32 %v4526_v44, %v4523_v35  ;;  %v4373_v20 = vld [vmem:[#allocation2 + $0x6c] sm:$0xf]  ;;  %v7136_v22 = vld [vmem:[#allocation2 + $0xc0] sm:$0xff]  }
 0x213   : > { %6556 = vmatprep.mubr.msk.bf16.mxu1 %vm1476_vm10, %v9262_v16  ;;  %9263 = vst [vmem:[#allocation11_spill] sm:$0xff] %v8253_v36  ;;  %v6033_v16 = vrot.slane %v1989_v58, 9  ;;  %v4540_v58 = vshll.u32 %v8253_v36, 16  ;;  %v8285_v8 = vcombine.low %v4509_v17, %v4519_v6  ;;  %v6034_v43 = vrot.slane %v1990_v39, 9  ;;  %v1991_v6 = vld [vmem:[#allocation2 + $0x6c] sm:$0xe] }
 0x214   : > { %v8264_v27 = vsel %vm7690_vm1, %v2086_v25, %v2087_v4  ;;  %v8279_v25 = vld [vmem:[#allocation2 + $0x70] sm:$0xf]  ;;  %v4561_v4 = vor.u32 %v4560_v52, %v8255_v13  ;;  %v7183_v39 = vld [vmem:[#allocation2 + $0x68] sm:$0x1]  ;;  %v7135_v17 = vld [vmem:[#allocation2 + $0xb4] sm:$0xff]  }
 0x215   : > { %v8276_v14 = vsel %vm7690_vm1, %v6033_v16, %v2084_v48  ;;  %v9266_v48 = vcombine.low %v7910_v51, %v7918_v55  ;;  %v2100_v16 = vrot.slane %v2098_v23, 4  ;;  %v4578_v35 = vshll.u32 %v8279_v25, 16  ;;  %v7184_v32 = vld [vmem:[#allocation2 + $0x74] sm:$0x1]  ;;  %v8301_v38 = vld [vmem:[#allocation2 + $0x7c] sm:$0xf] }
 0x216   : > { %v4582_v44 = vshrl.u32 %v8279_v25, 16  ;;  %v4542_v52 = vrot.slane %v4540_v58, 5  ;;  %v2094_v7 = vrot.slane %v7183_v39, 5  ;;  %v4569_v51 = vshrl.u32 %v4373_v20, 16 }
 0x217   : > { %v4572_v55 = vshll.u32 %v4373_v20, 16  ;;  %v2101_v28 = vrot.slane %v7184_v32, 5  ;;  %v4566_v20 = vrot.slane %v4564_v1, 5  ;;  %v6035_v39 = vrot.slane %v1991_v6, 9 }
 0x218   : > { %6723 = vmatmul.mubr.msk.bf16.gmra.mrb[20].mxu0 %vm1476_vm10, %v7131_v21  ;;  %v4538_v21 = vrot.slane %v4537_v19, 4  ;;  %v8299_v19 = vsel %vm7690_vm1, %v6034_v43, %v2091_v37  ;;  %v4584_v32 = vrot.slane %v4582_v44, 4  ;;  %v4602_v1 = vshll.u32 %v8301_v38, 16 }
 0x219   : > { %6726 = vmatprep.mubr.msk.bf16.mxu0 %vm1476_vm10, %v7133_v61  ;;  %v2093_v61 = vrot.slane %v2091_v37, 4  ;;  %v4552_v37 = vrot.slane %v4551_v45, 4  ;;  %v8314_v43 = vsel %vm7690_vm1, %v2100_v16, %v2101_v28  ;;  %v4606_v6 = vshrl.u32 %v8301_v38, 16 }
 0x21a   : > { %6557 = vmatmul.mubr.msk.bf16.gmra.mrb[24].mxu1 %vm1476_vm10, %v9265_v11  ;;  %v4528_v11 = vrot.slane %v4527_v59, 4  ;;  %v4543_v34 = vsel %vm7335_vm9, %v4538_v21, %v4542_v52  ;;  %v8309_v59 = vld [vmem:[#allocation2 + $0x74] sm:$0x1]  ;;  %v4571_v21 = vrot.slane %v4569_v51, 4  ;;  %v9267_v52 = vcombine.low %v7934_v49, %v7936_v57  ;;  %v8343_v51 = vld [vmem:[#allocation2 + $0x88] sm:$0xf] }
 0x21b   : > { %6560 = vmatprep.mubr.msk.bf16.mxu1 %vm1476_vm10, %v9266_v48  ;;  %v4562_v48 = vrot.slane %v4561_v4, 4  ;;  %v8307_v58 = vsel %vm7690_vm1, %v2093_v61, %v2094_v7  ;;  %v8316_v4 = vrot.slane %v4578_v35, 5  ;;  %v4574_v61 = vrot.slane %v4572_v55, 5  ;;  %v7137_v55 = vld [vmem:[#allocation2 + $0xcc] sm:$0xff]  }
 0x21c   : > { %v4533_v45 = vsel %vm7335_vm9, %v4528_v11, %v8245_v9  ;;  %v4588_v35 = vshll.u32 %v8309_v59, 16  ;;  %v9268_v44 = vcombine.low %v8080_v33, %v8088_v12  ;;  %v8341_v57 = vsel %vm7690_vm1, %v6035_v39, %v2098_v23  ;;  %v7185_v11 = vld [vmem:[#allocation2 + $0x7c] sm:$0xf]  ;;  %v4379_v39 = vld [vmem:[#allocation2 + $0x84] sm:$0xf] }
 0x21d   : > { %v8337_v49 = vcombine.low %v4533_v45, %v4543_v34  ;;  %v4593_v9 = vshrl.u32 %v4376_v54, 16  ;;  %v4596_v7 = vshll.u32 %v4376_v54, 16  ;;  %v4585_v12 = vor.u32 %v4584_v32, %v8316_v4  ;;  %v1992_v34 = vld [vmem:[#allocation2 + $0x78] sm:$0xe]  ;;  %v7186_v33 = vld [vmem:[#allocation2 + $0x80] sm:$0x1] }
 0x21e   : > { %v4575_v23 = vor.u32 %v4574_v61, %v4571_v21  ;;  %v4608_v54 = vrot.slane %v4606_v6, 4  ;;  %v5353_v45 = vsel %vm1525_vm8, %v8023_v56, 0  ;;  %v6036_v32 = vrot.slane %v1992_v34, 9  ;;  %v4382_v21 = vld [vmem:[#allocation2 + $0x90] sm:$0xf] }
 0x21f   : > { %v4586_v61 = vrot.slane %v4585_v12, 4  ;;  %v8362_v6 = vld [vmem:[#allocation2 + $0x80] sm:$0x1]  ;;  %v4620_v56 = vshll.u32 %v4379_v39, 16  ;;  %v4641_v12 = vshrl.u32 %v4382_v21, 16 }
 0x220   : > { %6727 = vmatmul.mubr.msk.bf16.gmra.mrb[24].mxu0 %vm1476_vm10, %v7135_v17  ;;  %v4557_v17 = vsel %vm7335_vm9, %v4552_v37, %v8255_v13  ;;  %v4626_v13 = vshll.u32 %v8343_v51, 16  ;;  %v4630_v37 = vshrl.u32 %v8343_v51, 16  ;;  %v4576_v16 = vrot.slane %v4575_v23, 4 }
 0x221   : > { %6730 = vmatprep.mubr.msk.bf16.mxu0 %vm1476_vm10, %v7136_v22  ;;  %v4567_v22 = vsel %vm7335_vm9, %v4562_v48, %v4566_v20  ;;  %v2105_v48 = vrot.slane %v7185_v11, 5  ;;  %v8353_v20 = vrot.slane %v4602_v1, 5  ;;  %v2108_v11 = vrot.slane %v7186_v33, 5 }
 0x222   : > { %6561 = vmatmul.mubr.msk.bf16.gmra.mrb[28].mxu1 %vm1476_vm10, %v9267_v52  ;;  %v8351_v28 = vcombine.low %v4557_v17, %v4567_v22  ;;  %v4590_v52 = vrot.slane %v4588_v35, 5  ;;  %v4595_v22 = vrot.slane %v4593_v9, 4  ;;  %v4598_v17 = vrot.slane %v4596_v7, 5 }
 0x223   : > { %6566 = vmatprep.mubr.msk.bf16.mxu1 %vm1476_vm10, %v9268_v44  ;;  %v8359_v44 = vld [vmem:[#allocation2 + $0x94] sm:$0xf]  ;;  %v2107_v1 = vrot.slane %v2105_v48, 4  ;;  %v4617_v35 = vshrl.u32 %v4379_v39, 16  ;;  %v4609_v47 = vor.u32 %v4608_v54, %v8353_v20  ;;  %v9269_v7 = vcombine.low %v8102_v46, %v8094_v3  ;;  %v7187_v46 = vld [vmem:[#allocation2 + $0x88] sm:$0xf] }
 0x224   : > { %v4650_v34 = vshll.u32 %v8359_v44, 16  ;;  %v4654_v9 = vshrl.u32 %v8359_v44, 16  ;;  %v4632_v33 = vrot.slane %v4630_v37, 4  ;;  %v4644_v39 = vshll.u32 %v4382_v21, 16  ;;  %v1993_v21 = vld [vmem:[#allocation2 + $0x84] sm:$0xe] }
 0x225   : > { %v8382_v23 = vsel %vm7690_vm1, %v6036_v32, %v2105_v48  ;;  %v4599_v54 = vor.u32 %v4598_v17, %v4595_v22  ;;  %v4612_v3 = vshll.u32 %v8362_v6, 16  ;;  %v4591_v37 = vsel %vm7335_vm9, %v4586_v61, %v4590_v52  ;;  %v7188_v48 = vld [vmem:[%s9224_s3 + $0x8] sm:$0x3]  ;;  %v8395_v22 = vld [vmem:[#allocation2 + $0x8c] sm:$0x1] }
 0x226   : > { %v4610_v32 = vrot.slane %v4609_v47, 4  ;;  %v7189_v17 = vld [vmem:[#allocation2 + $0x94] sm:$0xf]  ;;  %v4656_v52 = vrot.slane %v4654_v9, 4  ;;  %v6037_v9 = vrot.slane %v1993_v21, 9  ;;  %v4636_v36 = vshll.u32 %v8395_v22, 16 }
 0x227   : > { %v4614_v47 = vrot.slane %v4612_v3, 5  ;;  %v9271_v3 = vld [vmem:[#allocation7_spill] sm:$0xff] }
 0x228   : > { %6731 = vmatmul.mubr.msk.bf16.gmra.mrb[28].mxu0 %vm1476_vm10, %v7137_v55  ;;  %v8373_v55 = vrot.slane %v4626_v13, 5  ;;  %v2112_v13 = vrot.slane %v7187_v46, 5  ;;  %v4600_v46 = vrot.slane %v4599_v54, 4 }
 0x229   : > { %6736 = vmatprep.mubr.msk.bf16.mxu0 %vm1476_vm10, %v8160_v30  ;;  %v9270_v30 = vcombine.low %v8115_v10, %v8124_v5  ;;  %v4619_v10 = vrot.slane %v4617_v35, 4  ;;  %v4622_v5 = vrot.slane %v4620_v56, 5  ;;  %v4646_v35 = vrot.slane %v4644_v39, 5  ;;  %v1994_v39 = vld [vmem:[#allocation2 + $0x90] sm:$0xe] }
 0x22a   : > { %6567 = vmatmul.mubr.msk.bf16.vlgmr.msra.gmra.mrb[0].mxu1 %vm1476_vm10, %v9269_v7  ;;  %v2119_v7 = vrot.slane %v7189_v17, 5  ;;  %v4633_v61 = vor.u32 %v4632_v33, %v8373_v55  ;;  %v7190_v33 = vld [vmem:[#allocation2 + $0x8c] sm:$0x1]  ;;  %v8423_v21 = vsel %vm7690_vm1, %v6037_v9, %v2112_v13  ;;  %v4638_v9 = vrot.slane %v4636_v36, 5  ;;  %v7195_v56 = vld [vmem:[#allocation2 + $0xb0] sm:$0x1] }
 0x22b   : > { %6599 = vmatpush3.bf16.msra.mxu1 %v8106_v42  ;;  %6570 = vmatprep.mubr.msk.bf16.mxu1 %vm1476_vm10, %v9270_v30  ;;  %v8389_v42 = vsel %vm7690_vm1, %v2107_v1, %v2108_v11  ;;  %v8397_v30 = vrot.slane %v4650_v34, 5  ;;  %v4581_v11 = vsel %vm7335_vm9, %v4576_v16, %v8316_v4  ;;  %v4643_v1 = vrot.slane %v4641_v12, 4  ;;  %v8410_v4 = vld [vmem:[#allocation2 + $0x98] sm:$0x1] }
 0x22c   : > { %7065 = vmatprep.subr.msk.bf16.mxu1 %vm1525_vm8, %v7188_v48  ;;  %v2114_v48 = vrot.slane %v2112_v13, 4  ;;  %v8407_v34 = vcombine.low %v4581_v11, %v4591_v37  ;;  %v4623_v17 = vor.u32 %v4622_v5, %v4619_v10  ;;  %v4615_v16 = vsel %vm7335_vm9, %v4610_v32, %v4614_v47  ;;  %v7191_v10 = vld [vmem:[#allocation2 + $0xa0] sm:$0xf]  ;;  %v4385_v32 = vld [vmem:[#allocation2 + $0x9c] sm:$0xf] }
 0x22d   : > { %v2115_v12 = vrot.slane %v7190_v33, 5  ;;  %v2121_v54 = vrot.slane %v2119_v7, 4  ;;  %v9272_v37 = vcombine.low %v8139_v26, %v9271_v3  ;;  %v2126_v5 = vrot.slane %v7191_v10, 5  ;;  %v7192_v13 = vld [vmem:[#allocation2 + $0x98] sm:$0x1] }
 0x22e   : > { %v9273_v11 = vcombine.low %v8167_v62, %v8177_v41  ;;  %v4605_v26 = vsel %vm7335_vm9, %v4600_v46, %v8353_v20  ;;  %v2122_v47 = vrot.slane %v7192_v13, 5  ;;  %v6038_v33 = vrot.slane %v1994_v39, 9  ;;  %v8439_v62 = vld [vmem:[#allocation2 + $0xa0] sm:$0xf]  ;;  %v1995_v46 = vld [vmem:[#allocation2 + $0x9c] sm:$0xe] }
 0x22f   : > { %v4665_v3 = vshrl.u32 %v4385_v32, 16  ;;  %v8455_v10 = vld [vmem:[#allocation2 + $0xac] sm:$0xf]  ;;  %v2136_v15 = vrot.slane %v7195_v56, 5  ;;  %v9278_v56 = vcombine.low %v8276_v14, %v8264_v27 }
 0x230   : > { %6737 = vmatmul.mubr.msk.bf16.vlgmr.msra.gmra.mrb[0].mxu0 %vm1476_vm10, %v8195_v29  ;;  %v4657_v29 = vor.u32 %v4656_v52, %v8397_v30  ;;  %v8434_v52 = vsel %vm7690_vm1, %v2114_v48, %v2115_v12  ;;  %v8443_v41 = vsel %vm7690_vm1, %v2121_v54, %v2122_v47  ;;  %v4668_v48 = vshll.u32 %v4385_v32, 16 }
 0x231   : > { %6740 = vmatprep.mubr.msk.bf16.mxu0 %vm1476_vm10, %v8221_v53  ;;  %6769 = vmatpush3.bf16.msra.mxu0 %v5353_v45  ;;  %v4634_v53 = vrot.slane %v4633_v61, 4  ;;  %v4647_v45 = vor.u32 %v4646_v35, %v4643_v1  ;;  %v4660_v61 = vshll.u32 %v8410_v4, 16  ;;  %v8437_v1 = vcombine.low %v4605_v26, %v4615_v16  ;;  %v8464_v26 = vld [vmem:[#allocation2 + $0xa4] sm:$0x1] }
 0x232   : > { %6571 = vmatmul.mubr.msk.bf16.gmra.mrb[4].mxu1 %vm1476_vm10, %v9272_v37  ;;  %v4624_v35 = vrot.slane %v4623_v17, 4  ;;  %v4658_v20 = vrot.slane %v4657_v29, 4  ;;  %v2128_v17 = vrot.slane %v2126_v5, 4  ;;  %v8451_v36 = vsel %vm7690_vm1, %v6038_v33, %v2119_v7  ;;  %v7193_v7 = vld [vmem:[#allocation2 + $0xa4] sm:$0x1] }
 0x233   : > { %6574 = vmatprep.mubr.msk.bf16.mxu1 %vm1476_vm10, %v9273_v11  ;;  %v4639_v16 = vsel %vm7335_vm9, %v4634_v53, %v4638_v9  ;;  %v4648_v37 = vrot.slane %v4647_v45, 4  ;;  %v4662_v39 = vrot.slane %v4660_v61, 5  ;;  %v4674_v54 = vshll.u32 %v8439_v62, 16  ;;  %v8472_v9 = vld [vmem:[#allocation2 + $0xb8] sm:$0xf] }
 0x234   : > { %v4678_v29 = vshrl.u32 %v8439_v62, 16  ;;  %v4629_v53 = vsel %vm7335_vm9, %v4624_v35, %v8373_v55  ;;  %v6039_v32 = vrot.slane %v1995_v46, 9  ;;  %v2129_v11 = vrot.slane %v7193_v7, 5  ;;  %v4388_v33 = vld [vmem:[#allocation2 + $0xa8] sm:$0xf] }
 0x235   : > { %v8468_v13 = vcombine.low %v4629_v53, %v4639_v16  ;;  %v4667_v47 = vrot.slane %v4665_v3, 4  ;;  %v4670_v61 = vrot.slane %v4668_v48, 5  ;;  %v9274_v55 = vcombine.low %v8201_v0, %v8191_v40  ;;  %v1996_v45 = vld [vmem:[#allocation2 + $0xa8] sm:$0xe] }
 0x236   : > { %v4653_v35 = vsel %vm7335_vm9, %v4648_v37, %v8397_v30  ;;  %v4702_v46 = vshrl.u32 %v8455_v10, 16  ;;  %v9276_v3 = vcombine.low %v8225_v50, %v8251_v18  ;;  %v8491_v40 = vrot.slane %v4674_v54, 5  ;;  %v7194_v30 = vld [vmem:[#allocation2 + $0xac] sm:$0xf]  ;;  %v4391_v37 = vld [vmem:[#allocation2 + $0xb4] sm:$0xf] }
 0x237   : > { %v4680_v0 = vrot.slane %v4678_v29, 4  ;;  %v4684_v48 = vshll.u32 %v8464_v26, 16  ;;  %v2133_v16 = vrot.slane %v7194_v30, 5  ;;  %v4722_v53 = vshll.u32 %v8472_v9, 16  ;;  %v8506_v30 = vld [vmem:[#allocation2 + $0xc4] sm:$0xf] }
 0x238   : > { %6741 = vmatmul.mubr.msk.bf16.gmra.mrb[4].mxu0 %vm1476_vm10, %v8247_v31  ;;  %v4663_v31 = vsel %vm7335_vm9, %v4658_v20, %v4662_v39  ;;  %v4698_v20 = vshll.u32 %v8455_v10, 16  ;;  %v8498_v39 = vsel %vm7690_vm1, %v6039_v32, %v2126_v5  ;;  %v4726_v50 = vshrl.u32 %v8472_v9, 16  ;;  %9277 = vst [vmem:[#allocation13_spill] sm:$0xff] %v8506_v30 }
 0x239   : > { %6744 = vmatprep.mubr.msk.bf16.mxu0 %vm1476_vm10, %v8285_v8  ;;  %v8483_v8 = vsel %vm7690_vm1, %v2128_v17, %v2129_v11  ;;  %v8494_v17 = vcombine.low %v4653_v35, %v4663_v31  ;;  %v4671_v54 = vor.u32 %v4670_v61, %v4667_v47  ;;  %v4689_v29 = vshrl.u32 %v4388_v33, 16  ;;  %v4394_v11 = vld [vmem:[#allocation2 + $0xc0] sm:$0xf]  ;;  %v8513_v47 = vld [vmem:[#allocation2 + $0xb0] sm:$0x1] }
 0x23a   : > { %6575 = vmatmul.mubr.msk.bf16.gmra.mrb[8].mxu1 %vm1476_vm10, %v9274_v55  ;;  %9275 = vst [vmem:[#allocation7_spill] sm:$0xff] %v8483_v8  ;;  %v4692_v7 = vshll.u32 %v4388_v33, 16  ;;  %v8504_v55 = vrot.slane %v4698_v20, 5  ;;  %v4713_v31 = vshrl.u32 %v4391_v37, 16  ;;  %v4716_v35 = vshll.u32 %v4391_v37, 16 }
 0x23b   : > { %6578 = vmatprep.mubr.msk.bf16.mxu1 %vm1476_vm10, %v9276_v3  ;;  %v4704_v3 = vrot.slane %v4702_v46, 4  ;;  %v4681_v5 = vor.u32 %v4680_v0, %v8491_v40  ;;  %v8509_v32 = vrot.slane %v4684_v48, 5  ;;  %v2135_v12 = vrot.slane %v2133_v16, 4  ;;  %v8531_v8 = vld [vmem:[#allocation2 + $0xbc] sm:$0x1] }
 0x23c   : > { %v8515_v61 = vrot.slane %v4722_v53, 5  ;;  %v4728_v33 = vrot.slane %v4726_v50, 4  ;;  %v4737_v20 = vshrl.u32 %v4394_v11, 16  ;;  %v4740_v46 = vshll.u32 %v4394_v11, 16 }
 0x23d   : > { %v4691_v0 = vrot.slane %v4689_v29, 4  ;;  %v4694_v48 = vrot.slane %v4692_v7, 5  ;;  %v4746_v37 = vshll.u32 %v8506_v30, 16  ;;  %v4750_v18 = vshrl.u32 %v8506_v30, 16 }
 0x23e   : > { %v4705_v53 = vor.u32 %v4704_v3, %v8504_v55  ;;  %v4715_v50 = vrot.slane %v4713_v31, 4  ;;  %v4718_v2 = vrot.slane %v4716_v35, 5  ;;  %v9279_v11 = vcombine.low %v8299_v19, %v8307_v58  ;;  %v4397_v35 = vld [vmem:[#allocation2 + $0xcc] sm:$0xf] }
 0x23f   : > { %v6040_v29 = vrot.slane %v1996_v45, 9  ;;  %v4708_v7 = vshll.u32 %v8513_v47, 16  ;;  %v2140_v30 = vrot.slane %v7196_v63, 5  ;;  %v8535_v27 = vsel %vm7690_vm1, %v2135_v12, %v2136_v15  ;;  %v1997_v15 = vld [vmem:[#allocation2 + $0xb4] sm:$0xe] }
 0x240   : > { %6745 = vmatmul.mubr.msk.bf16.gmra.mrb[8].mxu0 %vm1476_vm10, %v8337_v49  ;;  %v4672_v49 = vrot.slane %v4671_v54, 4  ;;  %v4729_v14 = vor.u32 %v4728_v33, %v8515_v61  ;;  %v4739_v54 = vrot.slane %v4737_v20, 4  ;;  %v4742_v3 = vrot.slane %v4740_v46, 5 }
 0x241   : > { %6748 = vmatprep.mubr.msk.bf16.mxu0 %vm1476_vm10, %v8351_v28  ;;  %v4682_v28 = vrot.slane %v4681_v5, 4  ;;  %v8540_v19 = vsel %vm7690_vm1, %v6040_v29, %v2133_v16  ;;  %v4695_v58 = vor.u32 %v4694_v48, %v4691_v0  ;;  %v8542_v45 = vrot.slane %v4746_v37, 5  ;;  %v8555_v48 = vld [vmem:[#allocation2 + $0xd0] sm:$0xf]  ;;  %v8559_v37 = vld [vmem:[#allocation2 + $0xd4] sm:$0x1] }
 0x242   : > { %6579 = vmatmul.mubr.msk.bf16.gmra.mrb[12].mxu1 %vm1476_vm10, %v9278_v56  ;;  %v4752_v31 = vrot.slane %v4750_v18, 4  ;;  %v4677_v63 = vsel %vm7335_vm9, %v4672_v49, %v8491_v40  ;;  %v4706_v5 = vrot.slane %v4705_v53, 4  ;;  %v4719_v12 = vor.u32 %v4718_v2, %v4715_v50  ;;  %v8553_v18 = vld [vmem:[#allocation2 + $0xc8] sm:$0x1]  ;;  %v7197_v53 = vld [vmem:[#allocation2 + $0xbc] sm:$0x1] }
 0x243   : > { %6582 = vmatprep.mubr.msk.bf16.mxu1 %vm1476_vm10, %v9279_v11  ;;  %v4732_v33 = vshll.u32 %v8531_v8, 16  ;;  %v4687_v20 = vsel %vm7335_vm9, %v4682_v28, %v8509_v32  ;;  %v6057_v16 = vcombine.low %v8540_v19, %v8535_v27  ;;  %v4710_v46 = vrot.slane %v4708_v7, 5 }
 0x244   : > { %v2142_v0 = vrot.slane %v2140_v30, 4  ;;  %v4730_v40 = vrot.slane %v4729_v14, 4  ;;  %v4743_v2 = vor.u32 %v4742_v3, %v4739_v54  ;;  %v4761_v56 = vshrl.u32 %v4397_v35, 16 }
 0x245   : > { %v4764_v49 = vshll.u32 %v4397_v35, 16  ;;  %v4696_v32 = vrot.slane %v4695_v58, 4  ;;  %v2143_v50 = vrot.slane %v7197_v53, 5  ;;  %v4753_v11 = vor.u32 %v4752_v31, %v8542_v45 }
 0x246   : > { %v4756_v28 = vshll.u32 %v8553_v18, 16  ;;  %v9280_v29 = vcombine.low %v8341_v57, %v8314_v43  ;;  %v6041_v7 = vrot.slane %v1997_v15, 9  ;;  %v4720_v14 = vrot.slane %v4719_v12, 4 }
 0x247   : > { %v4734_v54 = vrot.slane %v4732_v33, 5  ;;  %v8577_v3 = vsel %vm7690_vm1, %v2142_v0, %v2143_v50  ;;  %v4770_v58 = vshll.u32 %v8555_v48, 16  ;;  %v4774_v43 = vshrl.u32 %v8555_v48, 16 }
 0x248   : > { %6749 = vmatmul.mubr.msk.bf16.gmra.mrb[12].mxu0 %vm1476_vm10, %v8407_v34  ;;  %v4711_v34 = vsel %vm7335_vm9, %v4706_v5, %v4710_v46  ;;  %v4780_v57 = vshll.u32 %v8559_v37, 16  ;;  %v8584_v35 = vrot.slane %v4743_v2, 4  ;;  %v4763_v5 = vrot.slane %v4761_v56, 4  ;;  %v5085_v56 = vld [vmem:[#allocation2 + $0x6c] sm:$0xe] }
 0x249   : > { %6752 = vmatprep.mubr.msk.bf16.mxu0 %vm1476_vm10, %v8437_v1  ;;  %v9281_v1 = vcombine.low %v8382_v23, %v8389_v42  ;;  %v4735_v31 = vsel %vm7335_vm9, %v4730_v40, %v4734_v54  ;;  %v4766_v15 = vrot.slane %v4764_v49, 5  ;;  %v4701_v23 = vsel %vm7335_vm9, %v4696_v32, %v8504_v55  ;;  %v5086_v49 = vld [vmem:[#allocation2 + $0x78] sm:$0xe] }
 0x24a   : > { %6583 = vmatmul.mubr.msk.bf16.gmra.mrb[16].mxu1 %vm1476_vm10, %v9280_v29  ;;  %v8591_v42 = vsel %vm7690_vm1, %v6041_v7, %v2140_v30  ;;  %v8593_v12 = vrot.slane %v4753_v11, 4  ;;  %v8595_v33 = vrot.slane %v4756_v28, 5  ;;  %v6235_v46 = vcombine.low %v4677_v63, %v4687_v20  ;;  %v5087_v28 = vld [vmem:[#allocation2 + $0x84] sm:$0xe] }
 0x24b   : > { %6586 = vmatprep.mubr.msk.bf16.mxu1 %vm1476_vm10, %v9281_v1  ;;  %v6236_v0 = vcombine.low %v4701_v23, %v4711_v34  ;;  %v6058_v40 = vcombine.low %v8591_v42, %v8577_v3  ;;  %v4725_v2 = vsel %vm7335_vm9, %v4720_v14, %v8515_v61  ;;  %v8604_v32 = vrot.slane %v4770_v58, 5  ;;  %v8616_v61 = vld [vmem:[#allocation2 + $0x1c] sm:$0xf]  ;;  %v5088_v58 = vld [vmem:[#allocation2 + $0x90] sm:$0xe] }
 0x24c   : > { %v8602_v55 = vcombine.low %v4725_v2, %v4735_v31  ;;  %v8606_v30 = vrot.slane %v4774_v43, 4  ;;  %v8608_v53 = vrot.slane %v4780_v57, 5  ;;  %v4749_v63 = vsel %vm7335_vm9, %v8584_v35, %v8542_v45  ;;  %v5089_v23 = vld [vmem:[#allocation2 + $0x9c] sm:$0xe]  ;;  %v9287_v35 = vld [vmem:[#allocation5_spill] sm:$0xff] }
 0x24d   : > { %v4767_v20 = vor.u32 %v4766_v15, %v4763_v5  ;;  %v5144_v50 = vrot.slane %v8616_v61, 5  ;;  %v5193_v11 = vrot.slane %v8279_v25, 5  ;;  %v6263_v29 = vrot.slane %v5085_v56, 9 }
 0x24e   : > { %v6264_v34 = vrot.slane %v5086_v49, 9  ;;  %v5200_v7 = vrot.slane %v8301_v38, 5  ;;  %v9282_v14 = vcombine.low %v8423_v21, %v8434_v52  ;;  %v5196_v25 = vrot.slane %v8309_v59, 5 }
 0x24f   : > { %v5195_v54 = vrot.slane %v5193_v11, 4  ;;  %v5203_v1 = vrot.slane %v8362_v6, 5  ;;  %v9283_v43 = vcombine.low %v8451_v36, %v8443_v41  ;;  %v8640_v38 = vsel %vm7690_vm1, %v6263_v29, %v5193_v11 }
 0x250   : > { %6753 = vmatmul.mubr.msk.bf16.gmra.mrb[16].mxu0 %vm1476_vm10, %v8468_v13  ;;  %v4759_v13 = vsel %vm7335_vm9, %v8593_v12, %v8595_v33  ;;  %v8644_v21 = vsel %vm7690_vm1, %v6264_v34, %v5200_v7  ;;  %v5202_v52 = vrot.slane %v5200_v7, 4  ;;  %v6265_v59 = vrot.slane %v5087_v28, 9  ;;  %v5090_v34 = vld [vmem:[#allocation2 + $0xa8] sm:$0xe]  ;;  %v5091_v7 = vld [vmem:[#allocation2 + $0xb4] sm:$0xe] }
 0x251   : > { %6756 = vmatprep.mubr.msk.bf16.mxu0 %vm1476_vm10, %v8494_v17  ;;  %v5207_v17 = vrot.slane %v8343_v51, 5  ;;  %v8648_v6 = vsel %vm7690_vm1, %v5195_v54, %v5196_v25  ;;  %v5210_v57 = vrot.slane %v8395_v22, 5  ;;  %v5214_v41 = vrot.slane %v8359_v44, 5 }
 0x252   : > { %6587 = vmatmul.mubr.msk.bf16.gmra.mrb[20].mxu1 %vm1476_vm10, %v9282_v14  ;;  %v6280_v36 = vcombine.low %v8640_v38, %v8648_v6  ;;  %v8656_v31 = vsel %vm7690_vm1, %v5202_v52, %v5203_v1  ;;  %v6266_v15 = vrot.slane %v5088_v58, 9  ;;  %v5217_v56 = vrot.slane %v8410_v4, 5  ;;  %v9284_v1 = vld [vmem:[#allocation7_spill] sm:$0xff] }
 0x253   : > { %6590 = vmatprep.mubr.msk.bf16.mxu1 %vm1476_vm10, %v9283_v43  ;;  %v5209_v51 = vrot.slane %v5207_v17, 4  ;;  %v8660_v5 = vsel %vm7690_vm1, %v6265_v59, %v5207_v17  ;;  %v6281_v2 = vcombine.low %v8644_v21, %v8656_v31  ;;  %v5216_v44 = vrot.slane %v5214_v41, 4  ;;  %v7150_v6 = vld [vmem:[#allocation2 + $0x9c] sm:$0xff]  }
 0x254   : > { %v8669_v49 = vrot.slane %v4767_v20, 4  ;;  %v4777_v11 = vor.u32 %v8606_v30, %v8604_v32  ;;  %v5221_v29 = vrot.slane %v8439_v62, 5  ;;  %v8679_v14 = vsel %vm7690_vm1, %v6266_v15, %v5214_v41 }
 0x255   : > { %v8666_v22 = vsel %vm7690_vm1, %v5209_v51, %v5210_v57  ;;  %v8683_v4 = vsel %vm7690_vm1, %v5216_v44, %v5217_v56  ;;  %v6267_v20 = vrot.slane %v5089_v23, 9  ;;  %v5228_v30 = vrot.slane %v8455_v10, 5  ;;  %v5092_v51 = vld [vmem:[#allocation2 + $0xc0] sm:$0xe]  ;;  %v2824_v23 = vld [vmem:[#allocation2 + $0x78] sm:$0xf] }
 0x256   : > { %v6282_v28 = vcombine.low %v8660_v5, %v8666_v22  ;;  %v6283_v62 = vcombine.low %v8679_v14, %v8683_v4  ;;  %v5223_v54 = vrot.slane %v5221_v29, 4  ;;  %v5224_v25 = vrot.slane %v8464_v26, 5  ;;  %v7199_v56 = vld [vmem:[#allocation2 + $0x20] sm:$0x1]  ;;  %v7208_v22 = vld [vmem:[#allocation2 + $0x88] sm:$0xf] }
 0x257   : > { %v9285_v17 = vcombine.low %v8498_v39, %v9284_v1  ;;  %v6268_v58 = vrot.slane %v5090_v34, 9  ;;  %v5230_v43 = vrot.slane %v5228_v30, 4  ;;  %v5231_v52 = vrot.slane %v8513_v47, 5  ;;  %v7152_v4 = vld [vmem:[#allocation2 + $0xb4] sm:$0xff]  }
 0x258   : > { %6757 = vmatmul.mubr.msk.bf16.gmra.mrb[20].mxu0 %vm1476_vm10, %v6235_v46  ;;  %v5235_v46 = vrot.slane %v8472_v9, 5  ;;  %v6269_v10 = vrot.slane %v5091_v7, 9  ;;  %v8702_v26 = vsel %vm7690_vm1, %v6267_v20, %v5221_v29  ;;  %v8706_v9 = vsel %vm7690_vm1, %v5223_v54, %v5224_v25 }
 0x259   : > { %6760 = vmatprep.mubr.msk.bf16.mxu0 %vm1476_vm10, %v6236_v0  ;;  %v5078_v0 = vld [vmem:[#allocation2 + $0x18] sm:$0xe]  ;;  %v5238_v59 = vrot.slane %v8531_v8, 5  ;;  %v4778_v47 = vrot.slane %v4777_v11, 4  ;;  %v6284_v57 = vcombine.low %v8702_v26, %v8706_v9  ;;  %v8713_v27 = vsel %vm7690_vm1, %v6268_v58, %v5228_v30  ;;  %v9286_v30 = vld [vmem:[#allocation13_spill] sm:$0xff] }
 0x25a   : > { %6591 = vmatmul.mubr.msk.bf16.gmra.mrb[24].mxu1 %vm1476_vm10, %v9285_v17  ;;  %v5237_v39 = vrot.slane %v5235_v46, 4  ;;  %v8717_v19 = vsel %vm7690_vm1, %v5230_v43, %v5231_v52  ;;  %v8725_v8 = vsel %vm7690_vm1, %v6269_v10, %v5235_v46  ;;  %v6256_v44 = vrot.slane %v5078_v0, 9  ;;  %v5093_v46 = vld [vmem:[#allocation2 + $0xcc] sm:$0xe]  ;;  %v7201_v0 = vld [vmem:[#allocation2 + $0x34] sm:$0xf] }
 0x25b   : > { %6594 = vmatprep.mubr.msk.bf16.mxu1 %vm1476_vm10, %v6057_v16  ;;  %v5146_v16 = vrot.slane %v5144_v50, 4  ;;  %v6285_v41 = vcombine.low %v8713_v27, %v8717_v19  ;;  %v5147_v11 = vrot.slane %v7199_v56, 5  ;;  %v6270_v34 = vrot.slane %v5092_v51, 9  ;;  %v2833_v19 = vld [vmem:[#allocation2 + $0x9c] sm:$0xf] }
 0x25c   : > { %v8729_v15 = vsel %vm7690_vm1, %v5237_v39, %v5238_v59  ;;  %v6238_v7 = vcombine.low %v4749_v63, %v4759_v13  ;;  %v4773_v20 = vsel %vm7335_vm9, %v8669_v49, %v8604_v32  ;;  %v5242_v54 = vrot.slane %v9286_v30, 5  ;;  %v9288_v63 = vld [vmem:[#allocation6_spill] sm:$0xff]  ;;  %v7200_v49 = vld [vmem:[#allocation2 + $0x28] sm:$0xf]  ;;  %v9289_v30 = vld [vmem:[#allocation4_spill] sm:$0xff] }
 0x25d   : > { %v6286_v29 = vcombine.low %v8725_v8, %v8729_v15  ;;  %v5245_v25 = vrot.slane %v8553_v18, 5  ;;  %v4783_v12 = vsel %vm7335_vm9, %v4778_v47, %v8608_v53  ;;  %v3062_v33 = vshrl.u32 %v2824_v23, 16  ;;  %v7138_v32 = vld [vmem:[#allocation2 + $0xc] sm:$0xff]  }
 0x25e   : > { %v3065_v45 = vshll.u32 %v2824_v23, 16  ;;  %v3084_v13 = vsel %vm7335_vm9, %v9288_v63, %v9287_v35  ;;  %v5148_v18 = vsel %vm7690_vm1, %v5146_v16, %v5147_v11  ;;  %v5151_v1 = vrot.slane %v7200_v49, 5 }
 0x25f   : > { %v5244_v53 = vrot.slane %v5242_v54, 4  ;;  %v3064_v17 = vrot.slane %v3062_v33, 4  ;;  %v6271_v43 = vrot.slane %v5093_v46, 9  ;;  %v5249_v52 = vrot.slane %v8555_v48, 5 }
 0x260   : > { %6761 = vmatmul.mubr.msk.bf16.gmra.mrb[24].mxu0 %vm1476_vm10, %v8602_v55  ;;  %v8763_v55 = vsel %vm7690_vm1, %v6270_v34, %v5242_v54  ;;  %v3067_v58 = vrot.slane %v3065_v45, 5  ;;  %v6239_v10 = vcombine.low %v4773_v20, %v4783_v12  ;;  %v5158_v39 = vrot.slane %v7201_v0, 5  ;;  %v7139_v34 = vld [vmem:[#allocation2 + $0x18] sm:$0xff]  }
 0x261   : > { %6764 = vmatprep.mubr.msk.bf16.mxu0 %vm1476_vm10, %v6238_v7  ;;  %v8773_v59 = vsel %vm7690_vm1, %v5244_v53, %v5245_v25  ;;  %v5252_v51 = vrot.slane %v8559_v37, 5  ;;  %v5251_v48 = vrot.slane %v5249_v52, 4  ;;  %v5145_v47 = vsel %vm7690_vm1, %v6256_v44, %v5144_v50  ;;  %v5079_v7 = vld [vmem:[#allocation2 + $0x24] sm:$0xe]  ;;  %v7202_v44 = vld [vmem:[#allocation2 + $0x2c] sm:$0x1] }
 0x262   : > { %6595 = vmatmul.mubr.msk.bf16.gmra.mrb[28].mxu1 %vm1476_vm10, %v6058_v40  ;;  %v6287_v3 = vcombine.low %v8763_v55, %v8773_v59  ;;  %v3068_v42 = vor.u32 %v3067_v58, %v3064_v17  ;;  %v8780_v40 = vsel %vm7690_vm1, %v6271_v43, %v5249_v52  ;;  %v6273_v37 = vcombine.low %v5145_v47, %v5148_v18  ;;  %v7140_v50 = vld [vmem:[#allocation2 + $0x24] sm:$0xff]   ;;  %v5080_v25 = vld [vmem:[#allocation2 + $0x30] sm:$0xe]  ;;  %v7203_v12 = vld [vmem:[#allocation2 + $0x38] sm:$0x1] }
 0x263   : > { %6600 = vmatprep.mubr.msk.bf16.mxu1 %vm1476_vm10, %v7138_v32  ;;  %v8788_v23 = vsel %vm7690_vm1, %v5251_v48, %v5252_v51  ;;  %v5153_v56 = vrot.slane %v5151_v1, 4  ;;  %v5160_v20 = vrot.slane %v5158_v39, 4  ;;  %v5154_v54 = vrot.slane %v7202_v44, 5  ;;  %v9290_v45 = vld [vmem:[#allocation3_spill] sm:$0xff]  ;;  %v7204_v32 = vld [vmem:[#allocation2 + $0x40] sm:$0xf] }
 0x264   : > { %v3069_v16 = vrot.slane %v3068_v42, 4  ;;  %v6288_v11 = vcombine.low %v8780_v40, %v8788_v23  ;;  %v5161_v33 = vrot.slane %v7203_v12, 5  ;;  %v6257_v35 = vrot.slane %v5079_v7, 9  ;;  %v7141_v51 = vld [vmem:[#allocation2 + $0x30] sm:$0xff]   ;;  %v5081_v42 = vld [vmem:[#allocation2 + $0x3c] sm:$0xe] }
 0x265   : > { %v5155_v63 = vsel %vm7690_vm1, %v5153_v56, %v5154_v54  ;;  %v5165_v18 = vrot.slane %v7204_v32, 5  ;;  %v6258_v49 = vrot.slane %v5080_v25, 9  ;;  %v7142_v47 = vld [vmem:[#allocation2 + $0x3c] sm:$0xff]   ;;  %v5082_v56 = vld [vmem:[#allocation2 + $0x48] sm:$0xe]  ;;  %v9293_v44 = vld [vmem:[#allocation10_spill] sm:$0xff] }
 0x266   : > { %v3074_v61 = vsel %vm7335_vm9, %v3069_v16, %v9289_v30  ;;  %v5162_v53 = vsel %vm7690_vm1, %v5160_v20, %v5161_v33  ;;  %v5152_v58 = vsel %vm7690_vm1, %v6257_v35, %v5151_v1  ;;  %v7206_v16 = vld [vmem:[#allocation2 + $0x44] sm:$0x1]  ;;  %v9291_v1 = vld [vmem:[#allocation9_spill] sm:$0xff]  ;;  %v5186_v54 = vrot.slane %v9293_v44, 5  ;;  %v5083_v32 = vld [vmem:[#allocation2 + $0x54] sm:$0xe] }
 0x267   : > { %v8797_v46 = vcombine.low %v3074_v61, %v3084_v13  ;;  %v7205_v13 = vld [vmem:[#allocation2 + $0x4c] sm:$0xf]  ;;  %v6274_v43 = vcombine.low %v5152_v58, %v5155_v63  ;;  %v5159_v52 = vsel %vm7690_vm1, %v6258_v49, %v5158_v39  ;;  %v5167_v0 = vrot.slane %v5165_v18, 4  ;;  %v9292_v20 = vld [vmem:[#allocation8_spill] sm:$0xff]  ;;  %v2836_v55 = vld [vmem:[#allocation2 + $0xa8] sm:$0xf] }
 0x268   : > { %6765 = vmatmul.mubr.msk.bf16.gmra.mrb[28].mxu0 %vm1476_vm10, %v6239_v10  ;;  %v5172_v17 = vrot.slane %v7205_v13, 5  ;;  %v6275_v10 = vcombine.low %v5159_v52, %v5162_v53  ;;  %v6259_v39 = vrot.slane %v5081_v42, 9  ;;  %v5179_v30 = vrot.slane %v9292_v20, 5  ;;  %v7143_v63 = vld [vmem:[#allocation2 + $0x48] sm:$0xff]   ;;  %v7144_v53 = vld [vmem:[#allocation2 + $0x54] sm:$0xff]  }
 0x269   : > { %6770 = vmatprep.mubr.msk.bf16.mxu0 %vm1476_vm10, %v6273_v37  ;;  %v5168_v37 = vrot.slane %v7206_v16, 5  ;;  %v6260_v61 = vrot.slane %v5082_v56, 9  ;;  %v5188_v49 = vrot.slane %v5186_v54, 4  ;;  %v9294_v13 = vld [vmem:[#allocation11_spill] sm:$0xff]  ;;  %v7146_v56 = vld [vmem:[#allocation2 + $0x6c] sm:$0xff]  }
 0x26a   : > { %6601 = vmatmul.mubr.msk.bf16.vlgmr.msra.gmra.mrb[0].mxu1 %vm1476_vm10, %v7139_v34  ;;  %v5174_v48 = vrot.slane %v5172_v17, 4  ;;  %v5175_v34 = vrot.slane %v9291_v1, 5  ;;  %v5166_v25 = vsel %vm7690_vm1, %v6259_v39, %v5165_v18  ;;  %v5181_v35 = vrot.slane %v5179_v30, 4  ;;  %v9295_v18 = vld [vmem:[#allocation12_spill] sm:$0xff]  ;;  %v7147_v1 = vld [vmem:[#allocation2 + $0x78] sm:$0xff]  }
 0x26b   : > { %6803 = vmatpush3.bf16.msra.mxu1 %v9290_v45  ;;  %6604 = vmatprep.mubr.msk.bf16.mxu1 %vm1476_vm10, %v7140_v50  ;;  %v5169_v7 = vsel %vm7690_vm1, %v5167_v0, %v5168_v37  ;;  %v5173_v33 = vsel %vm7690_vm1, %v6260_v61, %v5172_v17  ;;  %v5182_v58 = vrot.slane %v9294_v13, 5  ;;  %v5189_v52 = vrot.slane %v9295_v18, 5  ;;  %v7145_v37 = vld [vmem:[#allocation2 + $0x60] sm:$0xff]   ;;  %v7207_v39 = vld [vmem:[#allocation2 + $0x70] sm:$0xf] }
 0x26c   : > { %v5176_v50 = vsel %vm7690_vm1, %v5174_v48, %v5175_v34  ;;  %v6276_v12 = vcombine.low %v5166_v25, %v5169_v7  ;;  %v6261_v17 = vrot.slane %v5083_v32, 9  ;;  %v7148_v34 = vld [vmem:[#allocation2 + $0x84] sm:$0xff]   ;;  %v3047_v7 = vshll.u32 %v7207_v39, 16  ;;  %v2830_v13 = vld [vmem:[#allocation2 + $0x90] sm:$0xf] }
 0x26d   : > { %v6277_v45 = vcombine.low %v5173_v33, %v5176_v50  ;;  %v3051_v20 = vshrl.u32 %v7207_v39, 16  ;;  %v3041_v61 = vshll.u32 %v2821_v24, 16  ;;  %v7149_v50 = vld [vmem:[#allocation2 + $0x90] sm:$0xff]   ;;  %v3099_v25 = vshrl.u32 %v7208_v22, 16 }
 0x26e   : > { %v5180_v42 = vsel %vm7690_vm1, %v6261_v17, %v5179_v30  ;;  %v3038_v30 = vshrl.u32 %v2821_v24, 16  ;;  %v3049_v38 = vrot.slane %v3047_v7, 5 }
 0x26f   : > { %v3053_v21 = vrot.slane %v3051_v20, 4 }
 0x270   : > { %6771 = vmatmul.mubr.msk.bf16.vlgmr.msra.gmra.mrb[0].mxu0 %vm1476_vm10, %v6274_v43  ;;  %v5084_v43 = vld [vmem:[#allocation2 + $0x60] sm:$0xe]  ;;  %v3040_v31 = vrot.slane %v3038_v30, 4 }
 0x271   : > { %6774 = vmatprep.mubr.msk.bf16.mxu0 %vm1476_vm10, %v6275_v10  ;;  %v5183_v10 = vsel %vm7690_vm1, %v5181_v35, %v5182_v58  ;;  %v6262_v0 = vrot.slane %v5084_v43, 9  ;;  %v3054_v44 = vor.u32 %v3053_v21, %v3049_v38  ;;  %v7151_v35 = vld [vmem:[#allocation2 + $0xa8] sm:$0xff]   ;;  %v7210_v58 = vld [vmem:[#allocation2 + $0x94] sm:$0xf] }
 0x272   : > { %6605 = vmatmul.mubr.msk.bf16.gmra.mrb[4].mxu1 %vm1476_vm10, %v7141_v51  ;;  %v5190_v51 = vsel %vm7690_vm1, %v5188_v49, %v5189_v52  ;;  %v6278_v48 = vcombine.low %v5180_v42, %v5183_v10  ;;  %v3101_v49 = vrot.slane %v3099_v25, 4  ;;  %v3119_v26 = vshll.u32 %v7210_v58, 16  ;;  %v7216_v25 = vld [vmem:[#allocation2 + $0xb8] sm:$0xf] }
 0x273   : > { %6608 = vmatprep.mubr.msk.bf16.mxu1 %vm1476_vm10, %v7142_v47  ;;  %v5187_v47 = vsel %vm7690_vm1, %v6262_v0, %v5186_v54  ;;  %v3055_v14 = vrot.slane %v3054_v44, 4  ;;  %v3123_v9 = vshrl.u32 %v7210_v58, 16  ;;  %v3110_v10 = vshrl.u32 %v2830_v13, 16 }
 0x274   : > { %v6279_v16 = vcombine.low %v5187_v47, %v5190_v51  ;;  %v3113_v0 = vshll.u32 %v2830_v13, 16  ;;  %v8878_v51 = vrot.slane %v3119_v26, 5  ;;  %v7212_v47 = vld [vmem:[#allocation2 + $0x8c] sm:$0x1] }
 0x275   : > { %v3125_v42 = vrot.slane %v3123_v9, 4  ;;  %v3112_v30 = vrot.slane %v3110_v10, 4  ;;  %v7217_v10 = vld [vmem:[#allocation2 + $0xc4] sm:$0xf] }
 0x278   : > { %6775 = vmatmul.mubr.msk.bf16.gmra.mrb[4].mxu0 %vm1476_vm10, %v6276_v12  ;;  %v7209_v12 = vld [vmem:[#allocation2 + $0x74] sm:$0x1] }
 0x279   : > { %6778 = vmatprep.mubr.msk.bf16.mxu0 %vm1476_vm10, %v6277_v45  ;;  %v3057_v33 = vshll.u32 %v7209_v12, 16  ;;  %v3191_v12 = vshll.u32 %v7216_v25, 16 }
 0x27a   : > { %6609 = vmatmul.mubr.msk.bf16.gmra.mrb[8].mxu1 %vm1476_vm10, %v7143_v63 }
 0x27b   : > { %6612 = vmatprep.mubr.msk.bf16.mxu1 %vm1476_vm10, %v7144_v53  ;;  %v3059_v53 = vrot.slane %v3057_v33, 5  ;;  %v3195_v33 = vshrl.u32 %v7216_v25, 16  ;;  %v3193_v9 = vrot.slane %v3191_v12, 5 }
 0x27d   : > { %v3060_v27 = vsel %vm7335_vm9, %v3055_v14, %v3059_v53  ;;  %v3161_v14 = vshll.u32 %v2836_v55, 16 }
 0x280   : > { %6779 = vmatmul.mubr.msk.bf16.gmra.mrb[8].mxu0 %vm1476_vm10, %v6278_v48 }
 0x281   : > { %6782 = vmatprep.mubr.msk.bf16.mxu0 %vm1476_vm10, %v6279_v16  ;;  %v3105_v16 = vshll.u32 %v7212_v47, 16 }
 0x282   : > { %6613 = vmatmul.mubr.msk.bf16.gmra.mrb[12].mxu1 %vm1476_vm10, %v7145_v37  ;;  %v3134_v37 = vshrl.u32 %v2833_v19, 16 }
 0x283   : > { %6616 = vmatprep.mubr.msk.bf16.mxu1 %vm1476_vm10, %v7146_v56  ;;  %v3137_v56 = vshll.u32 %v2833_v19, 16  ;;  %v3107_v8 = vrot.slane %v3105_v16, 5  ;;  %v3163_v19 = vrot.slane %v3161_v14, 5 }
 0x284   : > { %v3136_v15 = vrot.slane %v3134_v37, 4 }
 0x288   : > { %6783 = vmatmul.mubr.msk.bf16.gmra.mrb[12].mxu0 %vm1476_vm10, %v6280_v36  ;;  %v2827_v36 = vld [vmem:[#allocation2 + $0x84] sm:$0xf] }
 0x289   : > { %6786 = vmatprep.mubr.msk.bf16.mxu0 %vm1476_vm10, %v6281_v2  ;;  %v3043_v2 = vrot.slane %v3041_v61, 5  ;;  %v3086_v54 = vshrl.u32 %v2827_v36, 16  ;;  %v3089_v5 = vshll.u32 %v2827_v36, 16  ;;  %v3115_v61 = vrot.slane %v3113_v0, 5 }
 0x28a   : > { %6617 = vmatmul.mubr.msk.bf16.gmra.mrb[16].mxu1 %vm1476_vm10, %v7147_v1  ;;  %v7153_v1 = vld [vmem:[#allocation2 + $0xc0] sm:$0xff]   ;;  %v3215_v0 = vshll.u32 %v7217_v10, 16 }
 0x28b   : > { %6620 = vmatprep.mubr.msk.bf16.mxu1 %vm1476_vm10, %v7148_v34  ;;  %v3044_v45 = vor.u32 %v3043_v2, %v3040_v31  ;;  %v3091_v63 = vrot.slane %v3089_v5, 5  ;;  %v3116_v31 = vor.u32 %v3115_v61, %v3112_v30  ;;  %v7214_v2 = vld [vmem:[#allocation2 + $0x98] sm:$0x1]  ;;  %v7219_v30 = vld [vmem:[#allocation2 + $0xbc] sm:$0x1] }
 0x28c   : > { %v3129_v44 = vshll.u32 %v7214_v2, 16  ;;  %v3201_v61 = vshll.u32 %v7219_v30, 16 }
 0x28d   : > { %v3117_v58 = vrot.slane %v3116_v31, 4 }
 0x28e   : > { %v3131_v13 = vrot.slane %v3129_v44, 5 }
 0x290   : > { %6787 = vmatmul.mubr.msk.bf16.gmra.mrb[16].mxu0 %vm1476_vm10, %v6282_v28  ;;  %v3095_v28 = vshll.u32 %v7208_v22, 16  ;;  %v7215_v22 = vld [vmem:[#allocation2 + $0xa4] sm:$0x1] }
 0x291   : > { %6790 = vmatprep.mubr.msk.bf16.mxu0 %vm1476_vm10, %v6283_v62  ;;  %v3088_v62 = vrot.slane %v3086_v54, 4  ;;  %v2839_v54 = vld [vmem:[#allocation2 + $0xb4] sm:$0xf] }
 0x292   : > { %6621 = vmatmul.mubr.msk.bf16.gmra.mrb[20].mxu1 %vm1476_vm10, %v7149_v50  ;;  %v8871_v32 = vrot.slane %v3095_v28, 5  ;;  %v3126_v50 = vor.u32 %v3125_v42, %v8878_v51  ;;  %v3153_v28 = vshll.u32 %v7215_v22, 16  ;;  %v3219_v42 = vshrl.u32 %v7217_v10, 16 }
 0x293   : > { %6624 = vmatprep.mubr.msk.bf16.mxu1 %vm1476_vm10, %v7150_v6  ;;  %v3092_v52 = vor.u32 %v3091_v63, %v3088_v62 }
 0x294   : > { %v3102_v17 = vor.u32 %v3101_v49, %v8871_v32  ;;  %v3127_v5 = vrot.slane %v3126_v50, 4  ;;  %v3185_v49 = vshll.u32 %v2839_v54, 16  ;;  %v3155_v26 = vrot.slane %v3153_v28, 5 }
 0x295   : > { %v3093_v7 = vrot.slane %v3092_v52, 4 }
 0x296   : > { %v3103_v20 = vrot.slane %v3102_v17, 4  ;;  %v3132_v40 = vsel %vm7335_vm9, %v3127_v5, %v3131_v13  ;;  %v3187_v52 = vrot.slane %v3185_v49, 5 }
 0x298   : > { %6791 = vmatmul.mubr.msk.bf16.gmra.mrb[20].mxu0 %vm1476_vm10, %v6284_v57  ;;  %v3045_v57 = vrot.slane %v3044_v45, 4  ;;  %v3108_v36 = vsel %vm7335_vm9, %v3103_v20, %v3107_v8 }
 0x299   : > { %6794 = vmatprep.mubr.msk.bf16.mxu0 %vm1476_vm10, %v6285_v41  ;;  %v7211_v41 = vld [vmem:[#allocation2 + $0xa0] sm:$0xf] }
 0x29a   : > { %6625 = vmatmul.mubr.msk.bf16.gmra.mrb[24].mxu1 %vm1476_vm10, %v7151_v35  ;;  %v3143_v43 = vshll.u32 %v7211_v41, 16  ;;  %v3147_v18 = vshrl.u32 %v7211_v41, 16  ;;  %v3050_v48 = vsel %vm7335_vm9, %v3045_v57, %v3049_v38  ;;  %v7213_v38 = vld [vmem:[#allocation2 + $0xac] sm:$0xf]  ;;  %v3158_v35 = vshrl.u32 %v2836_v55, 16 }
 0x29b   : > { %6628 = vmatprep.mubr.msk.bf16.mxu1 %vm1476_vm10, %v7152_v4  ;;  %v6117_v34 = vcombine.low %v3050_v48, %v3060_v27  ;;  %v3167_v21 = vshll.u32 %v7213_v38, 16  ;;  %v3171_v59 = vshrl.u32 %v7213_v38, 16  ;;  %v3197_v57 = vrot.slane %v3195_v33, 4  ;;  %v2842_v27 = vld [vmem:[#allocation2 + $0xc0] sm:$0xf] }
 0x29c   : > { %v8886_v24 = vrot.slane %v3143_v43, 5  ;;  %v3149_v39 = vrot.slane %v3147_v18, 4  ;;  %v3209_v17 = vshll.u32 %v2842_v27, 16  ;;  %v3122_v48 = vsel %vm7335_vm9, %v3117_v58, %v8878_v51 }
 0x29d   : > { %v3169_v4 = vrot.slane %v3167_v21, 5  ;;  %v3173_v63 = vrot.slane %v3171_v59, 4  ;;  %v3198_v47 = vor.u32 %v3197_v57, %v3193_v9  ;;  %v6120_v16 = vcombine.low %v3122_v48, %v3132_v40 }
 0x29e   : > { %v3150_v6 = vor.u32 %v3149_v39, %v8886_v24  ;;  %v3211_v8 = vrot.slane %v3209_v17, 5 }
 0x29f   : > { %v3174_v43 = vor.u32 %v3173_v63, %v3169_v4  ;;  %v3199_v51 = vrot.slane %v3198_v47, 4 }
 0x2a0   : > { %6795 = vmatmul.mubr.msk.bf16.gmra.mrb[24].mxu0 %vm1476_vm10, %v6286_v29  ;;  %v3139_v29 = vrot.slane %v3137_v56, 5  ;;  %v3151_v62 = vrot.slane %v3150_v6, 4  ;;  %v3203_v6 = vrot.slane %v3201_v61, 5 }
 0x2a1   : > { %6798 = vmatprep.mubr.msk.bf16.mxu0 %vm1476_vm10, %v6287_v3  ;;  %v3098_v3 = vsel %vm7335_vm9, %v3093_v7, %v8871_v32  ;;  %v3182_v32 = vshrl.u32 %v2839_v54, 16  ;;  %v3175_v7 = vrot.slane %v3174_v43, 4 }
 0x2a2   : > { %6629 = vmatmul.mubr.msk.bf16.gmra.mrb[28].mxu1 %vm1476_vm10, %v7153_v1  ;;  %v3140_v45 = vor.u32 %v3139_v29, %v3136_v15  ;;  %v6119_v53 = vcombine.low %v3098_v3, %v3108_v36  ;;  %v3156_v41 = vsel %vm7335_vm9, %v3151_v62, %v3155_v26  ;;  %v7218_v1 = vld [vmem:[#allocation2 + $0xb0] sm:$0x1]  ;;  %v3217_v15 = vrot.slane %v3215_v0, 5  ;;  %v7220_v36 = vld [vmem:[#allocation2 + $0xc8] sm:$0x1] }
 0x2a3   : > { %6650 = vmatprep.mubr.msk.bf16.mxu1 %vm1476_vm10, %v6117_v34  ;;  %v3184_v18 = vrot.slane %v3182_v32, 4  ;;  %v3177_v34 = vshll.u32 %v7218_v1, 16  ;;  %v3221_v29 = vrot.slane %v3219_v42, 4  ;;  %v3225_v31 = vshll.u32 %v7220_v36, 16 }
 0x2a4   : > { %v3141_v23 = vrot.slane %v3140_v45, 4  ;;  %v3204_v2 = vsel %vm7335_vm9, %v3199_v51, %v3203_v6 }
 0x2a5   : > { %v3188_v20 = vor.u32 %v3187_v52, %v3184_v18  ;;  %v3179_v21 = vrot.slane %v3177_v34, 5  ;;  %v3222_v3 = vor.u32 %v3221_v29, %v3217_v15  ;;  %v3227_v12 = vrot.slane %v3225_v31, 5 }
 0x2a6   : > { %v3146_v37 = vsel %vm7335_vm9, %v3141_v23, %v8886_v24 }
 0x2a7   : > { %v6121_v39 = vcombine.low %v3146_v37, %v3156_v41  ;;  %v3189_v24 = vrot.slane %v3188_v20, 4  ;;  %v3180_v55 = vsel %vm7335_vm9, %v3175_v7, %v3179_v21  ;;  %v3223_v25 = vrot.slane %v3222_v3, 4 }
 0x2a8   : > { %6799 = vmatmul.mubr.msk.bf16.gmra.mrb[28].mxu0 %vm1476_vm10, %v6288_v11  ;;  %v3160_v11 = vrot.slane %v3158_v35, 4 }
 0x2a9   : > { %v3194_v5 = vsel %vm7335_vm9, %v3189_v24, %v3193_v9  ;;  %v3228_v45 = vsel %vm7335_vm9, %v3223_v25, %v3227_v12 }
 0x2aa   : > { %6651 = vmatmul.mubr.msk.bf16.vlgmr.msra.gmra.mrb[16].mxu1 %vm1476_vm10, %v8797_v46  ;;  %v3206_v46 = vshrl.u32 %v2842_v27, 16  ;;  %v3164_v56 = vor.u32 %v3163_v19, %v3160_v11  ;;  %v6123_v22 = vcombine.low %v3194_v5, %v3204_v2 }
 0x2ab   : > { %6654 = vmatprep.mubr.msk.bf16.mxu1 %vm1476_vm10, %v6119_v53 }
 0x2ac   : > { %v3208_v50 = vrot.slane %v3206_v46, 4  ;;  %v3165_v38 = vrot.slane %v3164_v56, 4 }
 0x2ae   : > { %v3212_v59 = vor.u32 %v3211_v8, %v3208_v50  ;;  %v3170_v44 = vsel %vm7335_vm9, %v3165_v38, %v3169_v4 }
 0x2af   : > { %v6122_v54 = vcombine.low %v3170_v44, %v3180_v55 }
 0x2b0   : > { %v3213_v28 = vrot.slane %v3212_v59, 4 }
 0x2b2   : > { %6655 = vmatmul.mubr.msk.bf16.gmra.mrb[20].mxu1 %vm1476_vm10, %v6120_v16  ;;  %v3218_v33 = vsel %vm7335_vm9, %v3213_v28, %v3217_v15 }
 0x2b3   : > { %6658 = vmatprep.mubr.msk.bf16.mxu1 %vm1476_vm10, %v6121_v39  ;;  %v6124_v35 = vcombine.low %v3218_v33, %v3228_v45 }
 0x2ba   : > { %6659 = vmatmul.mubr.msk.bf16.gmra.mrb[24].mxu1 %vm1476_vm10, %v6122_v54 }
 0x2bb   : > { %6662 = vmatprep.mubr.msk.bf16.mxu1 %vm1476_vm10, %v6123_v22 }
 0x2c2   : > { %6663 = vmatmul.mubr.msk.bf16.gmra.mrb[28].mxu1 %vm1476_vm10, %v6124_v35 }
 0x33d   : > { %v6602_v14 = vpop.f32.mrb[0].mxu1 }
 0x33e   : > { %v2638_v4 = vpop.f32.mrb[1].mxu1 }
 0x33f   : > { %v6603_v62 = vpop.f32.mrb[2].mxu1 }
 0x340   : > { %v2641_v63 = vpop.f32.mrb[3].mxu1 }
 0x343   : > { %v6772_v32 = vpop.f32.mrb[0].mxu0 }
 0x344   : > { %v8935_v49 = vadd.f32 %v6772_v32, %v6602_v14  ;;  %v5389_v53 = vpop.f32.mrb[1].mxu0 }
 0x345   : > { %v6606_v13 = vpop.f32.mrb[4].mxu1  ;;  %v8937_v58 = vadd.f32 %v5389_v53, %v2638_v4  ;;  %v6773_v26 = vpop.f32.mrb[2].mxu0 }
 0x346   : > { %v2654_v9 = vpop.f32.mrb[5].mxu1  ;;  %v8939_v57 = vadd.f32 %v6773_v26, %v6603_v62  ;;  %v5392_v60 = vpop.f32.mrb[3].mxu0  ;;  %v5551_v43 = vsel %vm1476_vm10, %v8935_v49, 0.0 }
 0x347   : > { %v6607_v27 = vpop.f32.mrb[6].mxu1  ;;  %v8941_v40 = vadd.f32 %v5392_v60, %v2641_v63  ;;  %v5548_v11 = vsel %vm1476_vm10, %v8937_v58, 0.0 }
 0x348   : > { %v2657_v23 = vpop.f32.mrb[7].mxu1  ;;  %v5553_v37 = vsel %vm1476_vm10, %v8939_v57, 0.0 }
 0x349   : > { %v5549_v19 = vsel %vm1476_vm10, %v8941_v40, 0.0 }
 0x34a   : > { %v5550_v41 = vadd.f32 %v5549_v19, %v5548_v11 }
 0x34b   : > { %v6776_v18 = vpop.f32.mrb[4].mxu0 }
 0x34c   : > { %v5552_v52 = vadd.f32 %v5551_v43, %v5550_v41  ;;  %v8949_v46 = vadd.f32 %v6776_v18, %v6606_v13  ;;  %v5405_v17 = vpop.f32.mrb[5].mxu0 }
 0x34d   : > { %v6610_v10 = vpop.f32.mrb[8].mxu1  ;;  %v8951_v0 = vadd.f32 %v5405_v17, %v2654_v9  ;;  %v6777_v42 = vpop.f32.mrb[6].mxu0 }
 0x34e   : > { %v2670_v48 = vpop.f32.mrb[9].mxu1  ;;  %v8953_v47 = vadd.f32 %v6777_v42, %v6607_v27  ;;  %v5408_v16 = vpop.f32.mrb[7].mxu0  ;;  %v5554_v34 = vadd.f32 %v5553_v37, %v5552_v52  ;;  %v5559_v36 = vsel %vm1476_vm10, %v8949_v46, 0.0 }
 0x34f   : > { %v6611_v56 = vpop.f32.mrb[10].mxu1  ;;  %v8957_v1 = vadd.f32 %v5408_v16, %v2657_v23  ;;  %v5555_v7 = vsel %vm1476_vm10, %v8951_v0, 0.0 }
 0x350   : > { %v2673_v39 = vpop.f32.mrb[11].mxu1  ;;  %v5556_v30 = vadd.f32 %v5555_v7, %v5554_v34  ;;  %v5561_v12 = vsel %vm1476_vm10, %v8953_v47, 0.0 }
 0x351   : > { %v5557_v8 = vsel %vm1476_vm10, %v8957_v1, 0.0 }
 0x352   : > { %v5558_v59 = vadd.f32 %v5557_v8, %v5556_v30 }
 0x353   : > { %v6780_v20 = vpop.f32.mrb[8].mxu0 }
 0x354   : > { %v8961_v61 = vadd.f32 %v6780_v20, %v6610_v10  ;;  %v5421_v50 = vpop.f32.mrb[9].mxu0  ;;  %v5560_v2 = vadd.f32 %v5559_v36, %v5558_v59 }
 0x355   : > { %v6614_v15 = vpop.f32.mrb[12].mxu1  ;;  %v8965_v29 = vadd.f32 %v5421_v50, %v2670_v48  ;;  %v6781_v51 = vpop.f32.mrb[10].mxu0 }
 0x356   : > { %v2686_v38 = vpop.f32.mrb[13].mxu1  ;;  %v8967_v21 = vadd.f32 %v6781_v51, %v6611_v56  ;;  %v5424_v24 = vpop.f32.mrb[11].mxu0  ;;  %v5562_v45 = vadd.f32 %v5561_v12, %v5560_v2  ;;  %v5567_v26 = vsel %vm1476_vm10, %v8961_v61, 0.0 }
 0x357   : > { %v6615_v6 = vpop.f32.mrb[14].mxu1  ;;  %v8969_v55 = vadd.f32 %v5424_v24, %v2673_v39  ;;  %v5563_v35 = vsel %vm1476_vm10, %v8965_v29, 0.0 }
 0x358   : > { %v2689_v3 = vpop.f32.mrb[15].mxu1  ;;  %v5564_v4 = vadd.f32 %v5563_v35, %v5562_v45  ;;  %v5569_v19 = vsel %vm1476_vm10, %v8967_v21, 0.0 }
 0x359   : > { %v5565_v63 = vsel %vm1476_vm10, %v8969_v55, 0.0 }
 0x35a   : > { %v5566_v13 = vadd.f32 %v5565_v63, %v5564_v4 }
 0x35b   : > { %v6784_v31 = vpop.f32.mrb[12].mxu0 }
 0x35c   : > { %v8973_v44 = vadd.f32 %v6784_v31, %v6614_v15  ;;  %v5437_v54 = vpop.f32.mrb[13].mxu0  ;;  %v5568_v60 = vadd.f32 %v5567_v26, %v5566_v13 }
 0x35d   : > { %v8975_v5 = vadd.f32 %v5437_v54, %v2686_v38  ;;  %v6785_v22 = vpop.f32.mrb[14].mxu0 }
 0x35e   : > { %v8977_v28 = vadd.f32 %v6785_v22, %v6615_v6  ;;  %v5440_v25 = vpop.f32.mrb[15].mxu0  ;;  %v5570_v41 = vadd.f32 %v5569_v19, %v5568_v60  ;;  %v5575_v37 = vsel %vm1476_vm10, %v8973_v44, 0.0 }
 0x35f   : > { %v8981_v33 = vadd.f32 %v5440_v25, %v2689_v3  ;;  %v5571_v43 = vsel %vm1476_vm10, %v8975_v5, 0.0 }
 0x360   : > { %v5572_v52 = vadd.f32 %v5571_v43, %v5570_v41  ;;  %v5577_v15 = vsel %vm1476_vm10, %v8977_v28, 0.0 }
 0x361   : > { %v5573_v10 = vsel %vm1476_vm10, %v8981_v33, 0.0 }
 0x362   : > { %v5574_v16 = vadd.f32 %v5573_v10, %v5572_v52 }
 0x363   : > { %v6788_v14 = vpop.f32.mrb[16].mxu0 }
 0x364   : > { %v5453_v62 = vpop.f32.mrb[17].mxu0  ;;  %v5576_v34 = vadd.f32 %v5575_v37, %v5574_v16 }
 0x365   : > { %v6789_v32 = vpop.f32.mrb[18].mxu0 }
 0x366   : > { %v5456_v53 = vpop.f32.mrb[19].mxu0  ;;  %v5578_v24 = vadd.f32 %v5577_v15, %v5576_v34 }
 0x36b   : > { %v6792_v9 = vpop.f32.mrb[20].mxu0 }
 0x36c   : > { %v5469_v27 = vpop.f32.mrb[21].mxu0 }
 0x36d   : > { %v6793_v23 = vpop.f32.mrb[22].mxu0 }
 0x36e   : > { %v5472_v11 = vpop.f32.mrb[23].mxu0 }
 0x373   : > { %v6796_v18 = vpop.f32.mrb[24].mxu0 }
 0x374   : > { %v5485_v17 = vpop.f32.mrb[25].mxu0 }
 0x375   : > { %v6797_v42 = vpop.f32.mrb[26].mxu0 }
 0x376   : > { %v5488_v48 = vpop.f32.mrb[27].mxu0 }
 0x37b   : > { %v8997_v56 = vpop.f32.mrb[28].mxu0 }
 0x37c   : > { %v8999_v39 = vpop.f32.mrb[29].mxu0 }
 0x37d   : > { %v6652_v7 = vpop.f32.mrb[16].mxu1  ;;  %v9001_v20 = vpop.f32.mrb[30].mxu0 }
 0x37e   : > { %v9003_v30 = vadd.f32 %v6788_v14, %v6652_v7  ;;  %v3428_v50 = vpop.f32.mrb[17].mxu1  ;;  %v9005_v8 = vpop.f32.mrb[31].mxu0 }
 0x37f   : > { %v9009_v51 = vadd.f32 %v5453_v62, %v3428_v50  ;;  %v6653_v38 = vpop.f32.mrb[18].mxu1 }
 0x380   : > { %v9011_v6 = vadd.f32 %v6789_v32, %v6653_v38  ;;  %v3431_v59 = vpop.f32.mrb[19].mxu1  ;;  %v5583_v25 = vsel %vm1476_vm10, %v9003_v30, 0.0  ;;  %v7086_v60 = vpack.i.bf16 %v9003_v30, %v8935_v49 }
 0x381   : > { %v5579_v3 = vsel %vm1476_vm10, %v9009_v51, 0.0  ;;  %v9015_v36 = vadd.f32 %v5456_v53, %v3431_v59  ;;  %v7082_v31 = vpack.i.bf16 %v9009_v51, %v8937_v58 }
 0x382   : > { %v5580_v2 = vadd.f32 %v5579_v3, %v5578_v24  ;;  %v5585_v62 = vsel %vm1476_vm10, %v9011_v6, 0.0  ;;  %v7088_v52 = vpack.i.bf16 %v9011_v6, %v8939_v57 }
 0x383   : > { %v5581_v54 = vsel %vm1476_vm10, %v9015_v36, 0.0  ;;  %7083 = vxpose.xlu0.b32.start [1/16] (narrow) %v7082_v31, 8  ;;  %v7084_v12 = vpack.i.bf16 %v9015_v36, %v8941_v40 }
 0x384   : > { %v5582_v22 = vadd.f32 %v5581_v54, %v5580_v2 }
 0x385   : > { %v6656_v45 = vpop.f32.mrb[20].mxu1 }
 0x386   : > { %v5584_v35 = vadd.f32 %v5583_v25, %v5582_v22  ;;  %v9025_v14 = vadd.f32 %v6792_v9, %v6656_v45  ;;  %v3444_v4 = vpop.f32.mrb[21].mxu1 }
 0x387   : > { %v9029_v63 = vadd.f32 %v5469_v27, %v3444_v4  ;;  %7085 = vxpose.xlu0.b32.cont [2/16] (narrow) %v7084_v12, 8  ;;  %v6657_v32 = vpop.f32.mrb[22].mxu1 }
 0x388   : > { %v5586_v53 = vadd.f32 %v5585_v62, %v5584_v35  ;;  %v9031_v13 = vadd.f32 %v6793_v23, %v6657_v32  ;;  %v3447_v26 = vpop.f32.mrb[23].mxu1  ;;  %v5591_v23 = vsel %vm1476_vm10, %v9025_v14, 0.0 }
 0x389   : > { %v5587_v19 = vsel %vm1476_vm10, %v9029_v63, 0.0  ;;  %v9037_v9 = vadd.f32 %v5472_v11, %v3447_v26  ;;  %v7090_v59 = vpack.i.bf16 %v9029_v63, %v8951_v0  ;;  %v7094_v26 = vpack.i.bf16 %v9025_v14, %v8949_v46 }
 0x38a   : > { %v5588_v41 = vadd.f32 %v5587_v19, %v5586_v53  ;;  %v5593_v11 = vsel %vm1476_vm10, %v9031_v13, 0.0 }
 0x38b   : > { %v5589_v43 = vsel %vm1476_vm10, %v9037_v9, 0.0  ;;  %7087 = vxpose.xlu0.b32.cont [3/16] (narrow) %v7086_v60, 8  ;;  %v7092_v54 = vpack.i.bf16 %v9037_v9, %v8957_v1 }
 0x38c   : > { %v5590_v27 = vadd.f32 %v5589_v43, %v5588_v41 }
 0x38d   : > { %v6660_v10 = vpop.f32.mrb[24].mxu1 }
 0x38e   : > { %v5592_v16 = vadd.f32 %v5591_v23, %v5590_v27  ;;  %v9045_v37 = vadd.f32 %v6796_v18, %v6660_v10  ;;  %v3460_v34 = vpop.f32.mrb[25].mxu1 }
 0x38f   : > { %v9049_v7 = vadd.f32 %v5485_v17, %v3460_v34  ;;  %7089 = vxpose.xlu0.b32.cont [4/16] (narrow) %v7088_v52, 8  ;;  %v6661_v50 = vpop.f32.mrb[26].mxu1 }
 0x390   : > { %v5594_v15 = vadd.f32 %v5593_v11, %v5592_v16  ;;  %v9051_v38 = vadd.f32 %v6797_v42, %v6661_v50  ;;  %v3463_v24 = vpop.f32.mrb[27].mxu1  ;;  %v5599_v42 = vsel %vm1476_vm10, %v9045_v37, 0.0 }
 0x391   : > { %v5595_v3 = vsel %vm1476_vm10, %v9049_v7, 0.0  ;;  %v9057_v18 = vadd.f32 %v5488_v48, %v3463_v24 }
 0x392   : > { %v5596_v31 = vadd.f32 %v5595_v3, %v5594_v15  ;;  %v5601_v48 = vsel %vm1476_vm10, %v9051_v38, 0.0  ;;  %v7102_v15 = vpack.i.bf16 %v9045_v37, %v8961_v61 }
 0x393   : > { %v5597_v2 = vsel %vm1476_vm10, %v9057_v18, 0.0  ;;  %7091 = vxpose.xlu0.b32.cont [5/16] (narrow) %v7090_v59, 8  ;;  %v7100_v34 = vpack.i.bf16 %v9057_v18, %v8969_v55  ;;  %v7104_v59 = vpack.i.bf16 %v9051_v38, %v8967_v21 }
 0x394   : > { %v5598_v17 = vadd.f32 %v5597_v2, %v5596_v31 }
 0x395   : > { %v6664_v22 = vpop.f32.mrb[28].mxu1 }
 0x396   : > { %v5600_v25 = vadd.f32 %v5599_v42, %v5598_v17  ;;  %v9066_v12 = vadd.f32 %v8997_v56, %v6664_v22  ;;  %v3476_v45 = vpop.f32.mrb[29].mxu1 }
 0x397   : > { %v9071_v35 = vadd.f32 %v8999_v39, %v3476_v45  ;;  %7093 = vxpose.xlu0.b32.cont [6/16] (narrow) %v7092_v54, 8  ;;  %v6665_v4 = vpop.f32.mrb[30].mxu1 }
 0x398   : > { %v5602_v62 = vadd.f32 %v5601_v48, %v5600_v25  ;;  %v9074_v32 = vadd.f32 %v9001_v20, %v6665_v4  ;;  %v3479_v53 = vpop.f32.mrb[31].mxu1  ;;  %v7096_v20 = vpack.i.bf16 %v9031_v13, %v8953_v47  ;;  %v5607_v43 = vsel %vm1476_vm10, %v9066_v12, 0.0 }
 0x399   : > { %v5603_v56 = vsel %vm1476_vm10, %v9071_v35, 0.0  ;;  %v9081_v60 = vadd.f32 %v9005_v8, %v3479_v53  ;;  %v7098_v8 = vpack.i.bf16 %v9049_v7, %v8965_v29  ;;  %v7106_v31 = vpack.i.bf16 %v9071_v35, %v8975_v5 }
 0x39a   : > { %v5604_v19 = vadd.f32 %v5603_v56, %v5602_v62  ;;  %v5609_v52 = vsel %vm1476_vm10, %v9074_v32, 0.0  ;;  %v7110_v22 = vpack.i.bf16 %v9066_v12, %v8973_v44  ;;  %v7112_v62 = vpack.i.bf16 %v9074_v32, %v8977_v28 }
 0x39b   : > { %v5605_v39 = vsel %vm1476_vm10, %v9081_v60, 0.0  ;;  %7095 = vxpose.xlu0.b32.cont [7/16] (narrow) %v7094_v26, 8  ;;  %v7108_v17 = vpack.i.bf16 %v9081_v60, %v8981_v33 }
 0x39c   : > { %v5606_v41 = vadd.f32 %v5605_v39, %v5604_v19 }
 0x39e   : > { %v5608_v27 = vadd.f32 %v5607_v43, %v5606_v41 }
 0x39f   : > { %7097 = vxpose.xlu0.b32.cont [8/16] (narrow) %v7096_v20, 8 }
 0x3a0   : > { %v5610_v23 = vadd.f32 %v5609_v52, %v5608_v27 }
 0x3a2   : > { %v5611_v10 = vrot.slane %v5610_v23, 4 }
 0x3a3   : > { %7099 = vxpose.xlu0.b32.cont [9/16] (narrow) %v7098_v8, 8 }
 0x3a4   : > { %v5612_v16 = vadd.f32 %v5611_v10, %v5610_v23 }
 0x3a6   : > { %v5613_v11 = vrot.slane %v5612_v16, 2 }
 0x3a7   : > { %7101 = vxpose.xlu0.b32.cont [10/16] (narrow) %v7100_v34, 8 }
 0x3a8   : > { %v5614_v50 = vadd.f32 %v5613_v11, %v5612_v16 }
 0x3aa   : > { %v5615_v24 = vrot.slane %v5614_v50, 1 }
 0x3ab   : > { %7103 = vxpose.xlu0.b32.cont [11/16] (narrow) %v7102_v15, 8 }
 0x3ac   : > { %v9099_v3 = vadd.f32 %v5615_v24, %v5614_v50 }
 0x3ae   : > { %v9104_v2 = vmul.f32 0.00390625, %v9099_v3 }
 0x3af   : > { %7105 = vxpose.xlu0.b32.cont [12/16] (narrow) %v7104_v59, 8 }
 0x3b0   : > { %v5618_v54 = vsub.f32 %v8937_v58, %v9104_v2  ;;  %v5619_v42 = vsub.f32 %v8941_v40, %v9104_v2  ;;  %v5620_v25 = vsub.f32 %v8935_v49, %v9104_v2  ;;  %v5621_v45 = vsub.f32 %v8939_v57, %v9104_v2 }
 0x3b1   : > { %v5622_v58 = vsub.f32 %v8951_v0, %v9104_v2  ;;  %v5623_v40 = vsub.f32 %v8957_v1, %v9104_v2  ;;  %v5624_v57 = vsub.f32 %v8949_v46, %v9104_v2  ;;  %v5625_v0 = vsub.f32 %v8953_v47, %v9104_v2 }
 0x3b2   : > { %v5650_v48 = vmul.f32 %v5618_v54, %v5618_v54  ;;  %v5651_v4 = vmul.f32 %v5619_v42, %v5619_v42  ;;  %v5652_v53 = vmul.f32 %v5620_v25, %v5620_v25  ;;  %v5653_v26 = vmul.f32 %v5621_v45, %v5621_v45 }
 0x3b3   : > { %7107 = vxpose.xlu0.b32.cont [13/16] (narrow) %v7106_v31, 8  ;;  %v5654_v39 = vmul.f32 %v5622_v58, %v5622_v58  ;;  %v5655_v43 = vmul.f32 %v5623_v40, %v5623_v40  ;;  %v5626_v52 = vsub.f32 %v8965_v29, %v9104_v2  ;;  %v5656_v23 = vmul.f32 %v5624_v57, %v5624_v57 }
 0x3b4   : > { %v5682_v49 = vsel %vm1476_vm10, %v5650_v48, 0.0  ;;  %v5683_v56 = vsel %vm1476_vm10, %v5651_v4, 0.0  ;;  %v5685_v41 = vsel %vm1476_vm10, %v5652_v53, 0.0  ;;  %v5687_v27 = vsel %vm1476_vm10, %v5653_v26, 0.0 }
 0x3b5   : > { %v5684_v19 = vadd.f32 %v5683_v56, %v5682_v49  ;;  %v5689_v8 = vsel %vm1476_vm10, %v5654_v39, 0.0  ;;  %v5627_v46 = vsub.f32 %v8969_v55, %v9104_v2  ;;  %v5657_v16 = vmul.f32 %v5625_v0, %v5625_v0 }
 0x3b6   : > { %v5691_v34 = vsel %vm1476_vm10, %v5655_v43, 0.0  ;;  %v5628_v47 = vsub.f32 %v8961_v61, %v9104_v2  ;;  %v5658_v50 = vmul.f32 %v5626_v52, %v5626_v52  ;;  %v5693_v15 = vsel %vm1476_vm10, %v5656_v23, 0.0 }
 0x3b7   : > { %7109 = vxpose.xlu0.b32.cont [14/16] (narrow) %v7108_v17, 8  ;;  %v5686_v20 = vadd.f32 %v5685_v41, %v5684_v19  ;;  %v5629_v29 = vsub.f32 %v8967_v21, %v9104_v2  ;;  %v5659_v59 = vmul.f32 %v5627_v46, %v5627_v46  ;;  %v5695_v31 = vsel %vm1476_vm10, %v5657_v16, 0.0 }
 0x3b8   : > { %v5630_v55 = vsub.f32 %v8975_v5, %v9104_v2  ;;  %v5660_v54 = vmul.f32 %v5628_v47, %v5628_v47  ;;  %v5697_v42 = vsel %vm1476_vm10, %v5658_v50, 0.0  ;;  %v5631_v61 = vsub.f32 %v8981_v33, %v9104_v2 }
 0x3b9   : > { %v5688_v1 = vadd.f32 %v5687_v27, %v5686_v20  ;;  %v5661_v25 = vmul.f32 %v5629_v29, %v5629_v29  ;;  %v5699_v45 = vsel %vm1476_vm10, %v5659_v59, 0.0  ;;  %v5632_v21 = vsub.f32 %v8973_v44, %v9104_v2 }
 0x3ba   : > { %v5662_v4 = vmul.f32 %v5630_v55, %v5630_v55  ;;  %v5633_v5 = vsub.f32 %v8977_v28, %v9104_v2  ;;  %v5663_v53 = vmul.f32 %v5631_v61, %v5631_v61  ;;  %v5634_v33 = vsub.f32 %v9009_v51, %v9104_v2 }
 0x3bb   : > { %7111 = vxpose.xlu0.b32.cont [15/16] (narrow) %v7110_v22, 8  ;;  %v5690_v10 = vadd.f32 %v5689_v8, %v5688_v1  ;;  %v5703_v40 = vsel %vm1476_vm10, %v5661_v25, 0.0  ;;  %v5664_v49 = vmul.f32 %v5632_v21, %v5632_v21  ;;  %v5635_v44 = vsub.f32 %v9015_v36, %v9104_v2 }
 0x3bc   : > { %v5705_v56 = vsel %vm1476_vm10, %v5662_v4, 0.0  ;;  %v5665_v57 = vmul.f32 %v5633_v5, %v5633_v5  ;;  %v5707_v39 = vsel %vm1476_vm10, %v5663_v53, 0.0  ;;  %v5636_v28 = vsub.f32 %v9003_v30, %v9104_v2 }
 0x3bd   : > { %v5692_v11 = vadd.f32 %v5691_v34, %v5690_v10  ;;  %v5666_v20 = vmul.f32 %v5634_v33, %v5634_v33  ;;  %v5709_v0 = vsel %vm1476_vm10, %v5664_v49, 0.0  ;;  %v5637_v51 = vsub.f32 %v9011_v6, %v9104_v2 }
 0x3be   : > { %v5667_v27 = vmul.f32 %v5635_v44, %v5635_v44  ;;  %v5711_v1 = vsel %vm1476_vm10, %v5665_v57, 0.0  ;;  %v5638_v36 = vsub.f32 %v9029_v63, %v9104_v2  ;;  %v5668_v23 = vmul.f32 %v5636_v28, %v5636_v28 }
 0x3bf   : > { %7113 = vxpose.xlu0.b32.end [16/16] (narrow) %v7112_v62, 8  ;;  %v5694_v24 = vadd.f32 %v5693_v15, %v5692_v11  ;;  %v5701_v62 = vsel %vm1476_vm10, %v5660_v54, 0.0  ;;  %v5713_v8 = vsel %vm1476_vm10, %v5666_v20, 0.0  ;;  %v5639_v30 = vsub.f32 %v9037_v9, %v9104_v2 }
 0x3c0   : > { %v5669_v46 = vmul.f32 %v5637_v51, %v5637_v51  ;;  %v5715_v16 = vsel %vm1476_vm10, %v5667_v27, 0.0  ;;  %v5640_v6 = vsub.f32 %v9025_v14, %v9104_v2  ;;  %v5670_v11 = vmul.f32 %v5638_v36, %v5638_v36 }
 0x3c1   : > { %v5696_v17 = vadd.f32 %v5695_v31, %v5694_v24  ;;  %v5717_v47 = vsel %vm1476_vm10, %v5668_v23, 0.0  ;;  %v5641_v63 = vsub.f32 %v9031_v13, %v9104_v2  ;;  %v5671_v15 = vmul.f32 %v5639_v30, %v5639_v30 }
 0x3c2   : > { %v5719_v24 = vsel %vm1476_vm10, %v5669_v46, 0.0  ;;  %v5642_v9 = vsub.f32 %v9049_v7, %v9104_v2  ;;  %v5672_v59 = vmul.f32 %v5640_v6, %v5640_v6  ;;  %v5721_v31 = vsel %vm1476_vm10, %v5670_v11, 0.0 }
 0x3c3   : > { %v5698_v22 = vadd.f32 %v5697_v42, %v5696_v17  ;;  %v5643_v14 = vsub.f32 %v9057_v18, %v9104_v2  ;;  %v5673_v55 = vmul.f32 %v5641_v63, %v5641_v63  ;;  %v5723_v54 = vsel %vm1476_vm10, %v5671_v15, 0.0 }
 0x3c4   : > { %v5644_v13 = vsub.f32 %v9045_v37, %v9104_v2  ;;  %v5725_v61 = vsel %vm1476_vm10, %v5672_v59, 0.0  ;;  %v5645_v7 = vsub.f32 %v9051_v38, %v9104_v2  ;;  %v5646_v18 = vsub.f32 %v9071_v35, %v9104_v2 }
 0x3c5   : > { %v5700_v48 = vadd.f32 %v5699_v45, %v5698_v22  ;;  %v5674_v22 = vmul.f32 %v5642_v9, %v5642_v9  ;;  %v5675_v45 = vmul.f32 %v5643_v14, %v5643_v14  ;;  %v5647_v37 = vsub.f32 %v9081_v60, %v9104_v2 }
 0x3c6   : > { %v5676_v4 = vmul.f32 %v5644_v13, %v5644_v13  ;;  %v5677_v5 = vmul.f32 %v5645_v7, %v5645_v7  ;;  %v5648_v38 = vsub.f32 %v9066_v12, %v9104_v2  ;;  %v5649_v35 = vsub.f32 %v9074_v32, %v9104_v2 }
 0x3c7   : > { %v5702_v58 = vadd.f32 %v5701_v62, %v5700_v48  ;;  %v5727_v48 = vsel %vm1476_vm10, %v5673_v55, 0.0  ;;  %v5729_v62 = vsel %vm1476_vm10, %v5674_v22, 0.0  ;;  %v5731_v53 = vsel %vm1476_vm10, %v5675_v45, 0.0 }
 0x3c8   : > { %v5733_v33 = vsel %vm1476_vm10, %v5676_v4, 0.0  ;;  %v5680_v57 = vmul.f32 %v5648_v38, %v5648_v38 }
 0x3c9   : > { %v5704_v26 = vadd.f32 %v5703_v40, %v5702_v58 }
 0x3ca   : > { %v5741_v20 = vsel %vm1476_vm10, %v5680_v57, 0.0 }
 0x3cb   : > { %v5706_v19 = vadd.f32 %v5705_v56, %v5704_v26  ;;  %v5678_v26 = vmul.f32 %v5646_v18, %v5646_v18  ;;  %v5679_v56 = vmul.f32 %v5647_v37, %v5647_v37 }
 0x3cd   : > { %v5708_v41 = vadd.f32 %v5707_v39, %v5706_v19  ;;  %v5735_v19 = vsel %vm1476_vm10, %v5677_v5, 0.0  ;;  %v5737_v60 = vsel %vm1476_vm10, %v5678_v26, 0.0  ;;  %v5739_v12 = vsel %vm1476_vm10, %v5679_v56, 0.0 }
 0x3cf   : > { %v5710_v43 = vadd.f32 %v5709_v0, %v5708_v41  ;;  %v5681_v41 = vmul.f32 %v5649_v35, %v5649_v35 }
 0x3d1   : > { %v5712_v52 = vadd.f32 %v5711_v1, %v5710_v43  ;;  %v5743_v43 = vsel %vm1476_vm10, %v5681_v41, 0.0 }
 0x3d3   : > { %v5714_v10 = vadd.f32 %v5713_v8, %v5712_v52 }
 0x3d5   : > { %v5716_v34 = vadd.f32 %v5715_v16, %v5714_v10 }
 0x3d7   : > { %v5718_v50 = vadd.f32 %v5717_v47, %v5716_v34 }
 0x3d9   : > { %v5720_v29 = vadd.f32 %v5719_v24, %v5718_v50 }
 0x3db   : > { %v5722_v17 = vadd.f32 %v5721_v31, %v5720_v29 }
 0x3dd   : > { %v5724_v42 = vadd.f32 %v5723_v54, %v5722_v17 }
 0x3df   : > { %v5726_v25 = vadd.f32 %v5725_v61, %v5724_v42 }
 0x3e1   : > { %v5728_v21 = vadd.f32 %v5727_v48, %v5726_v25 }
 0x3e3   : > { %v5730_v58 = vadd.f32 %v5729_v62, %v5728_v21 }
 0x3e5   : > { %v5732_v40 = vadd.f32 %v5731_v53, %v5730_v58 }
 0x3e7   : > { %v5734_v49 = vadd.f32 %v5733_v33, %v5732_v40 }
 0x3e9   : > { %v5736_v44 = vadd.f32 %v5735_v19, %v5734_v49 }
 0x3eb   : > { %v5738_v39 = vadd.f32 %v5737_v60, %v5736_v44 }
 0x3ed   : > { %v5740_v28 = vadd.f32 %v5739_v12, %v5738_v39 }
 0x3ef   : > { %v5742_v0 = vadd.f32 %v5741_v20, %v5740_v28 }
 0x3f1   : > { %v5744_v32 = vadd.f32 %v5743_v43, %v5742_v0 }
 0x3f3   : > { %v5745_v2 = vrot.slane %v5744_v32, 4 }
 0x3f5   : > { %v5746_v51 = vadd.f32 %v5745_v2, %v5744_v32 }
 0x3f7   : > { %v5747_v27 = vrot.slane %v5746_v51, 2 }
 0x3f9   : > { %v5748_v23 = vadd.f32 %v5747_v27, %v5746_v51 }
 0x3fb   : > { %v5749_v10 = vrot.slane %v5748_v23, 1 }
 0x3fd   : > { %v5750_v30 = vadd.f32 %v5749_v10, %v5748_v23 }
 0x3ff   : > { %v5752_v46 = vsel %vm5751_vm0, %v9099_v3, %v5750_v30 }
 0x400   : > { %5754 = vst.msk [vmem:[%s235_s11] sm:$0x3] %vm5753_vm2, %v5752_v46 }
 0x403   : > { %v7114_v1 = vpop.trf.xlu0 }
 0x404   : > { %v7118_v52 = vunpack.i.h.bf16 %v7114_v1  ;;  %v7115_v36 = vunpack.i.l.bf16 %v7114_v1 }
 0x406   : > { %v6305_v8 = vpack.c.bf16 %v7118_v52, %v7115_v36 }
 0x408   : > { %6306 = vst.sshfl [vmem:[%s231_s7] sm:$0x33 pattern:$0x76325410] %v6305_v8 }
 0x409 PF: > { %s16_s18 = sadd.s32 1, %s7227_s18  }
 0x40a   : > { %p13_p4 = scmp.ge.s32.totalorder %s16_s18, 4  }
 0x40c   :  { %15 = sbr.rel (!%p13_p4) target bundleno = 1 (0x1), region = 89 }

</bundles_post_ra>
